<compile_context>
chip_gen: v6e
topology: v6e:2x2x1
jax: 0.10.0
libtpu: 0.0.40
codegen_flags: <defaults>
</compile_context>

<pallas_src>
import numpy as np
import jax
import jax.numpy as jnp
from jax.experimental import pallas as pl
from jax.experimental.pallas import tpu as pltpu


# ----------------------------------------------------------------------------- helpers
def _round_up(x, m):
    return (x + m - 1) // m * m


def _roll_rows(x, off):
    """y[p] = x[(p + off) mod n] along axis 0 (sublane rotation via slice+concat)."""
    n = x.shape[0]
    off = off % n
    if off == 0:
        return x
    return jnp.concatenate([x[off:], x[:off]], axis=0)


# ----------------------------------------------------------------------------- kernel
def _make_kernel(H, W, Ho, Wo, stride, Dp, conv_shortcut):
    HW = H * W

    def kernel(*refs):
        it = iter(refs)
        x_ref = next(it)          # (1, HW, Cp)   f32
        w1_ref = next(it)         # (Cp, 9*Dp)    bf16
        w2_ref = next(it)         # (Dp, 9*Dp)    bf16  (BN2 scale folded)
        mask_ref = next(it)       # (9, HW, 1)    f32   (edge/padding masks)
        alpha_ref = next(it)      # (1, Dp)       f32   (PReLU)
        bn1s_ref = next(it)       # (1, Cp)       f32
        bn1b_ref = next(it)       # (1, Cp)       f32
        bn2b_ref = next(it)       # (1, Dp)       f32
        if stride > 1:
            xsc_ref = next(it)    # (1, HoWo, Cp) f32   (strided subsample of x)
            csel_ref = next(it)   # (Wo, W)       f32   (column pick matrix)
        if conv_shortcut:
            wsc_ref = next(it)    # (Cp, Dp)      bf16  (shortcut-BN scale folded)
            bnscb_ref = next(it)  # (1, Dp)       f32
        out_ref = next(it)        # (1, HoWo, Dp) f32
        acc1_ref = next(it)       # (HW, Dp)      f32 scratch
        acc2_ref = next(it)       # (HW, Dp)      f32 scratch

        def accumulate_taps(t, acc_ref):
            # t: (HW, 9*Dp) f32.  Tap k = dy*3+dx has spatial offset (dy-1, dx-1):
            #   acc[p] = sum_k mask_k[p] * t[p + (dy-1)*W + (dx-1), k*Dp:(k+1)*Dp]
            for dy in range(3):
                for dx in range(3):
                    k = dy * 3 + dx
                    off = (dy - 1) * W + (dx - 1)
                    slab = t[:, k * Dp:(k + 1) * Dp]
                    contrib = _roll_rows(slab, off) * mask_ref[k]
                    if k == 0:
                        acc_ref[...] = contrib
                    else:
                        acc_ref[...] += contrib

        xf = x_ref[0]                                          # (HW, Cp)

        # --- BN1 (eval mode, running stats) ---
        xbn = xf * bn1s_ref[...] + bn1b_ref[...]

        # --- conv1 3x3 stride 1 pad 1: one wide bf16 matmul + 9 shift/mask adds ---
        t1 = jnp.dot(xbn.astype(jnp.bfloat16), w1_ref[...],
                     preferred_element_type=jnp.float32)       # (HW, 9*Dp)
        accumulate_taps(t1, acc1_ref)

        # --- PReLU (per-channel alpha) ---
        a1 = acc1_ref[...]
        a1 = jnp.where(a1 > 0, a1, a1 * alpha_ref[...])

        # --- conv2 3x3 pad 1 at stride 1 (BN2 scale folded into w2) ---
        t2 = jnp.dot(a1.astype(jnp.bfloat16), w2_ref[...],
                     preferred_element_type=jnp.float32)       # (HW, 9*Dp)
        accumulate_taps(t2, acc2_ref)
        res_full = acc2_ref[...] + bn2b_ref[...]               # (HW, Dp)

        # --- strided output selection (only when stride > 1) ---
        if stride > 1:
            rows = []
            for ho in range(Ho):
                r = res_full[ho * stride * W: ho * stride * W + W, :]        # (W, Dp)
                rows.append(jnp.dot(csel_ref[...], r,
                                    preferred_element_type=jnp.float32))     # (Wo, Dp)
            res = jnp.concatenate(rows, axis=0)                # (HoWo, Dp)
            xsc = xsc_ref[0]                                   # (HoWo, Cp)
        else:
            res = res_full
            xsc = xf

        # --- shortcut: 1x1 conv + BN  OR  plain (strided) identity (MaxPool(1,s)) ---
        if conv_shortcut:
            sc = jnp.dot(xsc.astype(jnp.bfloat16), wsc_ref[...],
                         preferred_element_type=jnp.float32) + bnscb_ref[...]
        else:
            sc = xsc

        out_ref[0] = (res + sc).astype(out_ref.dtype)

    return kernel


# ----------------------------------------------------------------------------- glue
def _bn_scale_shift(g, b, m, v, eps=1e-5):
    s = (g / jnp.sqrt(v + eps)).astype(jnp.float32)
    return s, (b - m * s).astype(jnp.float32)


def _pad1d(v, n):
    return jnp.pad(v, (0, n - v.shape[0]))


def _build_masks(H, W):
    """mask[k, h*W+w] = 1 iff input pixel (h+dy-1, w+dx-1) is inside the image."""
    HW = H * W
    m = np.zeros((9, HW, 1), np.float32)
    for dy in range(3):
        for dx in range(3):
            k = dy * 3 + dx
            for h in range(H):
                hh = h + dy - 1
                if not (0 <= hh < H):
                    continue
                for w in range(W):
                    if 0 <= w + dx - 1 < W:
                        m[k, h * W + w, 0] = 1.0
    return jnp.asarray(m)


def bottleneck_ir_forward(x_nchw, p, stride):
    """Pallas forward of bottleneck_IR (eval-mode BN).  x_nchw: (N, Cin, H, W) f32."""
    N, Cin, H, W = x_nchw.shape
    D = p['w1'].shape[0]
    conv_shortcut = (Cin != D)
    Ho = (H - 1) // stride + 1
    Wo = (W - 1) // stride + 1
    HW, HoWo = H * W, Ho * Wo
    Cp = _round_up(Cin, 128)            # lane-dense channel padding
    Dp = _round_up(D, 128)

    # activations: NCHW -> flattened NHWC, channel-padded
    xf = jnp.transpose(x_nchw, (0, 2, 3, 1)).reshape(N, HW, Cin).astype(jnp.float32)
    xf = jnp.pad(xf, ((0, 0), (0, 0), (0, Cp - Cin)))

    # conv1 weights OIHW -> (Cp, 9*Dp) wide-matmul form (tap k = dy*3+dx)
    w1_taps = jnp.transpose(p['w1'].astype(jnp.float32), (2, 3, 1, 0)).reshape(9, Cin, D)
    w1_taps = jnp.pad(w1_taps, ((0, 0), (0, Cp - Cin), (0, Dp - D)))
    w1cat = jnp.transpose(w1_taps, (1, 0, 2)).reshape(Cp, 9 * Dp).astype(jnp.bfloat16)

    bn1s, bn1b = _bn_scale_shift(p['bn1_g'], p['bn1_b'], p['bn1_m'], p['bn1_v'])
    bn1s = _pad1d(bn1s, Cp).reshape(1, Cp)
    bn1b = _pad1d(bn1b, Cp).reshape(1, Cp)
    bn2s, bn2b = _bn_scale_shift(p['bn2_g'], p['bn2_b'], p['bn2_m'], p['bn2_v'])

    # conv2 weights with BN2 scale folded into output channels
    w2_taps = jnp.transpose(p['w2'].astype(jnp.float32), (2, 3, 1, 0)).reshape(9, D, D)
    w2_taps = w2_taps * bn2s[None, None, :]
    w2_taps = jnp.pad(w2_taps, ((0, 0), (0, Dp - D), (0, Dp - D)))
    w2cat = jnp.transpose(w2_taps, (1, 0, 2)).reshape(Dp, 9 * Dp).astype(jnp.bfloat16)
    bn2b = _pad1d(bn2b, Dp).reshape(1, Dp)

    alpha = _pad1d(p['alpha'].astype(jnp.float32), Dp).reshape(1, Dp)
    masks = _build_masks(H, W)

    inputs = [xf, w1cat, w2cat, masks, alpha, bn1s, bn1b, bn2b]
    in_specs = [
        pl.BlockSpec((1, HW, Cp), lambda n: (n, 0, 0)),
        pl.BlockSpec((Cp, 9 * Dp), lambda n: (0, 0)),
        pl.BlockSpec((Dp, 9 * Dp), lambda n: (0, 0)),
        pl.BlockSpec((9, HW, 1), lambda n: (0, 0, 0)),
        pl.BlockSpec((1, Dp), lambda n: (0, 0)),
        pl.BlockSpec((1, Cp), lambda n: (0, 0)),
        pl.BlockSpec((1, Cp), lambda n: (0, 0)),
        pl.BlockSpec((1, Dp), lambda n: (0, 0)),
    ]

    if stride > 1:
        # strided subsample of x at output resolution (layout plumbing in the wrapper)
        xsc = xf.reshape(N, H, W, Cp)[:, ::stride, ::stride, :].reshape(N, HoWo, Cp)
        csel = np.zeros((Wo, W), np.float32)
        csel[np.arange(Wo), np.arange(Wo) * stride] = 1.0
        inputs += [xsc, jnp.asarray(csel)]
        in_specs += [
            pl.BlockSpec((1, HoWo, Cp), lambda n: (n, 0, 0)),
            pl.BlockSpec((Wo, W), lambda n: (0, 0)),
        ]

    if conv_shortcut:
        bnscs, bnscb = _bn_scale_shift(p['bnsc_g'], p['bnsc_b'], p['bnsc_m'], p['bnsc_v'])
        wsc = p['wsc'][:, :, 0, 0].T.astype(jnp.float32) * bnscs[None, :]      # (Cin, D)
        wsc = jnp.pad(wsc, ((0, Cp - Cin), (0, Dp - D))).astype(jnp.bfloat16)
        bnscb = _pad1d(bnscb, Dp).reshape(1, Dp)
        inputs += [wsc, bnscb]
        in_specs += [
            pl.BlockSpec((Cp, Dp), lambda n: (0, 0)),
            pl.BlockSpec((1, Dp), lambda n: (0, 0)),
        ]

    out = pl.pallas_call(
        _make_kernel(H, W, Ho, Wo, stride, Dp, conv_shortcut),
        out_shape=jax.ShapeDtypeStruct((N, HoWo, Dp), jnp.float32),
        grid_spec=pltpu.PrefetchScalarGridSpec(
            num_scalar_prefetch=0,
            grid=(N,),
            in_specs=in_specs,
            out_specs=pl.BlockSpec((1, HoWo, Dp), lambda n: (n, 0, 0)),
            scratch_shapes=[pltpu.VMEM((HW, Dp), jnp.float32),
                            pltpu.VMEM((HW, Dp), jnp.float32)],
        ),
        compiler_params=pltpu.CompilerParams(
            dimension_semantics=("parallel",),
            vmem_limit_bytes=64 * 1024 * 1024,
        ),
    )(*inputs)

    out = out[:, :, :D].reshape(N, Ho, Wo, D)      # drop channel padding
    return jnp.transpose(out, (0, 3, 1, 2))        # -> NCHW


# ----------------------------------------------------------------------------- reference (pure JAX)
def reference_forward(x, p, stride):
    eps = 1e-5
    dn = ('NCHW', 'OIHW', 'NCHW')
    hi = jax.lax.Precision.HIGHEST

    def bn(y, g, b, m, v):
        s = (g / jnp.sqrt(v + eps))[None, :, None, None]
        return (y - m[None, :, None, None]) * s + b[None, :, None, None]

    Cin, D = x.shape[1], p['w1'].shape[0]
    r = bn(x, p['bn1_g'], p['bn1_b'], p['bn1_m'], p['bn1_v'])
    r = jax.lax.conv_general_dilated(r, p['w1'], (1, 1), ((1, 1), (1, 1)),
                                     dimension_numbers=dn, precision=hi)
    r = jnp.where(r > 0, r, p['alpha'][None, :, None, None] * r)
    r = jax.lax.conv_general_dilated(r, p['w2'], (stride, stride), ((1, 1), (1, 1)),
                                     dimension_numbers=dn, precision=hi)
    r = bn(r, p['bn2_g'], p['bn2_b'], p['bn2_m'], p['bn2_v'])
    if Cin == D:
        sc = x[:, :, ::stride, ::stride]
    else:
        sc = jax.lax.conv_general_dilated(x, p['wsc'], (stride, stride), ((0, 0), (0, 0)),
                                          dimension_numbers=dn, precision=hi)
        sc = bn(sc, p['bnsc_g'], p['bnsc_b'], p['bnsc_m'], p['bnsc_v'])
    return r + sc


def _make_params(key, Cin, D):
    ks = jax.random.split(key, 16)

    def pos(k, shape):
        return 0.5 + jnp.abs(jax.random.normal(k, shape, jnp.float32)) * 0.5

    return {
        'w1':  jax.random.normal(ks[0], (D, Cin, 3, 3), jnp.float32) * 0.1,
        'w2':  jax.random.normal(ks[1], (D, D, 3, 3), jnp.float32) * 0.1,
        'wsc': jax.random.normal(ks[2], (D, Cin, 1, 1), jnp.float32) * 0.1,
        'alpha': 0.25 + 0.05 * jax.random.normal(ks[3], (D,), jnp.float32),
        'bn1_g': 1.0 + 0.1 * jax.random.normal(ks[4], (Cin,), jnp.float32),
        'bn1_b': 0.1 * jax.random.normal(ks[5], (Cin,), jnp.float32),
        'bn1_m': 0.1 * jax.random.normal(ks[6], (Cin,), jnp.float32),
        'bn1_v': pos(ks[7], (Cin,)),
        'bn2_g': 1.0 + 0.1 * jax.random.normal(ks[8], (D,), jnp.float32),
        'bn2_b': 0.1 * jax.random.normal(ks[9], (D,), jnp.float32),
        'bn2_m': 0.1 * jax.random.normal(ks[10], (D,), jnp.float32),
        'bn2_v': pos(ks[11], (D,)),
        'bnsc_g': 1.0 + 0.1 * jax.random.normal(ks[12], (D,), jnp.float32),
        'bnsc_b': 0.1 * jax.random.normal(ks[13], (D,), jnp.float32),
        'bnsc_m': 0.1 * jax.random.normal(ks[14], (D,), jnp.float32),
        'bnsc_v': pos(ks[15], (D,)),
    }


# ----------------------------------------------------------------------------- main
if __name__ == "__main__":
    key = jax.random.PRNGKey(0)
    k_x1, k_p1, k_x2, k_p2 = jax.random.split(key, 4)

    # bf16 MXU operands (f32 accumulation) -> slightly looser tolerance vs the
    # HIGHEST-precision f32 reference.
    TOL = dict(rtol=2e-2, atol=2e-2)

    # config A: in_channel != depth, stride 2  (1x1-conv+BN shortcut, downsample)
    N, Cin, D, H, W, stride = 2, 4, 8, 16, 16, 2
    x = jax.random.normal(k_x1, (N, Cin, H, W), jnp.float32)
    params = _make_params(k_p1, Cin, D)
    out = jax.block_until_ready(bottleneck_ir_forward(x, params, stride))
    ref = jax.block_until_ready(reference_forward(x, params, stride))
    np.testing.assert_allclose(np.asarray(out), np.asarray(ref), **TOL)

    # config B: in_channel == depth, stride 1  (identity / MaxPool(1,1) shortcut)
    N, Cin, D, H, W, stride = 2, 8, 8, 16, 16, 1
    x = jax.random.normal(k_x2, (N, Cin, H, W), jnp.float32)
    params = _make_params(k_p2, Cin, D)
    out = jax.block_until_ready(bottleneck_ir_forward(x, params, stride))
    ref = jax.block_until_ready(reference_forward(x, params, stride))
    np.testing.assert_allclose(np.asarray(out), np.asarray(ref), **TOL)

    print("KERNEL_OK")
</pallas_src>

<mosaic_0001>
module attributes {stable_mosaic.version = 11 : i64} {
  func.func @kernel(%arg0: i32, %arg1: memref<1x256x128xf32, #tpu.memory_space<vmem>>, %arg2: memref<128x1152xbf16, #tpu.memory_space<vmem>>, %arg3: memref<128x1152xbf16, #tpu.memory_space<vmem>>, %arg4: memref<9x256x1xf32, #tpu.memory_space<vmem>>, %arg5: memref<1x128xf32, #tpu.memory_space<vmem>>, %arg6: memref<1x128xf32, #tpu.memory_space<vmem>>, %arg7: memref<1x128xf32, #tpu.memory_space<vmem>>, %arg8: memref<1x128xf32, #tpu.memory_space<vmem>>, %arg9: memref<1x64x128xf32, #tpu.memory_space<vmem>>, %arg10: memref<8x16xf32, #tpu.memory_space<vmem>>, %arg11: memref<128x128xbf16, #tpu.memory_space<vmem>>, %arg12: memref<1x128xf32, #tpu.memory_space<vmem>>, %arg13: memref<1x64x128xf32, #tpu.memory_space<vmem>>, %arg14: memref<256x128xf32, #tpu.memory_space<vmem>>, %arg15: memref<256x128xf32, #tpu.memory_space<vmem>>) attributes {dimension_semantics = [#tpu.dimension_semantics<parallel>], iteration_bounds = array<i64: 2>, scalar_prefetch = 0 : i64, scratch_operands = 2 : i64, tpu.core_type = #tpu.core_type<tc>, window_params = [{transform_indices = @transform_0, window_bounds = array<i64: 1, 256, 128>}, {pipeline_mode = #tpu.pipeline_mode<synchronous>, transform_indices = @transform_1, window_bounds = array<i64: 128, 1152>}, {pipeline_mode = #tpu.pipeline_mode<synchronous>, transform_indices = @transform_2, window_bounds = array<i64: 128, 1152>}, {pipeline_mode = #tpu.pipeline_mode<synchronous>, transform_indices = @transform_3, window_bounds = array<i64: 9, 256, 1>}, {pipeline_mode = #tpu.pipeline_mode<synchronous>, transform_indices = @transform_4, window_bounds = array<i64: 1, 128>}, {pipeline_mode = #tpu.pipeline_mode<synchronous>, transform_indices = @transform_5, window_bounds = array<i64: 1, 128>}, {pipeline_mode = #tpu.pipeline_mode<synchronous>, transform_indices = @transform_6, window_bounds = array<i64: 1, 128>}, {pipeline_mode = #tpu.pipeline_mode<synchronous>, transform_indices = @transform_7, window_bounds = array<i64: 1, 128>}, {transform_indices = @transform_8, window_bounds = array<i64: 1, 64, 128>}, {pipeline_mode = #tpu.pipeline_mode<synchronous>, transform_indices = @transform_9, window_bounds = array<i64: 8, 16>}, {pipeline_mode = #tpu.pipeline_mode<synchronous>, transform_indices = @transform_10, window_bounds = array<i64: 128, 128>}, {pipeline_mode = #tpu.pipeline_mode<synchronous>, transform_indices = @transform_11, window_bounds = array<i64: 1, 128>}, {transform_indices = @transform_12, window_bounds = array<i64: 1, 64, 128>}]} {
    %c0 = arith.constant 0 : index
    %c0_0 = arith.constant 0 : index
    %c0_1 = arith.constant 0 : index
    %0 = vector.load %arg1[%c0, %c0_0, %c0_1] : memref<1x256x128xf32, #tpu.memory_space<vmem>>, vector<1x256x128xf32>
    %1 = vector.shape_cast %0 : vector<1x256x128xf32> to vector<256x128xf32>
    %c0_2 = arith.constant 0 : index
    %c0_3 = arith.constant 0 : index
    %2 = vector.load %arg6[%c0_2, %c0_3] : memref<1x128xf32, #tpu.memory_space<vmem>>, vector<1x128xf32>
    %3 = vector.broadcast %2 : vector<1x128xf32> to vector<256x128xf32>
    %4 = arith.mulf %1, %3 : vector<256x128xf32>
    %c0_4 = arith.constant 0 : index
    %c0_5 = arith.constant 0 : index
    %5 = vector.load %arg7[%c0_4, %c0_5] : memref<1x128xf32, #tpu.memory_space<vmem>>, vector<1x128xf32>
    %6 = vector.broadcast %5 : vector<1x128xf32> to vector<256x128xf32>
    %7 = arith.addf %4, %6 : vector<256x128xf32>
    %8 = arith.truncf %7 : vector<256x128xf32> to vector<256x128xbf16>
    %c0_6 = arith.constant 0 : index
    %c0_7 = arith.constant 0 : index
    %9 = vector.load %arg2[%c0_6, %c0_7] : memref<128x1152xbf16, #tpu.memory_space<vmem>>, vector<128x1152xbf16>
    %cst = arith.constant dense<0.000000e+00> : vector<256x1152xf32>
    %10 = tpu.matmul %8, %9, %cst {dimension_numbers = #tpu.dot_dimension_numbers<[1], [0], [0], [1], [0, 0, 1, 1], [], []>} : vector<256x128xbf16>, vector<128x1152xbf16>, vector<256x1152xf32> -> vector<256x1152xf32>
    %11 = vector.extract_strided_slice %10 {offsets = [0, 0], sizes = [256, 128], strides = [1, 1]} : vector<256x1152xf32> to vector<256x128xf32>
    %12 = vector.extract_strided_slice %11 {offsets = [239, 0], sizes = [17, 128], strides = [1, 1]} : vector<256x128xf32> to vector<17x128xf32>
    %13 = vector.extract_strided_slice %11 {offsets = [0, 0], sizes = [239, 128], strides = [1, 1]} : vector<256x128xf32> to vector<239x128xf32>
    %14 = tpu.concatenate %12, %13 in 0 : vector<17x128xf32>, vector<239x128xf32> -> vector<256x128xf32>
    %c0_8 = arith.constant 0 : index
    %c0_9 = arith.constant 0 : index
    %c0_10 = arith.constant 0 : index
    %15 = vector.load %arg4[%c0_8, %c0_9, %c0_10] : memref<9x256x1xf32, #tpu.memory_space<vmem>>, vector<1x256x1xf32>
    %16 = vector.shape_cast %15 : vector<1x256x1xf32> to vector<256x1xf32>
    %17 = vector.broadcast %16 : vector<256x1xf32> to vector<256x128xf32>
    %18 = arith.mulf %14, %17 : vector<256x128xf32>
    %c0_11 = arith.constant 0 : index
    %c0_12 = arith.constant 0 : index
    %19 = vector.load %arg14[%c0_11, %c0_12] : memref<256x128xf32, #tpu.memory_space<vmem>>, vector<256x128xf32>
    tpu.vector_store %arg14[%c0_11, %c0_12], %18 {strides = array<i32>} : memref<256x128xf32, #tpu.memory_space<vmem>>, vector<256x128xf32>,
    %20 = vector.extract_strided_slice %10 {offsets = [0, 128], sizes = [256, 128], strides = [1, 1]} : vector<256x1152xf32> to vector<256x128xf32>
    %21 = vector.extract_strided_slice %20 {offsets = [240, 0], sizes = [16, 128], strides = [1, 1]} : vector<256x128xf32> to vector<16x128xf32>
    %22 = vector.extract_strided_slice %20 {offsets = [0, 0], sizes = [240, 128], strides = [1, 1]} : vector<256x128xf32> to vector<240x128xf32>
    %23 = tpu.concatenate %21, %22 in 0 : vector<16x128xf32>, vector<240x128xf32> -> vector<256x128xf32>
    %c1 = arith.constant 1 : index
    %c0_13 = arith.constant 0 : index
    %c0_14 = arith.constant 0 : index
    %24 = vector.load %arg4[%c1, %c0_13, %c0_14] : memref<9x256x1xf32, #tpu.memory_space<vmem>>, vector<1x256x1xf32>
    %25 = vector.shape_cast %24 : vector<1x256x1xf32> to vector<256x1xf32>
    %26 = vector.broadcast %25 : vector<256x1xf32> to vector<256x128xf32>
    %27 = arith.mulf %23, %26 : vector<256x128xf32>
    %c0_15 = arith.constant 0 : index
    %c0_16 = arith.constant 0 : index
    %28 = vector.load %arg14[%c0_15, %c0_16] : memref<256x128xf32, #tpu.memory_space<vmem>>, vector<256x128xf32>
    %29 = arith.addf %28, %27 : vector<256x128xf32>
    %c0_17 = arith.constant 0 : index
    %c0_18 = arith.constant 0 : index
    %30 = vector.load %arg14[%c0_17, %c0_18] : memref<256x128xf32, #tpu.memory_space<vmem>>, vector<256x128xf32>
    tpu.vector_store %arg14[%c0_17, %c0_18], %29 {strides = array<i32>} : memref<256x128xf32, #tpu.memory_space<vmem>>, vector<256x128xf32>,
    %31 = vector.extract_strided_slice %10 {offsets = [0, 256], sizes = [256, 128], strides = [1, 1]} : vector<256x1152xf32> to vector<256x128xf32>
    %32 = vector.extract_strided_slice %31 {offsets = [241, 0], sizes = [15, 128], strides = [1, 1]} : vector<256x128xf32> to vector<15x128xf32>
    %33 = vector.extract_strided_slice %31 {offsets = [0, 0], sizes = [241, 128], strides = [1, 1]} : vector<256x128xf32> to vector<241x128xf32>
    %34 = tpu.concatenate %32, %33 in 0 : vector<15x128xf32>, vector<241x128xf32> -> vector<256x128xf32>
    %c2 = arith.constant 2 : index
    %c0_19 = arith.constant 0 : index
    %c0_20 = arith.constant 0 : index
    %35 = vector.load %arg4[%c2, %c0_19, %c0_20] : memref<9x256x1xf32, #tpu.memory_space<vmem>>, vector<1x256x1xf32>
    %36 = vector.shape_cast %35 : vector<1x256x1xf32> to vector<256x1xf32>
    %37 = vector.broadcast %36 : vector<256x1xf32> to vector<256x128xf32>
    %38 = arith.mulf %34, %37 : vector<256x128xf32>
    %c0_21 = arith.constant 0 : index
    %c0_22 = arith.constant 0 : index
    %39 = vector.load %arg14[%c0_21, %c0_22] : memref<256x128xf32, #tpu.memory_space<vmem>>, vector<256x128xf32>
    %40 = arith.addf %39, %38 : vector<256x128xf32>
    %c0_23 = arith.constant 0 : index
    %c0_24 = arith.constant 0 : index
    %41 = vector.load %arg14[%c0_23, %c0_24] : memref<256x128xf32, #tpu.memory_space<vmem>>, vector<256x128xf32>
    tpu.vector_store %arg14[%c0_23, %c0_24], %40 {strides = array<i32>} : memref<256x128xf32, #tpu.memory_space<vmem>>, vector<256x128xf32>,
    %42 = vector.extract_strided_slice %10 {offsets = [0, 384], sizes = [256, 128], strides = [1, 1]} : vector<256x1152xf32> to vector<256x128xf32>
    %43 = vector.extract_strided_slice %42 {offsets = [255, 0], sizes = [1, 128], strides = [1, 1]} : vector<256x128xf32> to vector<1x128xf32>
    %44 = vector.extract_strided_slice %42 {offsets = [0, 0], sizes = [255, 128], strides = [1, 1]} : vector<256x128xf32> to vector<255x128xf32>
    %45 = tpu.concatenate %43, %44 in 0 : vector<1x128xf32>, vector<255x128xf32> -> vector<256x128xf32>
    %c3 = arith.constant 3 : index
    %c0_25 = arith.constant 0 : index
    %c0_26 = arith.constant 0 : index
    %46 = vector.load %arg4[%c3, %c0_25, %c0_26] : memref<9x256x1xf32, #tpu.memory_space<vmem>>, vector<1x256x1xf32>
    %47 = vector.shape_cast %46 : vector<1x256x1xf32> to vector<256x1xf32>
    %48 = vector.broadcast %47 : vector<256x1xf32> to vector<256x128xf32>
    %49 = arith.mulf %45, %48 : vector<256x128xf32>
    %c0_27 = arith.constant 0 : index
    %c0_28 = arith.constant 0 : index
    %50 = vector.load %arg14[%c0_27, %c0_28] : memref<256x128xf32, #tpu.memory_space<vmem>>, vector<256x128xf32>
    %51 = arith.addf %50, %49 : vector<256x128xf32>
    %c0_29 = arith.constant 0 : index
    %c0_30 = arith.constant 0 : index
    %52 = vector.load %arg14[%c0_29, %c0_30] : memref<256x128xf32, #tpu.memory_space<vmem>>, vector<256x128xf32>
    tpu.vector_store %arg14[%c0_29, %c0_30], %51 {strides = array<i32>} : memref<256x128xf32, #tpu.memory_space<vmem>>, vector<256x128xf32>,
    %53 = vector.extract_strided_slice %10 {offsets = [0, 512], sizes = [256, 128], strides = [1, 1]} : vector<256x1152xf32> to vector<256x128xf32>
    %c4 = arith.constant 4 : index
    %c0_31 = arith.constant 0 : index
    %c0_32 = arith.constant 0 : index
    %54 = vector.load %arg4[%c4, %c0_31, %c0_32] : memref<9x256x1xf32, #tpu.memory_space<vmem>>, vector<1x256x1xf32>
    %55 = vector.shape_cast %54 : vector<1x256x1xf32> to vector<256x1xf32>
    %56 = vector.broadcast %55 : vector<256x1xf32> to vector<256x128xf32>
    %57 = arith.mulf %53, %56 : vector<256x128xf32>
    %c0_33 = arith.constant 0 : index
    %c0_34 = arith.constant 0 : index
    %58 = vector.load %arg14[%c0_33, %c0_34] : memref<256x128xf32, #tpu.memory_space<vmem>>, vector<256x128xf32>
    %59 = arith.addf %58, %57 : vector<256x128xf32>
    %c0_35 = arith.constant 0 : index
    %c0_36 = arith.constant 0 : index
    %60 = vector.load %arg14[%c0_35, %c0_36] : memref<256x128xf32, #tpu.memory_space<vmem>>, vector<256x128xf32>
    tpu.vector_store %arg14[%c0_35, %c0_36], %59 {strides = array<i32>} : memref<256x128xf32, #tpu.memory_space<vmem>>, vector<256x128xf32>,
    %61 = vector.extract_strided_slice %10 {offsets = [0, 640], sizes = [256, 128], strides = [1, 1]} : vector<256x1152xf32> to vector<256x128xf32>
    %62 = vector.extract_strided_slice %61 {offsets = [1, 0], sizes = [255, 128], strides = [1, 1]} : vector<256x128xf32> to vector<255x128xf32>
    %63 = vector.extract_strided_slice %61 {offsets = [0, 0], sizes = [1, 128], strides = [1, 1]} : vector<256x128xf32> to vector<1x128xf32>
    %64 = tpu.concatenate %62, %63 in 0 : vector<255x128xf32>, vector<1x128xf32> -> vector<256x128xf32>
    %c5 = arith.constant 5 : index
    %c0_37 = arith.constant 0 : index
    %c0_38 = arith.constant 0 : index
    %65 = vector.load %arg4[%c5, %c0_37, %c0_38] : memref<9x256x1xf32, #tpu.memory_space<vmem>>, vector<1x256x1xf32>
    %66 = vector.shape_cast %65 : vector<1x256x1xf32> to vector<256x1xf32>
    %67 = vector.broadcast %66 : vector<256x1xf32> to vector<256x128xf32>
    %68 = arith.mulf %64, %67 : vector<256x128xf32>
    %c0_39 = arith.constant 0 : index
    %c0_40 = arith.constant 0 : index
    %69 = vector.load %arg14[%c0_39, %c0_40] : memref<256x128xf32, #tpu.memory_space<vmem>>, vector<256x128xf32>
    %70 = arith.addf %69, %68 : vector<256x128xf32>
    %c0_41 = arith.constant 0 : index
    %c0_42 = arith.constant 0 : index
    %71 = vector.load %arg14[%c0_41, %c0_42] : memref<256x128xf32, #tpu.memory_space<vmem>>, vector<256x128xf32>
    tpu.vector_store %arg14[%c0_41, %c0_42], %70 {strides = array<i32>} : memref<256x128xf32, #tpu.memory_space<vmem>>, vector<256x128xf32>,
    %72 = vector.extract_strided_slice %10 {offsets = [0, 768], sizes = [256, 128], strides = [1, 1]} : vector<256x1152xf32> to vector<256x128xf32>
    %73 = vector.extract_strided_slice %72 {offsets = [15, 0], sizes = [241, 128], strides = [1, 1]} : vector<256x128xf32> to vector<241x128xf32>
    %74 = vector.extract_strided_slice %72 {offsets = [0, 0], sizes = [15, 128], strides = [1, 1]} : vector<256x128xf32> to vector<15x128xf32>
    %75 = tpu.concatenate %73, %74 in 0 : vector<241x128xf32>, vector<15x128xf32> -> vector<256x128xf32>
    %c6 = arith.constant 6 : index
    %c0_43 = arith.constant 0 : index
    %c0_44 = arith.constant 0 : index
    %76 = vector.load %arg4[%c6, %c0_43, %c0_44] : memref<9x256x1xf32, #tpu.memory_space<vmem>>, vector<1x256x1xf32>
    %77 = vector.shape_cast %76 : vector<1x256x1xf32> to vector<256x1xf32>
    %78 = vector.broadcast %77 : vector<256x1xf32> to vector<256x128xf32>
    %79 = arith.mulf %75, %78 : vector<256x128xf32>
    %c0_45 = arith.constant 0 : index
    %c0_46 = arith.constant 0 : index
    %80 = vector.load %arg14[%c0_45, %c0_46] : memref<256x128xf32, #tpu.memory_space<vmem>>, vector<256x128xf32>
    %81 = arith.addf %80, %79 : vector<256x128xf32>
    %c0_47 = arith.constant 0 : index
    %c0_48 = arith.constant 0 : index
    %82 = vector.load %arg14[%c0_47, %c0_48] : memref<256x128xf32, #tpu.memory_space<vmem>>, vector<256x128xf32>
    tpu.vector_store %arg14[%c0_47, %c0_48], %81 {strides = array<i32>} : memref<256x128xf32, #tpu.memory_space<vmem>>, vector<256x128xf32>,
    %83 = vector.extract_strided_slice %10 {offsets = [0, 896], sizes = [256, 128], strides = [1, 1]} : vector<256x1152xf32> to vector<256x128xf32>
    %84 = vector.extract_strided_slice %83 {offsets = [16, 0], sizes = [240, 128], strides = [1, 1]} : vector<256x128xf32> to vector<240x128xf32>
    %85 = vector.extract_strided_slice %83 {offsets = [0, 0], sizes = [16, 128], strides = [1, 1]} : vector<256x128xf32> to vector<16x128xf32>
    %86 = tpu.concatenate %84, %85 in 0 : vector<240x128xf32>, vector<16x128xf32> -> vector<256x128xf32>
    %c7 = arith.constant 7 : index
    %c0_49 = arith.constant 0 : index
    %c0_50 = arith.constant 0 : index
    %87 = vector.load %arg4[%c7, %c0_49, %c0_50] : memref<9x256x1xf32, #tpu.memory_space<vmem>>, vector<1x256x1xf32>
    %88 = vector.shape_cast %87 : vector<1x256x1xf32> to vector<256x1xf32>
    %89 = vector.broadcast %88 : vector<256x1xf32> to vector<256x128xf32>
    %90 = arith.mulf %86, %89 : vector<256x128xf32>
    %c0_51 = arith.constant 0 : index
    %c0_52 = arith.constant 0 : index
    %91 = vector.load %arg14[%c0_51, %c0_52] : memref<256x128xf32, #tpu.memory_space<vmem>>, vector<256x128xf32>
    %92 = arith.addf %91, %90 : vector<256x128xf32>
    %c0_53 = arith.constant 0 : index
    %c0_54 = arith.constant 0 : index
    %93 = vector.load %arg14[%c0_53, %c0_54] : memref<256x128xf32, #tpu.memory_space<vmem>>, vector<256x128xf32>
    tpu.vector_store %arg14[%c0_53, %c0_54], %92 {strides = array<i32>} : memref<256x128xf32, #tpu.memory_space<vmem>>, vector<256x128xf32>,
    %94 = vector.extract_strided_slice %10 {offsets = [0, 1024], sizes = [256, 128], strides = [1, 1]} : vector<256x1152xf32> to vector<256x128xf32>
    %95 = vector.extract_strided_slice %94 {offsets = [17, 0], sizes = [239, 128], strides = [1, 1]} : vector<256x128xf32> to vector<239x128xf32>
    %96 = vector.extract_strided_slice %94 {offsets = [0, 0], sizes = [17, 128], strides = [1, 1]} : vector<256x128xf32> to vector<17x128xf32>
    %97 = tpu.concatenate %95, %96 in 0 : vector<239x128xf32>, vector<17x128xf32> -> vector<256x128xf32>
    %c8 = arith.constant 8 : index
    %c0_55 = arith.constant 0 : index
    %c0_56 = arith.constant 0 : index
    %98 = vector.load %arg4[%c8, %c0_55, %c0_56] : memref<9x256x1xf32, #tpu.memory_space<vmem>>, vector<1x256x1xf32>
    %99 = vector.shape_cast %98 : vector<1x256x1xf32> to vector<256x1xf32>
    %100 = vector.broadcast %99 : vector<256x1xf32> to vector<256x128xf32>
    %101 = arith.mulf %97, %100 : vector<256x128xf32>
    %c0_57 = arith.constant 0 : index
    %c0_58 = arith.constant 0 : index
    %102 = vector.load %arg14[%c0_57, %c0_58] : memref<256x128xf32, #tpu.memory_space<vmem>>, vector<256x128xf32>
    %103 = arith.addf %102, %101 : vector<256x128xf32>
    %c0_59 = arith.constant 0 : index
    %c0_60 = arith.constant 0 : index
    %104 = vector.load %arg14[%c0_59, %c0_60] : memref<256x128xf32, #tpu.memory_space<vmem>>, vector<256x128xf32>
    tpu.vector_store %arg14[%c0_59, %c0_60], %103 {strides = array<i32>} : memref<256x128xf32, #tpu.memory_space<vmem>>, vector<256x128xf32>,
    %c0_61 = arith.constant 0 : index
    %c0_62 = arith.constant 0 : index
    %105 = vector.load %arg14[%c0_61, %c0_62] : memref<256x128xf32, #tpu.memory_space<vmem>>, vector<256x128xf32>
    %cst_63 = arith.constant 0.000000e+00 : f32
    %106 = vector.broadcast %cst_63 : f32 to vector<256x128xf32>
    %107 = arith.cmpf ogt, %105, %106 : vector<256x128xf32>
    %c0_64 = arith.constant 0 : index
    %c0_65 = arith.constant 0 : index
    %108 = vector.load %arg5[%c0_64, %c0_65] : memref<1x128xf32, #tpu.memory_space<vmem>>, vector<1x128xf32>
    %109 = vector.broadcast %108 : vector<1x128xf32> to vector<256x128xf32>
    %110 = arith.mulf %105, %109 : vector<256x128xf32>
    %111 = arith.select %107, %105, %110 : vector<256x128xi1>, vector<256x128xf32>
    %112 = arith.truncf %111 : vector<256x128xf32> to vector<256x128xbf16>
    %c0_66 = arith.constant 0 : index
    %c0_67 = arith.constant 0 : index
    %113 = vector.load %arg3[%c0_66, %c0_67] : memref<128x1152xbf16, #tpu.memory_space<vmem>>, vector<128x1152xbf16>
    %cst_68 = arith.constant dense<0.000000e+00> : vector<256x1152xf32>
    %114 = tpu.matmul %112, %113, %cst_68 {dimension_numbers = #tpu.dot_dimension_numbers<[1], [0], [0], [1], [0, 0, 1, 1], [], []>} : vector<256x128xbf16>, vector<128x1152xbf16>, vector<256x1152xf32> -> vector<256x1152xf32>
    %115 = vector.extract_strided_slice %114 {offsets = [0, 0], sizes = [256, 128], strides = [1, 1]} : vector<256x1152xf32> to vector<256x128xf32>
    %116 = vector.extract_strided_slice %115 {offsets = [239, 0], sizes = [17, 128], strides = [1, 1]} : vector<256x128xf32> to vector<17x128xf32>
    %117 = vector.extract_strided_slice %115 {offsets = [0, 0], sizes = [239, 128], strides = [1, 1]} : vector<256x128xf32> to vector<239x128xf32>
    %118 = tpu.concatenate %116, %117 in 0 : vector<17x128xf32>, vector<239x128xf32> -> vector<256x128xf32>
    %c0_69 = arith.constant 0 : index
    %c0_70 = arith.constant 0 : index
    %c0_71 = arith.constant 0 : index
    %119 = vector.load %arg4[%c0_69, %c0_70, %c0_71] : memref<9x256x1xf32, #tpu.memory_space<vmem>>, vector<1x256x1xf32>
    %120 = vector.shape_cast %119 : vector<1x256x1xf32> to vector<256x1xf32>
    %121 = vector.broadcast %120 : vector<256x1xf32> to vector<256x128xf32>
    %122 = arith.mulf %118, %121 : vector<256x128xf32>
    %c0_72 = arith.constant 0 : index
    %c0_73 = arith.constant 0 : index
    %123 = vector.load %arg15[%c0_72, %c0_73] : memref<256x128xf32, #tpu.memory_space<vmem>>, vector<256x128xf32>
    tpu.vector_store %arg15[%c0_72, %c0_73], %122 {strides = array<i32>} : memref<256x128xf32, #tpu.memory_space<vmem>>, vector<256x128xf32>,
    %124 = vector.extract_strided_slice %114 {offsets = [0, 128], sizes = [256, 128], strides = [1, 1]} : vector<256x1152xf32> to vector<256x128xf32>
    %125 = vector.extract_strided_slice %124 {offsets = [240, 0], sizes = [16, 128], strides = [1, 1]} : vector<256x128xf32> to vector<16x128xf32>
    %126 = vector.extract_strided_slice %124 {offsets = [0, 0], sizes = [240, 128], strides = [1, 1]} : vector<256x128xf32> to vector<240x128xf32>
    %127 = tpu.concatenate %125, %126 in 0 : vector<16x128xf32>, vector<240x128xf32> -> vector<256x128xf32>
    %c1_74 = arith.constant 1 : index
    %c0_75 = arith.constant 0 : index
    %c0_76 = arith.constant 0 : index
    %128 = vector.load %arg4[%c1_74, %c0_75, %c0_76] : memref<9x256x1xf32, #tpu.memory_space<vmem>>, vector<1x256x1xf32>
    %129 = vector.shape_cast %128 : vector<1x256x1xf32> to vector<256x1xf32>
    %130 = vector.broadcast %129 : vector<256x1xf32> to vector<256x128xf32>
    %131 = arith.mulf %127, %130 : vector<256x128xf32>
    %c0_77 = arith.constant 0 : index
    %c0_78 = arith.constant 0 : index
    %132 = vector.load %arg15[%c0_77, %c0_78] : memref<256x128xf32, #tpu.memory_space<vmem>>, vector<256x128xf32>
    %133 = arith.addf %132, %131 : vector<256x128xf32>
    %c0_79 = arith.constant 0 : index
    %c0_80 = arith.constant 0 : index
    %134 = vector.load %arg15[%c0_79, %c0_80] : memref<256x128xf32, #tpu.memory_space<vmem>>, vector<256x128xf32>
    tpu.vector_store %arg15[%c0_79, %c0_80], %133 {strides = array<i32>} : memref<256x128xf32, #tpu.memory_space<vmem>>, vector<256x128xf32>,
    %135 = vector.extract_strided_slice %114 {offsets = [0, 256], sizes = [256, 128], strides = [1, 1]} : vector<256x1152xf32> to vector<256x128xf32>
    %136 = vector.extract_strided_slice %135 {offsets = [241, 0], sizes = [15, 128], strides = [1, 1]} : vector<256x128xf32> to vector<15x128xf32>
    %137 = vector.extract_strided_slice %135 {offsets = [0, 0], sizes = [241, 128], strides = [1, 1]} : vector<256x128xf32> to vector<241x128xf32>
    %138 = tpu.concatenate %136, %137 in 0 : vector<15x128xf32>, vector<241x128xf32> -> vector<256x128xf32>
    %c2_81 = arith.constant 2 : index
    %c0_82 = arith.constant 0 : index
    %c0_83 = arith.constant 0 : index
    %139 = vector.load %arg4[%c2_81, %c0_82, %c0_83] : memref<9x256x1xf32, #tpu.memory_space<vmem>>, vector<1x256x1xf32>
    %140 = vector.shape_cast %139 : vector<1x256x1xf32> to vector<256x1xf32>
    %141 = vector.broadcast %140 : vector<256x1xf32> to vector<256x128xf32>
    %142 = arith.mulf %138, %141 : vector<256x128xf32>
    %c0_84 = arith.constant 0 : index
    %c0_85 = arith.constant 0 : index
    %143 = vector.load %arg15[%c0_84, %c0_85] : memref<256x128xf32, #tpu.memory_space<vmem>>, vector<256x128xf32>
    %144 = arith.addf %143, %142 : vector<256x128xf32>
    %c0_86 = arith.constant 0 : index
    %c0_87 = arith.constant 0 : index
    %145 = vector.load %arg15[%c0_86, %c0_87] : memref<256x128xf32, #tpu.memory_space<vmem>>, vector<256x128xf32>
    tpu.vector_store %arg15[%c0_86, %c0_87], %144 {strides = array<i32>} : memref<256x128xf32, #tpu.memory_space<vmem>>, vector<256x128xf32>,
    %146 = vector.extract_strided_slice %114 {offsets = [0, 384], sizes = [256, 128], strides = [1, 1]} : vector<256x1152xf32> to vector<256x128xf32>
    %147 = vector.extract_strided_slice %146 {offsets = [255, 0], sizes = [1, 128], strides = [1, 1]} : vector<256x128xf32> to vector<1x128xf32>
    %148 = vector.extract_strided_slice %146 {offsets = [0, 0], sizes = [255, 128], strides = [1, 1]} : vector<256x128xf32> to vector<255x128xf32>
    %149 = tpu.concatenate %147, %148 in 0 : vector<1x128xf32>, vector<255x128xf32> -> vector<256x128xf32>
    %c3_88 = arith.constant 3 : index
    %c0_89 = arith.constant 0 : index
    %c0_90 = arith.constant 0 : index
    %150 = vector.load %arg4[%c3_88, %c0_89, %c0_90] : memref<9x256x1xf32, #tpu.memory_space<vmem>>, vector<1x256x1xf32>
    %151 = vector.shape_cast %150 : vector<1x256x1xf32> to vector<256x1xf32>
    %152 = vector.broadcast %151 : vector<256x1xf32> to vector<256x128xf32>
    %153 = arith.mulf %149, %152 : vector<256x128xf32>
    %c0_91 = arith.constant 0 : index
    %c0_92 = arith.constant 0 : index
    %154 = vector.load %arg15[%c0_91, %c0_92] : memref<256x128xf32, #tpu.memory_space<vmem>>, vector<256x128xf32>
    %155 = arith.addf %154, %153 : vector<256x128xf32>
    %c0_93 = arith.constant 0 : index
    %c0_94 = arith.constant 0 : index
    %156 = vector.load %arg15[%c0_93, %c0_94] : memref<256x128xf32, #tpu.memory_space<vmem>>, vector<256x128xf32>
    tpu.vector_store %arg15[%c0_93, %c0_94], %155 {strides = array<i32>} : memref<256x128xf32, #tpu.memory_space<vmem>>, vector<256x128xf32>,
    %157 = vector.extract_strided_slice %114 {offsets = [0, 512], sizes = [256, 128], strides = [1, 1]} : vector<256x1152xf32> to vector<256x128xf32>
    %c4_95 = arith.constant 4 : index
    %c0_96 = arith.constant 0 : index
    %c0_97 = arith.constant 0 : index
    %158 = vector.load %arg4[%c4_95, %c0_96, %c0_97] : memref<9x256x1xf32, #tpu.memory_space<vmem>>, vector<1x256x1xf32>
    %159 = vector.shape_cast %158 : vector<1x256x1xf32> to vector<256x1xf32>
    %160 = vector.broadcast %159 : vector<256x1xf32> to vector<256x128xf32>
    %161 = arith.mulf %157, %160 : vector<256x128xf32>
    %c0_98 = arith.constant 0 : index
    %c0_99 = arith.constant 0 : index
    %162 = vector.load %arg15[%c0_98, %c0_99] : memref<256x128xf32, #tpu.memory_space<vmem>>, vector<256x128xf32>
    %163 = arith.addf %162, %161 : vector<256x128xf32>
    %c0_100 = arith.constant 0 : index
    %c0_101 = arith.constant 0 : index
    %164 = vector.load %arg15[%c0_100, %c0_101] : memref<256x128xf32, #tpu.memory_space<vmem>>, vector<256x128xf32>
    tpu.vector_store %arg15[%c0_100, %c0_101], %163 {strides = array<i32>} : memref<256x128xf32, #tpu.memory_space<vmem>>, vector<256x128xf32>,
    %165 = vector.extract_strided_slice %114 {offsets = [0, 640], sizes = [256, 128], strides = [1, 1]} : vector<256x1152xf32> to vector<256x128xf32>
    %166 = vector.extract_strided_slice %165 {offsets = [1, 0], sizes = [255, 128], strides = [1, 1]} : vector<256x128xf32> to vector<255x128xf32>
    %167 = vector.extract_strided_slice %165 {offsets = [0, 0], sizes = [1, 128], strides = [1, 1]} : vector<256x128xf32> to vector<1x128xf32>
    %168 = tpu.concatenate %166, %167 in 0 : vector<255x128xf32>, vector<1x128xf32> -> vector<256x128xf32>
    %c5_102 = arith.constant 5 : index
    %c0_103 = arith.constant 0 : index
    %c0_104 = arith.constant 0 : index
    %169 = vector.load %arg4[%c5_102, %c0_103, %c0_104] : memref<9x256x1xf32, #tpu.memory_space<vmem>>, vector<1x256x1xf32>
    %170 = vector.shape_cast %169 : vector<1x256x1xf32> to vector<256x1xf32>
    %171 = vector.broadcast %170 : vector<256x1xf32> to vector<256x128xf32>
    %172 = arith.mulf %168, %171 : vector<256x128xf32>
    %c0_105 = arith.constant 0 : index
    %c0_106 = arith.constant 0 : index
    %173 = vector.load %arg15[%c0_105, %c0_106] : memref<256x128xf32, #tpu.memory_space<vmem>>, vector<256x128xf32>
    %174 = arith.addf %173, %172 : vector<256x128xf32>
    %c0_107 = arith.constant 0 : index
    %c0_108 = arith.constant 0 : index
    %175 = vector.load %arg15[%c0_107, %c0_108] : memref<256x128xf32, #tpu.memory_space<vmem>>, vector<256x128xf32>
    tpu.vector_store %arg15[%c0_107, %c0_108], %174 {strides = array<i32>} : memref<256x128xf32, #tpu.memory_space<vmem>>, vector<256x128xf32>,
    %176 = vector.extract_strided_slice %114 {offsets = [0, 768], sizes = [256, 128], strides = [1, 1]} : vector<256x1152xf32> to vector<256x128xf32>
    %177 = vector.extract_strided_slice %176 {offsets = [15, 0], sizes = [241, 128], strides = [1, 1]} : vector<256x128xf32> to vector<241x128xf32>
    %178 = vector.extract_strided_slice %176 {offsets = [0, 0], sizes = [15, 128], strides = [1, 1]} : vector<256x128xf32> to vector<15x128xf32>
    %179 = tpu.concatenate %177, %178 in 0 : vector<241x128xf32>, vector<15x128xf32> -> vector<256x128xf32>
    %c6_109 = arith.constant 6 : index
    %c0_110 = arith.constant 0 : index
    %c0_111 = arith.constant 0 : index
    %180 = vector.load %arg4[%c6_109, %c0_110, %c0_111] : memref<9x256x1xf32, #tpu.memory_space<vmem>>, vector<1x256x1xf32>
    %181 = vector.shape_cast %180 : vector<1x256x1xf32> to vector<256x1xf32>
    %182 = vector.broadcast %181 : vector<256x1xf32> to vector<256x128xf32>
    %183 = arith.mulf %179, %182 : vector<256x128xf32>
    %c0_112 = arith.constant 0 : index
    %c0_113 = arith.constant 0 : index
    %184 = vector.load %arg15[%c0_112, %c0_113] : memref<256x128xf32, #tpu.memory_space<vmem>>, vector<256x128xf32>
    %185 = arith.addf %184, %183 : vector<256x128xf32>
    %c0_114 = arith.constant 0 : index
    %c0_115 = arith.constant 0 : index
    %186 = vector.load %arg15[%c0_114, %c0_115] : memref<256x128xf32, #tpu.memory_space<vmem>>, vector<256x128xf32>
    tpu.vector_store %arg15[%c0_114, %c0_115], %185 {strides = array<i32>} : memref<256x128xf32, #tpu.memory_space<vmem>>, vector<256x128xf32>,
    %187 = vector.extract_strided_slice %114 {offsets = [0, 896], sizes = [256, 128], strides = [1, 1]} : vector<256x1152xf32> to vector<256x128xf32>
    %188 = vector.extract_strided_slice %187 {offsets = [16, 0], sizes = [240, 128], strides = [1, 1]} : vector<256x128xf32> to vector<240x128xf32>
    %189 = vector.extract_strided_slice %187 {offsets = [0, 0], sizes = [16, 128], strides = [1, 1]} : vector<256x128xf32> to vector<16x128xf32>
    %190 = tpu.concatenate %188, %189 in 0 : vector<240x128xf32>, vector<16x128xf32> -> vector<256x128xf32>
    %c7_116 = arith.constant 7 : index
    %c0_117 = arith.constant 0 : index
    %c0_118 = arith.constant 0 : index
    %191 = vector.load %arg4[%c7_116, %c0_117, %c0_118] : memref<9x256x1xf32, #tpu.memory_space<vmem>>, vector<1x256x1xf32>
    %192 = vector.shape_cast %191 : vector<1x256x1xf32> to vector<256x1xf32>
    %193 = vector.broadcast %192 : vector<256x1xf32> to vector<256x128xf32>
    %194 = arith.mulf %190, %193 : vector<256x128xf32>
    %c0_119 = arith.constant 0 : index
    %c0_120 = arith.constant 0 : index
    %195 = vector.load %arg15[%c0_119, %c0_120] : memref<256x128xf32, #tpu.memory_space<vmem>>, vector<256x128xf32>
    %196 = arith.addf %195, %194 : vector<256x128xf32>
    %c0_121 = arith.constant 0 : index
    %c0_122 = arith.constant 0 : index
    %197 = vector.load %arg15[%c0_121, %c0_122] : memref<256x128xf32, #tpu.memory_space<vmem>>, vector<256x128xf32>
    tpu.vector_store %arg15[%c0_121, %c0_122], %196 {strides = array<i32>} : memref<256x128xf32, #tpu.memory_space<vmem>>, vector<256x128xf32>,
    %198 = vector.extract_strided_slice %114 {offsets = [0, 1024], sizes = [256, 128], strides = [1, 1]} : vector<256x1152xf32> to vector<256x128xf32>
    %199 = vector.extract_strided_slice %198 {offsets = [17, 0], sizes = [239, 128], strides = [1, 1]} : vector<256x128xf32> to vector<239x128xf32>
    %200 = vector.extract_strided_slice %198 {offsets = [0, 0], sizes = [17, 128], strides = [1, 1]} : vector<256x128xf32> to vector<17x128xf32>
    %201 = tpu.concatenate %199, %200 in 0 : vector<239x128xf32>, vector<17x128xf32> -> vector<256x128xf32>
    %c8_123 = arith.constant 8 : index
    %c0_124 = arith.constant 0 : index
    %c0_125 = arith.constant 0 : index
    %202 = vector.load %arg4[%c8_123, %c0_124, %c0_125] : memref<9x256x1xf32, #tpu.memory_space<vmem>>, vector<1x256x1xf32>
    %203 = vector.shape_cast %202 : vector<1x256x1xf32> to vector<256x1xf32>
    %204 = vector.broadcast %203 : vector<256x1xf32> to vector<256x128xf32>
    %205 = arith.mulf %201, %204 : vector<256x128xf32>
    %c0_126 = arith.constant 0 : index
    %c0_127 = arith.constant 0 : index
    %206 = vector.load %arg15[%c0_126, %c0_127] : memref<256x128xf32, #tpu.memory_space<vmem>>, vector<256x128xf32>
    %207 = arith.addf %206, %205 : vector<256x128xf32>
    %c0_128 = arith.constant 0 : index
    %c0_129 = arith.constant 0 : index
    %208 = vector.load %arg15[%c0_128, %c0_129] : memref<256x128xf32, #tpu.memory_space<vmem>>, vector<256x128xf32>
    tpu.vector_store %arg15[%c0_128, %c0_129], %207 {strides = array<i32>} : memref<256x128xf32, #tpu.memory_space<vmem>>, vector<256x128xf32>,
    %c0_130 = arith.constant 0 : index
    %c0_131 = arith.constant 0 : index
    %209 = vector.load %arg15[%c0_130, %c0_131] : memref<256x128xf32, #tpu.memory_space<vmem>>, vector<256x128xf32>
    %c0_132 = arith.constant 0 : index
    %c0_133 = arith.constant 0 : index
    %210 = vector.load %arg8[%c0_132, %c0_133] : memref<1x128xf32, #tpu.memory_space<vmem>>, vector<1x128xf32>
    %211 = vector.broadcast %210 : vector<1x128xf32> to vector<256x128xf32>
    %212 = arith.addf %209, %211 : vector<256x128xf32>
    %213 = vector.extract_strided_slice %212 {offsets = [0, 0], sizes = [16, 128], strides = [1, 1]} : vector<256x128xf32> to vector<16x128xf32>
    %c0_134 = arith.constant 0 : index
    %c0_135 = arith.constant 0 : index
    %214 = vector.load %arg10[%c0_134, %c0_135] : memref<8x16xf32, #tpu.memory_space<vmem>>, vector<8x16xf32>
    %cst_136 = arith.constant dense<0.000000e+00> : vector<8x128xf32>
    %215 = tpu.matmul %214, %213, %cst_136 {dimension_numbers = #tpu.dot_dimension_numbers<[1], [0], [0], [1], [0, 0, 1, 1], [], []>} : vector<8x16xf32>, vector<16x128xf32>, vector<8x128xf32> -> vector<8x128xf32>
    %216 = vector.extract_strided_slice %212 {offsets = [32, 0], sizes = [16, 128], strides = [1, 1]} : vector<256x128xf32> to vector<16x128xf32>
    %c0_137 = arith.constant 0 : index
    %c0_138 = arith.constant 0 : index
    %217 = vector.load %arg10[%c0_137, %c0_138] : memref<8x16xf32, #tpu.memory_space<vmem>>, vector<8x16xf32>
    %cst_139 = arith.constant dense<0.000000e+00> : vector<8x128xf32>
    %218 = tpu.matmul %217, %216, %cst_139 {dimension_numbers = #tpu.dot_dimension_numbers<[1], [0], [0], [1], [0, 0, 1, 1], [], []>} : vector<8x16xf32>, vector<16x128xf32>, vector<8x128xf32> -> vector<8x128xf32>
    %219 = vector.extract_strided_slice %212 {offsets = [64, 0], sizes = [16, 128], strides = [1, 1]} : vector<256x128xf32> to vector<16x128xf32>
    %c0_140 = arith.constant 0 : index
    %c0_141 = arith.constant 0 : index
    %220 = vector.load %arg10[%c0_140, %c0_141] : memref<8x16xf32, #tpu.memory_space<vmem>>, vector<8x16xf32>
    %cst_142 = arith.constant dense<0.000000e+00> : vector<8x128xf32>
    %221 = tpu.matmul %220, %219, %cst_142 {dimension_numbers = #tpu.dot_dimension_numbers<[1], [0], [0], [1], [0, 0, 1, 1], [], []>} : vector<8x16xf32>, vector<16x128xf32>, vector<8x128xf32> -> vector<8x128xf32>
    %222 = vector.extract_strided_slice %212 {offsets = [96, 0], sizes = [16, 128], strides = [1, 1]} : vector<256x128xf32> to vector<16x128xf32>
    %c0_143 = arith.constant 0 : index
    %c0_144 = arith.constant 0 : index
    %223 = vector.load %arg10[%c0_143, %c0_144] : memref<8x16xf32, #tpu.memory_space<vmem>>, vector<8x16xf32>
    %cst_145 = arith.constant dense<0.000000e+00> : vector<8x128xf32>
    %224 = tpu.matmul %223, %222, %cst_145 {dimension_numbers = #tpu.dot_dimension_numbers<[1], [0], [0], [1], [0, 0, 1, 1], [], []>} : vector<8x16xf32>, vector<16x128xf32>, vector<8x128xf32> -> vector<8x128xf32>
    %225 = vector.extract_strided_slice %212 {offsets = [128, 0], sizes = [16, 128], strides = [1, 1]} : vector<256x128xf32> to vector<16x128xf32>
    %c0_146 = arith.constant 0 : index
    %c0_147 = arith.constant 0 : index
    %226 = vector.load %arg10[%c0_146, %c0_147] : memref<8x16xf32, #tpu.memory_space<vmem>>, vector<8x16xf32>
    %cst_148 = arith.constant dense<0.000000e+00> : vector<8x128xf32>
    %227 = tpu.matmul %226, %225, %cst_148 {dimension_numbers = #tpu.dot_dimension_numbers<[1], [0], [0], [1], [0, 0, 1, 1], [], []>} : vector<8x16xf32>, vector<16x128xf32>, vector<8x128xf32> -> vector<8x128xf32>
    %228 = vector.extract_strided_slice %212 {offsets = [160, 0], sizes = [16, 128], strides = [1, 1]} : vector<256x128xf32> to vector<16x128xf32>
    %c0_149 = arith.constant 0 : index
    %c0_150 = arith.constant 0 : index
    %229 = vector.load %arg10[%c0_149, %c0_150] : memref<8x16xf32, #tpu.memory_space<vmem>>, vector<8x16xf32>
    %cst_151 = arith.constant dense<0.000000e+00> : vector<8x128xf32>
    %230 = tpu.matmul %229, %228, %cst_151 {dimension_numbers = #tpu.dot_dimension_numbers<[1], [0], [0], [1], [0, 0, 1, 1], [], []>} : vector<8x16xf32>, vector<16x128xf32>, vector<8x128xf32> -> vector<8x128xf32>
    %231 = vector.extract_strided_slice %212 {offsets = [192, 0], sizes = [16, 128], strides = [1, 1]} : vector<256x128xf32> to vector<16x128xf32>
    %c0_152 = arith.constant 0 : index
    %c0_153 = arith.constant 0 : index
    %232 = vector.load %arg10[%c0_152, %c0_153] : memref<8x16xf32, #tpu.memory_space<vmem>>, vector<8x16xf32>
    %cst_154 = arith.constant dense<0.000000e+00> : vector<8x128xf32>
    %233 = tpu.matmul %232, %231, %cst_154 {dimension_numbers = #tpu.dot_dimension_numbers<[1], [0], [0], [1], [0, 0, 1, 1], [], []>} : vector<8x16xf32>, vector<16x128xf32>, vector<8x128xf32> -> vector<8x128xf32>
    %234 = vector.extract_strided_slice %212 {offsets = [224, 0], sizes = [16, 128], strides = [1, 1]} : vector<256x128xf32> to vector<16x128xf32>
    %c0_155 = arith.constant 0 : index
    %c0_156 = arith.constant 0 : index
    %235 = vector.load %arg10[%c0_155, %c0_156] : memref<8x16xf32, #tpu.memory_space<vmem>>, vector<8x16xf32>
    %cst_157 = arith.constant dense<0.000000e+00> : vector<8x128xf32>
    %236 = tpu.matmul %235, %234, %cst_157 {dimension_numbers = #tpu.dot_dimension_numbers<[1], [0], [0], [1], [0, 0, 1, 1], [], []>} : vector<8x16xf32>, vector<16x128xf32>, vector<8x128xf32> -> vector<8x128xf32>
    %237 = tpu.concatenate %215, %218, %221, %224, %227, %230, %233, %236 in 0 : vector<8x128xf32>, vector<8x128xf32>, vector<8x128xf32>, vector<8x128xf32>, vector<8x128xf32>, vector<8x128xf32>, vector<8x128xf32>, vector<8x128xf32> -> vector<64x128xf32>
    %c0_158 = arith.constant 0 : index
    %c0_159 = arith.constant 0 : index
    %c0_160 = arith.constant 0 : index
    %238 = vector.load %arg9[%c0_158, %c0_159, %c0_160] : memref<1x64x128xf32, #tpu.memory_space<vmem>>, vector<1x64x128xf32>
    %239 = vector.shape_cast %238 : vector<1x64x128xf32> to vector<64x128xf32>
    %240 = arith.truncf %239 : vector<64x128xf32> to vector<64x128xbf16>
    %c0_161 = arith.constant 0 : index
    %c0_162 = arith.constant 0 : index
    %241 = vector.load %arg11[%c0_161, %c0_162] : memref<128x128xbf16, #tpu.memory_space<vmem>>, vector<128x128xbf16>
    %cst_163 = arith.constant dense<0.000000e+00> : vector<64x128xf32>
    %242 = tpu.matmul %240, %241, %cst_163 {dimension_numbers = #tpu.dot_dimension_numbers<[1], [0], [0], [1], [0, 0, 1, 1], [], []>} : vector<64x128xbf16>, vector<128x128xbf16>, vector<64x128xf32> -> vector<64x128xf32>
    %c0_164 = arith.constant 0 : index
    %c0_165 = arith.constant 0 : index
    %243 = vector.load %arg12[%c0_164, %c0_165] : memref<1x128xf32, #tpu.memory_space<vmem>>, vector<1x128xf32>
    %244 = vector.broadcast %243 : vector<1x128xf32> to vector<64x128xf32>
    %245 = arith.addf %242, %244 : vector<64x128xf32>
    %246 = arith.addf %237, %245 : vector<64x128xf32>
    %c0_166 = arith.constant 0 : index
    %c0_167 = arith.constant 0 : index
    %c0_168 = arith.constant 0 : index
    %247 = vector.load %arg13[%c0_166, %c0_167, %c0_168] : memref<1x64x128xf32, #tpu.memory_space<vmem>>, vector<1x64x128xf32>
    %248 = vector.shape_cast %247 : vector<1x64x128xf32> to vector<64x128xf32>
    %249 = vector.shape_cast %246 : vector<64x128xf32> to vector<1x64x128xf32>
    tpu.vector_store %arg13[%c0_166, %c0_167, %c0_168], %249 {strides = array<i32>} : memref<1x64x128xf32, #tpu.memory_space<vmem>>, vector<1x64x128xf32>,
    return
  }
  func.func @transform_0(%arg0: i32) -> (i32, i32, i32) {
    %c0_i32 = arith.constant 0 : i32
    %c0_i32_0 = arith.constant 0 : i32
    %c0_i32_1 = arith.constant 0 : i32
    return %arg0, %c0_i32, %c0_i32_0 : i32, i32, i32
  }
  func.func @transform_1(%arg0: i32) -> (i32, i32) {
    %c0_i32 = arith.constant 0 : i32
    %c0_i32_0 = arith.constant 0 : i32
    %c0_i32_1 = arith.constant 0 : i32
    return %c0_i32, %c0_i32_0 : i32, i32
  }
  func.func @transform_2(%arg0: i32) -> (i32, i32) {
    %c0_i32 = arith.constant 0 : i32
    %c0_i32_0 = arith.constant 0 : i32
    %c0_i32_1 = arith.constant 0 : i32
    return %c0_i32, %c0_i32_0 : i32, i32
  }
  func.func @transform_3(%arg0: i32) -> (i32, i32, i32) {
    %c0_i32 = arith.constant 0 : i32
    %c0_i32_0 = arith.constant 0 : i32
    %c0_i32_1 = arith.constant 0 : i32
    %c0_i32_2 = arith.constant 0 : i32
    return %c0_i32, %c0_i32_0, %c0_i32_1 : i32, i32, i32
  }
  func.func @transform_4(%arg0: i32) -> (i32, i32) {
    %c0_i32 = arith.constant 0 : i32
    %c0_i32_0 = arith.constant 0 : i32
    %c0_i32_1 = arith.constant 0 : i32
    return %c0_i32, %c0_i32_0 : i32, i32
  }
  func.func @transform_5(%arg0: i32) -> (i32, i32) {
    %c0_i32 = arith.constant 0 : i32
    %c0_i32_0 = arith.constant 0 : i32
    %c0_i32_1 = arith.constant 0 : i32
    return %c0_i32, %c0_i32_0 : i32, i32
  }
  func.func @transform_6(%arg0: i32) -> (i32, i32) {
    %c0_i32 = arith.constant 0 : i32
    %c0_i32_0 = arith.constant 0 : i32
    %c0_i32_1 = arith.constant 0 : i32
    return %c0_i32, %c0_i32_0 : i32, i32
  }
  func.func @transform_7(%arg0: i32) -> (i32, i32) {
    %c0_i32 = arith.constant 0 : i32
    %c0_i32_0 = arith.constant 0 : i32
    %c0_i32_1 = arith.constant 0 : i32
    return %c0_i32, %c0_i32_0 : i32, i32
  }
  func.func @transform_8(%arg0: i32) -> (i32, i32, i32) {
    %c0_i32 = arith.constant 0 : i32
    %c0_i32_0 = arith.constant 0 : i32
    %c0_i32_1 = arith.constant 0 : i32
    return %arg0, %c0_i32, %c0_i32_0 : i32, i32, i32
  }
  func.func @transform_9(%arg0: i32) -> (i32, i32) {
    %c0_i32 = arith.constant 0 : i32
    %c0_i32_0 = arith.constant 0 : i32
    %c0_i32_1 = arith.constant 0 : i32
    return %c0_i32, %c0_i32_0 : i32, i32
  }
  func.func @transform_10(%arg0: i32) -> (i32, i32) {
    %c0_i32 = arith.constant 0 : i32
    %c0_i32_0 = arith.constant 0 : i32
    %c0_i32_1 = arith.constant 0 : i32
    return %c0_i32, %c0_i32_0 : i32, i32
  }
  func.func @transform_11(%arg0: i32) -> (i32, i32) {
    %c0_i32 = arith.constant 0 : i32
    %c0_i32_0 = arith.constant 0 : i32
    %c0_i32_1 = arith.constant 0 : i32
    return %c0_i32, %c0_i32_0 : i32, i32
  }
  func.func @transform_12(%arg0: i32) -> (i32, i32, i32) {
    %c0_i32 = arith.constant 0 : i32
    %c0_i32_0 = arith.constant 0 : i32
    %c0_i32_1 = arith.constant 0 : i32
    return %arg0, %c0_i32, %c0_i32_0 : i32, i32, i32
  }
}

</mosaic_0001>

<bundles_post_ra>
// kernel: tpu_custom_call.1
= control target key start
LH: loop header
LB: loop body
LE: loop exit
PB: predicated region body
PF: predicated region fallthrough
CT: control target
= control target key end

     0   :  { %17 = vsyncpa [#allocation5], 0  ;;  %s17581_s0 = inlined_call_operand.vmem [shape: f32[2,256,128], index: 0, kind: input, shape index: {}]   ;;  %s17582_s1 = inlined_call_operand.vmem [shape: bf16[128,1152], index: 1, kind: input, shape index: {}]   ;;  %s17583_s2 = inlined_call_operand.vmem [shape: bf16[128,1152], index: 2, kind: input, shape index: {}]   ;;  %s17584_s3 = inlined_call_operand.vmem [shape: f32[9,256,1], index: 3, kind: input, shape index: {}]   ;;  %s17585_s4 = inlined_call_operand.vmem [shape: f32[1,128], index: 4, kind: input, shape index: {}]   ;;  %s17586_s5 = inlined_call_operand.vmem [shape: f32[1,128], index: 5, kind: input, shape index: {}]   ;;  %s17587_s6 = inlined_call_operand.vmem [shape: f32[1,128], index: 6, kind: input, shape index: {}]   ;;  %s17588_s7 = inlined_call_operand.vmem [shape: f32[1,128], index: 7, kind: input, shape index: {}]   ;;  %s17589_s8 = inlined_call_operand.vmem [shape: f32[2,64,128], index: 8, kind: input, shape index: {}]   ;;  %s17590_s9 = inlined_call_operand.vmem [shape: f32[8,16], index: 9, kind: input, shape index: {}]   ;;  %s17591_s10 = inlined_call_operand.vmem [shape: bf16[128,128], index: 10, kind: input, shape index: {}]   ;;  %s17592_s11 = inlined_call_operand.vmem [shape: f32[1,128], index: 11, kind: input, shape index: {}]   ;;  %s17593_s12 = inlined_call_operand.hbm [shape: f32[2,64,128], index: 12, kind: output, shape index: {}]  }
   0x1   :  { %19 = vsyncpa [#allocation5 + $0x1], 0  ;;  %s12900_s21 = smov 0   ;;  %s12902_s22 = smov 0  }
   0x2   :  { %s12904_s23 = smov 0   ;;  %s12906_s24 = smov 0  }
   0x3 LB: > { %17616 = sst [smem:[#allocation7_spill]] %s12823_s23  ;;  %s12921_s25 = sadd.s32 4294967295, %s12827_s24   ;;  %s12827_s24 = sphi %s12906_s24, %s18012_s24   ;;  %s12823_s23 = sphi %s12904_s23, %s18014_s23   ;;  %s12819_s22 = sphi %s12902_s22, %s18016_s22   ;;  %s12815_s21 = sphi %s12900_s21, %s18015_s21  }
   0x4   : > { %s11518_s26 = sadd.s32 4294967294, %s12827_s24   ;;  %s12925_s27 = sadd.s32 1, %s12827_s24  }
   0x5   : > { %17617 = sst [smem:[#allocation8_spill]] %s12925_s27  ;;  %s294_s28 = sadd.s32 1, %s12823_s23 }
   0x6   : > { %s291_s29 = ssub.s32 %s12827_s24, %s12925_s27  ;;  %p304_p0 = scmp.ne.s32.totalorder %s12823_s23, %s12819_s22 }
   0x7   : > { %p292_p1 = scmp.eq.s32.totalorder %s291_s29, 0  ;;  %p305_p2 = scmp.eq.s32.totalorder %s12921_s25, 1 }
   0x8   : > { %p310_p3 = scmp.ne.s32.totalorder %s12819_s22, %s12815_s21  ;;  %p311_p4 = scmp.eq.s32.totalorder %s11518_s26, 1 }
   0x9   : > { %s12936_s30 = scalar_select %p292_p1, %s12823_s23, %s294_s28  }
   0xa   : > { %p12938_p5 = por %p305_p2, %p304_p0  ;;  %p12942_p6 = por %p311_p4, %p310_p3 }
   0xb   : > { %17618 = sst [smem:[#allocation9_spill]] %s12936_s30  ;;  %p11521_p7 = scmp.ge.s32.totalorder %s12827_s24, 1 }
   0xc   : > { %s17620_s14 = scalar_select %p12942_p6, 1, 0 }
   0xd   : > { %p375_p8 = scmp.lt.s32.totalorder %s12827_s24, 3 }
   0xe   : > { %17621 = sst [smem:[#allocation10_spill]] %s17620_s14 }
   0xf   : > { %p376_p9 = pnand %p11521_p7, %p375_p8 }
  0x11   : > { %379 = sbr.rel (%p376_p9) target bundleno = 1381 (0x565), region = 68 }
  0x16   : > { %v2072_v0 = vld [vmem:[%s17584_s3 + $0x10] sm:$0xff]  ;;  %v2070_v1 = vld [vmem:[%s17584_s3] sm:$0xff]  ;;  %v17598_v2 = vmov 0   ;;  %v12554_v5 = vld [vmem:[%s17582_s1 + $0x1f8] ss:$36 sps:$4 sm:$0xff]   ;;  %p422_p10 = scmp.lt.s32.totalorder %s12921_s25, 1 }
  0x17   : > { %12549 = vset.pattern.permute.xlu1 %v17598_v2  ;;  %12548 = vset.pattern.permute.xlu0 %v17598_v2  ;;  %v12550_v3 = vld [vmem:[%s17582_s1 + $0x1fc] ss:$36 sps:$4 sm:$0xff]   ;;  %v12552_v4 = vld [vmem:[%s17582_s1 + $0x204] ss:$36 sps:$4 sm:$0xff]   ;;  %v12556_v9 = vld [vmem:[%s17582_s1 + $0x1b4] ss:$36 sps:$4 sm:$0xff]  }
  0x18   : > { %2114 = vperm.xlu1 %12549, %v2072_v0   ;;  %2104 = vperm.xlu0 %12548, %v2070_v1   ;;  %v12555_v6 = vld [vmem:[%s17582_s1 + $0x200] ss:$36 sps:$4 sm:$0xff]   ;;  %v2073_v7 = vld [vmem:[%s17584_s3 + $0x18] sm:$0xff]  ;;  %v2071_v8 = vld [vmem:[%s17584_s3 + $0x8] sm:$0xff]  ;;  %s13044_s30 = scalar_select %p422_p10, %s12921_s25, 1  ;;  %vm1943_vm0 = vcmask 1040384  }
  0x19   : > { %1007 = vmatprep.subr.bf16.mxu0 %v12550_v3  ;;  %1039 = vmatprep.mubr.bf16.mxu0 %v17598_v2  ;;  %v12558_v10 = vld [vmem:[%s17582_s1 + $0x1bc] ss:$36 sps:$4 sm:$0xff]   ;;  %v12560_v11 = vld [vmem:[%s17582_s1 + $0x1b0] ss:$36 sps:$4 sm:$0xff]   ;;  %v2075_v13 = vld [vmem:[%s17584_s3 + $0x28] sm:$0xff]  ;;  %vm2649_vm1 = vcmask 1046528  }
  0x1a   : > { %1200 = vmatprep.subr.bf16.mxu1 %v12552_v4  ;;  %1008 = vmatpush1.bf16.msra.mxu0 %v12554_v5  ;;  %v12561_v12 = vld [vmem:[%s17582_s1 + $0x1b8] ss:$36 sps:$4 sm:$0xff]   ;;  %v2074_v14 = vld [vmem:[%s17584_s3 + $0x20] sm:$0xff]  ;;  %v12562_v15 = vld [vmem:[%s17582_s1 + $0x16c] ss:$36 sps:$4 sm:$0xff]   ;;  %s12209_s20 = sshll.u32 %s13044_s30, 8 }
  0x1b   : > { %1201 = vmatpush1.bf16.msra.mxu1 %v12555_v6  ;;  %1232 = vmatprep.mubr.bf16.mxu1 %v17598_v2  ;;  %v12564_v16 = vld [vmem:[%s17582_s1 + $0x174] ss:$36 sps:$4 sm:$0xff]   ;;  %v12566_v17 = vld [vmem:[%s17582_s1 + $0x168] ss:$36 sps:$4 sm:$0xff]   ;;  %v12572_v23 = vld [vmem:[%s17582_s1 + $0x120] ss:$36 sps:$4 sm:$0xff]   ;;  %s13086_s14 = scalar_lea.vmem %s17581_s0, %s12209_s20 }
  0x1c   : > { %2119 = vperm.xlu1 %12549, %v2073_v7   ;;  %2109 = vperm.xlu0 %12548, %v2071_v8   ;;  %v12567_v18 = vld [vmem:[%s17582_s1 + $0x170] ss:$36 sps:$4 sm:$0xff]   ;;  %v2077_v19 = vld [vmem:[%s17584_s3 + $0x38] sm:$0xff]  ;;  %v12568_v21 = vld [vmem:[%s17582_s1 + $0x124] ss:$36 sps:$4 sm:$0xff]   ;;  %s12210_s26 = sshll.u32 %s13044_s30, 6 }
  0x1d   : > { %1009 = vmatprep.subr.bf16.mxu0 %v12556_v9  ;;  %1202 = vmatprep.subr.bf16.mxu1 %v12558_v10  ;;  %v2076_v20 = vld [vmem:[%s17584_s3 + $0x30] sm:$0xff]  ;;  %v12573_v24 = vld [vmem:[%s17582_s1 + $0x128] ss:$36 sps:$4 sm:$0xff]   ;;  %v2078_v26 = vld [vmem:[%s17584_s3 + $0x40] sm:$0xff]  ;;  %s12211_s19 = sshll.u32 %s12921_s25, 10  ;;  %s12832_s27 = smov [#allocation4]  }
  0x1e   : > { %1010 = vmatpush1.bf16.msra.mxu0 %v12560_v11  ;;  %v12570_v22 = vld [vmem:[%s17582_s1 + $0x12c] ss:$36 sps:$4 sm:$0xff]   ;;  %v12574_v27 = vld [vmem:[%s17582_s1 + $0xdc] ss:$36 sps:$4 sm:$0xff]   ;;  %v12576_v28 = vld [vmem:[%s17582_s1 + $0xe4] ss:$36 sps:$4 sm:$0xff]   ;;  %s17535_s23 = scalar_lea.hbm %s17593_s12, %s12211_s19 }
  0x1f   : > { %1203 = vmatpush1.bf16.msra.mxu1 %v12561_v12  ;;  %1011 = vmatprep.subr.bf16.mxu0 %v12562_v15  ;;  %v2079_v25 = vld [vmem:[%s17584_s3 + $0x48] sm:$0xff]  ;;  %v12578_v29 = vld [vmem:[%s17582_s1 + $0xd8] ss:$36 sps:$4 sm:$0xff]   ;;  %v12579_v30 = vld [vmem:[%s17582_s1 + $0xe0] ss:$36 sps:$4 sm:$0xff]   ;;  %s12771_s15 = sshll.u32 %s12832_s27, 4  ;;  %s12772_s15 = int_to_ptr.vmem [resolvable:$false] %s12771_s15 }
  0x20   : > { %2129 = vperm.xlu1 %12549, %v2075_v13   ;;  %2124 = vperm.xlu0 %12548, %v2074_v14   ;;  %v12580_v31 = vld [vmem:[%s17582_s1 + $0x94] ss:$36 sps:$4 sm:$0xff]   ;;  %v12582_v34 = vld [vmem:[%s17582_s1 + $0x9c] ss:$36 sps:$4 sm:$0xff]   ;;  %v12586_v37 = vld [vmem:[%s17582_s1 + $0x4c] ss:$36 sps:$4 sm:$0xff]  }
  0x21   : > { %1204 = vmatprep.subr.bf16.mxu1 %v12564_v16  ;;  %v2081_v32 = vld [vmem:[%s17584_s3 + $0x58] sm:$0xff]  ;;  %v2080_v33 = vld [vmem:[%s17584_s3 + $0x50] sm:$0xff]  ;;  %v2083_v38 = vld [vmem:[%s17584_s3 + $0x68] sm:$0xff]  ;;  %s12773_s16 = scalar_lea.vmem %s12772_s15, 2048 }
  0x22   : > { %1012 = vmatpush1.bf16.msra.mxu0 %v12566_v17  ;;  %v12584_v35 = vld [vmem:[%s17582_s1 + $0x90] ss:$36 sps:$4 sm:$0xff]   ;;  %v12585_v36 = vld [vmem:[%s17582_s1 + $0x98] ss:$36 sps:$4 sm:$0xff]   ;;  %v2082_v39 = vld [vmem:[%s17584_s3 + $0x60] sm:$0xff] }
  0x23   : > { %1205 = vmatpush1.bf16.msra.mxu1 %v12567_v18  ;;  %1013 = vmatprep.subr.bf16.mxu0 %v12568_v21  ;;  %v12588_v40 = vld [vmem:[%s17582_s1 + $0x54] ss:$36 sps:$4 sm:$0xff]   ;;  %v12590_v41 = vld [vmem:[%s17582_s1 + $0x48] ss:$36 sps:$4 sm:$0xff]   ;;  %v433_v47 = vld [vmem:[%s13086_s14] sm:$0xff] }
  0x24   : > { %2139 = vperm.xlu1 %12549, %v2077_v19   ;;  %2134 = vperm.xlu0 %12548, %v2076_v20   ;;  %v12591_v42 = vld [vmem:[%s17582_s1 + $0x50] ss:$36 sps:$4 sm:$0xff]   ;;  %v12592_v43 = vld [vmem:[%s17582_s1 + $0x4] ss:$36 sps:$4 sm:$0xff]   ;;  %v2085_v44 = vld [vmem:[%s17584_s3 + $0x78] sm:$0xff] }
  0x25   : > { %1206 = vmatprep.subr.bf16.mxu1 %v12570_v22  ;;  %v2084_v45 = vld [vmem:[%s17584_s3 + $0x70] sm:$0xff]  ;;  %v434_v48 = vld [vmem:[%s13086_s14 + $0x8] sm:$0xff]  ;;  %v12596_v49 = vld [vmem:[%s17582_s1] ss:$36 sps:$4 sm:$0xff]  }
  0x26   : > { %1014 = vmatpush1.bf16.msra.mxu0 %v12572_v23  ;;  %v12594_v46 = vld [vmem:[%s17582_s1 + $0xc] ss:$36 sps:$4 sm:$0xff]   ;;  %v13108_v50 = vld [vmem:[%s17586_s5] ss:$0 sm:$0xff]  ;;  %v436_v56 = vld [vmem:[%s13086_s14 + $0x18] sm:$0xff] }
  0x27   : > { %1207 = vmatpush1.bf16.msra.mxu1 %v12573_v24  ;;  %1015 = vmatprep.subr.bf16.mxu0 %v12574_v27  ;;  %v13113_v51 = vld [vmem:[%s17587_s6] ss:$0 sm:$0xff]  ;;  %v12597_v52 = vld [vmem:[%s17582_s1 + $0x8] ss:$36 sps:$4 sm:$0xff]   ;;  %v472_v53 = vmul.f32 %v13108_v50, %v433_v47  ;;  %v473_v54 = vmul.f32 %v13108_v50, %v434_v48  ;;  %v435_v55 = vld [vmem:[%s13086_s14 + $0x10] sm:$0xff]  ;;  %v475_v62 = vmul.f32 %v13108_v50, %v436_v56 }
  0x28   : > { %2149 = vperm.xlu1 %12549, %v2079_v25   ;;  %2144 = vperm.xlu0 %12548, %v2078_v26   ;;  %v2087_v57 = vld [vmem:[%s17584_s3 + $0x88] sm:$0xff]  ;;  %v2086_v58 = vld [vmem:[%s17584_s3 + $0x80] sm:$0xff]  ;;  %v474_v61 = vmul.f32 %v13108_v50, %v435_v55  ;;  %v2089_v0 = vld [vmem:[%s17584_s3 + $0x98] sm:$0xff] }
  0x29   : > { %1208 = vmatprep.subr.bf16.mxu1 %v12576_v28  ;;  %v511_v59 = vadd.f32 %v13113_v51, %v472_v53  ;;  %v512_v60 = vadd.f32 %v13113_v51, %v473_v54  ;;  %v2088_v1 = vld [vmem:[%s17584_s3 + $0x90] sm:$0xff]  ;;  %v514_v4 = vadd.f32 %v13113_v51, %v475_v62  ;;  %v437_v5 = vld [vmem:[%s13086_s14 + $0x20] sm:$0xff]  ;;  %v438_v6 = vld [vmem:[%s13086_s14 + $0x28] sm:$0xff] }
  0x2a   : > { %1016 = vmatpush1.bf16.msra.mxu0 %v12578_v29  ;;  %v513_v3 = vadd.f32 %v13113_v51, %v474_v61  ;;  %v2091_v7 = vld [vmem:[%s17584_s3 + $0xa8] sm:$0xff]  ;;  %v2090_v8 = vld [vmem:[%s17584_s3 + $0xa0] sm:$0xff]  ;;  %v476_v10 = vmul.f32 %v13108_v50, %v437_v5  ;;  %v477_v11 = vmul.f32 %v13108_v50, %v438_v6  ;;  %v2093_v12 = vld [vmem:[%s17584_s3 + $0xb8] sm:$0xff] }
  0x2b   : > { %1209 = vmatpush1.bf16.msra.mxu1 %v12579_v30  ;;  %1017 = vmatprep.subr.bf16.mxu0 %v12580_v31  ;;  %v13132_v63 = vpack.c.bf16 %v512_v60, %v511_v59  ;;  %v2092_v13 = vld [vmem:[%s17584_s3 + $0xb0] sm:$0xff]  ;;  %v440_v17 = vld [vmem:[%s13086_s14 + $0x38] sm:$0xff]  ;;  %v449_v18 = vld [vmem:[%s13086_s14 + $0x80] sm:$0xff] }
  0x2c   : > { %2159 = vperm.xlu1 %12549, %v2081_v32   ;;  %2154 = vperm.xlu0 %12548, %v2080_v33   ;;  %v13154_v9 = vpack.c.bf16 %v514_v4, %v513_v3  ;;  %v515_v14 = vadd.f32 %v13113_v51, %v476_v10  ;;  %v516_v15 = vadd.f32 %v13113_v51, %v477_v11  ;;  %v439_v16 = vld [vmem:[%s13086_s14 + $0x30] sm:$0xff]  ;;  %v450_v19 = vld [vmem:[%s13086_s14 + $0x88] sm:$0xff]  ;;  %v452_v25 = vld [vmem:[%s13086_s14 + $0x98] sm:$0xff] }
  0x2d   : > { %1210 = vmatprep.subr.bf16.mxu1 %v12582_v34  ;;  %v488_v20 = vmul.f32 %v13108_v50, %v449_v18  ;;  %v478_v21 = vmul.f32 %v13108_v50, %v439_v16  ;;  %v479_v22 = vmul.f32 %v13108_v50, %v440_v17  ;;  %v489_v23 = vmul.f32 %v13108_v50, %v450_v19  ;;  %v451_v24 = vld [vmem:[%s13086_s14 + $0x90] sm:$0xff]  ;;  %v2095_v26 = vld [vmem:[%s17584_s3 + $0xc8] sm:$0xff]  ;;  %v2094_v27 = vld [vmem:[%s17584_s3 + $0xc0] sm:$0xff] }
  0x2e   : > { %1018 = vmatpush1.bf16.msra.mxu0 %v12584_v35  ;;  %v13186_v28 = vpack.c.bf16 %v516_v15, %v515_v14  ;;  %v490_v30 = vmul.f32 %v13108_v50, %v451_v24  ;;  %v491_v31 = vmul.f32 %v13108_v50, %v452_v25  ;;  %v453_v33 = vld [vmem:[%s13086_s14 + $0xa0] sm:$0xff]  ;;  %v454_v34 = vld [vmem:[%s13086_s14 + $0xa8] sm:$0xff]  ;;  %v460_v14 = vld [vmem:[%s13086_s14 + $0xd8] sm:$0xff] }
  0x2f   : > { %1211 = vmatpush1.bf16.msra.mxu1 %v12585_v36  ;;  %1019 = vmatprep.subr.bf16.mxu0 %v12586_v37  ;;  %v527_v29 = vadd.f32 %v13113_v51, %v488_v20  ;;  %v528_v32 = vadd.f32 %v13113_v51, %v489_v23  ;;  %v492_v37 = vmul.f32 %v13108_v50, %v453_v33  ;;  %v441_v53 = vld [vmem:[%s13086_s14 + $0x40] sm:$0xff]  ;;  %v442_v54 = vld [vmem:[%s13086_s14 + $0x48] sm:$0xff]  ;;  %v2101_v16 = vld [vmem:[%s17584_s3 + $0xf8] sm:$0xff] }
  0x30   : > { %2169 = vperm.xlu1 %12549, %v2083_v38   ;;  %2164 = vperm.xlu0 %12548, %v2082_v39   ;;  %v529_v35 = vadd.f32 %v13113_v51, %v490_v30  ;;  %v530_v36 = vadd.f32 %v13113_v51, %v491_v31  ;;  %v493_v38 = vmul.f32 %v13108_v50, %v454_v34  ;;  %v12598_v39 = vld [vmem:[%s17582_s1 + $0x208] ss:$36 sps:$4 sm:$0xff]   ;;  %v12601_v11 = vld [vmem:[%s17582_s1 + $0x1c0] ss:$36 sps:$4 sm:$0xff]   ;;  %v2100_v17 = vld [vmem:[%s17584_s3 + $0xf0] sm:$0xff] }
  0x31   : > { %1212 = vmatprep.subr.bf16.mxu1 %v12588_v40  ;;  %v12600_v40 = vld [vmem:[%s17582_s1 + $0x20c] ss:$36 sps:$4 sm:$0xff]   ;;  %v531_v47 = vadd.f32 %v13113_v51, %v492_v37  ;;  %v480_v4 = vmul.f32 %v13108_v50, %v441_v53  ;;  %v481_v5 = vmul.f32 %v13108_v50, %v442_v54  ;;  %v499_v19 = vmul.f32 %v13108_v50, %v460_v14  ;;  %v12606_v24 = vld [vmem:[%s17582_s1 + $0x17c] ss:$36 sps:$4 sm:$0xff]   ;;  %v12612_v31 = vld [vmem:[%s17582_s1 + $0x214] ss:$36 sps:$4 sm:$0xff]  }
  0x32   : > { %1020 = vmatpush1.bf16.msra.mxu0 %v12590_v41  ;;  %v2097_v41 = vld [vmem:[%s17584_s3 + $0xd8] sm:$0xff]  ;;  %v532_v48 = vadd.f32 %v13113_v51, %v493_v38  ;;  %v458_v59 = vld [vmem:[%s13086_s14 + $0xc8] sm:$0xff]  ;;  %v443_v18 = vld [vmem:[%s13086_s14 + $0x50] sm:$0xff] }
  0x33   : > { %1213 = vmatpush1.bf16.msra.mxu1 %v12591_v42  ;;  %1021 = vmatprep.subr.bf16.mxu0 %v12592_v43  ;;  %v517_v42 = vadd.f32 %v13113_v51, %v478_v21  ;;  %v518_v43 = vadd.f32 %v13113_v51, %v479_v22  ;;  %v497_v6 = vmul.f32 %v13108_v50, %v458_v59  ;;  %v444_v25 = vld [vmem:[%s13086_s14 + $0x58] sm:$0xff]  ;;  %v12610_v30 = vld [vmem:[%s17582_s1 + $0x210] ss:$36 sps:$4 sm:$0xff]   ;;  %v12616_v59 = vld [vmem:[%s17582_s1 + $0x1c8] ss:$36 sps:$4 sm:$0xff]  }
  0x34   : > { %2179 = vperm.xlu1 %12549, %v2085_v44   ;;  %2174 = vperm.xlu0 %12548, %v2084_v45   ;;  %v13209_v44 = vpack.c.bf16 %v528_v32, %v527_v29  ;;  %v2096_v45 = vld [vmem:[%s17584_s3 + $0xd0] sm:$0xff]  ;;  %v519_v20 = vadd.f32 %v13113_v51, %v480_v4  ;;  %v520_v21 = vadd.f32 %v13113_v51, %v481_v5  ;;  %v11602_v29 = vld [vmem:[%s17584_s3 + $0x108] sm:$0xff]  ;;  %v11601_v32 = vld [vmem:[%s17584_s3 + $0x100] sm:$0xff] }
  0x35   : > { %1214 = vmatprep.subr.bf16.mxu1 %v12594_v46  ;;  %v13215_v46 = vpack.c.bf16 %v530_v36, %v529_v35  ;;  %v13241_v3 = vpack.c.bf16 %v518_v43, %v517_v42  ;;  %v482_v33 = vmul.f32 %v13108_v50, %v443_v18  ;;  %v12609_v35 = vld [vmem:[%s17582_s1 + $0x134] ss:$36 sps:$4 sm:$0xff]   ;;  %v461_v36 = vld [vmem:[%s13086_s14 + $0xe0] sm:$0xff]  ;;  %v483_v38 = vmul.f32 %v13108_v50, %v444_v25 }
  0x36   : > { %1022 = vmatpush1.bf16.msra.mxu0 %v12596_v49  ;;  %v455_v49 = vld [vmem:[%s13086_s14 + $0xb0] sm:$0xff]  ;;  %v13303_v37 = vpack.c.bf16 %v520_v21, %v519_v20  ;;  %v11604_v42 = vld [vmem:[%s17584_s3 + $0x118] sm:$0xff]  ;;  %v12622_v18 = vld [vmem:[%s17582_s1 + $0x180] ss:$36 sps:$4 sm:$0xff]  }
  0x37   : > { %1215 = vmatpush1.bf16.msra.mxu1 %v12597_v52  ;;  %1393 = vmatprep.subr.bf16.mxu0 %v12600_v40  ;;  %v456_v52 = vld [vmem:[%s13086_s14 + $0xb8] sm:$0xff]  ;;  %v494_v55 = vmul.f32 %v13108_v50, %v455_v49  ;;  %v500_v40 = vmul.f32 %v13108_v50, %v461_v36  ;;  %v11603_v43 = vld [vmem:[%s17584_s3 + $0x110] sm:$0xff]  ;;  %v446_v49 = vld [vmem:[%s13086_s14 + $0x68] sm:$0xff]  ;;  %v521_v53 = vadd.f32 %v13113_v51, %v482_v33 }
  0x38   : > { %2189 = vperm.xlu1 %12549, %v2087_v57   ;;  %2184 = vperm.xlu0 %12548, %v2086_v58   ;;  %v495_v56 = vmul.f32 %v13108_v50, %v456_v52  ;;  %v13228_v57 = vpack.c.bf16 %v532_v48, %v531_v47  ;;  %v457_v58 = vld [vmem:[%s13086_s14 + $0xc0] sm:$0xff]  ;;  %17623 = vst [vmem:[#allocation12_spill] sm:$0xff] %v13303_v37  ;;  %v463_v4 = vld [vmem:[%s13086_s14 + $0xf0] sm:$0xff]  ;;  %v464_v5 = vld [vmem:[%s13086_s14 + $0xf8] sm:$0xff] }
  0x39   : > { %1040 = vmatmul.mubr.bf16.vlgmr.msra.gmra.mxu0 %v13132_v63  ;;  %v533_v60 = vadd.f32 %v13113_v51, %v494_v55  ;;  %v496_v62 = vmul.f32 %v13108_v50, %v457_v58  ;;  %1586 = vmatprep.subr.bf16.mxu1 %v12612_v31  ;;  %v539_v47 = vadd.f32 %v13113_v51, %v500_v40  ;;  %v445_v48 = vld [vmem:[%s13086_s14 + $0x60] sm:$0xff]  ;;  %v12615_v55 = vld [vmem:[%s17582_s1 + $0xec] ss:$36 sps:$4 sm:$0xff]   ;;  %v448_v25 = vld [vmem:[%s13086_s14 + $0x78] sm:$0xff] }
  0x3a   : > { %1233 = vmatmul.mubr.bf16.vlgmr.msra.gmra.mxu1 %v13132_v63  ;;  %1049 = vmatprep.mubr.bf16.mxu0 %v17598_v2  ;;  %v534_v61 = vadd.f32 %v13113_v51, %v495_v56  ;;  %v522_v54 = vadd.f32 %v13113_v51, %v483_v38  ;;  %v12618_v56 = vld [vmem:[%s17582_s1 + $0x1cc] ss:$36 sps:$4 sm:$0xff]   ;;  %v487_v33 = vmul.f32 %v13108_v50, %v448_v25  ;;  %v12633_v36 = vld [vmem:[%s17582_s1 + $0x14] ss:$36 sps:$4 sm:$0xff]  }
  0x3b   : > { %1242 = vmatprep.mubr.bf16.mxu1 %v17598_v2  ;;  %1394 = vmatpush1.bf16.msra.mxu0 %v12598_v39  ;;  %v535_v10 = vadd.f32 %v13113_v51, %v496_v62  ;;  %v462_v39 = vld [vmem:[%s13086_s14 + $0xe8] sm:$0xff]  ;;  %v11607_v14 = vld [vmem:[%s17584_s3 + $0x130] sm:$0xff]  ;;  %v11612_v38 = vld [vmem:[%s17584_s3 + $0x158] sm:$0xff] }
  0x3c   : > { %2199 = vperm.xlu1 %12549, %v2089_v0   ;;  %2194 = vperm.xlu0 %12548, %v2088_v1   ;;  %v2099_v0 = vld [vmem:[%s17584_s3 + $0xe8] sm:$0xff]  ;;  %v2098_v1 = vld [vmem:[%s17584_s3 + $0xe0] sm:$0xff]  ;;  %v526_v40 = vadd.f32 %v13113_v51, %v487_v33 }
  0x3d   : > { %1587 = vmatpush1.bf16.msra.mxu1 %v12610_v30  ;;  %v12624_v62 = vld [vmem:[%s17582_s1 + $0x184] ss:$36 sps:$4 sm:$0xff]  }
  0x3e   : > { %1588 = vmatprep.subr.bf16.mxu1 %v12618_v56  ;;  %v11609_v30 = vld [vmem:[%s17584_s3 + $0x140] sm:$0xff]  ;;  %v11638_v33 = vld [vmem:[%s17584_s3 + $0x228] sm:$0xff] }
  0x3f   : > { %v11617_v56 = vld [vmem:[%s17584_s3 + $0x180] sm:$0xff] }
  0x40   : > { %2209 = vperm.xlu1 %12549, %v2091_v7   ;;  %2204 = vperm.xlu0 %12548, %v2090_v8   ;;  %v12603_v7 = vld [vmem:[%s17582_s1 + $0x1c4] ss:$36 sps:$4 sm:$0xff]   ;;  %v13249_v8 = vpack.c.bf16 %v534_v61, %v533_v60 }
  0x41   : > { %1050 = vmatmul.mubr.bf16.gmra.mxu0 %v13154_v9  ;;  %1395 = vmatprep.subr.bf16.mxu0 %v12603_v7  ;;  %v11606_v60 = vld [vmem:[%s17584_s3 + $0x128] sm:$0xff]  ;;  %v13355_v7 = vpack.c.bf16 %v522_v54, %v521_v53  ;;  %v11615_v53 = vld [vmem:[%s17584_s3 + $0x170] sm:$0xff] }
  0x42   : > { %1243 = vmatmul.mubr.bf16.gmra.mxu1 %v13154_v9  ;;  %1059 = vmatprep.mubr.bf16.mxu0 %v17598_v2  ;;  %17622 = vst [vmem:[#allocation11_spill] sm:$0xff] %v13249_v8  ;;  %v12613_v61 = vld [vmem:[%s17582_s1 + $0xe8] ss:$36 sps:$4 sm:$0xff]  }
  0x43   : > { %1252 = vmatprep.mubr.bf16.mxu1 %v17598_v2  ;;  %1396 = vmatpush1.bf16.msra.mxu0 %v12601_v11  ;;  %17624 = vst [vmem:[#allocation13_spill] sm:$0xff] %v13355_v7  ;;  %v502_v11 = vmul.f32 %v13108_v50, %v463_v4  ;;  %v12642_v54 = vld [vmem:[%s17582_s1 + $0x64] ss:$36 sps:$4 sm:$0xff]  }
  0x44   : > { %2219 = vperm.xlu1 %12549, %v2093_v12   ;;  %2214 = vperm.xlu0 %12548, %v2092_v13   ;;  %v459_v12 = vld [vmem:[%s13086_s14 + $0xd0] sm:$0xff]  ;;  %v536_v13 = vadd.f32 %v13113_v51, %v497_v6  ;;  %v11605_v6 = vld [vmem:[%s17584_s3 + $0x120] sm:$0xff] }
  0x45   : > { %v498_v15 = vmul.f32 %v13108_v50, %v459_v12  ;;  %1397 = vmatprep.subr.bf16.mxu0 %v12606_v24  ;;  %v503_v12 = vmul.f32 %v13108_v50, %v464_v5  ;;  %1589 = vmatpush1.bf16.msra.mxu1 %v12616_v59  ;;  %v447_v24 = vld [vmem:[%s13086_s14 + $0x70] sm:$0xff]  ;;  %v12640_v59 = vld [vmem:[%s17582_s1 + $0x60] ss:$36 sps:$4 sm:$0xff]   ;;  %v11624_v5 = vld [vmem:[%s17584_s3 + $0x1b8] sm:$0xff]  ;;  %s17477_s14 = scalar_lea.vmem %s17589_s8, %s12210_s26 }
  0x46   : > { %v13270_v22 = vpack.c.bf16 %v536_v13, %v535_v10  ;;  %v12621_v10 = vld [vmem:[%s17582_s1 + $0xa4] ss:$36 sps:$4 sm:$0xff]   ;;  %v11608_v13 = vld [vmem:[%s17584_s3 + $0x138] sm:$0xff]  ;;  %1590 = vmatprep.subr.bf16.mxu1 %v12624_v62 }
  0x47   : > { %v537_v23 = vadd.f32 %v13113_v51, %v498_v15  ;;  %v12619_v15 = vld [vmem:[%s17582_s1 + $0xa0] ss:$36 sps:$4 sm:$0xff]   ;;  %v12643_v62 = vld [vmem:[%s17582_s1 + $0x18] ss:$36 sps:$4 sm:$0xff]  }
  0x48   : > { %2229 = vperm.xlu1 %12549, %v2095_v26   ;;  %2224 = vperm.xlu0 %12548, %v2094_v27   ;;  %v538_v26 = vadd.f32 %v13113_v51, %v499_v19  ;;  %v12604_v27 = vld [vmem:[%s17582_s1 + $0x178] ss:$36 sps:$4 sm:$0xff]   ;;  %v11621_v4 = vld [vmem:[%s17584_s3 + $0x1a0] sm:$0xff] }
  0x49   : > { %1060 = vmatmul.mubr.bf16.gmra.mxu0 %v13186_v28  ;;  %1591 = vmatpush1.bf16.msra.mxu1 %v12622_v18  ;;  %v11631_v18 = vld [vmem:[%s17584_s3 + $0x1f0] sm:$0xff] }
  0x4a   : > { %1253 = vmatmul.mubr.bf16.gmra.mxu1 %v13186_v28  ;;  %1069 = vmatprep.mubr.bf16.mxu0 %v17598_v2  ;;  %v13297_v34 = vpack.c.bf16 %v538_v26, %v537_v23  ;;  %v12627_v23 = vld [vmem:[%s17582_s1 + $0x5c] ss:$36 sps:$4 sm:$0xff]  }
  0x4b   : > { %1262 = vmatprep.mubr.bf16.mxu1 %v17598_v2  ;;  %1398 = vmatpush1.bf16.msra.mxu0 %v12604_v27  ;;  %v12630_v26 = vld [vmem:[%s17582_s1 + $0x13c] ss:$36 sps:$4 sm:$0xff]  }
  0x4c   : > { %2239 = vperm.xlu1 %12549, %v2097_v41   ;;  %2234 = vperm.xlu0 %12548, %v2096_v45   ;;  %v501_v41 = vmul.f32 %v13108_v50, %v462_v39  ;;  %v12607_v45 = vld [vmem:[%s17582_s1 + $0x130] ss:$36 sps:$4 sm:$0xff]   ;;  %v12625_v27 = vld [vmem:[%s17582_s1 + $0x58] ss:$36 sps:$4 sm:$0xff]  }
  0x4d   : > { %1399 = vmatprep.subr.bf16.mxu0 %v12609_v35  ;;  %v12628_v35 = vld [vmem:[%s17582_s1 + $0x138] ss:$36 sps:$4 sm:$0xff]   ;;  %1592 = vmatprep.subr.bf16.mxu1 %v12630_v26 }
  0x4e   : > { %v540_v52 = vadd.f32 %v13113_v51, %v501_v41  ;;  %1593 = vmatpush1.bf16.msra.mxu1 %v12628_v35  ;;  %v12631_v41 = vld [vmem:[%s17582_s1 + $0x10] ss:$36 sps:$4 sm:$0xff]   ;;  %v11637_v35 = vld [vmem:[%s17584_s3 + $0x220] sm:$0xff] }
  0x4f   : > { %1400 = vmatpush1.bf16.msra.mxu0 %v12607_v45  ;;  %v11614_v45 = vld [vmem:[%s17584_s3 + $0x168] sm:$0xff] }
  0x50   : > { %2249 = vperm.xlu1 %12549, %v2099_v0   ;;  %2244 = vperm.xlu0 %12548, %v2098_v1   ;;  %v13333_v58 = vpack.c.bf16 %v540_v52, %v539_v47  ;;  %v484_v0 = vmul.f32 %v13108_v50, %v445_v48  ;;  %v485_v1 = vmul.f32 %v13108_v50, %v446_v49  ;;  %v11613_v47 = vld [vmem:[%s17584_s3 + $0x160] sm:$0xff]  ;;  %v11616_v49 = vld [vmem:[%s17584_s3 + $0x178] sm:$0xff]  ;;  %v12637_v52 = vld [vmem:[%s17582_s1 + $0xa8] ss:$36 sps:$4 sm:$0xff]  }
  0x51   : > { %1070 = vmatmul.mubr.bf16.gmra.mxu0 %v13241_v3  ;;  %1401 = vmatprep.subr.bf16.mxu0 %v12615_v55  ;;  %v11618_v55 = vld [vmem:[%s17584_s3 + $0x188] sm:$0xff] }
  0x52   : > { %1263 = vmatmul.mubr.bf16.gmra.mxu1 %v13241_v3  ;;  %1079 = vmatprep.mubr.bf16.mxu0 %v17598_v2  ;;  %v523_v19 = vadd.f32 %v13113_v51, %v484_v0  ;;  %v524_v20 = vadd.f32 %v13113_v51, %v485_v1  ;;  %v11619_v0 = vld [vmem:[%s17584_s3 + $0x190] sm:$0xff]  ;;  %v11622_v1 = vld [vmem:[%s17584_s3 + $0x1a8] sm:$0xff] }
  0x53   : > { %1272 = vmatprep.mubr.bf16.mxu1 %v17598_v2  ;;  %1402 = vmatpush1.bf16.msra.mxu0 %v12613_v61  ;;  %v11620_v61 = vld [vmem:[%s17584_s3 + $0x198] sm:$0xff] }
  0x54   : > { %2259 = vperm.xlu1 %12549, %v2101_v16   ;;  %2254 = vperm.xlu0 %12548, %v2100_v17   ;;  %v541_v16 = vadd.f32 %v13113_v51, %v502_v11  ;;  %v542_v17 = vadd.f32 %v13113_v51, %v503_v12  ;;  %v13401_v31 = vpack.c.bf16 %v524_v20, %v523_v19  ;;  %v11625_v11 = vld [vmem:[%s17584_s3 + $0x1c0] sm:$0xff]  ;;  %v11628_v12 = vld [vmem:[%s17584_s3 + $0x1d8] sm:$0xff] }
  0x55   : > { %1403 = vmatprep.subr.bf16.mxu0 %v12621_v10  ;;  %v11626_v10 = vld [vmem:[%s17584_s3 + $0x1c8] sm:$0xff] }
  0x56   : > { %v13379_v21 = vpack.c.bf16 %v542_v17, %v541_v16  ;;  %17625 = vst [vmem:[#allocation14_spill] sm:$0xff] %v13401_v31  ;;  %v13525_v16 = vld [vmem:[%s17582_s1 + $0x218] ss:$36 sps:$4 sm:$0xff]  }
  0x57   : > { %1404 = vmatpush1.bf16.msra.mxu0 %v12619_v15  ;;  %v11629_v15 = vld [vmem:[%s17584_s3 + $0x1e0] sm:$0xff]  ;;  %v11632_v17 = vld [vmem:[%s17584_s3 + $0x1f8] sm:$0xff] }
  0x58   : > { %2366 = vperm.xlu1 %12549, %v11602_v29   ;;  %2361 = vperm.xlu0 %12548, %v11601_v32   ;;  %v11610_v29 = vld [vmem:[%s17584_s3 + $0x148] sm:$0xff]  ;;  %v486_v32 = vmul.f32 %v13108_v50, %v447_v24  ;;  %v11611_v50 = vld [vmem:[%s17584_s3 + $0x150] sm:$0xff]  ;;  %v11633_v24 = vld [vmem:[%s17584_s3 + $0x200] sm:$0xff] }
  0x59   : > { %1080 = vmatmul.mubr.bf16.gmra.mxu0 %v13303_v37  ;;  %1405 = vmatprep.subr.bf16.mxu0 %v12627_v23  ;;  %v11634_v23 = vld [vmem:[%s17584_s3 + $0x208] sm:$0xff] }
  0x5a   : > { %1273 = vmatmul.mubr.bf16.gmra.mxu1 %v13303_v37  ;;  %1089 = vmatprep.mubr.bf16.mxu0 %v17598_v2  ;;  %v525_v39 = vadd.f32 %v13113_v51, %v486_v32  ;;  %v12639_v51 = vld [vmem:[%s17582_s1 + $0xac] ss:$36 sps:$4 sm:$0xff]  }
  0x5b   : > { %1282 = vmatprep.mubr.bf16.mxu1 %v17598_v2  ;;  %1406 = vmatpush1.bf16.msra.mxu0 %v12625_v27  ;;  %v11636_v27 = vld [vmem:[%s17584_s3 + $0x218] sm:$0xff] }
  0x5c   : > { %2376 = vperm.xlu1 %12549, %v11604_v42   ;;  %2371 = vperm.xlu0 %12548, %v11603_v43   ;;  %v12636_v42 = vld [vmem:[%s17582_s1 + $0xf4] ss:$36 sps:$4 sm:$0xff]   ;;  %v13441_v48 = vpack.c.bf16 %v526_v40, %v525_v39 }
  0x5d   : > { %v12634_v43 = vld [vmem:[%s17582_s1 + $0xf0] ss:$36 sps:$4 sm:$0xff]   ;;  %1407 = vmatprep.subr.bf16.mxu0 %v12633_v36  ;;  %1594 = vmatprep.subr.bf16.mxu1 %v12636_v42  ;;  %v11642_v42 = vld [vmem:[%s17584_s3 + $0x248] sm:$0xff] }
  0x5e   : > { %17626 = vst [vmem:[#allocation15_spill] sm:$0xff] %v13441_v48  ;;  %1595 = vmatpush1.bf16.msra.mxu1 %v12634_v43  ;;  %v11639_v39 = vld [vmem:[%s17584_s3 + $0x230] sm:$0xff]  ;;  %v11641_v43 = vld [vmem:[%s17584_s3 + $0x240] sm:$0xff] }
  0x5f   : > { %1408 = vmatpush1.bf16.msra.mxu0 %v12631_v41  ;;  %1596 = vmatprep.subr.bf16.mxu1 %v12639_v51 }
  0x60   : > { %2386 = vperm.xlu1 %12549, %v11606_v60   ;;  %2381 = vperm.xlu0 %12548, %v11605_v6   ;;  %v12645_v60 = vld [vmem:[%s17582_s1 + $0x1c] ss:$36 sps:$4 sm:$0xff]   ;;  %v11623_v6 = vld [vmem:[%s17584_s3 + $0x1b0] sm:$0xff] }
  0x61   : > { %1090 = vmatmul.mubr.bf16.gmra.mxu0 %v13355_v7  ;;  %12296 = vmatprep.subr.bf16.mxu0 %v13525_v16 }
  0x62   : > { %1283 = vmatmul.mubr.bf16.gmra.mxu1 %v13355_v7  ;;  %1099 = vmatprep.mubr.bf16.mxu0 %v17598_v2 }
  0x63   : > { %1292 = vmatprep.mubr.bf16.mxu1 %v17598_v2  ;;  %1597 = vmatpush1.bf16.msra.mxu1 %v12637_v52 }
  0x64   : > { %2396 = vperm.xlu1 %12549, %v11608_v13   ;;  %2391 = vperm.xlu0 %12548, %v11607_v14   ;;  %v11627_v13 = vld [vmem:[%s17584_s3 + $0x1d0] sm:$0xff]  ;;  %v11630_v14 = vld [vmem:[%s17584_s3 + $0x1e8] sm:$0xff] }
  0x65   : > { %1598 = vmatprep.subr.bf16.mxu1 %v12642_v54  ;;  %v11646_v54 = vld [vmem:[%s17584_s3 + $0x268] sm:$0xff] }
  0x67   : > { %1599 = vmatpush1.bf16.msra.mxu1 %v12640_v59 }
  0x68   : > { %2406 = vperm.xlu1 %12549, %v11610_v29   ;;  %2401 = vperm.xlu0 %12548, %v11609_v30   ;;  %v11635_v29 = vld [vmem:[%s17584_s3 + $0x210] sm:$0xff] }
  0x69   : > { %1100 = vmatmul.mubr.bf16.gmra.mxu0 %v13401_v31  ;;  %1600 = vmatprep.subr.bf16.mxu1 %v12645_v60  ;;  %v11648_v60 = vld [vmem:[%s17584_s3 + $0x278] sm:$0xff] }
  0x6a   : > { %1293 = vmatmul.mubr.bf16.gmra.mxu1 %v13401_v31  ;;  %1109 = vmatprep.mubr.bf16.mxu0 %v17598_v2 }
  0x6b   : > { %1302 = vmatprep.mubr.bf16.mxu1 %v17598_v2  ;;  %1601 = vmatpush1.bf16.msra.mxu1 %v12643_v62 }
  0x6c   : > { %2416 = vperm.xlu1 %12549, %v11612_v38   ;;  %2411 = vperm.xlu0 %12548, %v11611_v50   ;;  %v11640_v50 = vld [vmem:[%s17584_s3 + $0x238] sm:$0xff] }
  0x6d   : > { %12472 = vmatprep.subr.bf16.mxu1 %v13525_v16 }
  0x70   : > { %2426 = vperm.xlu1 %12549, %v11614_v45   ;;  %2421 = vperm.xlu0 %12548, %v11613_v47   ;;  %v11644_v47 = vld [vmem:[%s17584_s3 + $0x258] sm:$0xff] }
  0x71   : > { %1110 = vmatmul.mubr.bf16.gmra.mxu0 %v13441_v48 }
  0x72   : > { %1303 = vmatmul.mubr.bf16.gmra.mxu1 %v13441_v48  ;;  %1119 = vmatprep.mubr.bf16.mxu0 %v17598_v2 }
  0x73   : > { %1312 = vmatprep.mubr.bf16.mxu1 %v17598_v2 }
  0x74   : > { %2436 = vperm.xlu1 %12549, %v11616_v49   ;;  %2431 = vperm.xlu0 %12548, %v11615_v53   ;;  %v11643_v49 = vld [vmem:[%s17584_s3 + $0x250] sm:$0xff] }
  0x78   : > { %2446 = vperm.xlu1 %12549, %v11618_v55   ;;  %2441 = vperm.xlu0 %12548, %v11617_v56   ;;  %v11645_v55 = vld [vmem:[%s17584_s3 + $0x260] sm:$0xff] }
  0x79   : > { %1120 = vmatmul.mubr.bf16.gmra.mxu0 %v13209_v44 }
  0x7a   : > { %1313 = vmatmul.mubr.bf16.gmra.mxu1 %v13209_v44  ;;  %1129 = vmatprep.mubr.bf16.mxu0 %v17598_v2 }
  0x7b   : > { %1322 = vmatprep.mubr.bf16.mxu1 %v17598_v2 }
  0x7c   : > { %2456 = vperm.xlu1 %12549, %v11620_v61   ;;  %2451 = vperm.xlu0 %12548, %v11619_v0   ;;  %v11647_v61 = vld [vmem:[%s17584_s3 + $0x270] sm:$0xff] }
  0x80   : > { %2466 = vperm.xlu1 %12549, %v11622_v1   ;;  %2461 = vperm.xlu0 %12548, %v11621_v4   ;;  %v11650_v1 = vld [vmem:[%s17584_s3 + $0x288] sm:$0xff]  ;;  %v11649_v4 = vld [vmem:[%s17584_s3 + $0x280] sm:$0xff] }
  0x81   : > { %1130 = vmatmul.mubr.bf16.gmra.mxu0 %v13215_v46 }
  0x82   : > { %1323 = vmatmul.mubr.bf16.gmra.mxu1 %v13215_v46  ;;  %1139 = vmatprep.mubr.bf16.mxu0 %v17598_v2 }
  0x83   : > { %1332 = vmatprep.mubr.bf16.mxu1 %v17598_v2 }
  0x84   : > { %2476 = vperm.xlu1 %12549, %v11624_v5   ;;  %2471 = vperm.xlu0 %12548, %v11623_v6  }
  0x88   : > { %2486 = vperm.xlu1 %12549, %v11626_v10   ;;  %2481 = vperm.xlu0 %12548, %v11625_v11   ;;  %v11652_v10 = vld [vmem:[%s17584_s3 + $0x298] sm:$0xff]  ;;  %v11651_v11 = vld [vmem:[%s17584_s3 + $0x290] sm:$0xff] }
  0x89   : > { %1140 = vmatmul.mubr.bf16.gmra.mxu0 %v13228_v57 }
  0x8a   : > { %1333 = vmatmul.mubr.bf16.gmra.mxu1 %v13228_v57  ;;  %1149 = vmatprep.mubr.bf16.mxu0 %v17598_v2 }
  0x8b   : > { %1342 = vmatprep.mubr.bf16.mxu1 %v17598_v2 }
  0x8c   : > { %2496 = vperm.xlu1 %12549, %v11628_v12   ;;  %2491 = vperm.xlu0 %12548, %v11627_v13   ;;  %v12647_v12 = vld [vmem:[%s17582_s1 + $0x1d0] ss:$36 sps:$4 sm:$0xff]  }
  0x90   : > { %2506 = vperm.xlu1 %12549, %v11630_v14   ;;  %2501 = vperm.xlu0 %12548, %v11629_v15   ;;  %v11654_v15 = vld [vmem:[%s17584_s3 + $0x2a8] sm:$0xff] }
  0x91   : > { %1150 = vmatmul.mubr.bf16.gmra.mxu0 %v13249_v8 }
  0x92   : > { %1343 = vmatmul.mubr.bf16.gmra.mxu1 %v13249_v8  ;;  %1159 = vmatprep.mubr.bf16.mxu0 %v17598_v2 }
  0x93   : > { %v13538_v19 = vpop.permute.xlu1 %2114  ;;  %v13540_v20 = vpop.permute.xlu0 %2104  ;;  %1352 = vmatprep.mubr.bf16.mxu1 %v17598_v2 }
  0x94   : > { %17627 = vst [vmem:[#allocation16_spill] sm:$0xff] %v13538_v19  ;;  %17628 = vst [vmem:[#allocation17_spill] sm:$0xff] %v13540_v20  ;;  %2516 = vperm.xlu1 %12549, %v11632_v17   ;;  %2511 = vperm.xlu0 %12548, %v11631_v18   ;;  %v11653_v17 = vld [vmem:[%s17584_s3 + $0x2a0] sm:$0xff]  ;;  %v11678_v20 = vld [vmem:[%s17584_s3 + $0x368] sm:$0xff] }
  0x97   : > { %v13549_v25 = vpop.permute.xlu1 %2119  ;;  %v13551_v26 = vpop.permute.xlu0 %2109 }
  0x98   : > { %17629 = vst [vmem:[#allocation18_spill] sm:$0xff] %v13551_v26  ;;  %2817 = vperm.xlu1 %12549, %v11634_v23   ;;  %2812 = vperm.xlu0 %12548, %v11633_v24   ;;  %v12648_v24 = vld [vmem:[%s17582_s1 + $0x188] ss:$36 sps:$4 sm:$0xff]  }
  0x99   : > { %1160 = vmatmul.mubr.bf16.gmra.mxu0 %v13270_v22 }
  0x9a   : > { %1353 = vmatmul.mubr.bf16.gmra.mxu1 %v13270_v22  ;;  %1169 = vmatprep.mubr.bf16.mxu0 %v17598_v2 }
  0x9b   : > { %v13562_v30 = vpop.permute.xlu1 %2129  ;;  %v13564_v32 = vpop.permute.xlu0 %2124  ;;  %1362 = vmatprep.mubr.bf16.mxu1 %v17598_v2 }
  0x9c   : > { %2827 = vperm.xlu1 %12549, %v11636_v27   ;;  %2822 = vperm.xlu0 %12548, %v11635_v29   ;;  %v11656_v27 = vld [vmem:[%s17584_s3 + $0x2b8] sm:$0xff] }
  0x9f   : > { %v13573_v36 = vpop.permute.xlu1 %2139  ;;  %v13575_v38 = vpop.permute.xlu0 %2134 }
  0xa0   : > { %2837 = vperm.xlu1 %12549, %v11638_v33   ;;  %2832 = vperm.xlu0 %12548, %v11637_v35   ;;  %v12649_v35 = vld [vmem:[%s17582_s1 + $0x140] ss:$36 sps:$4 sm:$0xff]  }
  0xa1   : > { %1170 = vmatmul.mubr.bf16.gmra.mxu0 %v13297_v34 }
  0xa2   : > { %1363 = vmatmul.mubr.bf16.gmra.mxu1 %v13297_v34  ;;  %1179 = vmatprep.mubr.bf16.mxu0 %v17598_v2 }
  0xa3   : > { %v13586_v40 = vpop.permute.xlu1 %2149  ;;  %v13588_v41 = vpop.permute.xlu0 %2144  ;;  %1372 = vmatprep.mubr.bf16.mxu1 %v17598_v2 }
  0xa4   : > { %2847 = vperm.xlu1 %12549, %v11640_v50   ;;  %2842 = vperm.xlu0 %12548, %v11639_v39   ;;  %v11658_v50 = vld [vmem:[%s17584_s3 + $0x2c8] sm:$0xff]  ;;  %v11657_v39 = vld [vmem:[%s17584_s3 + $0x2c0] sm:$0xff] }
  0xa7   : > { %v13597_v51 = vpop.permute.xlu1 %2159  ;;  %v13599_v45 = vpop.permute.xlu0 %2154 }
  0xa8   : > { %2857 = vperm.xlu1 %12549, %v11642_v42   ;;  %2852 = vperm.xlu0 %12548, %v11641_v43  }
  0xa9   : > { %1180 = vmatmul.mubr.bf16.gmra.mxu0 %v13333_v58 }
  0xaa   : > { %1373 = vmatmul.mubr.bf16.gmra.mxu1 %v13333_v58  ;;  %1189 = vmatprep.mubr.bf16.mxu0 %v17598_v2 }
  0xab   : > { %v13610_v52 = vpop.permute.xlu1 %2169  ;;  %v13612_v53 = vpop.permute.xlu0 %2164  ;;  %1382 = vmatprep.mubr.bf16.mxu1 %v17598_v2 }
  0xac   : > { %2867 = vperm.xlu1 %12549, %v11644_v47   ;;  %2862 = vperm.xlu0 %12548, %v11643_v49   ;;  %v11660_v47 = vld [vmem:[%s17584_s3 + $0x2d8] sm:$0xff]  ;;  %v11659_v49 = vld [vmem:[%s17584_s3 + $0x2d0] sm:$0xff] }
  0xaf   : > { %v13621_v56 = vpop.permute.xlu1 %2179  ;;  %v13623_v59 = vpop.permute.xlu0 %2174 }
  0xb0   : > { %2877 = vperm.xlu1 %12549, %v11646_v54   ;;  %2872 = vperm.xlu0 %12548, %v11645_v55  }
  0xb1   : > { %1190 = vmatmul.mubr.bf16.gmra.mxu0 %v13379_v21 }
  0xb2   : > { %1383 = vmatmul.mubr.bf16.gmra.mxu1 %v13379_v21  ;;  %1425 = vmatprep.mubr.bf16.mxu0 %v17598_v2 }
  0xb3   : > { %v13634_v62 = vpop.permute.xlu1 %2189  ;;  %v13636_v0 = vpop.permute.xlu0 %2184  ;;  %1618 = vmatprep.mubr.bf16.mxu1 %v17598_v2 }
  0xb4   : > { %2887 = vperm.xlu1 %12549, %v11648_v60   ;;  %2882 = vperm.xlu0 %12548, %v11647_v61   ;;  %v11662_v60 = vld [vmem:[%s17584_s3 + $0x2e8] sm:$0xff]  ;;  %v11661_v61 = vld [vmem:[%s17584_s3 + $0x2e0] sm:$0xff] }
  0xb7   : > { %v13645_v5 = vpop.permute.xlu1 %2199  ;;  %v13647_v6 = vpop.permute.xlu0 %2194 }
  0xb8   : > { %17630 = vst [vmem:[#allocation19_spill] sm:$0xff] %v13645_v5  ;;  %2897 = vperm.xlu1 %12549, %v11650_v1   ;;  %2892 = vperm.xlu0 %12548, %v11649_v4  }
  0xb9   : > { %1426 = vmatmul.mubr.bf16.vlgmr.msra.gmra.mxu0 %v13132_v63 }
  0xba   : > { %1435 = vmatprep.mubr.bf16.mxu0 %v17598_v2  ;;  %1619 = vmatmul.mubr.bf16.vlgmr.msra.gmra.mxu1 %v13132_v63 }
  0xbb   : > { %v13661_v13 = vpop.permute.xlu1 %2209  ;;  %v13663_v14 = vpop.permute.xlu0 %2204  ;;  %1628 = vmatprep.mubr.bf16.mxu1 %v17598_v2  ;;  %12297 = vmatpush3.bf16.msra.mxu0 %v13525_v16 }
  0xbc   : > { %17631 = vst [vmem:[#allocation20_spill] sm:$0xff] %v13661_v13  ;;  %17632 = vst [vmem:[#allocation21_spill] sm:$0xff] %v13663_v14  ;;  %2907 = vperm.xlu1 %12549, %v11652_v10   ;;  %2902 = vperm.xlu0 %12548, %v11651_v11   ;;  %v12650_v10 = vld [vmem:[%s17582_s1 + $0xf8] ss:$36 sps:$4 sm:$0xff]  }
  0xbd   : > { %12298 = vmatprep.subr.bf16.mxu0 %v12647_v12  ;;  %12480 = vmatpush3.bf16.msra.mxu1 %v13525_v16  ;;  %v11655_v16 = vld [vmem:[%s17584_s3 + $0x2b0] sm:$0xff]  ;;  %v11664_v11 = vld [vmem:[%s17584_s3 + $0x2f8] sm:$0xff] }
  0xbe   : > { %12473 = vmatprep.subr.bf16.mxu1 %v12647_v12 }
  0xbf   : > { %v13674_v18 = vpop.permute.xlu1 %2219  ;;  %v13676_v23 = vpop.permute.xlu0 %2214  ;;  %12299 = vmatpush3.bf16.msra.mxu0 %v12647_v12 }
  0xc0   : > { %17633 = vst [vmem:[#allocation22_spill] sm:$0xff] %v13674_v18  ;;  %17634 = vst [vmem:[#allocation23_spill] sm:$0xff] %v13676_v23  ;;  %2917 = vperm.xlu1 %12549, %v11654_v15   ;;  %2912 = vperm.xlu0 %12548, %v11653_v17   ;;  %v11685_v23 = vld [vmem:[%s17584_s3 + $0x3a0] sm:$0xff] }
  0xc1   : > { %1436 = vmatmul.mubr.bf16.gmra.mxu0 %v13154_v9  ;;  %12300 = vmatprep.subr.bf16.mxu0 %v12648_v24 }
  0xc2   : > { %1445 = vmatprep.mubr.bf16.mxu0 %v17598_v2  ;;  %1629 = vmatmul.mubr.bf16.gmra.mxu1 %v13154_v9 }
  0xc3   : > { %v13690_v29 = vpop.permute.xlu1 %2229  ;;  %v13692_v33 = vpop.permute.xlu0 %2224  ;;  %1638 = vmatprep.mubr.bf16.mxu1 %v17598_v2  ;;  %12301 = vmatpush3.bf16.msra.mxu0 %v12648_v24 }
  0xc4   : > { %17635 = vst [vmem:[#allocation24_spill] sm:$0xff] %v13690_v29  ;;  %17636 = vst [vmem:[#allocation25_spill] sm:$0xff] %v13692_v33  ;;  %2927 = vperm.xlu1 %12549, %v11656_v27   ;;  %2922 = vperm.xlu0 %12548, %v11655_v16   ;;  %v11665_v27 = vld [vmem:[%s17584_s3 + $0x300] sm:$0xff] }
  0xc5   : > { %12302 = vmatprep.subr.bf16.mxu0 %v12649_v35  ;;  %12481 = vmatpush3.bf16.msra.mxu1 %v12647_v12  ;;  %v11663_v12 = vld [vmem:[%s17584_s3 + $0x2f0] sm:$0xff] }
  0xc6   : > { %12474 = vmatprep.subr.bf16.mxu1 %v12648_v24 }
  0xc7   : > { %v13704_v42 = vpop.permute.xlu1 %2239  ;;  %v13706_v43 = vpop.permute.xlu0 %2234  ;;  %12303 = vmatpush3.bf16.msra.mxu0 %v12649_v35 }
  0xc8   : > { %17637 = vst [vmem:[#allocation26_spill] sm:$0xff] %v13704_v42  ;;  %17638 = vst [vmem:[#allocation27_spill] sm:$0xff] %v13706_v43  ;;  %2937 = vperm.xlu1 %12549, %v11658_v50   ;;  %2932 = vperm.xlu0 %12548, %v11657_v39   ;;  %v11668_v50 = vld [vmem:[%s17584_s3 + $0x318] sm:$0xff]  ;;  %v11667_v39 = vld [vmem:[%s17584_s3 + $0x310] sm:$0xff] }
  0xc9   : > { %1446 = vmatmul.mubr.bf16.gmra.mxu0 %v13186_v28  ;;  %12482 = vmatpush3.bf16.msra.mxu1 %v12648_v24  ;;  %v11666_v24 = vld [vmem:[%s17584_s3 + $0x308] sm:$0xff] }
  0xca   : > { %1455 = vmatprep.mubr.bf16.mxu0 %v17598_v2  ;;  %1639 = vmatmul.mubr.bf16.gmra.mxu1 %v13186_v28 }
  0xcb   : > { %v13717_v54 = vpop.permute.xlu1 %2249  ;;  %v13719_v55 = vpop.permute.xlu0 %2244  ;;  %1648 = vmatprep.mubr.bf16.mxu1 %v17598_v2  ;;  %12475 = vmatprep.subr.bf16.mxu1 %v12649_v35 }
  0xcc   : > { %17639 = vst [vmem:[#allocation28_spill] sm:$0xff] %v13717_v54  ;;  %17640 = vst [vmem:[#allocation29_spill] sm:$0xff] %v13719_v55  ;;  %2947 = vperm.xlu1 %12549, %v11660_v47   ;;  %2942 = vperm.xlu0 %12548, %v11659_v49  }
  0xcd   : > { %12483 = vmatpush3.bf16.msra.mxu1 %v12649_v35  ;;  %12304 = vmatprep.subr.bf16.mxu0 %v12650_v10 }
  0xce   : > { %12305 = vmatpush3.bf16.msra.mxu0 %v12650_v10  ;;  %12476 = vmatprep.subr.bf16.mxu1 %v12650_v10 }
  0xcf   : > { %v13728_v1 = vpop.permute.xlu1 %2259  ;;  %v13730_v4 = vpop.permute.xlu0 %2254 }
  0xd0   : > { %17641 = vst [vmem:[#allocation30_spill] sm:$0xff] %v13728_v1  ;;  %17642 = vst [vmem:[#allocation31_spill] sm:$0xff] %v13730_v4  ;;  %2957 = vperm.xlu1 %12549, %v11662_v60   ;;  %2952 = vperm.xlu0 %12548, %v11661_v61   ;;  %v11670_v60 = vld [vmem:[%s17584_s3 + $0x328] sm:$0xff]  ;;  %v11669_v61 = vld [vmem:[%s17584_s3 + $0x320] sm:$0xff] }
  0xd1   : > { %1456 = vmatmul.mubr.bf16.gmra.mxu0 %v13241_v3  ;;  %12484 = vmatpush3.bf16.msra.mxu1 %v12650_v10 }
  0xd2   : > { %1465 = vmatprep.mubr.bf16.mxu0 %v17598_v2  ;;  %1649 = vmatmul.mubr.bf16.gmra.mxu1 %v13241_v3 }
  0xd3   : > { %v13744_v15 = vpop.permute.xlu1 %2366  ;;  %v13746_v17 = vpop.permute.xlu0 %2361  ;;  %1658 = vmatprep.mubr.bf16.mxu1 %v17598_v2 }
  0xd4   : > { %17643 = vst [vmem:[#allocation32_spill] sm:$0xff] %v13744_v15  ;;  %17644 = vst [vmem:[#allocation33_spill] sm:$0xff] %v13746_v17  ;;  %2967 = vperm.xlu1 %12549, %v11664_v11   ;;  %2962 = vperm.xlu0 %12548, %v11663_v12   ;;  %v12651_v12 = vld [vmem:[%s17582_s1 + $0xb0] ss:$36 sps:$4 sm:$0xff]   ;;  %v12652_v15 = vld [vmem:[%s17582_s1 + $0x68] ss:$36 sps:$4 sm:$0xff]  }
  0xd5   : > { %12306 = vmatprep.subr.bf16.mxu0 %v12651_v12  ;;  %12477 = vmatprep.subr.bf16.mxu1 %v12651_v12  ;;  %v11677_v17 = vld [vmem:[%s17584_s3 + $0x360] sm:$0xff] }
  0xd6   : > { %12307 = vmatpush3.bf16.msra.mxu0 %v12651_v12  ;;  %12485 = vmatpush3.bf16.msra.mxu1 %v12651_v12  ;;  %v11675_v12 = vld [vmem:[%s17584_s3 + $0x350] sm:$0xff] }
  0xd7   : > { %v13755_v16 = vpop.permute.xlu1 %2376  ;;  %v13757_v35 = vpop.permute.xlu0 %2371  ;;  %12478 = vmatprep.subr.bf16.mxu1 %v12652_v15  ;;  %12308 = vmatprep.subr.bf16.mxu0 %v12652_v15 }
  0xd8   : > { %17645 = vst [vmem:[#allocation34_spill] sm:$0xff] %v13757_v35  ;;  %3267 = vperm.xlu1 %12549, %v11666_v24   ;;  %3262 = vperm.xlu0 %12548, %v11665_v27   ;;  %v11672_v24 = vld [vmem:[%s17584_s3 + $0x338] sm:$0xff]  ;;  %v11671_v27 = vld [vmem:[%s17584_s3 + $0x330] sm:$0xff] }
  0xd9   : > { %1466 = vmatmul.mubr.bf16.gmra.mxu0 %v13303_v37 }
  0xda   : > { %1475 = vmatprep.mubr.bf16.mxu0 %v17598_v2  ;;  %1659 = vmatmul.mubr.bf16.gmra.mxu1 %v13303_v37 }
  0xdb   : > { %v13768_v47 = vpop.permute.xlu1 %2386  ;;  %v13770_v49 = vpop.permute.xlu0 %2381  ;;  %1668 = vmatprep.mubr.bf16.mxu1 %v17598_v2  ;;  %12486 = vmatpush3.bf16.msra.mxu1 %v12652_v15 }
  0xdc   : > { %3277 = vperm.xlu1 %12549, %v11668_v50   ;;  %3272 = vperm.xlu0 %12548, %v11667_v39  }
  0xdd   : > { %12309 = vmatpush3.bf16.msra.mxu0 %v12652_v15 }
  0xdf   : > { %v13779_v10 = vpop.permute.xlu1 %2396  ;;  %v13781_v11 = vpop.permute.xlu0 %2391 }
  0xe0   : > { %3287 = vperm.xlu1 %12549, %v11670_v60   ;;  %3282 = vperm.xlu0 %12548, %v11669_v61   ;;  %v11674_v60 = vld [vmem:[%s17584_s3 + $0x348] sm:$0xff]  ;;  %v11673_v61 = vld [vmem:[%s17584_s3 + $0x340] sm:$0xff] }
  0xe1   : > { %1476 = vmatmul.mubr.bf16.gmra.mxu0 %v13355_v7 }
  0xe2   : > { %1485 = vmatprep.mubr.bf16.mxu0 %v17598_v2  ;;  %1669 = vmatmul.mubr.bf16.gmra.mxu1 %v13355_v7 }
  0xe3   : > { %v13795_v50 = vpop.permute.xlu1 %2406  ;;  %v13797_v39 = vpop.permute.xlu0 %2401  ;;  %1678 = vmatprep.mubr.bf16.mxu1 %v17598_v2 }
  0xe4   : > { %3297 = vperm.xlu1 %12549, %v11672_v24   ;;  %3292 = vperm.xlu0 %12548, %v11671_v27   ;;  %v11676_v24 = vld [vmem:[%s17584_s3 + $0x358] sm:$0xff]  ;;  %v17646_v27 = vmov 0  }
  0xe7   : > { %v13809_v26 = vpop.permute.xlu1 %2416  ;;  %v13811_v2 = vpop.permute.xlu0 %2411 }
  0xe8   : > { %3307 = vperm.xlu1 %12549, %v11674_v60   ;;  %3302 = vperm.xlu0 %12548, %v11673_v61   ;;  %v12653_v60 = vld [vmem:[%s17582_s1 + $0x20] ss:$36 sps:$4 sm:$0xff]  }
  0xe9   : > { %1486 = vmatmul.mubr.bf16.gmra.mxu0 %v13401_v31  ;;  %12479 = vmatprep.subr.bf16.mxu1 %v12653_v60 }
  0xea   : > { %1495 = vmatprep.mubr.bf16.mxu0 %v17646_v27  ;;  %1679 = vmatmul.mubr.bf16.gmra.mxu1 %v13401_v31 }
  0xeb   : > { %v13825_v61 = vpop.permute.xlu1 %2426  ;;  %v13827_v19 = vpop.permute.xlu0 %2421  ;;  %1688 = vmatprep.mubr.bf16.mxu1 %v17646_v27  ;;  %12487 = vmatpush3.bf16.msra.mxu1 %v12653_v60 }
  0xec   : > { %3317 = vperm.xlu1 %12549, %v11676_v24   ;;  %3312 = vperm.xlu0 %12548, %v11675_v12   ;;  %v11680_v24 = vld [vmem:[%s17584_s3 + $0x378] sm:$0xff]  ;;  %v11679_v12 = vld [vmem:[%s17584_s3 + $0x370] sm:$0xff] }
  0xed   : > { %12310 = vmatprep.subr.bf16.mxu0 %v12653_v60 }
  0xee   : > { %12311 = vmatpush3.bf16.msra.mxu0 %v12653_v60  ;;  %v11684_v60 = vld [vmem:[%s17584_s3 + $0x398] sm:$0xff] }
  0xef   : > { %v13836_v1 = vpop.permute.xlu1 %2436  ;;  %v13838_v4 = vpop.permute.xlu0 %2431 }
  0xf0   : > { %3327 = vperm.xlu1 %12549, %v11678_v20   ;;  %3322 = vperm.xlu0 %12548, %v11677_v17   ;;  %v11682_v20 = vld [vmem:[%s17584_s3 + $0x388] sm:$0xff]  ;;  %v11681_v17 = vld [vmem:[%s17584_s3 + $0x380] sm:$0xff] }
  0xf1   : > { %1496 = vmatmul.mubr.bf16.gmra.mxu0 %v13441_v48 }
  0xf2   : > { %1505 = vmatprep.mubr.bf16.mxu0 %v17646_v27  ;;  %1689 = vmatmul.mubr.bf16.gmra.mxu1 %v13441_v48  ;;  %v11686_v48 = vld [vmem:[%s17584_s3 + $0x3a8] sm:$0xff] }
  0xf3   : > { %v13849_v15 = vpop.permute.xlu1 %2446  ;;  %v13851_v54 = vpop.permute.xlu0 %2441  ;;  %1698 = vmatprep.mubr.bf16.mxu1 %v17646_v27 }
  0xf4   : > { %3337 = vperm.xlu1 %12549, %v11680_v24   ;;  %3332 = vperm.xlu0 %12548, %v11679_v12   ;;  %v11683_v24 = vld [vmem:[%s17584_s3 + $0x390] sm:$0xff] }
  0xf7   : > { %v13860_v55 = vpop.permute.xlu1 %2456  ;;  %v13862_v42 = vpop.permute.xlu0 %2451 }
  0xf8   : > { %17647 = vst [vmem:[#allocation35_spill] sm:$0xff] %v13860_v55  ;;  %3347 = vperm.xlu1 %12549, %v11682_v20   ;;  %3342 = vperm.xlu0 %12548, %v11681_v17  }
  0xf9   : > { %v13864_v43 = vpop.f32.mrf.mxu0  ;;  %1506 = vmatmul.mubr.bf16.gmra.mxu0 %v13209_v44 }
  0xfa   : > { %17648 = vst [vmem:[#allocation36_spill] sm:$0xff] %v13864_v43  ;;  %v13873_v12 = vpop.f32.mrf.mxu1  ;;  %1515 = vmatprep.mubr.bf16.mxu0 %v17646_v27  ;;  %1699 = vmatmul.mubr.bf16.gmra.mxu1 %v13209_v44  ;;  %v17656_v14 = vrot.slane %v13864_v43, 7 }
  0xfb   : > { %17649 = vst [vmem:[#allocation37_spill] sm:$0xff] %v13873_v12  ;;  %v13877_v20 = vpop.permute.xlu1 %2466  ;;  %v13879_v17 = vpop.permute.xlu0 %2461  ;;  %1708 = vmatprep.mubr.bf16.mxu1 %v17646_v27 }
  0xfc   : > { %17650 = vst [vmem:[#allocation38_spill] sm:$0xff] %v13877_v20  ;;  %17651 = vst [vmem:[#allocation39_spill] sm:$0xff] %v13879_v17  ;;  %v13882_v29 = vpop.f32.mrf.mxu0  ;;  %v13884_v35 = vpop.f32.mrf.mxu1  ;;  %3357 = vperm.xlu1 %12549, %v11684_v60   ;;  %3352 = vperm.xlu0 %12548, %v11683_v24  }
  0xfd   : > { %17652 = vst [vmem:[#allocation40_spill] sm:$0xff] %v13882_v29  ;;  %17653 = vst [vmem:[#allocation41_spill] sm:$0xff] %v13884_v35 }
  0xfe   : > { %v1045_v31 = vpop.f32.mrf.mxu0  ;;  %v1238_v20 = vpop.f32.mrf.mxu1 }
  0xff   : > { %v1982_v60 = vrot.slane %v1045_v31, 7  ;;  %v2686_v24 = vrot.slane %v1238_v20, 1  ;;  %v13895_v13 = vpop.permute.xlu1 %2476  ;;  %v13897_v33 = vpop.permute.xlu0 %2471  ;;  %v11688_v31 = vld [vmem:[%s17584_s3 + $0x3b8] sm:$0xff]  ;;  %v11687_v20 = vld [vmem:[%s17584_s3 + $0x3b0] sm:$0xff] }
 0x100   : > { %17654 = vst [vmem:[#allocation42_spill] sm:$0xff] %v13895_v13  ;;  %17655 = vst [vmem:[#allocation43_spill] sm:$0xff] %v13897_v33  ;;  %v1047_v18 = vpop.f32.mrf.mxu0  ;;  %v1240_v7 = vpop.f32.mrf.mxu1  ;;  %3367 = vperm.xlu1 %12549, %v11686_v48   ;;  %3362 = vperm.xlu0 %12548, %v11685_v23   ;;  %v17657_v48 = vrot.slane %v13873_v12, 1  ;;  %v17661_v12 = vrot.slane %v13884_v35, 7 }
 0x101   : > { %v1983_v17 = vsel %vm1943_vm0, %v17656_v14, %v1982_v60  ;;  %v2522_v37 = vmul.f32 %v13755_v16, %v1047_v18  ;;  %v3133_v55 = vrot.slane %v1240_v7, 7  ;;  %1516 = vmatmul.mubr.bf16.gmra.mxu0 %v13215_v46 }
 0x102   : > { %v13913_v23 = vsel %vm2649_vm1, %v17657_v48, %v2686_v24  ;;  %v2265_v14 = vmul.f32 %v13549_v25, %v1983_v17  ;;  %v1051_v29 = vpop.f32.mrf.mxu0  ;;  %v1244_v18 = vpop.f32.mrf.mxu1  ;;  %1525 = vmatprep.mubr.bf16.mxu0 %v17646_v27  ;;  %1709 = vmatmul.mubr.bf16.gmra.mxu1 %v13215_v46 }
 0x103   : > { %17658 = vst [vmem:[#allocation44_spill] sm:$0xff] %v13913_v23  ;;  %v1984_v7 = vrot.slane %v1051_v29, 7  ;;  %v2688_v16 = vrot.slane %v1244_v18, 1  ;;  %v13918_v43 = vpop.permute.xlu1 %2486  ;;  %v13920_v13 = vpop.permute.xlu0 %2481  ;;  %1718 = vmatprep.mubr.bf16.mxu1 %v17646_v27  ;;  %v13926_v48 = vsel %vm1943_vm0, %v17661_v12, %v3133_v55  ;;  %v11689_v12 = vld [vmem:[%s17584_s3 + $0x3c0] sm:$0xff] }
 0x104   : > { %17659 = vst [vmem:[#allocation45_spill] sm:$0xff] %v13918_v43  ;;  %17660 = vst [vmem:[#allocation46_spill] sm:$0xff] %v13920_v13  ;;  %v13928_v25 = vadd.f32 %v2522_v37, %v2265_v14  ;;  %v1053_v17 = vpop.f32.mrf.mxu0  ;;  %v1246_v23 = vpop.f32.mrf.mxu1  ;;  %3377 = vperm.xlu1 %12549, %v11688_v31   ;;  %3372 = vperm.xlu0 %12548, %v11687_v20   ;;  %v11690_v13 = vld [vmem:[%s17584_s3 + $0x3c8] sm:$0xff] }
 0x105   : > { %17662 = vst [vmem:[#allocation47_spill] sm:$0xff] %v13926_v48  ;;  %v1985_v29 = vsel %vm1943_vm0, %v1982_v60, %v1984_v7  ;;  %v2523_v18 = vmul.f32 %v13770_v49, %v1053_v17  ;;  %v3135_v43 = vrot.slane %v1246_v23, 7  ;;  %v13939_v37 = vsel %vm2649_vm1, %v2686_v24, %v2688_v16 }
 0x106   : > { %v2266_v14 = vmul.f32 %v13564_v32, %v1985_v29  ;;  %v1055_v31 = vpop.f32.mrf.mxu0  ;;  %v1248_v20 = vpop.f32.mrf.mxu1 }
 0x107   : > { %v1986_v35 = vrot.slane %v1055_v31, 7  ;;  %v2690_v60 = vrot.slane %v1248_v20, 1  ;;  %v13942_v48 = vpop.permute.xlu1 %2496  ;;  %v13944_v49 = vpop.permute.xlu0 %2491  ;;  %v13947_v23 = vsel %vm1943_vm0, %v3133_v55, %v3135_v43  ;;  %v11692_v31 = vld [vmem:[%s17584_s3 + $0x3d8] sm:$0xff]  ;;  %v11691_v55 = vld [vmem:[%s17584_s3 + $0x3d0] sm:$0xff] }
 0x108   : > { %17663 = vst [vmem:[#allocation48_spill] sm:$0xff] %v13942_v48  ;;  %17664 = vst [vmem:[#allocation49_spill] sm:$0xff] %v13944_v49  ;;  %v13949_v17 = vadd.f32 %v2523_v18, %v2266_v14  ;;  %v1057_v33 = vpop.f32.mrf.mxu0  ;;  %v1250_v5 = vpop.f32.mrf.mxu1  ;;  %3387 = vperm.xlu1 %12549, %v11690_v13   ;;  %3382 = vperm.xlu0 %12548, %v11689_v12  }
 0x109   : > { %17665 = vst [vmem:[#allocation50_spill] sm:$0xff] %v13947_v23  ;;  %v1987_v24 = vsel %vm1943_vm0, %v1984_v7, %v1986_v35  ;;  %v2524_v32 = vmul.f32 %v13768_v47, %v1057_v33  ;;  %v3137_v29 = vrot.slane %v1250_v5, 7  ;;  %1526 = vmatmul.mubr.bf16.gmra.mxu0 %v13228_v57  ;;  %v13961_v18 = vsel %vm2649_vm1, %v2688_v16, %v2690_v60 }
 0x10a   : > { %v2267_v13 = vmul.f32 %v13562_v30, %v1987_v24  ;;  %v1061_v12 = vpop.f32.mrf.mxu0  ;;  %v1254_v7 = vpop.f32.mrf.mxu1  ;;  %1535 = vmatprep.mubr.bf16.mxu0 %v17646_v27  ;;  %1719 = vmatmul.mubr.bf16.gmra.mxu1 %v13228_v57 }
 0x10b   : > { %v1988_v5 = vrot.slane %v1061_v12, 7  ;;  %v2692_v33 = vrot.slane %v1254_v7, 1  ;;  %v13966_v47 = vpop.permute.xlu1 %2506  ;;  %v13968_v14 = vpop.permute.xlu0 %2501  ;;  %1728 = vmatprep.mubr.bf16.mxu1 %v17646_v27  ;;  %v13972_v20 = vsel %vm1943_vm0, %v3135_v43, %v3137_v29  ;;  %v11693_v43 = vld [vmem:[%s17584_s3 + $0x3e0] sm:$0xff] }
 0x10c   : > { %17666 = vst [vmem:[#allocation51_spill] sm:$0xff] %v13966_v47  ;;  %17667 = vst [vmem:[#allocation52_spill] sm:$0xff] %v13968_v14  ;;  %v13974_v16 = vadd.f32 %v2524_v32, %v2267_v13  ;;  %v1063_v30 = vpop.f32.mrf.mxu0  ;;  %v1256_v24 = vpop.f32.mrf.mxu1  ;;  %3397 = vperm.xlu1 %12549, %v11692_v31   ;;  %3392 = vperm.xlu0 %12548, %v11691_v55   ;;  %v11694_v47 = vld [vmem:[%s17584_s3 + $0x3e8] sm:$0xff] }
 0x10d   : > { %17668 = vst [vmem:[#allocation53_spill] sm:$0xff] %v13972_v20  ;;  %v1989_v23 = vsel %vm1943_vm0, %v1986_v35, %v1988_v5  ;;  %v2525_v12 = vmul.f32 %v13781_v11, %v1063_v30  ;;  %v3139_v7 = vrot.slane %v1256_v24, 7  ;;  %v13985_v32 = vsel %vm2649_vm1, %v2690_v60, %v2692_v33 }
 0x10e   : > { %v2268_v13 = vmul.f32 %v13575_v38, %v1989_v23  ;;  %v1065_v31 = vpop.f32.mrf.mxu0  ;;  %v1258_v55 = vpop.f32.mrf.mxu1 }
 0x10f   : > { %v1990_v14 = vrot.slane %v1065_v31, 7  ;;  %v2694_v35 = vrot.slane %v1258_v55, 1  ;;  %v13988_v48 = vpop.permute.xlu1 %2516  ;;  %v13990_v11 = vpop.permute.xlu0 %2511  ;;  %v13993_v30 = vsel %vm1943_vm0, %v3137_v29, %v3139_v7  ;;  %v11696_v31 = vld [vmem:[%s17584_s3 + $0x3f8] sm:$0xff]  ;;  %v11695_v29 = vld [vmem:[%s17584_s3 + $0x3f0] sm:$0xff] }
 0x110   : > { %17669 = vst [vmem:[#allocation54_spill] sm:$0xff] %v13988_v48  ;;  %17670 = vst [vmem:[#allocation55_spill] sm:$0xff] %v13990_v11  ;;  %v13995_v24 = vadd.f32 %v2525_v12, %v2268_v13  ;;  %v1067_v49 = vpop.f32.mrf.mxu0  ;;  %v1260_v20 = vpop.f32.mrf.mxu1  ;;  %3407 = vperm.xlu1 %12549, %v11694_v47   ;;  %3402 = vperm.xlu0 %12548, %v11693_v43  }
 0x111   : > { %17671 = vst [vmem:[#allocation56_spill] sm:$0xff] %v13993_v30  ;;  %v1991_v60 = vsel %vm1943_vm0, %v1988_v5, %v1990_v14  ;;  %v2526_v38 = vmul.f32 %v13779_v10, %v1067_v49  ;;  %v3141_v23 = vrot.slane %v1260_v20, 7  ;;  %1536 = vmatmul.mubr.bf16.gmra.mxu0 %v13249_v8  ;;  %v14007_v12 = vsel %vm2649_vm1, %v2692_v33, %v2694_v35 }
 0x112   : > { %v2269_v47 = vmul.f32 %v13573_v36, %v1991_v60  ;;  %v1071_v43 = vpop.f32.mrf.mxu0  ;;  %v1264_v5 = vpop.f32.mrf.mxu1  ;;  %1545 = vmatprep.mubr.bf16.mxu0 %v17646_v27  ;;  %1729 = vmatmul.mubr.bf16.gmra.mxu1 %v13249_v8 }
 0x113   : > { %v1992_v10 = vrot.slane %v1071_v43, 7  ;;  %v2696_v49 = vrot.slane %v1264_v5, 1  ;;  %v14012_v20 = vpop.permute.xlu1 %2817  ;;  %v14014_v13 = vpop.permute.xlu0 %2812  ;;  %1738 = vmatprep.mubr.bf16.mxu1 %v17646_v27  ;;  %v14018_v55 = vsel %vm1943_vm0, %v3139_v7, %v3141_v23  ;;  %v11697_v7 = vld [vmem:[%s17584_s3 + $0x400] sm:$0xff] }
 0x114   : > { %17672 = vst [vmem:[#allocation57_spill] sm:$0xff] %v14012_v20  ;;  %17673 = vst [vmem:[#allocation58_spill] sm:$0xff] %v14014_v13  ;;  %v14020_v33 = vadd.f32 %v2526_v38, %v2269_v47  ;;  %v1073_v36 = vpop.f32.mrf.mxu0  ;;  %v1266_v60 = vpop.f32.mrf.mxu1  ;;  %3417 = vperm.xlu1 %12549, %v11696_v31   ;;  %3412 = vperm.xlu0 %12548, %v11695_v29   ;;  %v11698_v20 = vld [vmem:[%s17584_s3 + $0x408] sm:$0xff] }
 0x115   : > { %17674 = vst [vmem:[#allocation59_spill] sm:$0xff] %v14018_v55  ;;  %v1993_v48 = vsel %vm1943_vm0, %v1990_v14, %v1992_v10  ;;  %v2527_v43 = vmul.f32 %v13797_v39, %v1073_v36  ;;  %v3143_v5 = vrot.slane %v1266_v60, 7  ;;  %v2697_v38 = vsel %vm2649_vm1, %v2694_v35, %v2696_v49 }
 0x116   : > { %v2270_v47 = vmul.f32 %v13588_v41, %v1993_v48  ;;  %v1075_v13 = vpop.f32.mrf.mxu0  ;;  %v1268_v31 = vpop.f32.mrf.mxu1 }
 0x117   : > { %v1994_v29 = vrot.slane %v1075_v13, 7  ;;  %v2698_v11 = vrot.slane %v1268_v31, 1  ;;  %v2828_v14 = vpop.permute.xlu1 %2827  ;;  %v14032_v30 = vpop.permute.xlu0 %2822  ;;  %v14035_v39 = vsel %vm1943_vm0, %v3141_v23, %v3143_v5  ;;  %v11700_v23 = vld [vmem:[%s17584_s3 + $0x418] sm:$0xff]  ;;  %v11699_v13 = vld [vmem:[%s17584_s3 + $0x410] sm:$0xff] }
 0x118   : > { %17675 = vst [vmem:[#allocation60_spill] sm:$0xff] %v14035_v39  ;;  %v14037_v36 = vadd.f32 %v2527_v43, %v2270_v47  ;;  %v2973_v60 = vmul.f32 %v2828_v14, %v13939_v37  ;;  %v1077_v55 = vpop.f32.mrf.mxu0  ;;  %v1270_v8 = vpop.f32.mrf.mxu1  ;;  %3588 = vperm.xlu1 %12549, %v11698_v20   ;;  %3583 = vperm.xlu0 %12548, %v11697_v7  }
 0x119   : > { %v1995_v41 = vsel %vm1943_vm0, %v1992_v10, %v1994_v29  ;;  %v2528_v48 = vmul.f32 %v13795_v50, %v1077_v55  ;;  %v3145_v35 = vrot.slane %v1270_v8, 7  ;;  %1546 = vmatmul.mubr.bf16.gmra.mxu0 %v13270_v22  ;;  %v14050_v37 = vsel %vm2649_vm1, %v2696_v49, %v2698_v11 }
 0x11a   : > { %v14053_v20 = vadd.f32 %v2973_v60, %v13928_v25  ;;  %v2271_v10 = vmul.f32 %v13586_v40, %v1995_v41  ;;  %v1081_v50 = vpop.f32.mrf.mxu0  ;;  %v1274_v8 = vpop.f32.mrf.mxu1  ;;  %1555 = vmatprep.mubr.bf16.mxu0 %v17646_v27  ;;  %1739 = vmatmul.mubr.bf16.gmra.mxu1 %v13270_v22 }
 0x11b   : > { %v1996_v55 = vrot.slane %v1081_v50, 7  ;;  %v2700_v43 = vrot.slane %v1274_v8, 1  ;;  %v2838_v7 = vpop.permute.xlu1 %2837  ;;  %v2833_v47 = vpop.permute.xlu0 %2832  ;;  %1748 = vmatprep.mubr.bf16.mxu1 %v17646_v27  ;;  %v14060_v49 = vsel %vm1943_vm0, %v3143_v5, %v3145_v35  ;;  %v11702_v5 = vld [vmem:[%s17584_s3 + $0x428] sm:$0xff] }
 0x11c   : > { %17676 = vst [vmem:[#allocation61_spill] sm:$0xff] %v14060_v49  ;;  %v14062_v31 = vadd.f32 %v2528_v48, %v2271_v10  ;;  %v2975_v25 = vmul.f32 %v2838_v7, %v13985_v32  ;;  %v2974_v40 = vmul.f32 %v2833_v47, %v13961_v18  ;;  %v1083_v14 = vpop.f32.mrf.mxu0  ;;  %v1276_v60 = vpop.f32.mrf.mxu1  ;;  %3598 = vperm.xlu1 %12549, %v11700_v23   ;;  %v11701_v48 = vld [vmem:[%s17584_s3 + $0x420] sm:$0xff] }
 0x11d   : > { %3593 = vperm.xlu0 %12548, %v11699_v13   ;;  %v1997_v41 = vsel %vm1943_vm0, %v1994_v29, %v1996_v55  ;;  %v2529_v50 = vmul.f32 %v13811_v2, %v1083_v14  ;;  %v3147_v8 = vrot.slane %v1276_v60, 7  ;;  %v2701_v32 = vsel %vm2649_vm1, %v2698_v11, %v2700_v43 }
 0x11e   : > { %v14076_v18 = vadd.f32 %v2975_v25, %v13974_v16  ;;  %v14079_v23 = vadd.f32 %v2974_v40, %v13949_v17  ;;  %v2272_v29 = vmul.f32 %v13599_v45, %v1997_v41  ;;  %v1085_v2 = vpop.f32.mrf.mxu0  ;;  %v1278_v13 = vpop.f32.mrf.mxu1 }
 0x11f   : > { %v1998_v10 = vrot.slane %v1085_v2, 7  ;;  %v2702_v7 = vrot.slane %v1278_v13, 1  ;;  %v2848_v47 = vpop.permute.xlu1 %2847  ;;  %v2843_v14 = vpop.permute.xlu0 %2842  ;;  %v14083_v60 = vsel %vm1943_vm0, %v3145_v35, %v3147_v8  ;;  %v11704_v35 = vld [vmem:[%s17584_s3 + $0x438] sm:$0xff] }
 0x120   : > { %v14085_v39 = vadd.f32 %v2529_v50, %v2272_v29  ;;  %v2977_v11 = vmul.f32 %v2848_v47, %v2697_v38  ;;  %v2976_v16 = vmul.f32 %v2843_v14, %v14007_v12  ;;  %v1087_v25 = vpop.f32.mrf.mxu0  ;;  %v1280_v49 = vpop.f32.mrf.mxu1  ;;  %3608 = vperm.xlu1 %12549, %v11702_v5   ;;  %v11703_v38 = vld [vmem:[%s17584_s3 + $0x430] sm:$0xff] }
 0x121   : > { %3603 = vperm.xlu0 %12548, %v11701_v48   ;;  %v1999_v45 = vsel %vm1943_vm0, %v1996_v55, %v1998_v10  ;;  %v2530_v17 = vmul.f32 %v13809_v26, %v1087_v25  ;;  %v3149_v40 = vrot.slane %v1280_v49, 7  ;;  %1556 = vmatmul.mubr.bf16.gmra.mxu0 %v13297_v34  ;;  %v2703_v12 = vsel %vm2649_vm1, %v2700_v43, %v2702_v7 }
 0x122   : > { %v14099_v41 = vadd.f32 %v2977_v11, %v14020_v33  ;;  %v14102_v55 = vadd.f32 %v2976_v16, %v13995_v24  ;;  %v2273_v26 = vmul.f32 %v13597_v51, %v1999_v45  ;;  %v1091_v49 = vpop.f32.mrf.mxu0  ;;  %v1284_v50 = vpop.f32.mrf.mxu1  ;;  %1565 = vmatprep.mubr.bf16.mxu0 %v17646_v27  ;;  %1749 = vmatmul.mubr.bf16.gmra.mxu1 %v13297_v34 }
 0x123   : > { %v2000_v5 = vrot.slane %v1091_v49, 7  ;;  %v2704_v48 = vrot.slane %v1284_v50, 1  ;;  %v2858_v29 = vpop.permute.xlu1 %2857  ;;  %v2853_v2 = vpop.permute.xlu0 %2852  ;;  %1758 = vmatprep.mubr.bf16.mxu1 %v17646_v27  ;;  %v14109_v33 = vsel %vm1943_vm0, %v3147_v8, %v3149_v40  ;;  %v11706_v8 = vld [vmem:[%s17584_s3 + $0x448] sm:$0xff] }
 0x124   : > { %v2594_v43 = vadd.f32 %v2530_v17, %v2273_v26  ;;  %v2979_v24 = vmul.f32 %v2858_v29, %v2701_v32  ;;  %v2978_v13 = vmul.f32 %v2853_v2, %v14050_v37  ;;  %v1093_v51 = vpop.f32.mrf.mxu0  ;;  %v1286_v47 = vpop.f32.mrf.mxu1  ;;  %3618 = vperm.xlu1 %12549, %v11704_v35   ;;  %v11705_v32 = vld [vmem:[%s17584_s3 + $0x440] sm:$0xff] }
 0x125   : > { %3613 = vperm.xlu0 %12548, %v11703_v38   ;;  %v2001_v14 = vsel %vm1943_vm0, %v1998_v10, %v2000_v5  ;;  %v2531_v11 = vmul.f32 %v13827_v19, %v1093_v51  ;;  %v3151_v16 = vrot.slane %v1286_v47, 7  ;;  %v2705_v25 = vsel %vm2649_vm1, %v2702_v7, %v2704_v48 }
 0x126   : > { %v14122_v37 = vadd.f32 %v2979_v24, %v14062_v31  ;;  %v14125_v45 = vadd.f32 %v2978_v13, %v14037_v36  ;;  %v2274_v10 = vmul.f32 %v13612_v53, %v2001_v14  ;;  %v1095_v19 = vpop.f32.mrf.mxu0  ;;  %v1288_v17 = vpop.f32.mrf.mxu1 }
 0x127   : > { %v2002_v35 = vrot.slane %v1095_v19, 7  ;;  %v2706_v7 = vrot.slane %v1288_v17, 1  ;;  %v2868_v38 = vpop.permute.xlu1 %2867  ;;  %v2863_v26 = vpop.permute.xlu0 %2862  ;;  %v14129_v49 = vsel %vm1943_vm0, %v3149_v40, %v3151_v16  ;;  %v11708_v40 = vld [vmem:[%s17584_s3 + $0x458] sm:$0xff] }
 0x128   : > { %v2595_v50 = vadd.f32 %v2531_v11, %v2274_v10  ;;  %v2981_v29 = vmul.f32 %v2868_v38, %v2705_v25  ;;  %v2980_v2 = vmul.f32 %v2863_v26, %v2703_v12  ;;  %v1097_v51 = vpop.f32.mrf.mxu0  ;;  %v1290_v31 = vpop.f32.mrf.mxu1  ;;  %3628 = vperm.xlu1 %12549, %v11706_v8   ;;  %v11707_v12 = vld [vmem:[%s17584_s3 + $0x450] sm:$0xff] }
 0x129   : > { %3623 = vperm.xlu0 %12548, %v11705_v32   ;;  %v2003_v36 = vsel %vm1943_vm0, %v2000_v5, %v2002_v35  ;;  %v2532_v53 = vmul.f32 %v13825_v61, %v1097_v51  ;;  %v3153_v24 = vrot.slane %v1290_v31, 7  ;;  %1566 = vmatmul.mubr.bf16.gmra.mxu0 %v13333_v58  ;;  %v2707_v13 = vsel %vm2649_vm1, %v2704_v48, %v2706_v7 }
 0x12a   : > { %v14141_v47 = vadd.f32 %v2981_v29, %v2594_v43  ;;  %v14144_v14 = vadd.f32 %v2980_v2, %v14085_v39  ;;  %v2275_v61 = vmul.f32 %v13610_v52, %v2003_v36  ;;  %v1101_v5 = vpop.f32.mrf.mxu0  ;;  %v1294_v11 = vpop.f32.mrf.mxu1  ;;  %1575 = vmatprep.mubr.bf16.mxu0 %v17646_v27  ;;  %1759 = vmatmul.mubr.bf16.gmra.mxu1 %v13333_v58  ;;  %v11710_v2 = vld [vmem:[%s17584_s3 + $0x468] sm:$0xff] }
 0x12b   : > { %v2004_v48 = vrot.slane %v1101_v5, 7  ;;  %v2708_v25 = vrot.slane %v1294_v11, 1  ;;  %v2878_v8 = vpop.permute.xlu1 %2877  ;;  %v2873_v32 = vpop.permute.xlu0 %2872  ;;  %1768 = vmatprep.mubr.bf16.mxu1 %v17646_v27  ;;  %v14151_v43 = vsel %vm1943_vm0, %v3151_v16, %v3153_v24  ;;  %v11709_v16 = vld [vmem:[%s17584_s3 + $0x460] sm:$0xff] }
 0x12c   : > { %v2596_v10 = vadd.f32 %v2532_v53, %v2275_v61  ;;  %v2982_v39 = vmul.f32 %v2873_v32, %v2707_v13  ;;  %v1103_v19 = vpop.f32.mrf.mxu0  ;;  %v1296_v17 = vpop.f32.mrf.mxu1  ;;  %3638 = vperm.xlu1 %12549, %v11708_v40  }
 0x12d   : > { %3633 = vperm.xlu0 %12548, %v11707_v12   ;;  %v2005_v52 = vsel %vm1943_vm0, %v2002_v35, %v2004_v48  ;;  %v2709_v38 = vsel %vm2649_vm1, %v2706_v7, %v2708_v25  ;;  %v2533_v26 = vmul.f32 %v13838_v4, %v1103_v19  ;;  %v3155_v29 = vrot.slane %v1296_v17, 7 }
 0x12e   : > { %v2983_v51 = vmul.f32 %v2878_v8, %v2709_v38  ;;  %v14162_v31 = vadd.f32 %v2982_v39, %v2595_v50  ;;  %v2276_v36 = vmul.f32 %v13623_v59, %v2005_v52  ;;  %v1105_v53 = vpop.f32.mrf.mxu0  ;;  %v1298_v35 = vpop.f32.mrf.mxu1 }
 0x12f   : > { %v2006_v13 = vrot.slane %v1105_v53, 7  ;;  %v2710_v7 = vrot.slane %v1298_v35, 1  ;;  %v2888_v40 = vpop.permute.xlu1 %2887  ;;  %v2883_v4 = vpop.permute.xlu0 %2882  ;;  %v14166_v12 = vsel %vm1943_vm0, %v3153_v24, %v3155_v29  ;;  %v11712_v24 = vld [vmem:[%s17584_s3 + $0x478] sm:$0xff] }
 0x130   : > { %v14168_v61 = vadd.f32 %v2983_v51, %v2596_v10  ;;  %v2597_v5 = vadd.f32 %v2533_v26, %v2276_v36  ;;  %v1107_v11 = vpop.f32.mrf.mxu0  ;;  %v1300_v32 = vpop.f32.mrf.mxu1  ;;  %3648 = vperm.xlu1 %12549, %v11710_v2   ;;  %v11711_v10 = vld [vmem:[%s17584_s3 + $0x470] sm:$0xff] }
 0x131   : > { %3643 = vperm.xlu0 %12548, %v11709_v16   ;;  %v2007_v50 = vsel %vm1943_vm0, %v2004_v48, %v2006_v13  ;;  %v2711_v59 = vsel %vm2649_vm1, %v2708_v25, %v2710_v7  ;;  %v2534_v8 = vmul.f32 %v13836_v1, %v1107_v11  ;;  %v3157_v39 = vrot.slane %v1300_v32, 7  ;;  %1576 = vmatmul.mubr.bf16.gmra.mxu0 %v13379_v21 }
 0x132   : > { %v2984_v19 = vmul.f32 %v2883_v4, %v2711_v59  ;;  %v2277_v17 = vmul.f32 %v13621_v56, %v2007_v50  ;;  %v1111_v52 = vpop.f32.mrf.mxu0  ;;  %v1304_v48 = vpop.f32.mrf.mxu1  ;;  %1769 = vmatmul.mubr.bf16.gmra.mxu1 %v13379_v21  ;;  %12312 = vmatprep.mubr.bf16.mxu0 %v13132_v63 }
 0x133   : > { %v2008_v1 = vrot.slane %v1111_v52, 7  ;;  %v2712_v25 = vrot.slane %v1304_v48, 1  ;;  %v2898_v38 = vpop.permute.xlu1 %2897  ;;  %v2893_v26 = vpop.permute.xlu0 %2892  ;;  %v14184_v2 = vsel %vm1943_vm0, %v3155_v29, %v3157_v39  ;;  %12328 = vmatprep.mubr.bf16.mxu1 %v13209_v44  ;;  %v11714_v29 = vld [vmem:[%s17584_s3 + $0x488] sm:$0xff]  ;;  %v11713_v44 = vld [vmem:[%s17584_s3 + $0x480] sm:$0xff] }
 0x134   : > { %v14187_v16 = vadd.f32 %v2984_v19, %v2597_v5  ;;  %v2598_v51 = vadd.f32 %v2534_v8, %v2277_v17  ;;  %v1113_v36 = vpop.f32.mrf.mxu0  ;;  %v1306_v56 = vpop.f32.mrf.mxu1  ;;  %3658 = vperm.xlu1 %12549, %v11712_v24  }
 0x135   : > { %3653 = vperm.xlu0 %12548, %v11711_v10   ;;  %v2009_v53 = vsel %vm1943_vm0, %v2006_v13, %v2008_v1  ;;  %v2713_v63 = vsel %vm2649_vm1, %v2710_v7, %v2712_v25  ;;  %v2535_v35 = vmul.f32 %v13851_v54, %v1113_v36  ;;  %v3159_v4 = vrot.slane %v1306_v56, 7  ;;  %v11716_v36 = vld [vmem:[%s17584_s3 + $0x498] sm:$0xff] }
 0x136   : > { %v2985_v5 = vmul.f32 %v2888_v40, %v2713_v63  ;;  %v2278_v11 = vmul.f32 %v13636_v0, %v2009_v53  ;;  %v1115_v32 = vpop.f32.mrf.mxu0  ;;  %v1308_v50 = vpop.f32.mrf.mxu1 }
 0x137   : > { %v2010_v59 = vrot.slane %v1115_v32, 7  ;;  %v2714_v13 = vrot.slane %v1308_v50, 1  ;;  %v14199_v8 = vpop.permute.xlu1 %2907  ;;  %v2903_v7 = vpop.permute.xlu0 %2902  ;;  %v14202_v54 = vsel %vm1943_vm0, %v3157_v39, %v3159_v4  ;;  %v11715_v39 = vld [vmem:[%s17584_s3 + $0x490] sm:$0xff] }
 0x138   : > { %v2599_v24 = vadd.f32 %v2535_v35, %v2278_v11  ;;  %v1117_v10 = vpop.f32.mrf.mxu0  ;;  %v1310_v19 = vpop.f32.mrf.mxu1  ;;  %3668 = vperm.xlu1 %12549, %v11714_v29   ;;  %v14204_v17 = vadd.f32 %v2985_v5, %v2598_v51 }
 0x139   : > { %3663 = vperm.xlu0 %12548, %v11713_v44   ;;  %v2011_v40 = vsel %vm1943_vm0, %v2008_v1, %v2010_v59  ;;  %v2715_v0 = vsel %vm2649_vm1, %v2712_v25, %v2714_v13  ;;  %v2536_v52 = vmul.f32 %v13849_v15, %v1117_v10  ;;  %v3161_v48 = vrot.slane %v1310_v19, 7  ;;  %12313 = vmatmul.mubr.bf16.vlgmr.msra.gmra.mxu0 %v13154_v9 }
 0x13a   : > { %v2986_v56 = vmul.f32 %v2893_v26, %v2715_v0  ;;  %v2279_v51 = vmul.f32 %v13634_v62, %v2011_v40  ;;  %v1121_v53 = vpop.f32.mrf.mxu0  ;;  %v1314_v1 = vpop.f32.mrf.mxu1  ;;  %12329 = vmatmul.mubr.bf16.vlgmr.msra.gmra.mxu1 %v13215_v46  ;;  %12316 = vmatprep.mubr.bf16.mxu0 %v13186_v28 }
 0x13b   : > { %v2012_v15 = vrot.slane %v1121_v53, 7  ;;  %v2716_v25 = vrot.slane %v1314_v1, 1  ;;  %v14219_v63 = vpop.permute.xlu1 %2917  ;;  %v14221_v35 = vpop.permute.xlu0 %2912  ;;  %v14224_v29 = vsel %vm1943_vm0, %v3159_v4, %v3161_v48  ;;  %12332 = vmatprep.mubr.bf16.mxu1 %v13228_v57  ;;  %v11718_v57 = vld [vmem:[%s17584_s3 + $0x4a8] sm:$0xff]  ;;  %v11717_v4 = vld [vmem:[%s17584_s3 + $0x4a0] sm:$0xff] }
 0x13c   : > { %v2600_v9 = vadd.f32 %v2536_v52, %v2279_v51  ;;  %v1123_v26 = vpop.f32.mrf.mxu0  ;;  %v14227_v62 = vpop.f32.mrf.mxu1  ;;  %3678 = vperm.xlu1 %12549, %v11716_v36   ;;  %v14229_v46 = vadd.f32 %v2986_v56, %v2599_v24  ;;  %v11720_v56 = vld [vmem:[%s17584_s3 + $0x4b8] sm:$0xff]  ;;  %v17680_v53 = vld [vmem:[#allocation19_spill] sm:$0xff] }
 0x13d   : > { %3673 = vperm.xlu0 %12548, %v11715_v39   ;;  %v2013_v28 = vsel %vm1943_vm0, %v2010_v59, %v2012_v15  ;;  %v2717_v44 = vsel %vm2649_vm1, %v2714_v13, %v2716_v25  ;;  %v2537_v5 = vmul.f32 %v13862_v42, %v1123_v26  ;;  %v17608_v11 = vrot.slane %v14227_v62, 7  ;;  %v17681_v26 = vld [vmem:[#allocation35_spill] sm:$0xff] }
 0x13e   : > { %17677 = vst [vmem:[#allocation62_spill] sm:$0xff] %v14229_v46  ;;  %v2987_v32 = vmul.f32 %v2898_v38, %v2717_v44  ;;  %v2280_v50 = vmul.f32 %v13647_v6, %v2013_v28  ;;  %v1125_v24 = vpop.f32.mrf.mxu0  ;;  %v1318_v10 = vpop.f32.mrf.mxu1 }
 0x13f   : > { %v2014_v59 = vrot.slane %v1125_v24, 7  ;;  %v2718_v19 = vrot.slane %v1318_v10, 1  ;;  %v14242_v13 = vpop.permute.xlu1 %2927  ;;  %v14244_v42 = vpop.permute.xlu0 %2922  ;;  %v14249_v40 = vsel %vm1943_vm0, %v3161_v48, %v17608_v11  ;;  %v11719_v48 = vld [vmem:[%s17584_s3 + $0x4b0] sm:$0xff] }
 0x140   : > { %17678 = vst [vmem:[#allocation63_spill] sm:$0xff] %v14249_v40  ;;  %v2601_v0 = vadd.f32 %v2537_v5, %v2280_v50  ;;  %v1127_v52 = vpop.f32.mrf.mxu0  ;;  %v14251_v36 = vpop.f32.mrf.mxu1  ;;  %3688 = vperm.xlu1 %12549, %v11718_v57   ;;  %v14253_v6 = vadd.f32 %v2987_v32, %v2600_v9 }
 0x141   : > { %3683 = vperm.xlu0 %12548, %v11717_v4   ;;  %v2015_v38 = vsel %vm1943_vm0, %v2012_v15, %v2014_v59  ;;  %v2719_v39 = vsel %vm2649_vm1, %v2716_v25, %v2718_v19  ;;  %12317 = vmatmul.mubr.bf16.gmra.mxu0 %v13241_v3  ;;  %v2538_v9 = vmul.f32 %v17681_v26, %v1127_v52  ;;  %v17682_v15 = vld [vmem:[#allocation11_spill] sm:$0xff]  ;;  %v17683_v25 = vld [vmem:[#allocation12_spill] sm:$0xff] }
 0x142   : > { %17679 = vst [vmem:[#allocation64_spill] sm:$0xff] %v14253_v6  ;;  %v2988_v51 = vmul.f32 %v2903_v7, %v2719_v39  ;;  %v2281_v1 = vmul.f32 %v17680_v53, %v2015_v38  ;;  %v1131_v28 = vpop.f32.mrf.mxu0  ;;  %v1324_v44 = vpop.f32.mrf.mxu1  ;;  %12333 = vmatmul.mubr.bf16.gmra.mxu1 %v17682_v15  ;;  %12320 = vmatprep.mubr.bf16.mxu0 %v17683_v25  ;;  %v17685_v52 = vld [vmem:[#allocation39_spill] sm:$0xff]  ;;  %v11722_v39 = vld [vmem:[%s17584_s3 + $0x4c8] sm:$0xff] }
 0x143   : > { %v2016_v5 = vrot.slane %v1131_v28, 7  ;;  %v2720_v57 = vrot.slane %v1324_v44, 1  ;;  %v14268_v4 = vpop.permute.xlu1 %2937  ;;  %v14270_v32 = vpop.permute.xlu0 %2932  ;;  %12336 = vmatprep.mubr.bf16.mxu1 %v13270_v22  ;;  %v11721_v22 = vld [vmem:[%s17584_s3 + $0x4c0] sm:$0xff] }
 0x144   : > { %v1133_v3 = vpop.f32.mrf.mxu0  ;;  %v14273_v7 = vpop.f32.mrf.mxu1  ;;  %3698 = vperm.xlu1 %12549, %v11720_v56   ;;  %v14275_v50 = vadd.f32 %v2988_v51, %v2601_v0  ;;  %v2602_v53 = vadd.f32 %v2538_v9, %v2281_v1  ;;  %v11724_v9 = vld [vmem:[%s17584_s3 + $0x4d8] sm:$0xff] }
 0x145   : > { %3693 = vperm.xlu0 %12548, %v11719_v48   ;;  %v2017_v24 = vsel %vm1943_vm0, %v2014_v59, %v2016_v5  ;;  %v2721_v10 = vsel %vm2649_vm1, %v2718_v19, %v2720_v57  ;;  %v2539_v38 = vmul.f32 %v17685_v52, %v1133_v3  ;;  %v17686_v48 = vld [vmem:[#allocation21_spill] sm:$0xff] }
 0x146   : > { %17684 = vst [vmem:[#allocation19_spill] sm:$0xff] %v14275_v50  ;;  %v2989_v56 = vmul.f32 %v14199_v8, %v2721_v10  ;;  %v2282_v0 = vmul.f32 %v17686_v48, %v2017_v24  ;;  %v1135_v51 = vpop.f32.mrf.mxu0  ;;  %v1328_v26 = vpop.f32.mrf.mxu1  ;;  %v11723_v24 = vld [vmem:[%s17584_s3 + $0x4d0] sm:$0xff] }
 0x147   : > { %v2018_v59 = vrot.slane %v1135_v51, 7  ;;  %v2722_v28 = vrot.slane %v1328_v26, 1  ;;  %v14288_v19 = vpop.permute.xlu1 %2947  ;;  %v14290_v44 = vpop.permute.xlu0 %2942  ;;  %v17688_v10 = vld [vmem:[#allocation13_spill] sm:$0xff] }
 0x148   : > { %v2603_v15 = vadd.f32 %v2539_v38, %v2282_v0  ;;  %v1137_v25 = vpop.f32.mrf.mxu0  ;;  %v14292_v3 = vpop.f32.mrf.mxu1  ;;  %3708 = vperm.xlu1 %12549, %v11722_v39   ;;  %v14294_v52 = vadd.f32 %v2989_v56, %v2602_v53  ;;  %v17689_v39 = vld [vmem:[#allocation20_spill] sm:$0xff]  ;;  %v17690_v53 = vld [vmem:[#allocation38_spill] sm:$0xff] }
 0x149   : > { %3703 = vperm.xlu0 %12548, %v11721_v22   ;;  %v2019_v8 = vsel %vm1943_vm0, %v2016_v5, %v2018_v59  ;;  %v2723_v1 = vsel %vm2649_vm1, %v2720_v57, %v2722_v28  ;;  %12321 = vmatmul.mubr.bf16.gmra.mxu0 %v17688_v10  ;;  %v2540_v56 = vmul.f32 %v17690_v53, %v1137_v25  ;;  %v17691_v57 = vld [vmem:[#allocation14_spill] sm:$0xff]  ;;  %v11726_v53 = vld [vmem:[%s17584_s3 + $0x4e8] sm:$0xff] }
 0x14a   : > { %17687 = vst [vmem:[#allocation35_spill] sm:$0xff] %v14294_v52  ;;  %v2990_v38 = vmul.f32 %v14221_v35, %v2723_v1  ;;  %v2283_v22 = vmul.f32 %v17689_v39, %v2019_v8  ;;  %v1141_v48 = vpop.f32.mrf.mxu0  ;;  %v1334_v5 = vpop.f32.mrf.mxu1  ;;  %12337 = vmatmul.mubr.bf16.gmra.mxu1 %v13297_v34  ;;  %12324 = vmatprep.mubr.bf16.mxu0 %v17691_v57  ;;  %v17693_v1 = vld [vmem:[#allocation43_spill] sm:$0xff] }
 0x14b   : > { %v2020_v0 = vrot.slane %v1141_v48, 7  ;;  %v2724_v51 = vrot.slane %v1334_v5, 1  ;;  %v14310_v26 = vpop.permute.xlu1 %2957  ;;  %v14312_v11 = vpop.permute.xlu0 %2952  ;;  %12340 = vmatprep.mubr.bf16.mxu1 %v13333_v58  ;;  %v11725_v58 = vld [vmem:[%s17584_s3 + $0x4e0] sm:$0xff] }
 0x14c   : > { %v1143_v10 = vpop.f32.mrf.mxu0  ;;  %v14315_v35 = vpop.f32.mrf.mxu1  ;;  %3718 = vperm.xlu1 %12549, %v11724_v9   ;;  %v14317_v25 = vadd.f32 %v2990_v38, %v2603_v15  ;;  %v2604_v48 = vadd.f32 %v2540_v56, %v2283_v22  ;;  %v11728_v56 = vld [vmem:[%s17584_s3 + $0x4f8] sm:$0xff] }
 0x14d   : > { %3713 = vperm.xlu0 %12548, %v11723_v24   ;;  %v2021_v8 = vsel %vm1943_vm0, %v2018_v59, %v2020_v0  ;;  %v2725_v34 = vsel %vm2649_vm1, %v2722_v28, %v2724_v51  ;;  %v2541_v39 = vmul.f32 %v17693_v1, %v1143_v10  ;;  %v17694_v24 = vld [vmem:[#allocation23_spill] sm:$0xff] }
 0x14e   : > { %17692 = vst [vmem:[#allocation11_spill] sm:$0xff] %v14317_v25  ;;  %v2991_v9 = vmul.f32 %v14219_v63, %v2725_v34  ;;  %v2284_v15 = vmul.f32 %v17694_v24, %v2021_v8  ;;  %v1145_v38 = vpop.f32.mrf.mxu0  ;;  %v1338_v5 = vpop.f32.mrf.mxu1  ;;  %v11727_v8 = vld [vmem:[%s17584_s3 + $0x4f0] sm:$0xff]  ;;  %v17697_v34 = vld [vmem:[#allocation15_spill] sm:$0xff]  ;;  %v17699_v24 = vld [vmem:[#allocation22_spill] sm:$0xff] }
 0x14f   : > { %v2022_v59 = vrot.slane %v1145_v38, 7  ;;  %v2726_v57 = vrot.slane %v1338_v5, 1  ;;  %v14330_v28 = vpop.permute.xlu1 %2967  ;;  %v14332_v10 = vpop.permute.xlu0 %2962  ;;  %v17700_v38 = vld [vmem:[#allocation42_spill] sm:$0xff] }
 0x150   : > { %17695 = vst [vmem:[#allocation12_spill] sm:$0xff] %v14330_v28  ;;  %v2605_v1 = vadd.f32 %v2541_v39, %v2284_v15  ;;  %v1147_v25 = vpop.f32.mrf.mxu0  ;;  %v14334_v50 = vpop.f32.mrf.mxu1  ;;  %3728 = vperm.xlu1 %12549, %v11726_v53   ;;  %v14336_v52 = vadd.f32 %v2991_v9, %v2604_v48 }
 0x151   : > { %3723 = vperm.xlu0 %12548, %v11725_v58   ;;  %v2023_v63 = vsel %vm1943_vm0, %v2020_v0, %v2022_v59  ;;  %v2727_v22 = vsel %vm2649_vm1, %v2724_v51, %v2726_v57  ;;  %12325 = vmatmul.mubr.bf16.gmra.mxu0 %v17697_v34  ;;  %v2542_v5 = vmul.f32 %v17700_v38, %v1147_v25  ;;  %v11729_v25 = vld [vmem:[%s17584_s3 + $0x500] sm:$0xff] }
 0x152   : > { %17696 = vst [vmem:[#allocation39_spill] sm:$0xff] %v14336_v52  ;;  %v2992_v39 = vmul.f32 %v14244_v42, %v2727_v22  ;;  %v1151_v53 = vpop.f32.mrf.mxu0  ;;  %v1344_v58 = vpop.f32.mrf.mxu1  ;;  %12341 = vmatmul.mubr.bf16.gmra.mxu1 %v13379_v21  ;;  %6364 = vmatprep.mubr.bf16.mxu0 %v17646_v27  ;;  %v2285_v15 = vmul.f32 %v17699_v24, %v2023_v63 }
 0x153   : > { %v2024_v0 = vrot.slane %v1151_v53, 7  ;;  %v2728_v51 = vrot.slane %v1344_v58, 1  ;;  %v14350_v48 = vpop.permute.xlu1 %3267  ;;  %v14352_v9 = vpop.permute.xlu0 %3262  ;;  %6171 = vmatprep.mubr.bf16.mxu1 %v17646_v27  ;;  %v17702_v58 = vld [vmem:[#allocation46_spill] sm:$0xff]  ;;  %v11730_v27 = vld [vmem:[%s17584_s3 + $0x508] sm:$0xff] }
 0x154   : > { %17698 = vst [vmem:[#allocation21_spill] sm:$0xff] %v14352_v9  ;;  %v1153_v34 = vpop.f32.mrf.mxu0  ;;  %v14357_v42 = vpop.f32.mrf.mxu1  ;;  %3738 = vperm.xlu1 %12549, %v11728_v56   ;;  %v14359_v21 = vadd.f32 %v2992_v39, %v2605_v1  ;;  %v17703_v56 = vld [vmem:[#allocation25_spill] sm:$0xff] }
 0x155   : > { %3733 = vperm.xlu0 %12548, %v11727_v8   ;;  %v2025_v22 = vsel %vm1943_vm0, %v2022_v59, %v2024_v0  ;;  %v2729_v53 = vsel %vm2649_vm1, %v2726_v57, %v2728_v51  ;;  %v2543_v52 = vmul.f32 %v17702_v58, %v1153_v34  ;;  %v2606_v58 = vadd.f32 %v2542_v5, %v2285_v15  ;;  %v17704_v9 = vld [vmem:[#allocation53_spill] sm:$0xff]  ;;  %v17706_v5 = vld [vmem:[#allocation34_spill] sm:$0xff] }
 0x156   : > { %17701 = vst [vmem:[#allocation13_spill] sm:$0xff] %v14359_v21  ;;  %v2993_v63 = vmul.f32 %v14242_v13, %v2729_v53  ;;  %v2286_v8 = vmul.f32 %v17703_v56, %v2025_v22  ;;  %v1155_v1 = vpop.f32.mrf.mxu0  ;;  %v1348_v39 = vpop.f32.mrf.mxu1  ;;  %v11732_v53 = vld [vmem:[%s17584_s3 + $0x518] sm:$0xff]  ;;  %v11731_v15 = vld [vmem:[%s17584_s3 + $0x510] sm:$0xff]  ;;  %v17708_v56 = vld [vmem:[#allocation44_spill] sm:$0xff] }
 0x157   : > { %v2026_v24 = vrot.slane %v1155_v1, 7  ;;  %v2730_v57 = vrot.slane %v1348_v39, 1  ;;  %v3278_v38 = vpop.permute.xlu1 %3277  ;;  %v14373_v34 = vpop.permute.xlu0 %3272 }
 0x158   : > { %v2607_v21 = vadd.f32 %v2543_v52, %v2286_v8  ;;  %v3423_v28 = vmul.f32 %v3278_v38, %v17704_v9  ;;  %v1157_v46 = vpop.f32.mrf.mxu0  ;;  %v14376_v6 = vpop.f32.mrf.mxu1  ;;  %4038 = vperm.xlu1 %12549, %v11730_v27   ;;  %v17705_v52 = vld [vmem:[#allocation40_spill] sm:$0xff]  ;;  %v14392_v27 = vmul.f32 %v14032_v30, %v17708_v56  ;;  %v14397_v8 = vadd.f32 %v2993_v63, %v2606_v58 }
 0x159   : > { %4033 = vperm.xlu0 %12548, %v11729_v25   ;;  %v2027_v13 = vsel %vm1943_vm0, %v2024_v0, %v2026_v24  ;;  %v2731_v22 = vsel %vm2649_vm1, %v2728_v51, %v2730_v57  ;;  %v14388_v9 = vmul.f32 %v17706_v5, %v17705_v52  ;;  %v17712_v52 = vrot.slane %v14251_v36, 7  ;;  %v17716_v58 = vld [vmem:[#allocation56_spill] sm:$0xff] }
 0x15a   : > { %17709 = vst [vmem:[#allocation38_spill] sm:$0xff] %v14392_v27  ;;  %v14395_v0 = vadd.f32 %v3423_v28, %v14053_v20  ;;  %v1161_v51 = vpop.f32.mrf.mxu0  ;;  %v1354_v25 = vpop.f32.mrf.mxu1  ;;  %17711 = vst [vmem:[#allocation43_spill] sm:$0xff] %v14397_v8  ;;  %v2994_v1 = vmul.f32 %v14270_v32, %v2731_v22  ;;  %v17713_v5 = vrot.slane %v14227_v62, 7  ;;  %v3167_v20 = vrot.slane %v14273_v7, 7  ;;  %v17714_v28 = vld [vmem:[#allocation45_spill] sm:$0xff] }
 0x15b   : > { %17707 = vst [vmem:[#allocation20_spill] sm:$0xff] %v14388_v9  ;;  %v2028_v39 = vrot.slane %v1161_v51, 7  ;;  %v2732_v38 = vrot.slane %v1354_v25, 1  ;;  %v3288_v59 = vpop.permute.xlu1 %3287  ;;  %v3283_v40 = vpop.permute.xlu0 %3282  ;;  %v2544_v56 = vmul.f32 %v17714_v28, %v1157_v46  ;;  %v17718_v51 = vld [vmem:[#allocation24_spill] sm:$0xff]  ;;  %v3169_v7 = vrot.slane %v14292_v3, 7  ;;  %v17722_v3 = vld [vmem:[#allocation61_spill] sm:$0xff] }
 0x15c   : > { %17710 = vst [vmem:[#allocation14_spill] sm:$0xff] %v14395_v0  ;;  %v14405_v30 = vsel %vm1943_vm0, %v17713_v5, %v17712_v52  ;;  %v17715_v0 = vld [vmem:[#allocation59_spill] sm:$0xff]  ;;  %v3424_v8 = vmul.f32 %v3283_v40, %v17716_v58  ;;  %v1163_v32 = vpop.f32.mrf.mxu0  ;;  %v14411_v22 = vpop.f32.mrf.mxu1  ;;  %4048 = vperm.xlu1 %12549, %v11732_v53   ;;  %v2287_v25 = vmul.f32 %v17718_v51, %v2027_v13  ;;  %v17719_v5 = vld [vmem:[#allocation49_spill] sm:$0xff]  ;;  %v11734_v46 = vld [vmem:[%s17584_s3 + $0x528] sm:$0xff] }
 0x15d   : > { %v3425_v63 = vmul.f32 %v3288_v59, %v17715_v0  ;;  %17717 = vst [vmem:[#allocation23_spill] sm:$0xff] %v14411_v22  ;;  %4043 = vperm.xlu0 %12548, %v11731_v15   ;;  %v2029_v62 = vsel %vm1943_vm0, %v2026_v24, %v2028_v39  ;;  %v2733_v52 = vsel %vm2649_vm1, %v2730_v57, %v2732_v38  ;;  %v11733_v40 = vld [vmem:[%s17584_s3 + $0x520] sm:$0xff] }
 0x15e   : > { %v2545_v27 = vmul.f32 %v17719_v5, %v1163_v32  ;;  %v14428_v13 = vadd.f32 %v3424_v8, %v14079_v23  ;;  %v17721_v24 = vld [vmem:[#allocation27_spill] sm:$0xff]  ;;  %v1165_v53 = vpop.f32.mrf.mxu0  ;;  %v1358_v15 = vpop.f32.mrf.mxu1  ;;  %v2995_v0 = vmul.f32 %v14268_v4, %v2733_v52  ;;  %v14432_v5 = vadd.f32 %v2994_v1, %v2607_v21  ;;  %v11736_v21 = vld [vmem:[%s17584_s3 + $0x538] sm:$0xff] }
 0x15f   : > { %v14425_v59 = vadd.f32 %v3425_v63, %v14076_v18  ;;  %v2288_v57 = vmul.f32 %v17721_v24, %v2029_v62  ;;  %v2030_v28 = vrot.slane %v1165_v53, 7  ;;  %v2734_v58 = vrot.slane %v1358_v15, 1  ;;  %v3298_v32 = vpop.permute.xlu1 %3297  ;;  %v3293_v51 = vpop.permute.xlu0 %3292  ;;  %v17723_v18 = vld [vmem:[#allocation60_spill] sm:$0xff] }
 0x160   : > { %v3427_v22 = vmul.f32 %v3298_v32, %v17722_v3  ;;  %v3426_v63 = vmul.f32 %v3293_v51, %v17723_v18  ;;  %v14436_v23 = vpop.f32.mrf.mxu1  ;;  %4058 = vperm.xlu1 %12549, %v11734_v46   ;;  %v2608_v8 = vadd.f32 %v2544_v56, %v2287_v25  ;;  %v17724_v1 = vrot.slane %v14251_v36, 7 }
 0x161   : > { %17720 = vst [vmem:[#allocation15_spill] sm:$0xff] %v14425_v59  ;;  %v2609_v9 = vadd.f32 %v2545_v27, %v2288_v57  ;;  %v1167_v59 = vpop.f32.mrf.mxu0  ;;  %4053 = vperm.xlu0 %12548, %v11733_v40   ;;  %v2031_v62 = vsel %vm1943_vm0, %v2028_v39, %v2030_v28  ;;  %v2735_v4 = vsel %vm2649_vm1, %v2732_v38, %v2734_v58  ;;  %v11735_v27 = vld [vmem:[%s17584_s3 + $0x530] sm:$0xff]  ;;  %v3171_v46 = vrot.slane %v14315_v35, 7 }
 0x162   : > { %v14449_v52 = vsel %vm1943_vm0, %v17724_v1, %v3167_v20  ;;  %v14453_v56 = vadd.f32 %v3427_v22, %v14099_v41  ;;  %v14456_v39 = vadd.f32 %v3426_v63, %v14102_v55  ;;  %v1364_v25 = vpop.f32.mrf.mxu1  ;;  %v14459_v40 = vsel %vm1943_vm0, %v3167_v20, %v3169_v7  ;;  %v17725_v41 = vld [vmem:[#allocation48_spill] sm:$0xff] }
 0x163   : > { %v1171_v38 = vpop.f32.mrf.mxu0  ;;  %v2996_v24 = vmul.f32 %v14290_v44, %v2735_v4  ;;  %v2736_v36 = vrot.slane %v1364_v25, 1  ;;  %v3308_v53 = vpop.permute.xlu1 %3307  ;;  %v14462_v32 = vadd.f32 %v2995_v0, %v2608_v8  ;;  %v3173_v35 = vrot.slane %v14334_v50, 7  ;;  %v17726_v44 = vld [vmem:[#allocation26_spill] sm:$0xff]  ;;  %v17727_v8 = vld [vmem:[#allocation52_spill] sm:$0xff] }
 0x164   : > { %v2032_v57 = vrot.slane %v1171_v38, 7  ;;  %v3303_v15 = vpop.permute.xlu0 %3302  ;;  %v2546_v22 = vmul.f32 %v17725_v41, %v1167_v59  ;;  %v3429_v55 = vmul.f32 %v3308_v53, %v14109_v33  ;;  %v14468_v18 = vpop.f32.mrf.mxu1  ;;  %4068 = vperm.xlu1 %12549, %v11736_v21   ;;  %v2289_v20 = vmul.f32 %v17726_v44, %v2031_v62  ;;  %v11738_v59 = vld [vmem:[%s17584_s3 + $0x548] sm:$0xff]  ;;  %v17728_v62 = vld [vmem:[#allocation29_spill] sm:$0xff] }
 0x165   : > { %v3428_v51 = vmul.f32 %v3303_v15, %v14083_v60  ;;  %v1173_v3 = vpop.f32.mrf.mxu0  ;;  %4063 = vperm.xlu0 %12548, %v11735_v27   ;;  %v2737_v0 = vsel %vm2649_vm1, %v2734_v58, %v2736_v36  ;;  %v11737_v60 = vld [vmem:[%s17584_s3 + $0x540] sm:$0xff]  ;;  %v14488_v1 = vsel %vm1943_vm0, %v3169_v7, %v3171_v46  ;;  %v17610_v50 = vrot.slane %v14376_v6, 7 }
 0x166   : > { %v2033_v63 = vsel %vm1943_vm0, %v2030_v28, %v2032_v57  ;;  %v2547_v4 = vmul.f32 %v17727_v8, %v1173_v3  ;;  %v14481_v33 = vadd.f32 %v3429_v55, %v14122_v37  ;;  %v1368_v58 = vpop.f32.mrf.mxu1  ;;  %v2997_v38 = vmul.f32 %v14288_v19, %v2737_v0 }
 0x167   : > { %v14484_v21 = vadd.f32 %v3428_v51, %v14125_v45  ;;  %v2290_v28 = vmul.f32 %v17728_v62, %v2033_v63  ;;  %v1175_v27 = vpop.f32.mrf.mxu0  ;;  %v2738_v53 = vrot.slane %v1368_v58, 1  ;;  %v3318_v15 = vpop.permute.xlu1 %3317  ;;  %v14491_v3 = vadd.f32 %v2996_v24, %v2609_v9  ;;  %v11740_v9 = vld [vmem:[%s17584_s3 + $0x558] sm:$0xff]  ;;  %v17729_v24 = vld [vmem:[#allocation47_spill] sm:$0xff] }
 0x168   : > { %v2034_v25 = vrot.slane %v1175_v27, 7  ;;  %v3313_v41 = vpop.permute.xlu0 %3312  ;;  %v3431_v55 = vmul.f32 %v3318_v15, %v14151_v43  ;;  %v14495_v44 = vpop.f32.mrf.mxu1  ;;  %4078 = vperm.xlu1 %12549, %v11738_v59   ;;  %v2610_v7 = vadd.f32 %v2546_v22, %v2289_v20  ;;  %v11739_v43 = vld [vmem:[%s17584_s3 + $0x550] sm:$0xff]  ;;  %v14512_v22 = vmul.f32 %v14350_v48, %v17729_v24  ;;  %v17730_v48 = vld [vmem:[#allocation51_spill] sm:$0xff] }
 0x169   : > { %v2611_v37 = vadd.f32 %v2547_v4, %v2290_v28  ;;  %v3430_v45 = vmul.f32 %v3313_v41, %v14129_v49  ;;  %v1177_v51 = vpop.f32.mrf.mxu0  ;;  %4073 = vperm.xlu0 %12548, %v11737_v60   ;;  %v2739_v19 = vsel %vm2649_vm1, %v2736_v36, %v2738_v53  ;;  %v14508_v49 = vsel %vm1943_vm0, %v3171_v46, %v3173_v35 }
 0x16a   : > { %v2035_v63 = vsel %vm1943_vm0, %v2032_v57, %v2034_v25  ;;  %v3175_v57 = vrot.slane %v14357_v42, 7  ;;  %v14516_v36 = vadd.f32 %v3431_v55, %v14141_v47  ;;  %v1374_v8 = vpop.f32.mrf.mxu1  ;;  %v2998_v4 = vmul.f32 %v14312_v11, %v2739_v19  ;;  %v17732_v19 = vld [vmem:[#allocation55_spill] sm:$0xff] }
 0x16b   : > { %v14519_v20 = vadd.f32 %v3430_v45, %v14144_v14  ;;  %v1181_v0 = vpop.f32.mrf.mxu0  ;;  %v2740_v60 = vrot.slane %v1374_v8, 1  ;;  %v3328_v46 = vpop.permute.xlu1 %3327  ;;  %v14522_v28 = vadd.f32 %v2997_v38, %v2610_v7  ;;  %v2548_v27 = vmul.f32 %v17730_v48, %v1177_v51  ;;  %v17731_v14 = vld [vmem:[#allocation28_spill] sm:$0xff] }
 0x16c   : > { %v2036_v59 = vrot.slane %v1181_v0, 7  ;;  %v3323_v62 = vpop.permute.xlu0 %3322  ;;  %v3433_v58 = vmul.f32 %v3328_v46, %v14184_v2  ;;  %v14527_v41 = vpop.f32.mrf.mxu1  ;;  %4088 = vperm.xlu1 %12549, %v11740_v9   ;;  %v2291_v55 = vmul.f32 %v17731_v14, %v2035_v63  ;;  %v11742_v51 = vld [vmem:[%s17584_s3 + $0x568] sm:$0xff]  ;;  %v17733_v63 = vld [vmem:[#allocation31_spill] sm:$0xff] }
 0x16d   : > { %v3432_v47 = vmul.f32 %v3323_v62, %v14166_v12  ;;  %v1183_v15 = vpop.f32.mrf.mxu0  ;;  %4083 = vperm.xlu0 %12548, %v11739_v43   ;;  %v2741_v45 = vsel %vm2649_vm1, %v2738_v53, %v2740_v60  ;;  %v11741_v12 = vld [vmem:[%s17584_s3 + $0x560] sm:$0xff]  ;;  %v14551_v43 = vsel %vm1943_vm0, %v3173_v35, %v3175_v57  ;;  %v14554_v62 = vadd.f32 %v2998_v4, %v2611_v37  ;;  %v11744_v37 = vld [vmem:[%s17584_s3 + $0x578] sm:$0xff] }
 0x16e   : > { %v2037_v11 = vsel %vm1943_vm0, %v2034_v25, %v2036_v59  ;;  %v2549_v38 = vmul.f32 %v17732_v19, %v1183_v15  ;;  %v14540_v2 = vadd.f32 %v3433_v58, %v14168_v61  ;;  %v1378_v53 = vpop.f32.mrf.mxu1  ;;  %v2999_v24 = vmul.f32 %v14310_v26, %v2741_v45 }
 0x16f   : > { %v14543_v7 = vadd.f32 %v3432_v47, %v14162_v31  ;;  %v2292_v25 = vmul.f32 %v17733_v63, %v2037_v11  ;;  %v1185_v9 = vpop.f32.mrf.mxu0  ;;  %v2742_v8 = vrot.slane %v1378_v53, 1  ;;  %v3338_v61 = vpop.permute.xlu1 %3337  ;;  %v2612_v35 = vadd.f32 %v2548_v27, %v2291_v55  ;;  %v17734_v11 = vld [vmem:[#allocation30_spill] sm:$0xff]  ;;  %v17737_v53 = vld [vmem:[#allocation63_spill] sm:$0xff] }
 0x170   : > { %v1944_v0 = vrot.slane %v1185_v9, 7  ;;  %v3333_v46 = vpop.permute.xlu0 %3332  ;;  %v3435_v48 = vmul.f32 %v3338_v61, %v14224_v29  ;;  %v14558_v15 = vpop.f32.mrf.mxu1  ;;  %4098 = vperm.xlu1 %12549, %v11742_v51   ;;  %v17735_v55 = vld [vmem:[#allocation54_spill] sm:$0xff] }
 0x171   : > { %v2613_v31 = vadd.f32 %v2549_v38, %v2292_v25  ;;  %v3434_v58 = vmul.f32 %v3333_v46, %v14202_v54  ;;  %v1187_v47 = vpop.f32.mrf.mxu0  ;;  %4093 = vperm.xlu0 %12548, %v11741_v12   ;;  %v2743_v14 = vsel %vm2649_vm1, %v2740_v60, %v2742_v8  ;;  %v11743_v54 = vld [vmem:[%s17584_s3 + $0x570] sm:$0xff]  ;;  %v14578_v25 = vadd.f32 %v2999_v24, %v2612_v35  ;;  %v17736_v9 = vld [vmem:[#allocation50_spill] sm:$0xff] }
 0x172   : > { %v2038_v26 = vsel %vm1943_vm0, %v2036_v59, %v1944_v0  ;;  %v14570_v29 = vadd.f32 %v3435_v48, %v14204_v17  ;;  %v2550_v59 = vmul.f32 %v17735_v55, %v1187_v47  ;;  %v1384_v60 = vpop.f32.mrf.mxu1  ;;  %v3000_v19 = vmul.f32 %v14332_v10, %v2743_v14  ;;  %v17738_v47 = vld [vmem:[#allocation33_spill] sm:$0xff]  ;;  %v17740_v14 = vld [vmem:[#allocation62_spill] sm:$0xff] }
 0x173   : > { %v14573_v4 = vadd.f32 %v3434_v58, %v14187_v16  ;;  %v2293_v27 = vmul.f32 %v17734_v11, %v2038_v26  ;;  %v1191_v45 = vpop.f32.mrf.mxu0  ;;  %v2650_v51 = vrot.slane %v1384_v60, 1  ;;  %v3348_v12 = vpop.permute.xlu1 %3347  ;;  %v14582_v17 = vmul.f32 %v14373_v34, %v17736_v9  ;;  %v11746_v34 = vld [vmem:[%s17584_s3 + $0x588] sm:$0xff] }
 0x174   : > { %v1945_v38 = vrot.slane %v1191_v45, 7  ;;  %v3343_v63 = vpop.permute.xlu0 %3342  ;;  %v3437_v16 = vmul.f32 %v3348_v12, %v14405_v30  ;;  %v14586_v48 = vpop.f32.mrf.mxu1  ;;  %4108 = vperm.xlu1 %12549, %v11744_v37   ;;  %v11745_v30 = vld [vmem:[%s17584_s3 + $0x580] sm:$0xff]  ;;  %v14602_v35 = vsel %vm1943_vm0, %v3175_v57, %v17610_v50  ;;  %v17739_v26 = vld [vmem:[#allocation64_spill] sm:$0xff] }
 0x175   : > { %v3436_v61 = vmul.f32 %v3343_v63, %v17737_v53  ;;  %v1193_v46 = vpop.f32.mrf.mxu0  ;;  %4103 = vperm.xlu0 %12548, %v11743_v54   ;;  %v2744_v58 = vsel %vm2649_vm1, %v2742_v8, %v2650_v51  ;;  %v17741_v54 = vld [vmem:[#allocation17_spill] sm:$0xff]  ;;  %v17742_v60 = vld [vmem:[#allocation12_spill] sm:$0xff]  ;;  %v17743_v57 = vld [vmem:[#allocation23_spill] sm:$0xff] }
 0x176   : > { %v1946_v10 = vsel %vm1943_vm0, %v1944_v0, %v1945_v38  ;;  %v2519_v24 = vmul.f32 %v17738_v47, %v1193_v46  ;;  %v2614_v0 = vadd.f32 %v2550_v59, %v2293_v27  ;;  %v14605_v8 = vadd.f32 %v3437_v16, %v17739_v26  ;;  %v1388_v45 = vpop.f32.mrf.mxu1 }
 0x177   : > { %v14608_v37 = vadd.f32 %v3436_v61, %v17740_v14  ;;  %v2262_v11 = vmul.f32 %v17741_v54, %v1946_v10  ;;  %v1195_v55 = vpop.f32.mrf.mxu0  ;;  %v3001_v12 = vmul.f32 %v17742_v60, %v2744_v58  ;;  %v2651_v9 = vrot.slane %v1388_v45, 1  ;;  %v3358_v53 = vpop.permute.xlu1 %3357  ;;  %v17744_v58 = vld [vmem:[#allocation36_spill] sm:$0xff]  ;;  %v17750_v60 = vld [vmem:[#allocation35_spill] sm:$0xff] }
 0x178   : > { %v1947_v63 = vrot.slane %v1195_v55, 7  ;;  %v3353_v42 = vpop.permute.xlu0 %3352  ;;  %v14612_v46 = vadd.f32 %v3000_v19, %v2613_v31  ;;  %v3179_v27 = vrot.slane %v17743_v57, 7  ;;  %v3439_v16 = vmul.f32 %v3358_v53, %v14459_v40  ;;  %v1390_v26 = vpop.f32.mrf.mxu1  ;;  %4118 = vperm.xlu1 %12549, %v11746_v34   ;;  %v17746_v19 = vld [vmem:[#allocation37_spill] sm:$0xff]  ;;  %v17748_v34 = vld [vmem:[#allocation16_spill] sm:$0xff]  ;;  %v17752_v53 = vld [vmem:[#allocation19_spill] sm:$0xff] }
 0x179   : > { %v2583_v59 = vadd.f32 %v2519_v24, %v2262_v11  ;;  %v3438_v61 = vmul.f32 %v3353_v42, %v14449_v52  ;;  %v1197_v47 = vpop.f32.mrf.mxu0  ;;  %4113 = vperm.xlu0 %12548, %v11745_v30   ;;  %v17745_v14 = vrot.slane %v17744_v58, 7  ;;  %v2652_v31 = vsel %vm2649_vm1, %v2650_v51, %v2651_v9  ;;  %v11748_v52 = vld [vmem:[%s17584_s3 + $0x598] sm:$0xff]  ;;  %v11747_v40 = vld [vmem:[%s17584_s3 + $0x590] sm:$0xff] }
 0x17a   : > { %v1948_v10 = vsel %vm1943_vm0, %v1945_v38, %v1947_v63  ;;  %v17747_v55 = vrot.slane %v17746_v19, 1  ;;  %v17749_v11 = vld [vmem:[#allocation58_spill] sm:$0xff]  ;;  %v14635_v51 = vadd.f32 %v3439_v16, %v17750_v60 }
 0x17b   : > { %v2069_v54 = vsel %vm1943_vm0, %v1947_v63, %v17745_v14  ;;  %v2970_v45 = vmul.f32 %v17749_v11, %v2652_v31  ;;  %v14637_v63 = vpop.f32.mrf.mxu0  ;;  %v14642_v42 = vadd.f32 %v3438_v61, %v17752_v53  ;;  %v17753_v57 = vld [vmem:[#allocation18_spill] sm:$0xff]  ;;  %v17754_v14 = vld [vmem:[#allocation32_spill] sm:$0xff]  ;;  %v3368_v50 = vpop.permute.xlu1 %3367 }
 0x17c   : > { %v2776_v24 = vsel %vm2649_vm1, %v2651_v9, %v17747_v55  ;;  %v2264_v30 = vmul.f32 %v17748_v34, %v2069_v54  ;;  %v14639_v9 = vpop.f32.mrf.mxu1  ;;  %v2263_v58 = vmul.f32 %v17753_v57, %v1948_v10  ;;  %v2520_v19 = vmul.f32 %v17754_v14, %v1197_v47  ;;  %v3363_v38 = vpop.permute.xlu0 %3362  ;;  %v17755_v31 = vld [vmem:[#allocation20_spill] sm:$0xff]  ;;  %4128 = vperm.xlu1 %12549, %v11748_v52   ;;  %v17758_v10 = vld [vmem:[#allocation57_spill] sm:$0xff] }
 0x17d   : > { %17751 = vst [vmem:[#allocation22_spill] sm:$0xff] %v14639_v9  ;;  %v3099_v55 = vrot.slane %v1390_v26, 7  ;;  %v3181_v54 = vrot.slane %v14436_v23, 7  ;;  %v3441_v16 = vmul.f32 %v3368_v50, %v14508_v49  ;;  %v3440_v11 = vmul.f32 %v3363_v38, %v14488_v1  ;;  %v14650_v60 = vpop.f32.mrf.mxu0  ;;  %4123 = vperm.xlu0 %12548, %v11747_v40   ;;  %v17759_v26 = vld [vmem:[#allocation41_spill] sm:$0xff]  ;;  %v11750_v23 = vld [vmem:[%s17584_s3 + $0x5a8] sm:$0xff]  ;;  %v11749_v1 = vld [vmem:[%s17584_s3 + $0x5a0] sm:$0xff] }
 0x17e   : > { %v2585_v34 = vadd.f32 %v17755_v31, %v2264_v30  ;;  %17756 = vst [vmem:[#allocation42_spill] sm:$0xff] %v14650_v60  ;;  %v14652_v61 = vpop.f32.mrf.mxu1  ;;  %v2971_v53 = vmul.f32 %v17758_v10, %v2776_v24  ;;  %v2584_v47 = vadd.f32 %v2520_v19, %v2263_v58  ;;  %v17760_v57 = vrot.slane %v17759_v26, 7  ;;  %v17761_v50 = vld [vmem:[#allocation21_spill] sm:$0xff]  ;;  %v17762_v40 = vld [vmem:[#allocation39_spill] sm:$0xff] }
 0x17f   : > { %17757 = vst [vmem:[#allocation46_spill] sm:$0xff] %v14652_v61  ;;  %v14664_v49 = vadd.f32 %v3001_v12, %v2614_v0  ;;  %v14668_v38 = vadd.f32 %v3441_v16, %v17762_v40  ;;  %v17763_v24 = vld [vmem:[#allocation11_spill] sm:$0xff]  ;;  %v14673_v58 = vpop.f32.mrf.mxu0  ;;  %v17764_v31 = vrot.slane %v14586_v48, 7  ;;  %v3378_v0 = vpop.permute.xlu1 %3377  ;;  %v3183_v40 = vrot.slane %v14468_v18, 7  ;;  %v11751_v18 = vld [vmem:[%s17584_s3 + $0x5b0] sm:$0xff] }
 0x180   : > { %v3226_v14 = vsel %vm1943_vm0, %v3099_v55, %v17760_v57  ;;  %v14671_v30 = vadd.f32 %v3440_v11, %v17763_v24  ;;  %v14675_v19 = vpop.f32.mrf.mxu1  ;;  %v3035_v26 = vadd.f32 %v2971_v53, %v2584_v47  ;;  %v3373_v12 = vpop.permute.xlu0 %3372  ;;  %v17765_v57 = vrot.slane %v14376_v6, 7  ;;  %4138 = vperm.xlu1 %12549, %v11750_v23  }
 0x181   : > { %v3420_v52 = vmul.f32 %v17761_v50, %v3226_v14  ;;  %v14680_v10 = vsel %vm1943_vm0, %v17764_v31, %v3099_v55  ;;  %v3034_v14 = vadd.f32 %v2970_v45, %v2583_v59  ;;  %v17766_v50 = vld [vmem:[#allocation38_spill] sm:$0xff]  ;;  %v3443_v24 = vmul.f32 %v3378_v0, %v14602_v35  ;;  %v14689_v60 = vpop.f32.mrf.mxu0  ;;  %4133 = vperm.xlu0 %12548, %v11749_v1  }
 0x182   : > { %v3180_v16 = vsel %vm1943_vm0, %v17765_v57, %v3179_v27  ;;  %v3036_v11 = vadd.f32 %v17766_v50, %v2585_v34  ;;  %v3442_v61 = vmul.f32 %v3373_v12, %v14551_v43  ;;  %v3182_v55 = vsel %vm1943_vm0, %v3179_v27, %v3181_v54  ;;  %v14692_v53 = vpop.f32.mrf.mxu1  ;;  %v11752_v59 = vld [vmem:[%s17584_s3 + $0x5b8] sm:$0xff]  ;;  %v17768_v27 = vld [vmem:[#allocation43_spill] sm:$0xff]  ;;  %v11754_v50 = vld [vmem:[%s17584_s3 + $0x5c8] sm:$0xff] }
 0x183   : > { %17767 = vst [vmem:[#allocation25_spill] sm:$0xff] %v14692_v53  ;;  %v3185_v6 = vrot.slane %v14495_v44, 7  ;;  %v14702_v43 = vadd.f32 %v14512_v22, %v3035_v26  ;;  %v14704_v35 = vadd.f32 %v3420_v52, %v3034_v14  ;;  %v14710_v34 = vadd.f32 %v3443_v24, %v17768_v27  ;;  %v17769_v44 = vld [vmem:[#allocation13_spill] sm:$0xff]  ;;  %v14715_v23 = vpop.f32.mrf.mxu0  ;;  %v3388_v31 = vpop.permute.xlu1 %3387 }
 0x184   : > { %v14707_v45 = vadd.f32 %v14582_v17, %v3036_v11  ;;  %v14713_v47 = vadd.f32 %v3442_v61, %v17769_v44  ;;  %v14717_v1 = vpop.f32.mrf.mxu1  ;;  %v3383_v0 = vpop.permute.xlu0 %3382  ;;  %v3445_v12 = vmul.f32 %v3388_v31, %v3182_v55  ;;  %4148 = vperm.xlu1 %12549, %v11752_v59   ;;  %v3187_v52 = vrot.slane %v14527_v41, 7 }
 0x185   : > { %v3444_v22 = vmul.f32 %v3383_v0, %v3180_v16  ;;  %v14719_v26 = vpop.f32.mrf.mxu0  ;;  %4143 = vperm.xlu0 %12548, %v11751_v18   ;;  %v3189_v57 = vrot.slane %v14558_v15, 7  ;;  %v3186_v61 = vsel %vm1943_vm0, %v3183_v40, %v3185_v6  ;;  %v3184_v14 = vsel %vm1943_vm0, %v3181_v54, %v3183_v40  ;;  %v11753_v16 = vld [vmem:[%s17584_s3 + $0x5c0] sm:$0xff] }
 0x186   : > { %v14721_v17 = vpop.f32.mrf.mxu1  ;;  %v14734_v11 = vadd.f32 %v3445_v12, %v14462_v32  ;;  %v4350_v27 = vrot.slane %v14675_v19, 7  ;;  %v4351_v32 = vrot.slane %v14717_v1, 7  ;;  %v3188_v0 = vsel %vm1943_vm0, %v3185_v6, %v3187_v52  ;;  %v11756_v12 = vld [vmem:[%s17584_s3 + $0x5d8] sm:$0xff] }
 0x187   : > { %17770 = vst [vmem:[#allocation53_spill] sm:$0xff] %v14721_v17  ;;  %v14737_v24 = vadd.f32 %v3444_v22, %v14432_v5  ;;  %v14739_v41 = vpop.f32.mrf.mxu0  ;;  %v3398_v55 = vpop.permute.xlu1 %3397  ;;  %v3190_v31 = vsel %vm1943_vm0, %v3187_v52, %v3189_v57  ;;  %v11755_v22 = vld [vmem:[%s17584_s3 + $0x5d0] sm:$0xff] }
 0x188   : > { %v14741_v15 = vpop.f32.mrf.mxu1  ;;  %v3393_v54 = vpop.permute.xlu0 %3392  ;;  %v3447_v40 = vmul.f32 %v3398_v55, %v3186_v61  ;;  %4158 = vperm.xlu1 %12549, %v11754_v50   ;;  %v14771_v5 = vsel %vm1943_vm0, %v4350_v27, %v4351_v32 }
 0x189   : > { %v3446_v59 = vmul.f32 %v3393_v54, %v3184_v14  ;;  %v14743_v18 = vpop.f32.mrf.mxu0  ;;  %4153 = vperm.xlu0 %12548, %v11753_v16   ;;  %17773 = vst [vmem:[#allocation44_spill] sm:$0xff] %v14771_v5 }
 0x18a   : > { %v14747_v44 = vpop.f32.mrf.mxu1  ;;  %v14759_v19 = vadd.f32 %v3447_v40, %v14522_v28  ;;  %v17774_v28 = vrot.slane %v14586_v48, 7  ;;  %v11758_v40 = vld [vmem:[%s17584_s3 + $0x5e8] sm:$0xff] }
 0x18b   : > { %17771 = vst [vmem:[#allocation40_spill] sm:$0xff] %v14747_v44  ;;  %v14762_v1 = vadd.f32 %v3446_v59, %v14491_v3  ;;  %v14764_v61 = vpop.f32.mrf.mxu0  ;;  %v3408_v50 = vpop.permute.xlu1 %3407  ;;  %v11757_v59 = vld [vmem:[%s17584_s3 + $0x5e0] sm:$0xff] }
 0x18c   : > { %v1640_v14 = vpop.f32.mrf.mxu1  ;;  %v3403_v16 = vpop.permute.xlu0 %3402  ;;  %v3449_v6 = vmul.f32 %v3408_v50, %v3190_v31  ;;  %4168 = vperm.xlu1 %12549, %v11756_v12   ;;  %v3192_v3 = vsel %vm1943_vm0, %v3189_v57, %v17774_v28  ;;  %v17775_v31 = vrot.slane %v14639_v9, 7  ;;  %v4353_v28 = vrot.slane %v14741_v15, 7 }
 0x18d   : > { %v3448_v52 = vmul.f32 %v3403_v16, %v3188_v0  ;;  %v14766_v55 = vpop.f32.mrf.mxu0  ;;  %4163 = vperm.xlu0 %12548, %v11755_v22  }
 0x18e   : > { %v14768_v54 = vpop.f32.mrf.mxu1  ;;  %v14785_v0 = vsel %vm1943_vm0, %v17775_v31, %v4350_v27  ;;  %v14788_v12 = vadd.f32 %v3449_v6, %v14578_v25  ;;  %v4355_v27 = vrot.slane %v1640_v14, 7  ;;  %v11759_v25 = vld [vmem:[%s17584_s3 + $0x5f0] sm:$0xff] }
 0x18f   : > { %17772 = vst [vmem:[#allocation34_spill] sm:$0xff] %v14768_v54  ;;  %17776 = vst [vmem:[#allocation45_spill] sm:$0xff] %v14785_v0  ;;  %v14791_v48 = vadd.f32 %v3448_v52, %v14554_v62  ;;  %v1451_v57 = vpop.f32.mrf.mxu0  ;;  %v3418_v50 = vpop.permute.xlu1 %3417  ;;  %v11760_v62 = vld [vmem:[%s17584_s3 + $0x5f8] sm:$0xff] }
 0x190   : > { %17777 = vst [vmem:[#allocation59_spill] sm:$0xff] %v14788_v12  ;;  %v1644_v22 = vpop.f32.mrf.mxu1  ;;  %v3413_v16 = vpop.permute.xlu0 %3412  ;;  %v3451_v53 = vmul.f32 %v3418_v50, %v14680_v10  ;;  %4178 = vperm.xlu1 %12549, %v11758_v40  }
 0x191   : > { %v3450_v54 = vmul.f32 %v3413_v16, %v3192_v3  ;;  %v14795_v17 = vpop.f32.mrf.mxu0  ;;  %4173 = vperm.xlu0 %12548, %v11757_v59   ;;  %v4357_v40 = vrot.slane %v1644_v22, 7  ;;  %v14812_v59 = vsel %vm1943_vm0, %v4351_v32, %v4353_v28  ;;  %v11761_v32 = vld [vmem:[%s17584_s3 + $0x600] sm:$0xff] }
 0x192   : > { %v14797_v31 = vpop.f32.mrf.mxu1  ;;  %v14806_v15 = vadd.f32 %v3451_v53, %v14664_v49  ;;  %17781 = vst [vmem:[#allocation27_spill] sm:$0xff] %v14812_v59  ;;  %v11762_v53 = vld [vmem:[%s17584_s3 + $0x608] sm:$0xff] }
 0x193   : > { %17778 = vst [vmem:[#allocation56_spill] sm:$0xff] %v14797_v31  ;;  %v14809_v10 = vadd.f32 %v3450_v54, %v14612_v46  ;;  %v1457_v6 = vpop.f32.mrf.mxu0  ;;  %v3589_v3 = vpop.permute.xlu1 %3588  ;;  %v14821_v46 = vsel %vm1943_vm0, %v4353_v28, %v4355_v27 }
 0x194   : > { %17779 = vst [vmem:[#allocation24_spill] sm:$0xff] %v14806_v15  ;;  %v1650_v52 = vpop.f32.mrf.mxu1  ;;  %v3584_v14 = vpop.permute.xlu0 %3583  ;;  %v3742_v50 = vmul.f32 %v3589_v3, %v14673_v58  ;;  %4188 = vperm.xlu1 %12549, %v11760_v62   ;;  %17783 = vst [vmem:[#allocation60_spill] sm:$0xff] %v14821_v46  ;;  %v14836_v3 = vsel %vm1943_vm0, %v4355_v27, %v4357_v40  ;;  %v11763_v27 = vld [vmem:[%s17584_s3 + $0x610] sm:$0xff] }
 0x195   : > { %17780 = vst [vmem:[#allocation49_spill] sm:$0xff] %v14809_v10  ;;  %v3741_v16 = vmul.f32 %v3584_v14, %v14637_v63  ;;  %v14816_v31 = vpop.f32.mrf.mxu0  ;;  %4183 = vperm.xlu0 %12548, %v11759_v25   ;;  %17785 = vst [vmem:[#allocation26_spill] sm:$0xff] %v14836_v3 }
 0x196   : > { %v14818_v49 = vpop.f32.mrf.mxu1  ;;  %v14830_v58 = vadd.f32 %v3742_v50, %v14702_v43  ;;  %v4359_v43 = vrot.slane %v1650_v52, 7 }
 0x197   : > { %17782 = vst [vmem:[#allocation61_spill] sm:$0xff] %v14818_v49  ;;  %v14833_v63 = vadd.f32 %v3741_v16, %v14704_v35  ;;  %v1461_v54 = vpop.f32.mrf.mxu0  ;;  %v3599_v62 = vpop.permute.xlu1 %3598  ;;  %v11764_v35 = vld [vmem:[%s17584_s3 + $0x618] sm:$0xff] }
 0x198   : > { %v1654_v22 = vpop.f32.mrf.mxu1  ;;  %v3594_v25 = vpop.permute.xlu0 %3593  ;;  %v3744_v14 = vmul.f32 %v3599_v62, %v14739_v41  ;;  %4488 = vperm.xlu1 %12549, %v11762_v53   ;;  %v17787_v16 = vld [vmem:[#allocation14_spill] sm:$0xff] }
 0x199   : > { %17784 = vst [vmem:[#allocation48_spill] sm:$0xff] %v14833_v63  ;;  %v4361_v28 = vrot.slane %v1654_v22, 7  ;;  %v3743_v49 = vmul.f32 %v3594_v25, %v14715_v23  ;;  %v14840_v44 = vpop.f32.mrf.mxu0  ;;  %4483 = vperm.xlu0 %12548, %v11761_v32  }
 0x19a   : > { %v14842_v50 = vpop.f32.mrf.mxu1  ;;  %v14851_v22 = vadd.f32 %v3744_v14, %v17787_v16  ;;  %v14865_v14 = vsel %vm1943_vm0, %v4357_v40, %v4359_v43 }
 0x19b   : > { %17786 = vst [vmem:[#allocation52_spill] sm:$0xff] %v14842_v50  ;;  %v14854_v23 = vadd.f32 %v3743_v49, %v14707_v45  ;;  %v1467_v41 = vpop.f32.mrf.mxu0  ;;  %v3609_v32 = vpop.permute.xlu1 %3608  ;;  %v14857_v62 = vsel %vm1943_vm0, %v4359_v43, %v4361_v28  ;;  %17790 = vst [vmem:[#allocation51_spill] sm:$0xff] %v14865_v14  ;;  %v11766_v45 = vld [vmem:[%s17584_s3 + $0x628] sm:$0xff]  ;;  %v11765_v49 = vld [vmem:[%s17584_s3 + $0x620] sm:$0xff] }
 0x19c   : > { %v1660_v53 = vpop.f32.mrf.mxu1  ;;  %v3604_v52 = vpop.permute.xlu0 %3603  ;;  %17788 = vst [vmem:[#allocation29_spill] sm:$0xff] %v14857_v62  ;;  %v3746_v25 = vmul.f32 %v3609_v32, %v1451_v57  ;;  %4498 = vperm.xlu1 %12549, %v11764_v35   ;;  %v17791_v57 = vld [vmem:[#allocation15_spill] sm:$0xff] }
 0x19d   : > { %v3745_v50 = vmul.f32 %v3604_v52, %v14764_v61  ;;  %v14860_v0 = vpop.f32.mrf.mxu0  ;;  %4493 = vperm.xlu0 %12548, %v11763_v27   ;;  %v4363_v27 = vrot.slane %v1660_v53, 7 }
 0x19e   : > { %v14862_v46 = vpop.f32.mrf.mxu1  ;;  %v14874_v16 = vadd.f32 %v3746_v25, %v17791_v57  ;;  %v11768_v25 = vld [vmem:[%s17584_s3 + $0x638] sm:$0xff] }
 0x19f   : > { %17789 = vst [vmem:[#allocation47_spill] sm:$0xff] %v14862_v46  ;;  %v14877_v61 = vadd.f32 %v3745_v50, %v14428_v13  ;;  %v1471_v35 = vpop.f32.mrf.mxu0  ;;  %v3619_v52 = vpop.permute.xlu1 %3618  ;;  %v11767_v13 = vld [vmem:[%s17584_s3 + $0x630] sm:$0xff] }
 0x1a0   : > { %v1664_v32 = vpop.f32.mrf.mxu1  ;;  %v3614_v40 = vpop.permute.xlu0 %3613  ;;  %v3748_v46 = vmul.f32 %v3619_v52, %v1461_v54  ;;  %4508 = vperm.xlu1 %12549, %v11766_v45  }
 0x1a1   : > { %v4365_v43 = vrot.slane %v1664_v32, 7  ;;  %v3747_v14 = vmul.f32 %v3614_v40, %v1457_v6  ;;  %v14879_v62 = vpop.f32.mrf.mxu0  ;;  %4503 = vperm.xlu0 %12548, %v11765_v49   ;;  %v14899_v49 = vsel %vm1943_vm0, %v4361_v28, %v4363_v27 }
 0x1a2   : > { %v14881_v3 = vpop.f32.mrf.mxu1  ;;  %v14893_v54 = vadd.f32 %v3748_v46, %v14453_v56  ;;  %17794 = vst [vmem:[#allocation31_spill] sm:$0xff] %v14899_v49  ;;  %v11770_v56 = vld [vmem:[%s17584_s3 + $0x648] sm:$0xff] }
 0x1a3   : > { %17792 = vst [vmem:[#allocation28_spill] sm:$0xff] %v14881_v3  ;;  %v14890_v50 = vsel %vm1943_vm0, %v4363_v27, %v4365_v43  ;;  %v14896_v6 = vadd.f32 %v3747_v14, %v14456_v39  ;;  %v1477_v53 = vpop.f32.mrf.mxu0  ;;  %v3629_v57 = vpop.permute.xlu1 %3628  ;;  %v11769_v39 = vld [vmem:[%s17584_s3 + $0x640] sm:$0xff] }
 0x1a4   : > { %17793 = vst [vmem:[#allocation55_spill] sm:$0xff] %v14890_v50  ;;  %v1670_v45 = vpop.f32.mrf.mxu1  ;;  %v3624_v32 = vpop.permute.xlu0 %3623  ;;  %v3750_v40 = vmul.f32 %v3629_v57, %v1471_v35  ;;  %4518 = vperm.xlu1 %12549, %v11768_v25  }
 0x1a5   : > { %v4367_v52 = vrot.slane %v1670_v45, 7  ;;  %v3749_v3 = vmul.f32 %v3624_v32, %v1467_v41  ;;  %v14901_v5 = vpop.f32.mrf.mxu0  ;;  %4513 = vperm.xlu0 %12548, %v11767_v13  }
 0x1a6   : > { %v14903_v50 = vpop.f32.mrf.mxu1  ;;  %v14912_v46 = vadd.f32 %v3750_v40, %v14481_v33  ;;  %v11772_v33 = vld [vmem:[%s17584_s3 + $0x658] sm:$0xff] }
 0x1a7   : > { %17795 = vst [vmem:[#allocation30_spill] sm:$0xff] %v14903_v50  ;;  %v14915_v28 = vadd.f32 %v3749_v3, %v14484_v21  ;;  %v1481_v41 = vpop.f32.mrf.mxu0  ;;  %v14918_v35 = vsel %vm1943_vm0, %v4365_v43, %v4367_v52  ;;  %v3639_v27 = vpop.permute.xlu1 %3638  ;;  %v11771_v21 = vld [vmem:[%s17584_s3 + $0x650] sm:$0xff] }
 0x1a8   : > { %v1674_v14 = vpop.f32.mrf.mxu1  ;;  %17796 = vst [vmem:[#allocation54_spill] sm:$0xff] %v14918_v35  ;;  %v3634_v25 = vpop.permute.xlu0 %3633  ;;  %v3752_v45 = vmul.f32 %v3639_v27, %v1481_v41  ;;  %4528 = vperm.xlu1 %12549, %v11770_v56  }
 0x1a9   : > { %v4369_v13 = vrot.slane %v1674_v14, 7  ;;  %v3751_v57 = vmul.f32 %v3634_v25, %v1477_v53  ;;  %v14920_v32 = vpop.f32.mrf.mxu0  ;;  %4523 = vperm.xlu0 %12548, %v11769_v39  }
 0x1aa   : > { %v14922_v50 = vpop.f32.mrf.mxu1  ;;  %v14934_v43 = vadd.f32 %v3752_v45, %v14516_v36  ;;  %v11774_v36 = vld [vmem:[%s17584_s3 + $0x668] sm:$0xff] }
 0x1ab   : > { %17797 = vst [vmem:[#allocation50_spill] sm:$0xff] %v14922_v50  ;;  %v14931_v3 = vsel %vm1943_vm0, %v4367_v52, %v4369_v13  ;;  %v14937_v53 = vadd.f32 %v3751_v57, %v14519_v20  ;;  %v1487_v40 = vpop.f32.mrf.mxu0  ;;  %v3649_v39 = vpop.permute.xlu1 %3648  ;;  %v11773_v20 = vld [vmem:[%s17584_s3 + $0x660] sm:$0xff] }
 0x1ac   : > { %17798 = vst [vmem:[#allocation63_spill] sm:$0xff] %v14931_v3  ;;  %v1680_v56 = vpop.f32.mrf.mxu1  ;;  %v3644_v41 = vpop.permute.xlu0 %3643  ;;  %4538 = vperm.xlu1 %12549, %v11772_v33  }
 0x1ad   : > { %v4371_v14 = vrot.slane %v1680_v56, 7  ;;  %v3753_v27 = vmul.f32 %v3644_v41, %v1487_v40  ;;  %v14939_v25 = vpop.f32.mrf.mxu0  ;;  %4533 = vperm.xlu0 %12548, %v11771_v21  }
 0x1ae   : > { %v14941_v50 = vpop.f32.mrf.mxu1 }
 0x1af   : > { %17799 = vst [vmem:[#allocation33_spill] sm:$0xff] %v14941_v50  ;;  %v14950_v52 = vsel %vm1943_vm0, %v4369_v13, %v4371_v14  ;;  %v14953_v45 = vadd.f32 %v3753_v27, %v14543_v7  ;;  %v1491_v57 = vpop.f32.mrf.mxu0  ;;  %v3659_v21 = vpop.permute.xlu1 %3658  ;;  %v11776_v7 = vld [vmem:[%s17584_s3 + $0x678] sm:$0xff]  ;;  %v11775_v13 = vld [vmem:[%s17584_s3 + $0x670] sm:$0xff] }
 0x1b0   : > { %17800 = vst [vmem:[#allocation64_spill] sm:$0xff] %v14950_v52  ;;  %v1684_v40 = vpop.f32.mrf.mxu1  ;;  %v3754_v33 = vmul.f32 %v3649_v39, %v1491_v57  ;;  %v3654_v56 = vpop.permute.xlu0 %3653  ;;  %4548 = vperm.xlu1 %12549, %v11774_v36  }
 0x1b1   : > { %v4373_v41 = vrot.slane %v1684_v40, 7  ;;  %v14955_v50 = vpop.f32.mrf.mxu0  ;;  %4543 = vperm.xlu0 %12548, %v11773_v20  }
 0x1b2   : > { %v14957_v35 = vpop.f32.mrf.mxu1  ;;  %v14960_v3 = vadd.f32 %v3754_v33, %v14540_v2 }
 0x1b3   : > { %17801 = vst [vmem:[#allocation62_spill] sm:$0xff] %v14957_v35  ;;  %v14969_v39 = vsel %vm1943_vm0, %v4371_v14, %v4373_v41  ;;  %v1497_v27 = vpop.f32.mrf.mxu0  ;;  %v3669_v20 = vpop.permute.xlu1 %3668  ;;  %v11778_v14 = vld [vmem:[%s17584_s3 + $0x688] sm:$0xff] }
 0x1b4   : > { %17802 = vst [vmem:[#allocation17_spill] sm:$0xff] %v14969_v39  ;;  %v1690_v57 = vpop.f32.mrf.mxu1  ;;  %v3755_v36 = vmul.f32 %v3654_v56, %v1497_v27  ;;  %v3664_v40 = vpop.permute.xlu0 %3663  ;;  %4558 = vperm.xlu1 %12549, %v11776_v7   ;;  %v11777_v56 = vld [vmem:[%s17584_s3 + $0x680] sm:$0xff] }
 0x1b5   : > { %v4375_v35 = vrot.slane %v1690_v57, 7  ;;  %v14971_v52 = vpop.f32.mrf.mxu0  ;;  %4553 = vperm.xlu0 %12548, %v11775_v13  }
 0x1b6   : > { %v14973_v2 = vpop.f32.mrf.mxu1  ;;  %v14976_v33 = vadd.f32 %v3755_v36, %v14573_v4 }
 0x1b7   : > { %17803 = vst [vmem:[#allocation12_spill] sm:$0xff] %v14973_v2  ;;  %v14985_v27 = vsel %vm1943_vm0, %v4373_v41, %v4375_v35  ;;  %v1501_v57 = vpop.f32.mrf.mxu0  ;;  %v14987_v13 = vpop.permute.xlu1 %3678  ;;  %v11780_v41 = vld [vmem:[%s17584_s3 + $0x698] sm:$0xff] }
 0x1b8   : > { %17804 = vst [vmem:[#allocation23_spill] sm:$0xff] %v14976_v33  ;;  %17805 = vst [vmem:[#allocation36_spill] sm:$0xff] %v14985_v27  ;;  %v1694_v39 = vpop.f32.mrf.mxu1  ;;  %v3756_v7 = vmul.f32 %v3659_v21, %v1501_v57  ;;  %v3674_v2 = vpop.permute.xlu0 %3673  ;;  %4568 = vperm.xlu1 %12549, %v11778_v14   ;;  %v11779_v21 = vld [vmem:[%s17584_s3 + $0x690] sm:$0xff]  ;;  %v11785_v33 = vld [vmem:[%s17584_s3 + $0x6c0] sm:$0xff] }
 0x1b9   : > { %v4377_v49 = vrot.slane %v1694_v39, 7  ;;  %v14989_v4 = vpop.f32.mrf.mxu0  ;;  %4563 = vperm.xlu0 %12548, %v11777_v56  }
 0x1ba   : > { %v14991_v36 = vpop.f32.mrf.mxu1  ;;  %v14994_v59 = vadd.f32 %v3756_v7, %v14570_v29 }
 0x1bb   : > { %17806 = vst [vmem:[#allocation37_spill] sm:$0xff] %v14991_v36  ;;  %v15003_v57 = vsel %vm1943_vm0, %v4375_v35, %v4377_v49  ;;  %v1507_v39 = vpop.f32.mrf.mxu0  ;;  %v15005_v56 = vpop.permute.xlu1 %3688  ;;  %v11782_v35 = vld [vmem:[%s17584_s3 + $0x6a8] sm:$0xff] }
 0x1bc   : > { %17807 = vst [vmem:[#allocation16_spill] sm:$0xff] %v14994_v59  ;;  %17808 = vst [vmem:[#allocation58_spill] sm:$0xff] %v15003_v57  ;;  %v1700_v27 = vpop.f32.mrf.mxu1  ;;  %v3757_v14 = vmul.f32 %v3664_v40, %v1507_v39  ;;  %v15007_v36 = vpop.permute.xlu0 %3683  ;;  %4578 = vperm.xlu1 %12549, %v11780_v41   ;;  %v11781_v40 = vld [vmem:[%s17584_s3 + $0x6a0] sm:$0xff] }
 0x1bd   : > { %v4379_v29 = vrot.slane %v1700_v27, 7  ;;  %v15009_v7 = vpop.f32.mrf.mxu0  ;;  %4573 = vperm.xlu0 %12548, %v11779_v21  }
 0x1be   : > { %v15011_v63 = vpop.f32.mrf.mxu1  ;;  %v15014_v9 = vadd.f32 %v3757_v14, %v14608_v37 }
 0x1bf   : > { %17809 = vst [vmem:[#allocation35_spill] sm:$0xff] %v15011_v63  ;;  %v15023_v39 = vsel %vm1943_vm0, %v4377_v49, %v4379_v29  ;;  %v1511_v27 = vpop.f32.mrf.mxu0  ;;  %v15025_v21 = vpop.permute.xlu1 %3698  ;;  %v11784_v49 = vld [vmem:[%s17584_s3 + $0x6b8] sm:$0xff] }
 0x1c0   : > { %17810 = vst [vmem:[#allocation19_spill] sm:$0xff] %v15014_v9  ;;  %17811 = vst [vmem:[#allocation18_spill] sm:$0xff] %v15023_v39  ;;  %v1704_v57 = vpop.f32.mrf.mxu1  ;;  %v3758_v41 = vmul.f32 %v3669_v20, %v1511_v27  ;;  %v15027_v63 = vpop.permute.xlu0 %3693  ;;  %4588 = vperm.xlu1 %12549, %v11782_v35   ;;  %v11783_v20 = vld [vmem:[%s17584_s3 + $0x6b0] sm:$0xff]  ;;  %v12654_v35 = vld [vmem:[%s17583_s2 + $0x1f8] ss:$36 sps:$4 sm:$0xff]  }
 0x1c1   : > { %v4381_v37 = vrot.slane %v1704_v57, 7  ;;  %v15029_v14 = vpop.f32.mrf.mxu0  ;;  %4583 = vperm.xlu0 %12548, %v11781_v40  }
 0x1c2   : > { %v15031_v15 = vpop.f32.mrf.mxu1  ;;  %v15034_v9 = vadd.f32 %v3758_v41, %v14605_v8 }
 0x1c3   : > { %17812 = vst [vmem:[#allocation32_spill] sm:$0xff] %v15031_v15  ;;  %v15043_v27 = vsel %vm1943_vm0, %v4379_v29, %v4381_v37  ;;  %v1517_v57 = vpop.f32.mrf.mxu0  ;;  %v15048_v8 = vpop.permute.xlu1 %3708  ;;  %v12657_v29 = vld [vmem:[%s17583_s2 + $0x200] ss:$36 sps:$4 sm:$0xff]  }
 0x1c4   : > { %17813 = vst [vmem:[#allocation20_spill] sm:$0xff] %v15034_v9  ;;  %17814 = vst [vmem:[#allocation57_spill] sm:$0xff] %v15043_v27  ;;  %v1710_v39 = vpop.f32.mrf.mxu1  ;;  %v3759_v40 = vmul.f32 %v3674_v2, %v1517_v57  ;;  %v15050_v41 = vpop.permute.xlu0 %3703  ;;  %v12656_v9 = vld [vmem:[%s17583_s2 + $0x1fc] ss:$36 sps:$4 sm:$0xff]   ;;  %4598 = vperm.xlu1 %12549, %v11784_v49   ;;  %v12659_v2 = vld [vmem:[%s17583_s2 + $0x204] ss:$36 sps:$4 sm:$0xff]  }
 0x1c5   : > { %v4383_v15 = vrot.slane %v1710_v39, 7  ;;  %v15058_v27 = vpop.f32.mrf.mxu0  ;;  %4593 = vperm.xlu0 %12548, %v11783_v20   ;;  %v11786_v57 = vld [vmem:[%s17584_s3 + $0x6c8] sm:$0xff]  ;;  %6139 = vmatprep.subr.bf16.mxu1 %v12656_v9  ;;  %v12662_v9 = vld [vmem:[%s17583_s2 + $0x1b4] ss:$36 sps:$4 sm:$0xff]  }
 0x1c6   : > { %v15060_v10 = vpop.f32.mrf.mxu1  ;;  %v15066_v39 = vadd.f32 %v3759_v40, %v14642_v42  ;;  %6140 = vmatpush1.bf16.msra.mxu1 %v12654_v35  ;;  %6332 = vmatprep.subr.bf16.mxu0 %v12659_v2  ;;  %v12660_v42 = vld [vmem:[%s17583_s2 + $0x1b0] ss:$36 sps:$4 sm:$0xff]  }
 0x1c7   : > { %17815 = vst [vmem:[#allocation41_spill] sm:$0xff] %v15060_v10  ;;  %v15075_v49 = vsel %vm1943_vm0, %v4381_v37, %v4383_v15  ;;  %v1521_v20 = vpop.f32.mrf.mxu0  ;;  %6333 = vmatpush1.bf16.msra.mxu0 %v12657_v29  ;;  %v12663_v37 = vld [vmem:[%s17583_s2 + $0x1b8] ss:$36 sps:$4 sm:$0xff]   ;;  %6141 = vmatprep.subr.bf16.mxu1 %v12662_v9 }
 0x1c8   : > { %17816 = vst [vmem:[#allocation21_spill] sm:$0xff] %v15066_v39  ;;  %17817 = vst [vmem:[#allocation39_spill] sm:$0xff] %v15075_v49  ;;  %v1714_v10 = vpop.f32.mrf.mxu1  ;;  %v3760_v40 = vmul.f32 %v14987_v13, %v1521_v20  ;;  %v15081_v39 = vpop.permute.xlu1 %3718  ;;  %4608 = vperm.xlu1 %12549, %v11786_v57   ;;  %v12665_v13 = vld [vmem:[%s17583_s2 + $0x1bc] ss:$36 sps:$4 sm:$0xff]   ;;  %v11787_v20 = vld [vmem:[%s17584_s3 + $0x6d0] sm:$0xff] }
 0x1c9   : > { %v15083_v59 = vpop.permute.xlu0 %3713  ;;  %v4385_v12 = vrot.slane %v1714_v10, 7  ;;  %v15091_v35 = vpop.f32.mrf.mxu0  ;;  %4603 = vperm.xlu0 %12548, %v11785_v33   ;;  %v11788_v29 = vld [vmem:[%s17584_s3 + $0x6d8] sm:$0xff]  ;;  %6334 = vmatprep.subr.bf16.mxu0 %v12665_v13 }
 0x1ca   : > { %17818 = vst [vmem:[#allocation11_spill] sm:$0xff] %v15091_v35  ;;  %v15093_v2 = vpop.f32.mrf.mxu1  ;;  %v15099_v10 = vadd.f32 %v3760_v40, %v14635_v51  ;;  %6142 = vmatpush1.bf16.msra.mxu1 %v12660_v42  ;;  %v12666_v51 = vld [vmem:[%s17583_s2 + $0x168] ss:$36 sps:$4 sm:$0xff]   ;;  %v12669_v42 = vld [vmem:[%s17583_s2 + $0x170] ss:$36 sps:$4 sm:$0xff]  }
 0x1cb   : > { %17819 = vst [vmem:[#allocation38_spill] sm:$0xff] %v15093_v2  ;;  %v15108_v57 = vsel %vm1943_vm0, %v4383_v15, %v4385_v12  ;;  %v1527_v33 = vpop.f32.mrf.mxu0  ;;  %6335 = vmatpush1.bf16.msra.mxu0 %v12663_v37  ;;  %v12668_v15 = vld [vmem:[%s17583_s2 + $0x16c] ss:$36 sps:$4 sm:$0xff]  }
 0x1cc   : > { %17820 = vst [vmem:[#allocation43_spill] sm:$0xff] %v15099_v10  ;;  %17821 = vst [vmem:[#allocation13_spill] sm:$0xff] %v15108_v57  ;;  %v1720_v2 = vpop.f32.mrf.mxu1  ;;  %v3761_v40 = vmul.f32 %v15007_v36, %v1527_v33  ;;  %v15114_v49 = vpop.permute.xlu1 %3728  ;;  %4618 = vperm.xlu1 %12549, %v11788_v29   ;;  %v12671_v36 = vld [vmem:[%s17583_s2 + $0x174] ss:$36 sps:$4 sm:$0xff]   ;;  %v11789_v33 = vld [vmem:[%s17584_s3 + $0x6e0] sm:$0xff]  ;;  %6143 = vmatprep.subr.bf16.mxu1 %v12668_v15 }
 0x1cd   : > { %17822 = vst [vmem:[#allocation14_spill] sm:$0xff] %v15114_v49  ;;  %v15116_v10 = vpop.permute.xlu0 %3723  ;;  %v4387_v35 = vrot.slane %v1720_v2, 7  ;;  %v15124_v9 = vpop.f32.mrf.mxu0  ;;  %4613 = vperm.xlu0 %12548, %v11787_v20   ;;  %v11790_v2 = vld [vmem:[%s17584_s3 + $0x6e8] sm:$0xff]  ;;  %6336 = vmatprep.subr.bf16.mxu0 %v12671_v36  ;;  %v3908_v20 = vrot.slane %v14766_v55, 1 }
 0x1ce   : > { %17823 = vst [vmem:[#allocation15_spill] sm:$0xff] %v15124_v9  ;;  %v15126_v13 = vpop.f32.mrf.mxu1  ;;  %v15132_v37 = vadd.f32 %v3761_v40, %v14671_v30  ;;  %6144 = vmatpush1.bf16.msra.mxu1 %v12666_v51  ;;  %v12672_v30 = vld [vmem:[%s17583_s2 + $0x120] ss:$36 sps:$4 sm:$0xff]   ;;  %v3904_v40 = vrot.slane %v14719_v26, 1  ;;  %v12675_v51 = vld [vmem:[%s17583_s2 + $0x128] ss:$36 sps:$4 sm:$0xff]  }
 0x1cf   : > { %17824 = vst [vmem:[#allocation65_spill] sm:$0xff] %v15126_v13  ;;  %v15141_v29 = vsel %vm1943_vm0, %v4385_v12, %v4387_v35  ;;  %v1531_v13 = vpop.f32.mrf.mxu0  ;;  %6337 = vmatpush1.bf16.msra.mxu0 %v12669_v42  ;;  %v12674_v15 = vld [vmem:[%s17583_s2 + $0x124] ss:$36 sps:$4 sm:$0xff]   ;;  %v11792_v42 = vld [vmem:[%s17584_s3 + $0x6f8] sm:$0xff] }
 0x1d0   : > { %17825 = vst [vmem:[#allocation66_spill] sm:$0xff] %v15132_v37  ;;  %17826 = vst [vmem:[#allocation67_spill] sm:$0xff] %v15141_v29  ;;  %v1724_v57 = vpop.f32.mrf.mxu1  ;;  %v3762_v37 = vmul.f32 %v15005_v56, %v1531_v13  ;;  %v15149_v9 = vpop.permute.xlu1 %3738  ;;  %4628 = vperm.xlu1 %12549, %v11790_v2   ;;  %v12677_v56 = vld [vmem:[%s17583_s2 + $0x12c] ss:$36 sps:$4 sm:$0xff]   ;;  %6145 = vmatprep.subr.bf16.mxu1 %v12674_v15 }
 0x1d1   : > { %17827 = vst [vmem:[#allocation68_spill] sm:$0xff] %v15149_v9  ;;  %v15151_v49 = vpop.permute.xlu0 %3733  ;;  %v4389_v12 = vrot.slane %v1724_v57, 7  ;;  %v15159_v36 = vpop.f32.mrf.mxu0  ;;  %4623 = vperm.xlu0 %12548, %v11789_v33   ;;  %v11791_v13 = vld [vmem:[%s17584_s3 + $0x6f0] sm:$0xff]  ;;  %v3906_v33 = vrot.slane %v14743_v18, 1  ;;  %6338 = vmatprep.subr.bf16.mxu0 %v12677_v56  ;;  %v12681_v56 = vld [vmem:[%s17583_s2 + $0xe0] ss:$36 sps:$4 sm:$0xff]  }
 0x1d2   : > { %v15161_v26 = vpop.f32.mrf.mxu1  ;;  %v15167_v57 = vadd.f32 %v3762_v37, %v14668_v38  ;;  %6146 = vmatpush1.bf16.msra.mxu1 %v12672_v30  ;;  %v12678_v38 = vld [vmem:[%s17583_s2 + $0xd8] ss:$36 sps:$4 sm:$0xff]   ;;  %v3910_v37 = vrot.slane %v14795_v17, 1 }
 0x1d3   : > { %17828 = vst [vmem:[#allocation69_spill] sm:$0xff] %v15161_v26  ;;  %v15176_v2 = vsel %vm1943_vm0, %v4387_v35, %v4389_v12  ;;  %v1537_v26 = vpop.f32.mrf.mxu0  ;;  %v17831_v35 = vrot.slane %v14689_v60, 1  ;;  %6339 = vmatpush1.bf16.msra.mxu0 %v12675_v51  ;;  %v12680_v30 = vld [vmem:[%s17583_s2 + $0xdc] ss:$36 sps:$4 sm:$0xff]   ;;  %v3907_v17 = vsel %vm2649_vm1, %v3904_v40, %v3906_v33 }
 0x1d4   : > { %17829 = vst [vmem:[#allocation70_spill] sm:$0xff] %v15167_v57  ;;  %17830 = vst [vmem:[#allocation71_spill] sm:$0xff] %v15176_v2  ;;  %v1730_v29 = vpop.f32.mrf.mxu1  ;;  %v3763_v57 = vmul.f32 %v15027_v63, %v1537_v26  ;;  %v4039_v9 = vpop.permute.xlu1 %4038  ;;  %4638 = vperm.xlu1 %12549, %v11792_v42   ;;  %v11794_v2 = vld [vmem:[%s17584_s3 + $0x708] sm:$0xff]  ;;  %6147 = vmatprep.subr.bf16.mxu1 %v12680_v30  ;;  %v3911_v30 = vsel %vm2649_vm1, %v3908_v20, %v3910_v37 }
 0x1d5   : > { %v3905_v15 = vsel %vm2649_vm1, %v17831_v35, %v3904_v40  ;;  %v15188_v18 = vpop.permute.xlu0 %4033  ;;  %v4391_v55 = vrot.slane %v1730_v29, 7  ;;  %v15197_v26 = vpop.f32.mrf.mxu0  ;;  %4633 = vperm.xlu0 %12548, %v11791_v13   ;;  %v12683_v29 = vld [vmem:[%s17583_s2 + $0xe4] ss:$36 sps:$4 sm:$0xff]   ;;  %v12686_v40 = vld [vmem:[%s17583_s2 + $0x94] ss:$36 sps:$4 sm:$0xff]  }
 0x1d6   : > { %17832 = vst [vmem:[#allocation72_spill] sm:$0xff] %v15188_v18  ;;  %v4192_v63 = vmul.f32 %v4039_v9, %v3905_v15  ;;  %v15199_v35 = vpop.f32.mrf.mxu1  ;;  %v15205_v51 = vadd.f32 %v3763_v57, %v14713_v47  ;;  %v11793_v9 = vld [vmem:[%s17584_s3 + $0x700] sm:$0xff]  ;;  %6148 = vmatpush1.bf16.msra.mxu1 %v12678_v38  ;;  %6340 = vmatprep.subr.bf16.mxu0 %v12683_v29  ;;  %v12684_v57 = vld [vmem:[%s17583_s2 + $0x90] ss:$36 sps:$4 sm:$0xff]   ;;  %v12687_v38 = vld [vmem:[%s17583_s2 + $0x98] ss:$36 sps:$4 sm:$0xff]  }
 0x1d7   : > { %17833 = vst [vmem:[#allocation73_spill] sm:$0xff] %v15199_v35  ;;  %v15214_v42 = vsel %vm1943_vm0, %v4389_v12, %v4391_v55  ;;  %v1541_v15 = vpop.f32.mrf.mxu0  ;;  %v3909_v12 = vsel %vm2649_vm1, %v3906_v33, %v3908_v20  ;;  %6341 = vmatpush1.bf16.msra.mxu0 %v12681_v56  ;;  %v12689_v56 = vld [vmem:[%s17583_s2 + $0x9c] ss:$36 sps:$4 sm:$0xff]   ;;  %6149 = vmatprep.subr.bf16.mxu1 %v12686_v40 }
 0x1d8   : > { %17834 = vst [vmem:[#allocation74_spill] sm:$0xff] %v15214_v42  ;;  %v15217_v13 = vadd.f32 %v4192_v63, %v14830_v58  ;;  %v1734_v47 = vpop.f32.mrf.mxu1  ;;  %v3764_v35 = vmul.f32 %v15025_v21, %v1541_v15  ;;  %v4049_v18 = vpop.permute.xlu1 %4048  ;;  %4809 = vperm.xlu1 %12549, %v11794_v2   ;;  %v17836_v21 = vrot.slane %v14816_v31, 1  ;;  %v3914_v15 = vrot.slane %v14840_v44, 1  ;;  %v11826_v2 = vld [vmem:[%s17584_s3 + $0x808] sm:$0xff]  ;;  %6342 = vmatprep.subr.bf16.mxu0 %v12689_v56 }
 0x1d9   : > { %v4044_v42 = vpop.permute.xlu0 %4043  ;;  %v4393_v58 = vrot.slane %v1734_v47, 7  ;;  %v4194_v63 = vmul.f32 %v4049_v18, %v3909_v12  ;;  %4804 = vperm.xlu0 %12548, %v11793_v9   ;;  %v3916_v47 = vrot.slane %v14860_v0, 1 }
 0x1da   : > { %17835 = vst [vmem:[#allocation75_spill] sm:$0xff] %v15217_v13  ;;  %v4193_v29 = vmul.f32 %v4044_v42, %v3907_v17  ;;  %v15232_v13 = vpop.f32.mrf.mxu0  ;;  %v3913_v20 = vsel %vm2649_vm1, %v3910_v37, %v17836_v21  ;;  %v15237_v33 = vpop.f32.mrf.mxu1  ;;  %v15245_v18 = vadd.f32 %v3764_v35, %v14710_v34  ;;  %v11825_v37 = vld [vmem:[%s17584_s3 + $0x800] sm:$0xff]  ;;  %6150 = vmatpush1.bf16.msra.mxu1 %v12684_v57  ;;  %v3918_v35 = vrot.slane %v14879_v62, 1 }
 0x1db   : > { %17837 = vst [vmem:[#allocation76_spill] sm:$0xff] %v15237_v33  ;;  %v15254_v17 = vsel %vm1943_vm0, %v4391_v55, %v4393_v58  ;;  %v15257_v9 = vadd.f32 %v4194_v63, %v14851_v22  ;;  %6343 = vmatpush1.bf16.msra.mxu0 %v12687_v38  ;;  %v17613_v55 = vrot.slane %v14901_v5, 1  ;;  %v3917_v62 = vsel %vm2649_vm1, %v3914_v15, %v3916_v47  ;;  %v11796_v38 = vld [vmem:[%s17584_s3 + $0x718] sm:$0xff] }
 0x1dc   : > { %v15260_v44 = vadd.f32 %v4193_v29, %v14854_v23  ;;  %v1547_v34 = vpop.f32.mrf.mxu0  ;;  %v1740_v0 = vpop.f32.mrf.mxu1  ;;  %5259 = vperm.xlu1 %12549, %v11826_v2  }
 0x1dd   : > { %v3765_v42 = vmul.f32 %v15050_v41, %v1547_v34  ;;  %v4059_v12 = vpop.permute.xlu1 %4058  ;;  %v4054_v21 = vpop.permute.xlu0 %4053  ;;  %v4395_v33 = vrot.slane %v1740_v0, 7  ;;  %5254 = vperm.xlu0 %12548, %v11825_v37   ;;  %v17839_v41 = vrot.slane %v14816_v31, 1 }
 0x1de   : > { %v4196_v40 = vmul.f32 %v4059_v12, %v3913_v20  ;;  %v4195_v22 = vmul.f32 %v4054_v21, %v3911_v30  ;;  %v15265_v63 = vpop.f32.mrf.mxu0  ;;  %v15267_v23 = vpop.f32.mrf.mxu1  ;;  %v11795_v30 = vld [vmem:[%s17584_s3 + $0x710] sm:$0xff] }
 0x1df   : > { %17838 = vst [vmem:[#allocation77_spill] sm:$0xff] %v15267_v23  ;;  %v15270_v57 = vadd.f32 %v3765_v42, %v14737_v24  ;;  %v3915_v29 = vsel %vm2649_vm1, %v17839_v41, %v3914_v15  ;;  %v15283_v20 = vsel %vm1943_vm0, %v4393_v58, %v4395_v33  ;;  %v12692_v15 = vld [vmem:[%s17583_s2 + $0x4c] ss:$36 sps:$4 sm:$0xff]   ;;  %v3919_v42 = vsel %vm2649_vm1, %v3916_v47, %v3918_v35 }
 0x1e0   : > { %v15286_v24 = vadd.f32 %v4196_v40, %v14874_v16  ;;  %v15289_v56 = vadd.f32 %v4195_v22, %v14877_v61  ;;  %v1551_v31 = vpop.f32.mrf.mxu0  ;;  %v1744_v2 = vpop.f32.mrf.mxu1  ;;  %v12690_v16 = vld [vmem:[%s17583_s2 + $0x48] ss:$36 sps:$4 sm:$0xff]   ;;  %v12693_v61 = vld [vmem:[%s17583_s2 + $0x50] ss:$36 sps:$4 sm:$0xff]   ;;  %4819 = vperm.xlu1 %12549, %v11796_v38   ;;  %v3922_v41 = vrot.slane %v14920_v32, 1  ;;  %6151 = vmatprep.subr.bf16.mxu1 %v12692_v15 }
 0x1e1   : > { %v3766_v37 = vmul.f32 %v15048_v8, %v1551_v31  ;;  %v4069_v34 = vpop.permute.xlu1 %4068  ;;  %v4064_v0 = vpop.permute.xlu0 %4063  ;;  %v4397_v58 = vrot.slane %v1744_v2, 7  ;;  %4814 = vperm.xlu0 %12548, %v11795_v30   ;;  %v3921_v8 = vsel %vm2649_vm1, %v3918_v35, %v17613_v55  ;;  %v12695_v22 = vld [vmem:[%s17583_s2 + $0x54] ss:$36 sps:$4 sm:$0xff]   ;;  %v3924_v31 = vrot.slane %v14939_v25, 1  ;;  %v12698_v32 = vld [vmem:[%s17583_s2 + $0x4] ss:$36 sps:$4 sm:$0xff]   ;;  %6152 = vmatpush1.bf16.msra.mxu1 %v12690_v16 }
 0x1e2   : > { %v4198_v12 = vmul.f32 %v4069_v34, %v3917_v62  ;;  %v4197_v21 = vmul.f32 %v4064_v0, %v3915_v29  ;;  %v15302_v40 = vpop.f32.mrf.mxu0  ;;  %v15307_v47 = vpop.f32.mrf.mxu1  ;;  %v11828_v29 = vld [vmem:[%s17584_s3 + $0x818] sm:$0xff]  ;;  %v11827_v35 = vld [vmem:[%s17584_s3 + $0x810] sm:$0xff]  ;;  %6344 = vmatprep.subr.bf16.mxu0 %v12695_v22  ;;  %6153 = vmatprep.subr.bf16.mxu1 %v12698_v32  ;;  %v12699_v16 = vld [vmem:[%s17583_s2 + $0x8] ss:$36 sps:$4 sm:$0xff]   ;;  %v17842_v32 = vrot.slane %v14901_v5, 1 }
 0x1e3   : > { %17840 = vst [vmem:[#allocation78_spill] sm:$0xff] %v15307_v47  ;;  %v15315_v62 = vadd.f32 %v3766_v37, %v14734_v11  ;;  %v15324_v38 = vsel %vm1943_vm0, %v4395_v33, %v4397_v58  ;;  %v12696_v33 = vld [vmem:[%s17583_s2] ss:$36 sps:$4 sm:$0xff]   ;;  %v12701_v15 = vld [vmem:[%s17583_s2 + $0xc] ss:$36 sps:$4 sm:$0xff]   ;;  %v3926_v37 = vrot.slane %v14955_v50, 1  ;;  %6345 = vmatpush1.bf16.msra.mxu0 %v12693_v61  ;;  %v3925_v61 = vsel %vm2649_vm1, %v3922_v41, %v3924_v31 }
 0x1e4   : > { %v15330_v25 = vadd.f32 %v4198_v12, %v14893_v54  ;;  %v15333_v11 = vadd.f32 %v4197_v21, %v14896_v6  ;;  %v1557_v30 = vpop.f32.mrf.mxu0  ;;  %v1750_v2 = vpop.f32.mrf.mxu1  ;;  %v3928_v12 = vrot.slane %v14971_v52, 1  ;;  %5269 = vperm.xlu1 %12549, %v11828_v29   ;;  %v11798_v52 = vld [vmem:[%s17584_s3 + $0x728] sm:$0xff]  ;;  %6346 = vmatprep.subr.bf16.mxu0 %v12701_v15  ;;  %v3946_v47 = vrot.slane %v15232_v13, 1 }
 0x1e5   : > { %v3767_v54 = vmul.f32 %v15083_v59, %v1557_v30  ;;  %v4079_v34 = vpop.permute.xlu1 %4078  ;;  %v4074_v0 = vpop.permute.xlu0 %4073  ;;  %v4399_v6 = vrot.slane %v1750_v2, 7  ;;  %5264 = vperm.xlu0 %12548, %v11827_v35   ;;  %v3923_v30 = vsel %vm2649_vm1, %v17842_v32, %v3922_v41  ;;  %6154 = vmatpush1.bf16.msra.mxu1 %v12696_v33 }
 0x1e6   : > { %v4200_v21 = vmul.f32 %v4079_v34, %v3921_v8  ;;  %v4199_v22 = vmul.f32 %v4074_v0, %v3919_v42  ;;  %v15347_v55 = vpop.f32.mrf.mxu0  ;;  %v15349_v50 = vpop.f32.mrf.mxu1  ;;  %v11797_v42 = vld [vmem:[%s17584_s3 + $0x720] sm:$0xff]  ;;  %v3927_v34 = vsel %vm2649_vm1, %v3924_v31, %v3926_v37  ;;  %v3932_v31 = vrot.slane %v15009_v7, 1 }
 0x1e7   : > { %17841 = vst [vmem:[#allocation79_spill] sm:$0xff] %v15349_v50  ;;  %v15352_v59 = vadd.f32 %v3767_v54, %v14762_v1  ;;  %v15365_v8 = vsel %vm1943_vm0, %v4397_v58, %v4399_v6  ;;  %6347 = vmatpush1.bf16.msra.mxu0 %v12699_v16  ;;  %v12704_v58 = vld [vmem:[%s17583_s2 + $0x20c] ss:$36 sps:$4 sm:$0xff]   ;;  %v3944_v50 = vrot.slane %v15197_v26, 1  ;;  %v11801_v26 = vld [vmem:[%s17584_s3 + $0x740] sm:$0xff] }
 0x1e8   : > { %v15368_v1 = vadd.f32 %v4200_v21, %v14912_v46  ;;  %v15371_v29 = vadd.f32 %v4199_v22, %v14915_v28  ;;  %v1561_v5 = vpop.f32.mrf.mxu0  ;;  %v1754_v41 = vpop.f32.mrf.mxu1  ;;  %4829 = vperm.xlu1 %12549, %v11798_v52   ;;  %v3929_v28 = vsel %vm2649_vm1, %v3926_v37, %v3928_v12  ;;  %v11830_v22 = vld [vmem:[%s17584_s3 + $0x828] sm:$0xff]  ;;  %6525 = vmatprep.subr.bf16.mxu1 %v12704_v58  ;;  %v11800_v58 = vld [vmem:[%s17584_s3 + $0x738] sm:$0xff] }
 0x1e9   : > { %v3768_v35 = vmul.f32 %v15081_v39, %v1561_v5  ;;  %v4089_v2 = vpop.permute.xlu1 %4088  ;;  %v4084_v54 = vpop.permute.xlu0 %4083  ;;  %v4401_v0 = vrot.slane %v1754_v41, 7  ;;  %4824 = vperm.xlu0 %12548, %v11797_v42   ;;  %v3930_v39 = vrot.slane %v14989_v4, 1 }
 0x1ea   : > { %v4202_v46 = vmul.f32 %v4089_v2, %v3925_v61  ;;  %v4201_v15 = vmul.f32 %v4084_v54, %v3923_v30  ;;  %v15378_v21 = vpop.f32.mrf.mxu0  ;;  %v15381_v33 = vpop.f32.mrf.mxu1  ;;  %v11829_v61 = vld [vmem:[%s17584_s3 + $0x820] sm:$0xff]  ;;  %v3934_v30 = vrot.slane %v15029_v14, 1 }
 0x1eb   : > { %17843 = vst [vmem:[#allocation80_spill] sm:$0xff] %v15381_v33  ;;  %v15386_v16 = vadd.f32 %v3768_v35, %v14759_v19  ;;  %v15395_v32 = vsel %vm1943_vm0, %v4399_v6, %v4401_v0  ;;  %v3936_v35 = vrot.slane %v15058_v27, 1  ;;  %v3933_v14 = vsel %vm2649_vm1, %v3930_v39, %v3932_v31  ;;  %v11799_v27 = vld [vmem:[%s17584_s3 + $0x730] sm:$0xff] }
 0x1ec   : > { %v15398_v37 = vadd.f32 %v4202_v46, %v14934_v43  ;;  %v15401_v4 = vadd.f32 %v4201_v15, %v14937_v53  ;;  %v1567_v19 = vpop.f32.mrf.mxu0  ;;  %v1760_v7 = vpop.f32.mrf.mxu1  ;;  %5279 = vperm.xlu1 %12549, %v11830_v22  }
 0x1ed   : > { %v3769_v52 = vmul.f32 %v15116_v10, %v1567_v19  ;;  %v4099_v42 = vpop.permute.xlu1 %4098  ;;  %v4094_v5 = vpop.permute.xlu0 %4093  ;;  %v4403_v41 = vrot.slane %v1760_v7, 7  ;;  %5274 = vperm.xlu0 %12548, %v11829_v61   ;;  %v3931_v10 = vsel %vm2649_vm1, %v3928_v12, %v3930_v39  ;;  %v17846_v12 = vld [vmem:[#allocation14_spill] sm:$0xff]  ;;  %v3935_v19 = vsel %vm2649_vm1, %v3932_v31, %v3934_v30 }
 0x1ee   : > { %v4204_v6 = vmul.f32 %v4099_v42, %v3929_v28  ;;  %v4203_v2 = vmul.f32 %v4094_v5, %v3927_v34  ;;  %v15406_v54 = vpop.f32.mrf.mxu0  ;;  %v15408_v43 = vpop.f32.mrf.mxu1  ;;  %v11832_v31 = vld [vmem:[%s17584_s3 + $0x838] sm:$0xff] }
 0x1ef   : > { %17844 = vst [vmem:[#allocation81_spill] sm:$0xff] %v15408_v43  ;;  %v15411_v53 = vadd.f32 %v3769_v52, %v14791_v48  ;;  %v15422_v34 = vsel %vm1943_vm0, %v4401_v0, %v4403_v41 }
 0x1f0   : > { %17845 = vst [vmem:[#allocation82_spill] sm:$0xff] %v15422_v34  ;;  %v15425_v46 = vadd.f32 %v4204_v6, %v14960_v3  ;;  %v15428_v48 = vadd.f32 %v4203_v2, %v14953_v45  ;;  %v1571_v15 = vpop.f32.mrf.mxu0  ;;  %v1764_v28 = vpop.f32.mrf.mxu1  ;;  %4839 = vperm.xlu1 %12549, %v11800_v58   ;;  %v3937_v3 = vsel %vm2649_vm1, %v3934_v30, %v3936_v35  ;;  %v17848_v45 = vld [vmem:[#allocation11_spill] sm:$0xff]  ;;  %v17851_v30 = vld [vmem:[#allocation16_spill] sm:$0xff] }
 0x1f1   : > { %v3770_v39 = vmul.f32 %v17846_v12, %v1571_v15  ;;  %v4109_v22 = vpop.permute.xlu1 %4108  ;;  %v4104_v61 = vpop.permute.xlu0 %4103  ;;  %v4405_v7 = vrot.slane %v1764_v28, 7  ;;  %4834 = vperm.xlu0 %12548, %v11799_v27   ;;  %v3938_v6 = vrot.slane %v17848_v45, 1  ;;  %v17849_v2 = vld [vmem:[#allocation15_spill] sm:$0xff] }
 0x1f2   : > { %v4206_v52 = vmul.f32 %v4109_v22, %v3933_v14  ;;  %v4205_v42 = vmul.f32 %v4104_v61, %v3931_v10  ;;  %v15432_v5 = vpop.f32.mrf.mxu0  ;;  %v15435_v0 = vpop.f32.mrf.mxu1  ;;  %v3940_v43 = vrot.slane %v17849_v2, 1  ;;  %v17850_v15 = vld [vmem:[#allocation59_spill] sm:$0xff]  ;;  %v11831_v14 = vld [vmem:[%s17584_s3 + $0x830] sm:$0xff]  ;;  %v3942_v61 = vrot.slane %v15159_v36, 1 }
 0x1f3   : > { %17847 = vst [vmem:[#allocation14_spill] sm:$0xff] %v15435_v0  ;;  %v15440_v12 = vadd.f32 %v3770_v39, %v17850_v15  ;;  %v15449_v10 = vsel %vm1943_vm0, %v4403_v41, %v4405_v7  ;;  %v17852_v27 = vld [vmem:[#allocation23_spill] sm:$0xff] }
 0x1f4   : > { %v15452_v58 = vadd.f32 %v4206_v52, %v17851_v30  ;;  %v15455_v28 = vadd.f32 %v4205_v42, %v17852_v27  ;;  %v1577_v22 = vpop.f32.mrf.mxu0  ;;  %v1770_v39 = vpop.f32.mrf.mxu1  ;;  %5289 = vperm.xlu1 %12549, %v11832_v31   ;;  %v17854_v42 = vld [vmem:[#allocation49_spill] sm:$0xff]  ;;  %v3941_v36 = vsel %vm2649_vm1, %v3938_v6, %v3940_v43  ;;  %v11802_v27 = vld [vmem:[%s17584_s3 + $0x748] sm:$0xff] }
 0x1f5   : > { %v3771_v45 = vmul.f32 %v15151_v49, %v1577_v22  ;;  %v4119_v2 = vpop.permute.xlu1 %4118  ;;  %v4114_v15 = vpop.permute.xlu0 %4113  ;;  %v4407_v0 = vrot.slane %v1770_v39, 7  ;;  %5284 = vperm.xlu0 %12548, %v11831_v14   ;;  %v3939_v49 = vsel %vm2649_vm1, %v3936_v35, %v3938_v6  ;;  %v17856_v14 = vld [vmem:[#allocation19_spill] sm:$0xff]  ;;  %v17857_v35 = vld [vmem:[#allocation68_spill] sm:$0xff] }
 0x1f6   : > { %v4208_v33 = vmul.f32 %v4119_v2, %v3937_v3  ;;  %v4207_v41 = vmul.f32 %v4114_v15, %v3935_v19  ;;  %v15460_v23 = vpop.f32.mrf.mxu0  ;;  %v15462_v52 = vpop.f32.mrf.mxu1  ;;  %v17855_v3 = vld [vmem:[#allocation20_spill] sm:$0xff] }
 0x1f7   : > { %17853 = vst [vmem:[#allocation11_spill] sm:$0xff] %v15462_v52  ;;  %v15465_v30 = vadd.f32 %v3771_v45, %v17854_v42  ;;  %v15476_v19 = vsel %vm1943_vm0, %v4405_v7, %v4407_v0  ;;  %v3943_v42 = vsel %vm2649_vm1, %v3940_v43, %v3942_v61  ;;  %v11833_v43 = vld [vmem:[%s17584_s3 + $0x840] sm:$0xff] }
 0x1f8   : > { %v15479_v31 = vadd.f32 %v4208_v33, %v17855_v3  ;;  %v15482_v22 = vadd.f32 %v4207_v41, %v17856_v14  ;;  %v1581_v39 = vpop.f32.mrf.mxu0  ;;  %v1774_v45 = vpop.f32.mrf.mxu1  ;;  %4849 = vperm.xlu1 %12549, %v11802_v27   ;;  %v3945_v33 = vsel %vm2649_vm1, %v3942_v61, %v3944_v50  ;;  %v3948_v41 = vrot.slane %v15265_v63, 1  ;;  %v17858_v3 = vld [vmem:[#allocation24_spill] sm:$0xff]  ;;  %v17861_v63 = vld [vmem:[#allocation43_spill] sm:$0xff] }
 0x1f9   : > { %v3772_v6 = vmul.f32 %v17857_v35, %v1581_v39  ;;  %v4129_v2 = vpop.permute.xlu1 %4128  ;;  %v4124_v15 = vpop.permute.xlu0 %4123  ;;  %v4409_v52 = vrot.slane %v1774_v45, 7  ;;  %4844 = vperm.xlu0 %12548, %v11801_v26   ;;  %v11834_v39 = vld [vmem:[%s17584_s3 + $0x848] sm:$0xff]  ;;  %v17862_v26 = vld [vmem:[#allocation21_spill] sm:$0xff] }
 0x1fa   : > { %v4210_v34 = vmul.f32 %v4129_v2, %v3941_v36  ;;  %v4209_v7 = vmul.f32 %v4124_v15, %v3939_v49  ;;  %v17859_v36 = vld [vmem:[#allocation22_spill] sm:$0xff] }
 0x1fb   : > { %v15490_v14 = vadd.f32 %v3772_v6, %v17858_v3  ;;  %v15499_v13 = vsel %vm1943_vm0, %v4407_v0, %v4409_v52  ;;  %v17860_v49 = vrot.slane %v17859_v36, 7  ;;  %v3950_v0 = vrot.slane %v15302_v40, 1 }
 0x1fc   : > { %v15507_v27 = vadd.f32 %v4210_v34, %v17861_v63  ;;  %v15510_v45 = vadd.f32 %v4209_v7, %v17862_v26  ;;  %5299 = vperm.xlu1 %12549, %v11834_v39   ;;  %v3952_v3 = vrot.slane %v15347_v55, 1  ;;  %v3949_v36 = vsel %vm2649_vm1, %v3946_v47, %v3948_v41  ;;  %v11804_v34 = vld [vmem:[%s17584_s3 + $0x758] sm:$0xff]  ;;  %v11803_v7 = vld [vmem:[%s17584_s3 + $0x750] sm:$0xff] }
 0x1fd   : > { %v15504_v61 = vsel %vm1943_vm0, %v4409_v52, %v17860_v49  ;;  %v4139_v35 = vpop.permute.xlu1 %4138  ;;  %v4134_v6 = vpop.permute.xlu0 %4133  ;;  %5294 = vperm.xlu0 %12548, %v11833_v43   ;;  %v3947_v52 = vsel %vm2649_vm1, %v3944_v50, %v3946_v47  ;;  %v17864_v39 = vld [vmem:[#allocation66_spill] sm:$0xff]  ;;  %v3954_v47 = vrot.slane %v15378_v21, 1  ;;  %v3956_v50 = vrot.slane %v15406_v54, 1 }
 0x1fe   : > { %v4212_v2 = vmul.f32 %v4139_v35, %v3945_v33  ;;  %v4211_v15 = vmul.f32 %v4134_v6, %v3943_v42  ;;  %v17863_v33 = vld [vmem:[#allocation70_spill] sm:$0xff]  ;;  %v3953_v26 = vsel %vm2649_vm1, %v3950_v0, %v3952_v3  ;;  %v3951_v35 = vsel %vm2649_vm1, %v3948_v41, %v3950_v0 }
 0x1ff   : > { %v11836_v6 = vld [vmem:[%s17584_s3 + $0x858] sm:$0xff]  ;;  %v3958_v41 = vrot.slane %v15432_v5, 1  ;;  %v3960_v0 = vrot.slane %v15460_v23, 1 }
 0x200   : > { %v15523_v42 = vadd.f32 %v4212_v2, %v17863_v33  ;;  %v15526_v43 = vadd.f32 %v4211_v15, %v17864_v39  ;;  %4859 = vperm.xlu1 %12549, %v11804_v34   ;;  %v11835_v2 = vld [vmem:[%s17584_s3 + $0x850] sm:$0xff]  ;;  %v3955_v33 = vsel %vm2649_vm1, %v3952_v3, %v3954_v47 }
 0x201   : > { %v4149_v40 = vpop.permute.xlu1 %4148  ;;  %v4144_v55 = vpop.permute.xlu0 %4143  ;;  %4854 = vperm.xlu0 %12548, %v11803_v7   ;;  %v3957_v7 = vsel %vm2649_vm1, %v3954_v47, %v3956_v50  ;;  %v3961_v47 = vsel %vm2649_vm1, %v3958_v41, %v3960_v0 }
 0x202   : > { %v4214_v49 = vmul.f32 %v4149_v40, %v3949_v36  ;;  %v4213_v63 = vmul.f32 %v4144_v55, %v3947_v52  ;;  %v15560_v55 = vpop.f32.mrf.mxu0 }
 0x204   : > { %v15539_v15 = vadd.f32 %v4214_v49, %v15245_v18  ;;  %v15542_v36 = vadd.f32 %v4213_v63, %v15205_v51  ;;  %5309 = vperm.xlu1 %12549, %v11836_v6   ;;  %v11806_v18 = vld [vmem:[%s17584_s3 + $0x768] sm:$0xff]  ;;  %v11805_v51 = vld [vmem:[%s17584_s3 + $0x760] sm:$0xff]  ;;  %v12713_v63 = vld [vmem:[%s17583_s2 + $0x214] ss:$36 sps:$4 sm:$0xff]  }
 0x205   : > { %v4159_v21 = vpop.permute.xlu1 %4158  ;;  %v4154_v54 = vpop.permute.xlu0 %4153  ;;  %5304 = vperm.xlu0 %12548, %v11835_v2   ;;  %6718 = vmatprep.subr.bf16.mxu0 %v12713_v63  ;;  %v17865_v2 = vld [vmem:[#allocation42_spill] sm:$0xff] }
 0x206   : > { %v4216_v52 = vmul.f32 %v4159_v21, %v3953_v26  ;;  %v4215_v34 = vmul.f32 %v4154_v54, %v3951_v35  ;;  %v11837_v26 = vld [vmem:[%s17584_s3 + $0x860] sm:$0xff]  ;;  %v3901_v21 = vrot.slane %v17865_v2, 1  ;;  %v3962_v54 = vrot.slane %v15560_v55, 1  ;;  %v11823_v55 = vld [vmem:[%s17584_s3 + $0x7f0] sm:$0xff] }
 0x208   : > { %v15555_v39 = vadd.f32 %v4216_v52, %v15315_v62  ;;  %v15558_v40 = vadd.f32 %v4215_v34, %v15270_v57  ;;  %4869 = vperm.xlu1 %12549, %v11806_v18   ;;  %v3959_v62 = vsel %vm2649_vm1, %v3956_v50, %v3958_v41  ;;  %v11838_v57 = vld [vmem:[%s17584_s3 + $0x868] sm:$0xff] }
 0x209   : > { %v4169_v5 = vpop.permute.xlu1 %4168  ;;  %v4164_v23 = vpop.permute.xlu0 %4163  ;;  %4864 = vperm.xlu0 %12548, %v11805_v51   ;;  %v17866_v51 = vrot.slane %v14689_v60, 1  ;;  %v11839_v60 = vld [vmem:[%s17584_s3 + $0x870] sm:$0xff] }
 0x20a   : > { %v4218_v49 = vmul.f32 %v4169_v5, %v3957_v7  ;;  %v4217_v3 = vmul.f32 %v4164_v23, %v3955_v33  ;;  %v3963_v7 = vsel %vm2649_vm1, %v3960_v0, %v3962_v54 }
 0x20b   : > { %v3903_v0 = vsel %vm2649_vm1, %v3901_v21, %v17866_v51 }
 0x20c   : > { %v15574_v35 = vadd.f32 %v4218_v49, %v15386_v16  ;;  %v15577_v6 = vadd.f32 %v4217_v3, %v15352_v59  ;;  %5319 = vperm.xlu1 %12549, %v11838_v57   ;;  %v11808_v59 = vld [vmem:[%s17584_s3 + $0x778] sm:$0xff]  ;;  %v11807_v16 = vld [vmem:[%s17584_s3 + $0x770] sm:$0xff]  ;;  %v17867_v49 = vld [vmem:[#allocation72_spill] sm:$0xff] }
 0x20d   : > { %v4179_v50 = vpop.permute.xlu1 %4178  ;;  %v4174_v52 = vpop.permute.xlu0 %4173  ;;  %5314 = vperm.xlu0 %12548, %v11837_v26   ;;  %v4191_v3 = vmul.f32 %v17867_v49, %v3903_v0  ;;  %v17868_v57 = vld [vmem:[#allocation48_spill] sm:$0xff]  ;;  %v17872_v49 = vld [vmem:[#allocation26_spill] sm:$0xff] }
 0x20e   : > { %v4220_v34 = vmul.f32 %v4179_v50, %v3961_v47  ;;  %v4219_v41 = vmul.f32 %v4174_v52, %v3959_v62  ;;  %v17869_v50 = vld [vmem:[#allocation27_spill] sm:$0xff] }
 0x20f   : > { %v4255_v26 = vadd.f32 %v4191_v3, %v17868_v57 }
 0x210   : > { %v15591_v33 = vadd.f32 %v4220_v34, %v15440_v12  ;;  %v15594_v18 = vadd.f32 %v4219_v41, %v15411_v53  ;;  %4879 = vperm.xlu1 %12549, %v11808_v59   ;;  %v11840_v12 = vld [vmem:[%s17584_s3 + $0x878] sm:$0xff]  ;;  %v17870_v34 = vld [vmem:[#allocation44_spill] sm:$0xff]  ;;  %v11809_v59 = vld [vmem:[%s17584_s3 + $0x780] sm:$0xff] }
 0x211   : > { %v15601_v5 = vpop.permute.xlu1 %4188  ;;  %v4184_v23 = vpop.permute.xlu0 %4183  ;;  %4874 = vperm.xlu0 %12548, %v11807_v16  }
 0x212   : > { %v4221_v63 = vmul.f32 %v4184_v23, %v3963_v7  ;;  %v11810_v7 = vld [vmem:[%s17584_s3 + $0x788] sm:$0xff] }
 0x214   : > { %v15611_v53 = vadd.f32 %v4221_v63, %v15465_v30  ;;  %5329 = vperm.xlu1 %12549, %v11840_v12   ;;  %v17871_v30 = vld [vmem:[#allocation75_spill] sm:$0xff]  ;;  %v17873_v63 = vld [vmem:[#allocation60_spill] sm:$0xff] }
 0x215   : > { %v4489_v47 = vpop.permute.xlu1 %4488  ;;  %v4484_v62 = vpop.permute.xlu0 %4483  ;;  %5324 = vperm.xlu0 %12548, %v11839_v60   ;;  %v11842_v60 = vld [vmem:[%s17584_s3 + $0x888] sm:$0xff] }
 0x216   : > { %v4642_v52 = vmul.f32 %v4489_v47, %v17869_v50  ;;  %v4641_v41 = vmul.f32 %v4484_v62, %v17870_v34  ;;  %v11841_v47 = vld [vmem:[%s17584_s3 + $0x880] sm:$0xff] }
 0x218   : > { %v15623_v16 = vadd.f32 %v4642_v52, %v17871_v30  ;;  %v15625_v51 = vadd.f32 %v4641_v41, %v4255_v26  ;;  %4889 = vperm.xlu1 %12549, %v11810_v7   ;;  %v17874_v52 = vld [vmem:[#allocation29_spill] sm:$0xff]  ;;  %v17875_v41 = vld [vmem:[#allocation51_spill] sm:$0xff] }
 0x219   : > { %v4499_v0 = vpop.permute.xlu1 %4498  ;;  %v4494_v23 = vpop.permute.xlu0 %4493  ;;  %4884 = vperm.xlu0 %12548, %v11809_v59   ;;  %v11812_v59 = vld [vmem:[%s17584_s3 + $0x798] sm:$0xff] }
 0x21a   : > { %v4644_v3 = vmul.f32 %v4499_v0, %v17872_v49  ;;  %v4643_v12 = vmul.f32 %v4494_v23, %v17873_v63  ;;  %v17876_v49 = vld [vmem:[#allocation55_spill] sm:$0xff] }
 0x21b   : > { %v17877_v63 = vld [vmem:[#allocation31_spill] sm:$0xff] }
 0x21c   : > { %v15636_v62 = vadd.f32 %v4644_v3, %v15257_v9  ;;  %v15639_v57 = vadd.f32 %v4643_v12, %v15260_v44  ;;  %5339 = vperm.xlu1 %12549, %v11842_v60   ;;  %v11811_v9 = vld [vmem:[%s17584_s3 + $0x790] sm:$0xff]  ;;  %v11844_v60 = vld [vmem:[%s17584_s3 + $0x898] sm:$0xff] }
 0x21d   : > { %v4509_v26 = vpop.permute.xlu1 %4508  ;;  %v4504_v50 = vpop.permute.xlu0 %4503  ;;  %5334 = vperm.xlu0 %12548, %v11841_v47  }
 0x21e   : > { %v4646_v34 = vmul.f32 %v4509_v26, %v17874_v52  ;;  %v4645_v7 = vmul.f32 %v4504_v50, %v17875_v41  ;;  %v17878_v52 = vld [vmem:[#allocation63_spill] sm:$0xff]  ;;  %v17879_v41 = vld [vmem:[#allocation54_spill] sm:$0xff] }
 0x220   : > { %v15650_v30 = vadd.f32 %v4646_v34, %v15286_v24  ;;  %v15653_v44 = vadd.f32 %v4645_v7, %v15289_v56  ;;  %4899 = vperm.xlu1 %12549, %v11812_v59   ;;  %v11843_v24 = vld [vmem:[%s17584_s3 + $0x890] sm:$0xff]  ;;  %v11814_v59 = vld [vmem:[%s17584_s3 + $0x7a8] sm:$0xff] }
 0x221   : > { %v4519_v0 = vpop.permute.xlu1 %4518  ;;  %v4514_v23 = vpop.permute.xlu0 %4513  ;;  %4894 = vperm.xlu0 %12548, %v11811_v9  }
 0x222   : > { %v4648_v3 = vmul.f32 %v4519_v0, %v17876_v49  ;;  %v4647_v12 = vmul.f32 %v4514_v23, %v17877_v63  ;;  %v17880_v49 = vld [vmem:[#allocation17_spill] sm:$0xff]  ;;  %v17881_v63 = vld [vmem:[#allocation64_spill] sm:$0xff] }
 0x224   : > { %v15664_v47 = vadd.f32 %v4648_v3, %v15330_v25  ;;  %v15667_v56 = vadd.f32 %v4647_v12, %v15333_v11  ;;  %5349 = vperm.xlu1 %12549, %v11844_v60   ;;  %v11813_v25 = vld [vmem:[%s17584_s3 + $0x7a0] sm:$0xff]  ;;  %v11846_v60 = vld [vmem:[%s17584_s3 + $0x8a8] sm:$0xff] }
 0x225   : > { %v4529_v26 = vpop.permute.xlu1 %4528  ;;  %v4524_v50 = vpop.permute.xlu0 %4523  ;;  %5344 = vperm.xlu0 %12548, %v11843_v24  }
 0x226   : > { %v4650_v34 = vmul.f32 %v4529_v26, %v17878_v52  ;;  %v4649_v7 = vmul.f32 %v4524_v50, %v17879_v41  ;;  %v17882_v52 = vld [vmem:[#allocation58_spill] sm:$0xff]  ;;  %v17883_v41 = vld [vmem:[#allocation36_spill] sm:$0xff] }
 0x228   : > { %v15678_v9 = vadd.f32 %v4650_v34, %v15368_v1  ;;  %v15681_v11 = vadd.f32 %v4649_v7, %v15371_v29  ;;  %4909 = vperm.xlu1 %12549, %v11814_v59   ;;  %v11845_v1 = vld [vmem:[%s17584_s3 + $0x8a0] sm:$0xff]  ;;  %v11816_v59 = vld [vmem:[%s17584_s3 + $0x7b8] sm:$0xff] }
 0x229   : > { %v4539_v0 = vpop.permute.xlu1 %4538  ;;  %v4534_v23 = vpop.permute.xlu0 %4533  ;;  %4904 = vperm.xlu0 %12548, %v11813_v25  }
 0x22a   : > { %v4652_v3 = vmul.f32 %v4539_v0, %v17880_v49  ;;  %v4651_v12 = vmul.f32 %v4534_v23, %v17881_v63  ;;  %v17884_v49 = vld [vmem:[#allocation57_spill] sm:$0xff]  ;;  %v17885_v63 = vld [vmem:[#allocation18_spill] sm:$0xff] }
 0x22c   : > { %v15692_v24 = vadd.f32 %v4652_v3, %v15398_v37  ;;  %v15695_v29 = vadd.f32 %v4651_v12, %v15401_v4  ;;  %5359 = vperm.xlu1 %12549, %v11846_v60   ;;  %v11815_v37 = vld [vmem:[%s17584_s3 + $0x7b0] sm:$0xff]  ;;  %v11848_v60 = vld [vmem:[%s17584_s3 + $0x8b8] sm:$0xff] }
 0x22d   : > { %v4549_v26 = vpop.permute.xlu1 %4548  ;;  %v4544_v50 = vpop.permute.xlu0 %4543  ;;  %5354 = vperm.xlu0 %12548, %v11845_v1  }
 0x22e   : > { %v4654_v34 = vmul.f32 %v4549_v26, %v17882_v52  ;;  %v4653_v7 = vmul.f32 %v4544_v50, %v17883_v41  ;;  %v17886_v52 = vld [vmem:[#allocation13_spill] sm:$0xff]  ;;  %v17887_v41 = vld [vmem:[#allocation39_spill] sm:$0xff] }
 0x230   : > { %v15706_v25 = vadd.f32 %v4654_v34, %v15425_v46  ;;  %v15709_v4 = vadd.f32 %v4653_v7, %v15428_v48  ;;  %4919 = vperm.xlu1 %12549, %v11816_v59   ;;  %v11847_v46 = vld [vmem:[%s17584_s3 + $0x8b0] sm:$0xff]  ;;  %v11818_v59 = vld [vmem:[%s17584_s3 + $0x7c8] sm:$0xff] }
 0x231   : > { %v4559_v0 = vpop.permute.xlu1 %4558  ;;  %v4554_v23 = vpop.permute.xlu0 %4553  ;;  %4914 = vperm.xlu0 %12548, %v11815_v37  }
 0x232   : > { %v4656_v3 = vmul.f32 %v4559_v0, %v17884_v49  ;;  %v4655_v12 = vmul.f32 %v4554_v23, %v17885_v63  ;;  %v17888_v49 = vld [vmem:[#allocation71_spill] sm:$0xff] }
 0x233   : > { %v17889_v63 = vld [vmem:[#allocation67_spill] sm:$0xff] }
 0x234   : > { %v15720_v1 = vadd.f32 %v4656_v3, %v15452_v58  ;;  %v15723_v48 = vadd.f32 %v4655_v12, %v15455_v28  ;;  %5369 = vperm.xlu1 %12549, %v11848_v60   ;;  %v11817_v58 = vld [vmem:[%s17584_s3 + $0x7c0] sm:$0xff]  ;;  %v11850_v60 = vld [vmem:[%s17584_s3 + $0x8c8] sm:$0xff] }
 0x235   : > { %v4569_v26 = vpop.permute.xlu1 %4568  ;;  %v4564_v50 = vpop.permute.xlu0 %4563  ;;  %5364 = vperm.xlu0 %12548, %v11847_v46  }
 0x236   : > { %v4658_v34 = vmul.f32 %v4569_v26, %v17886_v52  ;;  %v4657_v7 = vmul.f32 %v4564_v50, %v17887_v41 }
 0x238   : > { %v15734_v37 = vadd.f32 %v4658_v34, %v15479_v31  ;;  %v15737_v28 = vadd.f32 %v4657_v7, %v15482_v22  ;;  %4929 = vperm.xlu1 %12549, %v11818_v59   ;;  %v11849_v31 = vld [vmem:[%s17584_s3 + $0x8c0] sm:$0xff]  ;;  %v17890_v34 = vld [vmem:[#allocation74_spill] sm:$0xff]  ;;  %v15755_v7 = vpop.f32.mrf.mxu0 }
 0x239   : > { %v4579_v0 = vpop.permute.xlu1 %4578  ;;  %v4574_v23 = vpop.permute.xlu0 %4573  ;;  %4924 = vperm.xlu0 %12548, %v11817_v58   ;;  %v11820_v59 = vld [vmem:[%s17584_s3 + $0x7d8] sm:$0xff] }
 0x23a   : > { %v4660_v3 = vmul.f32 %v4579_v0, %v17888_v49  ;;  %v4659_v12 = vmul.f32 %v4574_v23, %v17889_v63  ;;  %v11852_v63 = vld [vmem:[%s17584_s3 + $0x8d8] sm:$0xff] }
 0x23c   : > { %v15748_v46 = vadd.f32 %v4660_v3, %v15507_v27  ;;  %v15751_v22 = vadd.f32 %v4659_v12, %v15510_v45  ;;  %5379 = vperm.xlu1 %12549, %v11850_v60   ;;  %v11819_v27 = vld [vmem:[%s17584_s3 + $0x7d0] sm:$0xff]  ;;  %v15771_v3 = vpop.f32.mrf.mxu0 }
 0x23d   : > { %v4589_v26 = vpop.permute.xlu1 %4588  ;;  %v4584_v50 = vpop.permute.xlu0 %4583  ;;  %5374 = vperm.xlu0 %12548, %v11849_v31  }
 0x23e   : > { %v4662_v52 = vmul.f32 %v4589_v26, %v15254_v17  ;;  %v4661_v41 = vmul.f32 %v4584_v50, %v17890_v34  ;;  %v12315_v26 = vpop.f32.mrf.mxu0  ;;  %v11822_v50 = vld [vmem:[%s17584_s3 + $0x7e8] sm:$0xff] }
 0x240   : > { %v15764_v45 = vadd.f32 %v4662_v52, %v15523_v42  ;;  %v15767_v58 = vadd.f32 %v4661_v41, %v15526_v43  ;;  %4939 = vperm.xlu1 %12549, %v11820_v59   ;;  %v11851_v42 = vld [vmem:[%s17584_s3 + $0x8d0] sm:$0xff]  ;;  %v17891_v59 = vld [vmem:[#allocation82_spill] sm:$0xff] }
 0x241   : > { %v4599_v17 = vpop.permute.xlu1 %4598  ;;  %v4594_v0 = vpop.permute.xlu0 %4593  ;;  %4934 = vperm.xlu0 %12548, %v11819_v27  }
 0x242   : > { %v4664_v23 = vmul.f32 %v4599_v17, %v15324_v38  ;;  %v4663_v49 = vmul.f32 %v4594_v0, %v15283_v20  ;;  %v11854_v17 = vld [vmem:[%s17584_s3 + $0x8e8] sm:$0xff] }
 0x244   : > { %v15780_v43 = vadd.f32 %v4664_v23, %v15539_v15  ;;  %v15783_v12 = vadd.f32 %v4663_v49, %v15542_v36  ;;  %5389 = vperm.xlu1 %12549, %v11852_v63   ;;  %v11821_v15 = vld [vmem:[%s17584_s3 + $0x7e0] sm:$0xff] }
 0x245   : > { %v4609_v38 = vpop.permute.xlu1 %4608  ;;  %v4604_v20 = vpop.permute.xlu0 %4603  ;;  %5384 = vperm.xlu0 %12548, %v11851_v42  }
 0x246   : > { %v4666_v60 = vmul.f32 %v4609_v38, %v15395_v32  ;;  %v4665_v31 = vmul.f32 %v4604_v20, %v15365_v8  ;;  %v15799_v8 = vpop.f32.mrf.mxu0  ;;  %v17892_v20 = vld [vmem:[#allocation45_spill] sm:$0xff] }
 0x248   : > { %v15794_v36 = vadd.f32 %v4666_v60, %v15555_v39  ;;  %v15797_v52 = vadd.f32 %v4665_v31, %v15558_v40  ;;  %4949 = vperm.xlu1 %12549, %v11822_v50   ;;  %v11853_v39 = vld [vmem:[%s17584_s3 + $0x8e0] sm:$0xff]  ;;  %v15821_v42 = vpop.f32.mrf.mxu0  ;;  %v11856_v50 = vld [vmem:[%s17584_s3 + $0x8f8] sm:$0xff] }
 0x249   : > { %v4619_v32 = vpop.permute.xlu1 %4618  ;;  %v4614_v34 = vpop.permute.xlu0 %4613  ;;  %4944 = vperm.xlu0 %12548, %v11821_v15  }
 0x24a   : > { %v4668_v41 = vmul.f32 %v4619_v32, %v15449_v10  ;;  %v4667_v27 = vmul.f32 %v4614_v34, %v17891_v59  ;;  %v3997_v10 = vsel %vm2649_vm1, %v3962_v54, %v3901_v21  ;;  %v5121_v32 = vrot.slane %v12315_v26, 1 }
 0x24b   : > { %v4222_v63 = vmul.f32 %v15601_v5, %v3997_v10  ;;  %v1829_v5 = vpop.f32.mrf.mxu0 }
 0x24c   : > { %v15810_v40 = vadd.f32 %v4668_v41, %v15574_v35  ;;  %v15813_v0 = vadd.f32 %v4667_v27, %v15577_v6  ;;  %5399 = vperm.xlu1 %12549, %v11854_v17   ;;  %v11824_v6 = vld [vmem:[%s17584_s3 + $0x7f8] sm:$0xff]  ;;  %v5123_v34 = vrot.slane %v1829_v5, 1  ;;  %v17893_v27 = vld [vmem:[#allocation40_spill] sm:$0xff]  ;;  %v7205_v5 = vld [vmem:[%s17584_s3 + $0x20] sm:$0xff] }
 0x24d   : > { %v4629_v23 = vpop.permute.xlu1 %4628  ;;  %v4624_v49 = vpop.permute.xlu0 %4623  ;;  %5394 = vperm.xlu0 %12548, %v11853_v39   ;;  %v17894_v39 = vld [vmem:[#allocation53_spill] sm:$0xff] }
 0x24e   : > { %v4670_v38 = vmul.f32 %v4629_v23, %v15499_v13  ;;  %v4669_v35 = vmul.f32 %v4624_v49, %v15476_v19  ;;  %v4286_v19 = vadd.f32 %v4222_v63, %v15490_v14  ;;  %v5120_v14 = vrot.slane %v15755_v7, 1  ;;  %v15852_v59 = vpop.f32.mrf.mxu0  ;;  %v7202_v23 = vld [vmem:[%s17584_s3 + $0x8] sm:$0xff] }
 0x24f   : > { %v5124_v63 = vsel %vm2649_vm1, %v5121_v32, %v5123_v34  ;;  %v12059_v7 = vld [vmem:[%s17584_s3 + $0x508] sm:$0xff] }
 0x250   : > { %v15832_v2 = vadd.f32 %v4670_v38, %v15591_v33  ;;  %v15835_v21 = vadd.f32 %v4669_v35, %v15594_v18  ;;  %4959 = vperm.xlu1 %12549, %v11824_v6   ;;  %v11855_v33 = vld [vmem:[%s17584_s3 + $0x8f0] sm:$0xff]  ;;  %v5122_v35 = vsel %vm2649_vm1, %v5120_v14, %v5121_v32  ;;  %v1832_v6 = vpop.f32.mrf.mxu0 }
 0x251   : > { %v4639_v54 = vpop.permute.xlu1 %4638  ;;  %v4634_v13 = vpop.permute.xlu0 %4633  ;;  %4954 = vperm.xlu0 %12548, %v11823_v55  }
 0x252   : > { %v4672_v60 = vmul.f32 %v4639_v54, %v17892_v20  ;;  %v4671_v31 = vmul.f32 %v4634_v13, %v15504_v61  ;;  %v15880_v32 = vpop.f32.mrf.mxu0 }
 0x254   : > { %v15846_v18 = vadd.f32 %v4672_v60, %v4286_v19  ;;  %v15849_v15 = vadd.f32 %v4671_v31, %v15611_v53  ;;  %5409 = vperm.xlu1 %12549, %v11856_v50   ;;  %v7201_v53 = vld [vmem:[%s17584_s3] sm:$0xff]  ;;  %v5125_v31 = vrot.slane %v1832_v6, 1 }
 0x255   : > { %v4810_v61 = vpop.permute.xlu1 %4809  ;;  %v4805_v41 = vpop.permute.xlu0 %4804  ;;  %5404 = vperm.xlu0 %12548, %v11855_v33   ;;  %v15871_v19 = vld [vmem:[%s17585_s4] ss:$0 sm:$0xff] }
 0x256   : > { %v4963_v17 = vmul.f32 %v4810_v61, %v17893_v27  ;;  %v4962_v10 = vmul.f32 %v4805_v41, %v17894_v39  ;;  %v17895_v27 = vld [vmem:[#allocation56_spill] sm:$0xff]  ;;  %v17896_v39 = vld [vmem:[#allocation34_spill] sm:$0xff] }
 0x258   : > { %v5027_v26 = vadd.f32 %v4963_v17, %v15623_v16  ;;  %v5026_v55 = vadd.f32 %v4962_v10, %v15625_v51  ;;  %7240 = vperm.xlu1 %12549, %v7202_v23   ;;  %v7206_v16 = vld [vmem:[%s17584_s3 + $0x28] sm:$0xff]  ;;  %v5127_v51 = vrot.slane %v15821_v42, 1 }
 0x259   : > { %v5260_v49 = vpop.permute.xlu1 %5259  ;;  %v5255_v38 = vpop.permute.xlu0 %5254  ;;  %7235 = vperm.xlu0 %12548, %v7201_v53   ;;  %v7210_v23 = vld [vmem:[%s17584_s3 + $0x48] sm:$0xff]  ;;  %v7209_v53 = vld [vmem:[%s17584_s3 + $0x40] sm:$0xff] }
 0x25a   : > { %v5413_v54 = vmul.f32 %v5260_v49, %v5124_v63  ;;  %v5412_v13 = vmul.f32 %v5255_v38, %v5122_v35  ;;  %v12702_v63 = vld [vmem:[%s17583_s2 + $0x208] ss:$36 sps:$4 sm:$0xff]  }
 0x25b   : > { %v7222_v42 = vld [vmem:[%s17584_s3 + $0xa8] sm:$0xff] }
 0x25c   : > { %v5477_v20 = vadd.f32 %v5413_v54, %v5027_v26  ;;  %v5476_v60 = vadd.f32 %v5412_v13, %v5026_v55  ;;  %7260 = vperm.xlu1 %12549, %v7206_v16   ;;  %v5128_v55 = vsel %vm2649_vm1, %v5125_v31, %v5127_v51  ;;  %v5126_v13 = vsel %vm2649_vm1, %v5123_v34, %v5125_v31  ;;  %v12707_v16 = vld [vmem:[%s17583_s2 + $0x1c4] ss:$36 sps:$4 sm:$0xff]  }
 0x25d   : > { %v4820_v50 = vpop.permute.xlu1 %4819  ;;  %v4815_v33 = vpop.permute.xlu0 %4814  ;;  %7255 = vperm.xlu0 %12548, %v7205_v5   ;;  %v7213_v34 = vld [vmem:[%s17584_s3 + $0x60] sm:$0xff] }
 0x25e   : > { %vm5573_vm2 = vcmp.gt.f32.partialorder %v5477_v20, 0.0  ;;  %v5612_v61 = vmul.f32 %v15871_v19, %v5477_v20  ;;  %vm5572_vm3 = vcmp.gt.f32.partialorder %v5476_v60, 0.0  ;;  %v5611_v41 = vmul.f32 %v15871_v19, %v5476_v60  ;;  %v15905_v5 = vpop.f32.mrf.mxu0 }
 0x25f   : > { %v4965_v17 = vmul.f32 %v4820_v50, %v17895_v27  ;;  %v4964_v10 = vmul.f32 %v4815_v33, %v17896_v39  ;;  %v12719_v27 = vld [vmem:[%s17583_s2 + $0x1cc] ss:$36 sps:$4 sm:$0xff]   ;;  %v5131_v39 = vrot.slane %v15905_v5, 1 }
 0x260   : > { %v5644_v26 = vsel %vm5573_vm2, %v5477_v20, %v5612_v61  ;;  %v5643_v49 = vsel %vm5572_vm3, %v5476_v60, %v5611_v41  ;;  %7280 = vperm.xlu1 %12549, %v7210_v23   ;;  %v17897_v61 = vmov 0   ;;  %v12705_v41 = vld [vmem:[%s17583_s2 + $0x1c0] ss:$36 sps:$4 sm:$0xff]   ;;  %v7230_v5 = vld [vmem:[%s17584_s3 + $0xe8] sm:$0xff] }
 0x261   : > { %v15895_v38 = vpack.c.bf16 %v5644_v26, %v5643_v49  ;;  %v5029_v35 = vadd.f32 %v4965_v17, %v15636_v62  ;;  %v5270_v6 = vpop.permute.xlu1 %5269  ;;  %v5265_v54 = vpop.permute.xlu0 %5264  ;;  %v5028_v20 = vadd.f32 %v4964_v10, %v15639_v57  ;;  %7275 = vperm.xlu0 %12548, %v7209_v53   ;;  %v7214_v62 = vld [vmem:[%s17584_s3 + $0x68] sm:$0xff]  ;;  %v12711_v57 = vld [vmem:[%s17583_s2 + $0x210] ss:$36 sps:$4 sm:$0xff]   ;;  %v5129_v17 = vrot.slane %v15852_v59, 1  ;;  %v12710_v53 = vld [vmem:[%s17583_s2 + $0x17c] ss:$36 sps:$4 sm:$0xff]  }
 0x262   : > { %v5415_v60 = vmul.f32 %v5270_v6, %v5128_v55  ;;  %v5414_v50 = vmul.f32 %v5265_v54, %v5126_v13  ;;  %v15932_v26 = vpop.f32.mrf.mxu0  ;;  %v17898_v59 = vld [vmem:[#allocation52_spill] sm:$0xff]  ;;  %v17899_v6 = vld [vmem:[#allocation61_spill] sm:$0xff]  ;;  %v7217_v13 = vld [vmem:[%s17584_s3 + $0x80] sm:$0xff] }
 0x263   : > { %6172 = vmatmul.mubr.bf16.vlgmr.msra.gmra.mxu1 %v15895_v38  ;;  %6365 = vmatmul.mubr.bf16.vlgmr.msra.gmra.mxu0 %v15895_v38  ;;  %v7218_v54 = vld [vmem:[%s17584_s3 + $0x88] sm:$0xff] }
 0x264   : > { %v5479_v31 = vadd.f32 %v5415_v60, %v5029_v35  ;;  %v5478_v33 = vadd.f32 %v5414_v50, %v5028_v20  ;;  %6526 = vmatpush1.bf16.msra.mxu1 %v12702_v63  ;;  %6181 = vmatprep.mubr.bf16.mxu1 %v17897_v61 }
 0x265   : > { %v4830_v10 = vpop.permute.xlu1 %4829  ;;  %v4825_v23 = vpop.permute.xlu0 %4824  ;;  %6374 = vmatprep.mubr.bf16.mxu0 %v17897_v61  ;;  %6527 = vmatprep.subr.bf16.mxu1 %v12707_v16 }
 0x266   : > { %vm5575_vm4 = vcmp.gt.f32.partialorder %v5479_v31, 0.0  ;;  %v5614_v49 = vmul.f32 %v15871_v19, %v5479_v31  ;;  %vm5574_vm5 = vcmp.gt.f32.partialorder %v5478_v33, 0.0  ;;  %v5613_v63 = vmul.f32 %v15871_v19, %v5478_v33  ;;  %7300 = vperm.xlu1 %12549, %v7214_v62   ;;  %7295 = vperm.xlu0 %12548, %v7213_v34  }
 0x267   : > { %v4967_v35 = vmul.f32 %v4830_v10, %v17898_v59  ;;  %v4966_v55 = vmul.f32 %v4825_v23, %v17899_v6  ;;  %6719 = vmatpush1.bf16.msra.mxu0 %v12711_v57  ;;  %v5132_v34 = vsel %vm2649_vm1, %v5129_v17, %v5131_v39  ;;  %v5130_v23 = vsel %vm2649_vm1, %v5127_v51, %v5129_v17  ;;  %v12708_v57 = vld [vmem:[%s17583_s2 + $0x178] ss:$36 sps:$4 sm:$0xff]   ;;  %v7221_v51 = vld [vmem:[%s17584_s3 + $0xa0] sm:$0xff] }
 0x268   : > { %v5646_v16 = vsel %vm5575_vm4, %v5479_v31, %v5614_v49  ;;  %v5645_v20 = vsel %vm5574_vm5, %v5478_v33, %v5613_v63  ;;  %6528 = vmatpush1.bf16.msra.mxu1 %v12705_v41  ;;  %6720 = vmatprep.subr.bf16.mxu0 %v12719_v27  ;;  %v12717_v31 = vld [vmem:[%s17583_s2 + $0x1c8] ss:$36 sps:$4 sm:$0xff]  }
 0x269   : > { %v15944_v60 = vpack.c.bf16 %v5646_v16, %v5645_v20  ;;  %v5031_v50 = vadd.f32 %v4967_v35, %v15650_v30  ;;  %v5280_v62 = vpop.permute.xlu1 %5279  ;;  %v5275_v10 = vpop.permute.xlu0 %5274  ;;  %6529 = vmatprep.subr.bf16.mxu1 %v12710_v53  ;;  %v5030_v33 = vadd.f32 %v4966_v55, %v15653_v44  ;;  %v12716_v44 = vld [vmem:[%s17583_s2 + $0x134] ss:$36 sps:$4 sm:$0xff]   ;;  %v12725_v17 = vld [vmem:[%s17583_s2 + $0x184] ss:$36 sps:$4 sm:$0xff]   ;;  %v5135_v53 = vrot.slane %v15880_v32, 1 }
 0x26a   : > { %v1848_v30 = vpop.f32.mrf.mxu0  ;;  %v5417_v41 = vmul.f32 %v5280_v62, %v5132_v34  ;;  %v5416_v27 = vmul.f32 %v5275_v10, %v5130_v23  ;;  %7320 = vperm.xlu1 %12549, %v7218_v54   ;;  %7315 = vperm.xlu0 %12548, %v7217_v13   ;;  %v12714_v55 = vld [vmem:[%s17583_s2 + $0x130] ss:$36 sps:$4 sm:$0xff]   ;;  %v12723_v54 = vld [vmem:[%s17583_s2 + $0x180] ss:$36 sps:$4 sm:$0xff]   ;;  %v7226_v23 = vld [vmem:[%s17584_s3 + $0xc8] sm:$0xff] }
 0x26b   : > { %6182 = vmatmul.mubr.bf16.gmra.mxu1 %v15944_v60  ;;  %6375 = vmatmul.mubr.bf16.gmra.mxu0 %v15944_v60  ;;  %v5133_v49 = vrot.slane %v1848_v30, 1  ;;  %v17901_v34 = vld [vmem:[#allocation47_spill] sm:$0xff]  ;;  %v11935_v32 = vld [vmem:[%s17584_s3 + $0x128] sm:$0xff] }
 0x26c   : > { %v5481_v63 = vadd.f32 %v5417_v41, %v5031_v50  ;;  %v5480_v59 = vadd.f32 %v5416_v27, %v5030_v33  ;;  %6191 = vmatprep.mubr.bf16.mxu1 %v17897_v61  ;;  %6384 = vmatprep.mubr.bf16.mxu0 %v17897_v61  ;;  %v15983_v13 = vpop.f32.mrf.mxu0  ;;  %v17900_v50 = vld [vmem:[#allocation28_spill] sm:$0xff] }
 0x26d   : > { %v4840_v35 = vpop.permute.xlu1 %4839  ;;  %v4835_v6 = vpop.permute.xlu0 %4834  ;;  %6530 = vmatpush1.bf16.msra.mxu1 %v12708_v57  ;;  %6721 = vmatpush1.bf16.msra.mxu0 %v12717_v31  ;;  %v7225_v57 = vld [vmem:[%s17584_s3 + $0xc0] sm:$0xff]  ;;  %v5136_v33 = vsel %vm2649_vm1, %v5133_v49, %v5135_v53 }
 0x26e   : > { %vm5577_vm6 = vcmp.gt.f32.partialorder %v5481_v63, 0.0  ;;  %v5616_v16 = vmul.f32 %v15871_v19, %v5481_v63  ;;  %vm5576_vm7 = vcmp.gt.f32.partialorder %v5480_v59, 0.0  ;;  %v5615_v20 = vmul.f32 %v15871_v19, %v5480_v59  ;;  %7340 = vperm.xlu1 %12549, %v7222_v42   ;;  %7335 = vperm.xlu0 %12548, %v7221_v51  }
 0x26f   : > { %v4969_v62 = vmul.f32 %v4840_v35, %v17900_v50  ;;  %v4968_v10 = vmul.f32 %v4835_v6, %v17901_v34  ;;  %6531 = vmatprep.subr.bf16.mxu1 %v12716_v44  ;;  %6722 = vmatprep.subr.bf16.mxu0 %v12725_v17  ;;  %v5134_v35 = vsel %vm2649_vm1, %v5131_v39, %v5133_v49  ;;  %v12722_v44 = vld [vmem:[%s17583_s2 + $0xec] ss:$36 sps:$4 sm:$0xff]   ;;  %v12731_v17 = vld [vmem:[%s17583_s2 + $0x13c] ss:$36 sps:$4 sm:$0xff]   ;;  %v12737_v50 = vld [vmem:[%s17583_s2 + $0xf4] ss:$36 sps:$4 sm:$0xff]  }
 0x270   : > { %v5648_v31 = vsel %vm5577_vm6, %v5481_v63, %v5616_v16  ;;  %v5647_v30 = vsel %vm5576_vm7, %v5480_v59, %v5615_v20  ;;  %v16010_v63 = vpop.f32.mrf.mxu0  ;;  %v7229_v39 = vld [vmem:[%s17584_s3 + $0xe0] sm:$0xff]  ;;  %v12729_v49 = vld [vmem:[%s17583_s2 + $0x138] ss:$36 sps:$4 sm:$0xff]  }
 0x271   : > { %v15998_v41 = vpack.c.bf16 %v5648_v31, %v5647_v30  ;;  %v5033_v27 = vadd.f32 %v4969_v62, %v15664_v47  ;;  %v5290_v42 = vpop.permute.xlu1 %5289  ;;  %v5285_v51 = vpop.permute.xlu0 %5284  ;;  %6532 = vmatpush1.bf16.msra.mxu1 %v12714_v55  ;;  %6723 = vmatpush1.bf16.msra.mxu0 %v12723_v54  ;;  %v5032_v47 = vadd.f32 %v4968_v10, %v15667_v56  ;;  %v12720_v56 = vld [vmem:[%s17583_s2 + $0xe8] ss:$36 sps:$4 sm:$0xff]   ;;  %v5137_v62 = vrot.slane %v15932_v26, 1  ;;  %v17902_v30 = vld [vmem:[#allocation50_spill] sm:$0xff] }
 0x272   : > { %v5419_v59 = vmul.f32 %v5290_v42, %v5136_v33  ;;  %v5418_v6 = vmul.f32 %v5285_v51, %v5134_v35  ;;  %7360 = vperm.xlu1 %12549, %v7226_v23   ;;  %7355 = vperm.xlu0 %12548, %v7225_v57   ;;  %v16027_v16 = vpop.f32.mrf.mxu0  ;;  %v12728_v20 = vld [vmem:[%s17583_s2 + $0xa4] ss:$36 sps:$4 sm:$0xff]   ;;  %v5139_v34 = vrot.slane %v16010_v63, 1 }
 0x273   : > { %6192 = vmatmul.mubr.bf16.gmra.mxu1 %v15998_v41  ;;  %6385 = vmatmul.mubr.bf16.gmra.mxu0 %v15998_v41  ;;  %v11931_v26 = vld [vmem:[%s17584_s3 + $0x108] sm:$0xff]  ;;  %v11930_v51 = vld [vmem:[%s17584_s3 + $0x100] sm:$0xff] }
 0x274   : > { %v5483_v55 = vadd.f32 %v5419_v59, %v5033_v27  ;;  %v5482_v54 = vadd.f32 %v5418_v6, %v5032_v47  ;;  %6201 = vmatprep.mubr.bf16.mxu1 %v17897_v61  ;;  %6394 = vmatprep.mubr.bf16.mxu0 %v17897_v61  ;;  %v17903_v27 = vld [vmem:[#allocation30_spill] sm:$0xff]  ;;  %v11943_v63 = vld [vmem:[%s17584_s3 + $0x168] sm:$0xff] }
 0x275   : > { %v4850_v10 = vpop.permute.xlu1 %4849  ;;  %v4845_v23 = vpop.permute.xlu0 %4844  ;;  %6533 = vmatprep.subr.bf16.mxu1 %v12722_v44  ;;  %6724 = vmatprep.subr.bf16.mxu0 %v12731_v17 }
 0x276   : > { %vm5579_vm8 = vcmp.gt.f32.partialorder %v5483_v55, 0.0  ;;  %v5618_v57 = vmul.f32 %v15871_v19, %v5483_v55  ;;  %vm5578_vm9 = vcmp.gt.f32.partialorder %v5482_v54, 0.0  ;;  %v5617_v31 = vmul.f32 %v15871_v19, %v5482_v54  ;;  %7380 = vperm.xlu1 %12549, %v7230_v5   ;;  %7375 = vperm.xlu0 %12548, %v7229_v39   ;;  %v1864_v17 = vpop.f32.mrf.mxu0 }
 0x277   : > { %v4971_v33 = vmul.f32 %v4850_v10, %v17902_v30  ;;  %v4970_v42 = vmul.f32 %v4845_v23, %v17903_v27  ;;  %6534 = vmatpush1.bf16.msra.mxu1 %v12720_v56  ;;  %6725 = vmatpush1.bf16.msra.mxu0 %v12729_v49  ;;  %v5140_v5 = vsel %vm2649_vm1, %v5137_v62, %v5139_v34  ;;  %v12726_v49 = vld [vmem:[%s17583_s2 + $0xa0] ss:$36 sps:$4 sm:$0xff]   ;;  %v5143_v10 = vrot.slane %v15983_v13, 1  ;;  %v12732_v27 = vld [vmem:[%s17583_s2 + $0x58] ss:$36 sps:$4 sm:$0xff]  }
 0x278   : > { %v5650_v35 = vsel %vm5579_vm8, %v5483_v55, %v5618_v57  ;;  %v5649_v44 = vsel %vm5578_vm9, %v5482_v54, %v5617_v31  ;;  %6535 = vmatprep.subr.bf16.mxu1 %v12728_v20  ;;  %6726 = vmatprep.subr.bf16.mxu0 %v12737_v50  ;;  %v5138_v56 = vsel %vm2649_vm1, %v5135_v53, %v5137_v62  ;;  %v12735_v55 = vld [vmem:[%s17583_s2 + $0xf0] ss:$36 sps:$4 sm:$0xff]   ;;  %v11934_v53 = vld [vmem:[%s17584_s3 + $0x120] sm:$0xff]  ;;  %v16079_v62 = vpop.f32.mrf.mxu1  ;;  %v5141_v23 = vrot.slane %v1864_v17, 1 }
 0x279   : > { %v16049_v47 = vpack.c.bf16 %v5650_v35, %v5649_v44  ;;  %v5035_v59 = vadd.f32 %v4971_v33, %v15678_v9  ;;  %v5300_v6 = vpop.permute.xlu1 %5299  ;;  %v5295_v39 = vpop.permute.xlu0 %5294  ;;  %v5034_v9 = vadd.f32 %v4970_v42, %v15681_v11  ;;  %v12734_v11 = vld [vmem:[%s17583_s2 + $0x5c] ss:$36 sps:$4 sm:$0xff]   ;;  %v12743_v50 = vld [vmem:[%s17583_s2 + $0xac] ss:$36 sps:$4 sm:$0xff]  }
 0x27a   : > { %v5421_v54 = vmul.f32 %v5300_v6, %v5140_v5  ;;  %v5420_v20 = vmul.f32 %v5295_v39, %v5138_v56  ;;  %7496 = vperm.xlu1 %12549, %v11931_v26   ;;  %7491 = vperm.xlu0 %12548, %v11930_v51   ;;  %v12741_v42 = vld [vmem:[%s17583_s2 + $0xa8] ss:$36 sps:$4 sm:$0xff]   ;;  %v17904_v35 = vld [vmem:[#allocation62_spill] sm:$0xff]  ;;  %v17905_v17 = vld [vmem:[#allocation33_spill] sm:$0xff]  ;;  %v16100_v39 = vpop.f32.mrf.mxu1 }
 0x27b   : > { %6202 = vmatmul.mubr.bf16.gmra.mxu1 %v16049_v47  ;;  %6395 = vmatmul.mubr.bf16.gmra.mxu0 %v16049_v47  ;;  %v11939_v6 = vld [vmem:[%s17584_s3 + $0x148] sm:$0xff]  ;;  %v11938_v5 = vld [vmem:[%s17584_s3 + $0x140] sm:$0xff] }
 0x27c   : > { %v5485_v57 = vadd.f32 %v5421_v54, %v5035_v59  ;;  %v5484_v31 = vadd.f32 %v5420_v20, %v5034_v9  ;;  %6211 = vmatprep.mubr.bf16.mxu1 %v17897_v61  ;;  %6404 = vmatprep.mubr.bf16.mxu0 %v17897_v61  ;;  %v11950_v13 = vld [vmem:[%s17584_s3 + $0x1a0] sm:$0xff] }
 0x27d   : > { %v4860_v30 = vpop.permute.xlu1 %4859  ;;  %v4855_v33 = vpop.permute.xlu0 %4854  ;;  %6536 = vmatpush1.bf16.msra.mxu1 %v12726_v49  ;;  %6727 = vmatpush1.bf16.msra.mxu0 %v12735_v55  ;;  %v5144_v55 = vsel %vm2649_vm1, %v5141_v23, %v5143_v10 }
 0x27e   : > { %vm5581_vm10 = vcmp.gt.f32.partialorder %v5485_v57, 0.0  ;;  %v5620_v26 = vmul.f32 %v15871_v19, %v5485_v57  ;;  %vm5580_vm11 = vcmp.gt.f32.partialorder %v5484_v31, 0.0  ;;  %v5619_v51 = vmul.f32 %v15871_v19, %v5484_v31  ;;  %7516 = vperm.xlu1 %12549, %v11935_v32   ;;  %7511 = vperm.xlu0 %12548, %v11934_v53  }
 0x27f   : > { %v4973_v44 = vmul.f32 %v4860_v30, %v17904_v35  ;;  %v4972_v59 = vmul.f32 %v4855_v33, %v17905_v17  ;;  %6537 = vmatprep.subr.bf16.mxu1 %v12734_v11  ;;  %6728 = vmatprep.subr.bf16.mxu0 %v12743_v50  ;;  %v5142_v53 = vsel %vm2649_vm1, %v5139_v34, %v5141_v23  ;;  %v12740_v11 = vld [vmem:[%s17583_s2 + $0x14] ss:$36 sps:$4 sm:$0xff]   ;;  %v12746_v50 = vld [vmem:[%s17583_s2 + $0x64] ss:$36 sps:$4 sm:$0xff]   ;;  %v16132_v30 = vpop.f32.mrf.mxu1  ;;  %v5145_v35 = vrot.slane %v16027_v16, 1 }
 0x280   : > { %v5652_v56 = vsel %vm5581_vm10, %v5485_v57, %v5620_v26  ;;  %v5651_v49 = vsel %vm5580_vm11, %v5484_v31, %v5619_v51  ;;  %v11942_v34 = vld [vmem:[%s17584_s3 + $0x160] sm:$0xff]  ;;  %v16142_v26 = vld [vmem:[%s17583_s2 + $0x218] ss:$36 sps:$4 sm:$0xff]   ;;  %v5147_v51 = vrot.slane %v16132_v30, 1  ;;  %v11947_v16 = vld [vmem:[%s17584_s3 + $0x188] sm:$0xff] }
 0x281   : > { %v16105_v9 = vpack.c.bf16 %v5652_v56, %v5651_v49  ;;  %v5037_v54 = vadd.f32 %v4973_v44, %v15692_v24  ;;  %v5310_v20 = vpop.permute.xlu1 %5309  ;;  %v5305_v32 = vpop.permute.xlu0 %5304  ;;  %6538 = vmatpush1.bf16.msra.mxu1 %v12732_v27  ;;  %6729 = vmatpush1.bf16.msra.mxu0 %v12741_v42  ;;  %v5036_v57 = vadd.f32 %v4972_v59, %v15695_v29  ;;  %v12738_v29 = vld [vmem:[%s17583_s2 + $0x10] ss:$36 sps:$4 sm:$0xff]   ;;  %v12744_v23 = vld [vmem:[%s17583_s2 + $0x60] ss:$36 sps:$4 sm:$0xff]   ;;  %v17907_v49 = vld [vmem:[#allocation12_spill] sm:$0xff] }
 0x282   : > { %v5423_v31 = vmul.f32 %v5310_v20, %v5144_v55  ;;  %v5422_v24 = vmul.f32 %v5305_v32, %v5142_v53  ;;  %7536 = vperm.xlu1 %12549, %v11939_v6   ;;  %7531 = vperm.xlu0 %12548, %v11938_v5   ;;  %v12749_v42 = vld [vmem:[%s17583_s2 + $0x1c] ss:$36 sps:$4 sm:$0xff]   ;;  %v17906_v5 = vld [vmem:[#allocation37_spill] sm:$0xff]  ;;  %v16156_v20 = vpop.f32.mrf.mxu1 }
 0x283   : > { %6212 = vmatmul.mubr.bf16.gmra.mxu1 %v16105_v9  ;;  %6405 = vmatmul.mubr.bf16.gmra.mxu0 %v16105_v9  ;;  %v11958_v30 = vld [vmem:[%s17584_s3 + $0x1e0] sm:$0xff] }
 0x284   : > { %v5487_v33 = vadd.f32 %v5423_v31, %v5037_v54  ;;  %v5486_v27 = vadd.f32 %v5422_v24, %v5036_v57  ;;  %6221 = vmatprep.mubr.bf16.mxu1 %v17897_v61  ;;  %6414 = vmatprep.mubr.bf16.mxu0 %v17897_v61  ;;  %v11946_v54 = vld [vmem:[%s17584_s3 + $0x180] sm:$0xff]  ;;  %v5148_v31 = vsel %vm2649_vm1, %v5145_v35, %v5147_v51 }
 0x285   : > { %v4870_v44 = vpop.permute.xlu1 %4869  ;;  %v4865_v17 = vpop.permute.xlu0 %4864  ;;  %6539 = vmatprep.subr.bf16.mxu1 %v12740_v11  ;;  %6730 = vmatprep.subr.bf16.mxu0 %v12746_v50 }
 0x286   : > { %vm5583_vm12 = vcmp.gt.f32.partialorder %v5487_v33, 0.0  ;;  %v5622_v59 = vmul.f32 %v15871_v19, %v5487_v33  ;;  %vm5582_vm13 = vcmp.gt.f32.partialorder %v5486_v27, 0.0  ;;  %v5621_v6 = vmul.f32 %v15871_v19, %v5486_v27  ;;  %7556 = vperm.xlu1 %12549, %v11943_v63   ;;  %7551 = vperm.xlu0 %12548, %v11942_v34   ;;  %v12747_v34 = vld [vmem:[%s17583_s2 + $0x18] ss:$36 sps:$4 sm:$0xff]  }
 0x287   : > { %v4975_v56 = vmul.f32 %v4870_v44, %v17906_v5  ;;  %v4974_v55 = vmul.f32 %v4865_v17, %v17907_v49  ;;  %6540 = vmatpush1.bf16.msra.mxu1 %v12738_v29  ;;  %6731 = vmatpush1.bf16.msra.mxu0 %v12744_v23  ;;  %v5146_v63 = vsel %vm2649_vm1, %v5143_v10, %v5145_v35  ;;  %v1880_v10 = vpop.f32.mrf.mxu1  ;;  %v17908_v5 = vld [vmem:[#allocation32_spill] sm:$0xff]  ;;  %v17909_v49 = vld [vmem:[#allocation35_spill] sm:$0xff] }
 0x288   : > { %v5654_v32 = vsel %vm5583_vm12, %v5487_v33, %v5622_v59  ;;  %v5653_v53 = vsel %vm5582_vm13, %v5486_v27, %v5621_v6  ;;  %6732 = vmatprep.subr.bf16.mxu0 %v12749_v42  ;;  %12488 = vmatprep.subr.bf16.mxu1 %v16142_v26  ;;  %v5149_v35 = vrot.slane %v1880_v10, 1 }
 0x289   : > { %v16159_v11 = vpack.c.bf16 %v5654_v32, %v5653_v53  ;;  %v5039_v50 = vadd.f32 %v4975_v56, %v15706_v25  ;;  %v5320_v57 = vpop.permute.xlu1 %5319  ;;  %v5315_v24 = vpop.permute.xlu0 %5314  ;;  %v5038_v29 = vadd.f32 %v4974_v55, %v15709_v4  ;;  %v11951_v25 = vld [vmem:[%s17584_s3 + $0x1a8] sm:$0xff]  ;;  %v5151_v4 = vrot.slane %v16100_v39, 1 }
 0x28a   : > { %v5425_v23 = vmul.f32 %v5320_v57, %v5148_v31  ;;  %v5424_v33 = vmul.f32 %v5315_v24, %v5146_v63  ;;  %7576 = vperm.xlu1 %12549, %v11947_v16   ;;  %7571 = vperm.xlu0 %12548, %v11946_v54   ;;  %v11955_v39 = vld [vmem:[%s17584_s3 + $0x1c8] sm:$0xff]  ;;  %v11954_v16 = vld [vmem:[%s17584_s3 + $0x1c0] sm:$0xff]  ;;  %v16194_v54 = vpop.f32.mrf.mxu1 }
 0x28b   : > { %6222 = vmatmul.mubr.bf16.gmra.mxu1 %v16159_v11  ;;  %6415 = vmatmul.mubr.bf16.gmra.mxu0 %v16159_v11  ;;  %v5152_v24 = vsel %vm2649_vm1, %v5149_v35, %v5151_v4 }
 0x28c   : > { %v5489_v27 = vadd.f32 %v5425_v23, %v5039_v50  ;;  %v5488_v42 = vadd.f32 %v5424_v33, %v5038_v29  ;;  %6231 = vmatprep.mubr.bf16.mxu1 %v17897_v61  ;;  %6424 = vmatprep.mubr.bf16.mxu0 %v17897_v61 }
 0x28d   : > { %v4880_v44 = vpop.permute.xlu1 %4879  ;;  %v4875_v17 = vpop.permute.xlu0 %4874  ;;  %6733 = vmatpush1.bf16.msra.mxu0 %v12747_v34  ;;  %v5150_v34 = vsel %vm2649_vm1, %v5147_v51, %v5149_v35 }
 0x28e   : > { %vm5585_vm14 = vcmp.gt.f32.partialorder %v5489_v27, 0.0  ;;  %v5624_v59 = vmul.f32 %v15871_v19, %v5489_v27  ;;  %vm5584_vm15 = vcmp.gt.f32.partialorder %v5488_v42, 0.0  ;;  %v5623_v6 = vmul.f32 %v15871_v19, %v5488_v42  ;;  %7596 = vperm.xlu1 %12549, %v11951_v25   ;;  %7591 = vperm.xlu0 %12548, %v11950_v13   ;;  %v16212_v25 = vpop.f32.mrf.mxu1 }
 0x28f   : > { %v4977_v56 = vmul.f32 %v4880_v44, %v17908_v5  ;;  %v4976_v55 = vmul.f32 %v4875_v17, %v17909_v49  ;;  %12344 = vmatprep.subr.bf16.mxu0 %v16142_v26  ;;  %v5153_v13 = vrot.slane %v16156_v20, 1  ;;  %v5155_v10 = vrot.slane %v16212_v25, 1  ;;  %v17910_v17 = vld [vmem:[#allocation38_spill] sm:$0xff]  ;;  %v11963_v20 = vld [vmem:[%s17584_s3 + $0x208] sm:$0xff] }
 0x290   : > { %v5656_v32 = vsel %vm5585_vm14, %v5489_v27, %v5624_v59  ;;  %v5655_v53 = vsel %vm5584_vm15, %v5488_v42, %v5623_v6  ;;  %v17911_v6 = vld [vmem:[#allocation41_spill] sm:$0xff]  ;;  %v16228_v49 = vpop.f32.mrf.mxu1 }
 0x291   : > { %v16196_v50 = vpack.c.bf16 %v5656_v32, %v5655_v53  ;;  %v5041_v57 = vadd.f32 %v4977_v56, %v15720_v1  ;;  %v5330_v31 = vpop.permute.xlu1 %5329  ;;  %v5325_v63 = vpop.permute.xlu0 %5324  ;;  %v5040_v29 = vadd.f32 %v4976_v55, %v15723_v48  ;;  %v11959_v1 = vld [vmem:[%s17584_s3 + $0x1e8] sm:$0xff]  ;;  %v11962_v56 = vld [vmem:[%s17584_s3 + $0x200] sm:$0xff] }
 0x292   : > { %v5427_v23 = vmul.f32 %v5330_v31, %v5152_v24  ;;  %v5426_v33 = vmul.f32 %v5325_v63, %v5150_v34  ;;  %7616 = vperm.xlu1 %12549, %v11955_v39   ;;  %7611 = vperm.xlu0 %12548, %v11954_v16   ;;  %v5154_v24 = vsel %vm2649_vm1, %v5151_v4, %v5153_v13 }
 0x293   : > { %6232 = vmatmul.mubr.bf16.gmra.mxu1 %v16196_v50  ;;  %6425 = vmatmul.mubr.bf16.gmra.mxu0 %v16196_v50 }
 0x294   : > { %v5491_v51 = vadd.f32 %v5427_v23, %v5041_v57  ;;  %v5490_v48 = vadd.f32 %v5426_v33, %v5040_v29  ;;  %6241 = vmatprep.mubr.bf16.mxu1 %v17897_v61  ;;  %6434 = vmatprep.mubr.bf16.mxu0 %v17897_v61  ;;  %v5156_v57 = vsel %vm2649_vm1, %v5153_v13, %v5155_v10  ;;  %v11966_v23 = vld [vmem:[%s17584_s3 + $0x220] sm:$0xff]  ;;  %v1896_v33 = vpop.f32.mrf.mxu1 }
 0x295   : > { %v4890_v27 = vpop.permute.xlu1 %4889  ;;  %v4885_v42 = vpop.permute.xlu0 %4884 }
 0x296   : > { %vm5587_vm2 = vcmp.gt.f32.partialorder %v5491_v51, 0.0  ;;  %v5626_v35 = vmul.f32 %v15871_v19, %v5491_v51  ;;  %vm5586_vm3 = vcmp.gt.f32.partialorder %v5490_v48, 0.0  ;;  %v5625_v44 = vmul.f32 %v15871_v19, %v5490_v48  ;;  %7636 = vperm.xlu1 %12549, %v11959_v1   ;;  %7631 = vperm.xlu0 %12548, %v11958_v30  }
 0x297   : > { %v4979_v59 = vmul.f32 %v4890_v27, %v17910_v17  ;;  %v4978_v5 = vmul.f32 %v4885_v42, %v17911_v6  ;;  %v5157_v30 = vrot.slane %v1896_v33, 1  ;;  %v17912_v27 = vld [vmem:[#allocation69_spill] sm:$0xff]  ;;  %v11971_v17 = vld [vmem:[%s17584_s3 + $0x248] sm:$0xff] }
 0x298   : > { %v5658_v55 = vsel %vm5587_vm2, %v5491_v51, %v5626_v35  ;;  %v5657_v39 = vsel %vm5586_vm3, %v5490_v48, %v5625_v44  ;;  %v17913_v35 = vld [vmem:[#allocation65_spill] sm:$0xff] }
 0x299   : > { %v16230_v16 = vpack.c.bf16 %v5658_v55, %v5657_v39  ;;  %v5043_v32 = vadd.f32 %v4979_v59, %v15734_v37  ;;  %v5340_v53 = vpop.permute.xlu1 %5339  ;;  %v5335_v31 = vpop.permute.xlu0 %5334  ;;  %v5042_v63 = vadd.f32 %v4978_v5, %v15737_v28  ;;  %v11967_v37 = vld [vmem:[%s17584_s3 + $0x228] sm:$0xff]  ;;  %v5159_v28 = vrot.slane %v16194_v54, 1  ;;  %v11970_v54 = vld [vmem:[%s17584_s3 + $0x240] sm:$0xff] }
 0x29a   : > { %v5429_v34 = vmul.f32 %v5340_v53, %v5156_v57  ;;  %v5428_v29 = vmul.f32 %v5335_v31, %v5154_v24  ;;  %7945 = vperm.xlu1 %12549, %v11963_v20   ;;  %7940 = vperm.xlu0 %12548, %v11962_v56   ;;  %v16257_v59 = vpop.f32.mrf.mxu1  ;;  %v5158_v53 = vsel %vm2649_vm1, %v5155_v10, %v5157_v30 }
 0x29b   : > { %6242 = vmatmul.mubr.bf16.gmra.mxu1 %v16230_v16  ;;  %6435 = vmatmul.mubr.bf16.gmra.mxu0 %v16230_v16  ;;  %v5160_v39 = vsel %vm2649_vm1, %v5157_v30, %v5159_v28  ;;  %v17914_v30 = vld [vmem:[#allocation76_spill] sm:$0xff] }
 0x29c   : > { %v5493_v4 = vadd.f32 %v5429_v34, %v5043_v32  ;;  %v5492_v1 = vadd.f32 %v5428_v29, %v5042_v63  ;;  %6251 = vmatprep.mubr.bf16.mxu1 %v17897_v61  ;;  %6444 = vmatprep.mubr.bf16.mxu0 %v17897_v61  ;;  %v11974_v63 = vld [vmem:[%s17584_s3 + $0x260] sm:$0xff]  ;;  %v16273_v34 = vpop.f32.mrf.mxu1  ;;  %v5161_v29 = vrot.slane %v16228_v49, 1  ;;  %v11979_v49 = vld [vmem:[%s17584_s3 + $0x288] sm:$0xff] }
 0x29d   : > { %v4900_v25 = vpop.permute.xlu1 %4899  ;;  %v4895_v51 = vpop.permute.xlu0 %4894 }
 0x29e   : > { %vm5589_vm4 = vcmp.gt.f32.partialorder %v5493_v4, 0.0  ;;  %v5628_v48 = vmul.f32 %v15871_v19, %v5493_v4  ;;  %vm5588_vm5 = vcmp.gt.f32.partialorder %v5492_v1, 0.0  ;;  %v5627_v13 = vmul.f32 %v15871_v19, %v5492_v1  ;;  %7965 = vperm.xlu1 %12549, %v11967_v37   ;;  %7960 = vperm.xlu0 %12548, %v11966_v23  }
 0x29f   : > { %v4981_v42 = vmul.f32 %v4900_v25, %v17912_v27  ;;  %v4980_v44 = vmul.f32 %v4895_v51, %v17913_v35  ;;  %v5163_v37 = vrot.slane %v16273_v34, 1  ;;  %v17915_v51 = vld [vmem:[#allocation73_spill] sm:$0xff]  ;;  %v16289_v27 = vpop.f32.mrf.mxu1 }
 0x2a0   : > { %v5660_v6 = vsel %vm5589_vm4, %v5493_v4, %v5628_v48  ;;  %v5659_v5 = vsel %vm5588_vm5, %v5492_v1, %v5627_v13  ;;  %v11978_v13 = vld [vmem:[%s17584_s3 + $0x280] sm:$0xff] }
 0x2a1   : > { %v16259_v20 = vpack.c.bf16 %v5660_v6, %v5659_v5  ;;  %v5045_v56 = vadd.f32 %v4981_v42, %v15748_v46  ;;  %v5350_v55 = vpop.permute.xlu1 %5349  ;;  %v5345_v32 = vpop.permute.xlu0 %5344  ;;  %v5044_v57 = vadd.f32 %v4980_v44, %v15751_v22  ;;  %v11975_v46 = vld [vmem:[%s17584_s3 + $0x268] sm:$0xff]  ;;  %v5164_v6 = vsel %vm2649_vm1, %v5161_v29, %v5163_v37 }
 0x2a2   : > { %v5431_v31 = vmul.f32 %v5350_v55, %v5160_v39  ;;  %v5430_v24 = vmul.f32 %v5345_v32, %v5158_v53  ;;  %7985 = vperm.xlu1 %12549, %v11971_v17   ;;  %7980 = vperm.xlu0 %12548, %v11970_v54   ;;  %v11982_v53 = vld [vmem:[%s17584_s3 + $0x2a0] sm:$0xff] }
 0x2a3   : > { %6252 = vmatmul.mubr.bf16.gmra.mxu1 %v16259_v20  ;;  %6445 = vmatmul.mubr.bf16.gmra.mxu0 %v16259_v20 }
 0x2a4   : > { %v5495_v10 = vadd.f32 %v5431_v31, %v5045_v56  ;;  %v5494_v22 = vadd.f32 %v5430_v24, %v5044_v57  ;;  %6261 = vmatprep.mubr.bf16.mxu1 %v17897_v61  ;;  %6454 = vmatprep.mubr.bf16.mxu0 %v17897_v61  ;;  %v5162_v56 = vsel %vm2649_vm1, %v5159_v28, %v5161_v29  ;;  %v1912_v57 = vpop.f32.mrf.mxu1 }
 0x2a5   : > { %v4910_v23 = vpop.permute.xlu1 %4909  ;;  %v4905_v33 = vpop.permute.xlu0 %4904  ;;  %v5165_v24 = vrot.slane %v1912_v57, 1 }
 0x2a6   : > { %vm5591_vm6 = vcmp.gt.f32.partialorder %v5495_v10, 0.0  ;;  %v5630_v4 = vmul.f32 %v15871_v19, %v5495_v10  ;;  %vm5590_vm7 = vcmp.gt.f32.partialorder %v5494_v22, 0.0  ;;  %v5629_v1 = vmul.f32 %v15871_v19, %v5494_v22  ;;  %8005 = vperm.xlu1 %12549, %v11975_v46   ;;  %8000 = vperm.xlu0 %12548, %v11974_v63  }
 0x2a7   : > { %v4983_v25 = vmul.f32 %v4910_v23, %v17914_v30  ;;  %v4982_v48 = vmul.f32 %v4905_v33, %v17915_v51  ;;  %v17918_v23 = vld [vmem:[#allocation77_spill] sm:$0xff] }
 0x2a8   : > { %v5662_v42 = vsel %vm5591_vm6, %v5495_v10, %v5630_v4  ;;  %v5661_v35 = vsel %vm5590_vm7, %v5494_v22, %v5629_v1  ;;  %v17917_v22 = vld [vmem:[#allocation78_spill] sm:$0xff]  ;;  %v11987_v4 = vld [vmem:[%s17584_s3 + $0x2c8] sm:$0xff]  ;;  %v16318_v1 = vpop.f32.mrf.mxu1  ;;  %vm12831_vm6 = vmmov 0   ;;  %vm10702_vm7 = vcmask 130048  }
 0x2a9   : > { %v16291_v44 = vpack.c.bf16 %v5662_v42, %v5661_v35  ;;  %v5047_v17 = vadd.f32 %v4983_v25, %v15764_v45  ;;  %v5360_v54 = vpop.permute.xlu1 %5359  ;;  %v5355_v5 = vpop.permute.xlu0 %5354  ;;  %v5046_v55 = vadd.f32 %v4982_v48, %v15767_v58  ;;  %v11983_v45 = vld [vmem:[%s17584_s3 + $0x2a8] sm:$0xff]  ;;  %v5167_v58 = vrot.slane %v16257_v59, 1  ;;  %v11986_v59 = vld [vmem:[%s17584_s3 + $0x2c0] sm:$0xff] }
 0x2aa   : > { %v5433_v39 = vmul.f32 %v5360_v54, %v5164_v6  ;;  %v5432_v32 = vmul.f32 %v5355_v5, %v5162_v56  ;;  %8025 = vperm.xlu1 %12549, %v11979_v49   ;;  %8020 = vperm.xlu0 %12548, %v11978_v13   ;;  %v5166_v35 = vsel %vm2649_vm1, %v5163_v37, %v5165_v24  ;;  %v11990_v5 = vld [vmem:[%s17584_s3 + $0x2e0] sm:$0xff]  ;;  %v16334_v56 = vpop.f32.mrf.mxu1 }
 0x2ab   : > { %17916 = vst [vmem:[#allocation15_spill] sm:$0xff] %v16291_v44  ;;  %6262 = vmatmul.mubr.bf16.gmra.mxu1 %v16291_v44  ;;  %6455 = vmatmul.mubr.bf16.gmra.mxu0 %v16291_v44  ;;  %v5168_v13 = vsel %vm2649_vm1, %v5165_v24, %v5167_v58  ;;  %v17920_v24 = vld [vmem:[#allocation79_spill] sm:$0xff] }
 0x2ac   : > { %v5497_v28 = vadd.f32 %v5433_v39, %v5047_v17  ;;  %v5496_v31 = vadd.f32 %v5432_v32, %v5046_v55  ;;  %6271 = vmatprep.mubr.bf16.mxu1 %v17897_v61  ;;  %6464 = vmatprep.mubr.bf16.mxu0 %v17897_v61  ;;  %v5169_v55 = vrot.slane %v16289_v27, 1  ;;  %v5171_v39 = vrot.slane %v16334_v56, 1  ;;  %v11995_v27 = vld [vmem:[%s17584_s3 + $0x308] sm:$0xff]  ;;  %v17921_v56 = vld [vmem:[#allocation14_spill] sm:$0xff] }
 0x2ad   : > { %v4920_v46 = vpop.permute.xlu1 %4919  ;;  %v4915_v63 = vpop.permute.xlu0 %4914 }
 0x2ae   : > { %vm5593_vm8 = vcmp.gt.f32.partialorder %v5497_v28, 0.0  ;;  %v5632_v34 = vmul.f32 %v15871_v19, %v5497_v28  ;;  %vm5592_vm9 = vcmp.gt.f32.partialorder %v5496_v31, 0.0  ;;  %v5631_v10 = vmul.f32 %v15871_v19, %v5496_v31  ;;  %8045 = vperm.xlu1 %12549, %v11983_v45   ;;  %8040 = vperm.xlu0 %12548, %v11982_v53  }
 0x2af   : > { %v4985_v29 = vmul.f32 %v4920_v46, %v17917_v22  ;;  %v4984_v33 = vmul.f32 %v4915_v63, %v17918_v23  ;;  %v11994_v63 = vld [vmem:[%s17584_s3 + $0x300] sm:$0xff] }
 0x2b0   : > { %v5664_v30 = vsel %vm5593_vm8, %v5497_v28, %v5632_v34  ;;  %v5663_v25 = vsel %vm5592_vm9, %v5496_v31, %v5631_v10  ;;  %v17919_v28 = vld [vmem:[#allocation80_spill] sm:$0xff]  ;;  %v16350_v34 = vpop.f32.mrf.mxu1 }
 0x2b1   : > { %v16320_v51 = vpack.c.bf16 %v5664_v30, %v5663_v25  ;;  %v5049_v48 = vadd.f32 %v4985_v29, %v15780_v43  ;;  %v5370_v49 = vpop.permute.xlu1 %5369  ;;  %v5365_v42 = vpop.permute.xlu0 %5364  ;;  %v5048_v17 = vadd.f32 %v4984_v33, %v15783_v12  ;;  %v11991_v43 = vld [vmem:[%s17584_s3 + $0x2e8] sm:$0xff]  ;;  %v5172_v33 = vsel %vm2649_vm1, %v5169_v55, %v5171_v39 }
 0x2b2   : > { %v5435_v54 = vmul.f32 %v5370_v49, %v5168_v13  ;;  %v5434_v6 = vmul.f32 %v5365_v42, %v5166_v35  ;;  %8065 = vperm.xlu1 %12549, %v11987_v4   ;;  %8060 = vperm.xlu0 %12548, %v11986_v59   ;;  %v5170_v59 = vsel %vm2649_vm1, %v5167_v58, %v5169_v55  ;;  %v1928_v30 = vpop.f32.mrf.mxu1  ;;  %v11998_v13 = vld [vmem:[%s17584_s3 + $0x320] sm:$0xff]  ;;  %v12003_v55 = vld [vmem:[%s17584_s3 + $0x348] sm:$0xff] }
 0x2b3   : > { %6272 = vmatmul.mubr.bf16.gmra.mxu1 %v16320_v51  ;;  %6465 = vmatmul.mubr.bf16.gmra.mxu0 %v16320_v51  ;;  %v5173_v35 = vrot.slane %v1928_v30, 1 }
 0x2b4   : > { %v5499_v37 = vadd.f32 %v5435_v54, %v5049_v48  ;;  %v5498_v12 = vadd.f32 %v5434_v6, %v5048_v17  ;;  %6281 = vmatprep.mubr.bf16.mxu1 %v17897_v61  ;;  %6474 = vmatprep.mubr.bf16.mxu0 %v17897_v61  ;;  %v16372_v6 = vld [vmem:[%s17585_s4] ss:$0 sm:$0xff] }
 0x2b5   : > { %v4930_v32 = vpop.permute.xlu1 %4929  ;;  %v4925_v45 = vpop.permute.xlu0 %4924 }
 0x2b6   : > { %vm5595_vm10 = vcmp.gt.f32.partialorder %v5499_v37, 0.0  ;;  %v5634_v53 = vmul.f32 %v15871_v19, %v5499_v37  ;;  %vm5594_vm11 = vcmp.gt.f32.partialorder %v5498_v12, 0.0  ;;  %v5633_v57 = vmul.f32 %v15871_v19, %v5498_v12  ;;  %8085 = vperm.xlu1 %12549, %v11991_v43   ;;  %8080 = vperm.xlu0 %12548, %v11990_v5  }
 0x2b7   : > { %v4987_v31 = vmul.f32 %v4930_v32, %v17919_v28  ;;  %v4986_v46 = vmul.f32 %v4925_v45, %v17920_v24  ;;  %v12002_v32 = vld [vmem:[%s17584_s3 + $0x340] sm:$0xff] }
 0x2b8   : > { %v5666_v10 = vsel %vm5595_vm10, %v5499_v37, %v5634_v53  ;;  %v5665_v22 = vsel %vm5594_vm11, %v5498_v12, %v5633_v57  ;;  %v17922_v12 = vld [vmem:[#allocation81_spill] sm:$0xff] }
 0x2b9   : > { %v16352_v29 = vpack.c.bf16 %v5666_v10, %v5665_v22  ;;  %v5051_v19 = vadd.f32 %v4987_v31, %v15794_v36  ;;  %v5380_v23 = vpop.permute.xlu1 %5379  ;;  %v5375_v4 = vpop.permute.xlu0 %5374  ;;  %v5050_v25 = vadd.f32 %v4986_v46, %v15797_v52  ;;  %v11999_v36 = vld [vmem:[%s17584_s3 + $0x328] sm:$0xff]  ;;  %v5175_v52 = vrot.slane %v16318_v1, 1 }
 0x2ba   : > { %v5437_v48 = vmul.f32 %v5380_v23, %v5172_v33  ;;  %v5436_v49 = vmul.f32 %v5375_v4, %v5170_v59  ;;  %8394 = vperm.xlu1 %12549, %v11995_v27   ;;  %8389 = vperm.xlu0 %12548, %v11994_v63   ;;  %v5174_v27 = vsel %vm2649_vm1, %v5171_v39, %v5173_v35  ;;  %v5177_v33 = vrot.slane %v16350_v34, 1  ;;  %v12010_v34 = vld [vmem:[%s17584_s3 + $0x380] sm:$0xff] }
 0x2bb   : > { %6282 = vmatmul.mubr.bf16.gmra.mxu1 %v16352_v29  ;;  %6475 = vmatmul.mubr.bf16.gmra.mxu0 %v16352_v29  ;;  %v5176_v24 = vsel %vm2649_vm1, %v5173_v35, %v5175_v52 }
 0x2bc   : > { %v5501_v58 = vadd.f32 %v5437_v48, %v5051_v19  ;;  %v5500_v42 = vadd.f32 %v5436_v49, %v5050_v25  ;;  %6291 = vmatprep.mubr.bf16.mxu1 %v17897_v61  ;;  %6484 = vmatprep.mubr.bf16.mxu0 %v17897_v61  ;;  %v12006_v19 = vld [vmem:[%s17584_s3 + $0x360] sm:$0xff] }
 0x2bd   : > { %v4940_v17 = vpop.permute.xlu1 %4939  ;;  %v4935_v54 = vpop.permute.xlu0 %4934  ;;  %v17923_v49 = vld [vmem:[#allocation11_spill] sm:$0xff] }
 0x2be   : > { %vm5597_vm12 = vcmp.gt.f32.partialorder %v5501_v58, 0.0  ;;  %v5636_v43 = vmul.f32 %v16372_v6, %v5501_v58  ;;  %vm5596_vm13 = vcmp.gt.f32.partialorder %v5500_v42, 0.0  ;;  %v5635_v5 = vmul.f32 %v16372_v6, %v5500_v42  ;;  %8414 = vperm.xlu1 %12549, %v11999_v36   ;;  %8409 = vperm.xlu0 %12548, %v11998_v13  }
 0x2bf   : > { %v4989_v37 = vmul.f32 %v4940_v17, %v17921_v56  ;;  %v4988_v1 = vmul.f32 %v4935_v54, %v17922_v12  ;;  %v12014_v12 = vld [vmem:[%s17584_s3 + $0x3a0] sm:$0xff] }
 0x2c0   : > { %v5668_v45 = vsel %vm5597_vm12, %v5501_v58, %v5636_v43  ;;  %v5667_v53 = vsel %vm5596_vm13, %v5500_v42, %v5635_v5  ;;  %v5178_v43 = vsel %vm2649_vm1, %v5175_v52, %v5177_v33 }
 0x2c1   : > { %v16384_v57 = vpack.c.bf16 %v5668_v45, %v5667_v53  ;;  %v5053_v28 = vadd.f32 %v4989_v37, %v15810_v40  ;;  %v5390_v31 = vpop.permute.xlu1 %5389  ;;  %v5385_v46 = vpop.permute.xlu0 %5384  ;;  %v5052_v63 = vadd.f32 %v4988_v1, %v15813_v0  ;;  %v12007_v40 = vld [vmem:[%s17584_s3 + $0x368] sm:$0xff]  ;;  %v5211_v0 = vrot.slane %v15771_v3, 1 }
 0x2c2   : > { %v5439_v10 = vmul.f32 %v5390_v31, %v5176_v24  ;;  %v5438_v22 = vmul.f32 %v5385_v46, %v5174_v27  ;;  %8434 = vperm.xlu1 %12549, %v12003_v55   ;;  %8429 = vperm.xlu0 %12548, %v12002_v32   ;;  %v12011_v3 = vld [vmem:[%s17584_s3 + $0x388] sm:$0xff]  ;;  %v17925_v24 = vld [vmem:[#allocation46_spill] sm:$0xff]  ;;  %v12026_v27 = vld [vmem:[%s17584_s3 + $0x400] sm:$0xff] }
 0x2c3   : > { %6292 = vmatmul.mubr.bf16.gmra.mxu1 %v16384_v57  ;;  %6485 = vmatmul.mubr.bf16.gmra.mxu0 %v16384_v57  ;;  %v5218_v54 = vsel %vm2649_vm1, %v5177_v33, %v5211_v0 }
 0x2c4   : > { %v5503_v23 = vadd.f32 %v5439_v10, %v5053_v28  ;;  %v5502_v39 = vadd.f32 %v5438_v22, %v5052_v63  ;;  %6301 = vmatprep.mubr.bf16.mxu1 %v17897_v61  ;;  %6494 = vmatprep.mubr.bf16.mxu0 %v17897_v61  ;;  %v17924_v28 = vld [vmem:[#allocation25_spill] sm:$0xff] }
 0x2c5   : > { %v4950_v4 = vpop.permute.xlu1 %4949  ;;  %v4945_v59 = vpop.permute.xlu0 %4944 }
 0x2c6   : > { %vm5599_vm14 = vcmp.gt.f32.partialorder %v5503_v23, 0.0  ;;  %v5638_v30 = vmul.f32 %v16372_v6, %v5503_v23  ;;  %vm5598_vm15 = vcmp.gt.f32.partialorder %v5502_v39, 0.0  ;;  %v5637_v25 = vmul.f32 %v16372_v6, %v5502_v39  ;;  %8454 = vperm.xlu1 %12549, %v12007_v40   ;;  %8449 = vperm.xlu0 %12548, %v12006_v19  }
 0x2c7   : > { %v4991_v48 = vmul.f32 %v4950_v4, %v16079_v62  ;;  %v4990_v36 = vmul.f32 %v4945_v59, %v17923_v49 }
 0x2c8   : > { %v5670_v13 = vsel %vm5599_vm14, %v5503_v23, %v5638_v30  ;;  %v5669_v58 = vsel %vm5598_vm15, %v5502_v39, %v5637_v25 }
 0x2c9   : > { %v16412_v42 = vpack.c.bf16 %v5670_v13, %v5669_v58  ;;  %v5055_v35 = vadd.f32 %v4991_v48, %v15832_v2  ;;  %v5400_v17 = vpop.permute.xlu1 %5399  ;;  %v5395_v62 = vpop.permute.xlu0 %5394  ;;  %v5054_v5 = vadd.f32 %v4990_v36, %v15835_v21  ;;  %v12015_v2 = vld [vmem:[%s17584_s3 + $0x3a8] sm:$0xff]  ;;  %v5212_v21 = vrot.slane %v15799_v8, 1 }
 0x2ca   : > { %v5441_v56 = vmul.f32 %v5400_v17, %v5218_v54  ;;  %v5440_v37 = vmul.f32 %v5395_v62, %v5178_v43  ;;  %8474 = vperm.xlu1 %12549, %v12011_v3   ;;  %8469 = vperm.xlu0 %12548, %v12010_v34   ;;  %v12027_v8 = vld [vmem:[%s17584_s3 + $0x408] sm:$0xff]  ;;  %v12058_v3 = vld [vmem:[%s17584_s3 + $0x500] sm:$0xff] }
 0x2cb   : > { %6302 = vmatmul.mubr.bf16.gmra.mxu1 %v16412_v42  ;;  %6495 = vmatmul.mubr.bf16.gmra.mxu0 %v16412_v42  ;;  %v5214_v23 = vsel %vm2649_vm1, %v5212_v21, %v5120_v14  ;;  %v5213_v33 = vsel %vm2649_vm1, %v5211_v0, %v5212_v21  ;;  %v12091_v36 = vld [vmem:[%s17584_s3 + $0x608] sm:$0xff]  ;;  %v12034_v54 = vld [vmem:[%s17584_s3 + $0x440] sm:$0xff] }
 0x2cc   : > { %v5505_v1 = vadd.f32 %v5441_v56, %v5055_v35  ;;  %v5504_v52 = vadd.f32 %v5440_v37, %v5054_v5  ;;  %6311 = vmatprep.mubr.bf16.mxu1 %v17897_v61  ;;  %6504 = vmatprep.mubr.bf16.mxu0 %v17897_v61  ;;  %v12123_v5 = vld [vmem:[%s17584_s3 + $0x708] sm:$0xff]  ;;  %v12090_v56 = vld [vmem:[%s17584_s3 + $0x600] sm:$0xff] }
 0x2cd   : > { %v4960_v55 = vpop.permute.xlu1 %4959  ;;  %v4955_v32 = vpop.permute.xlu0 %4954 }
 0x2ce   : > { %vm5601_vm2 = vcmp.gt.f32.partialorder %v5505_v1, 0.0  ;;  %v5640_v45 = vmul.f32 %v16372_v6, %v5505_v1  ;;  %vm5600_vm3 = vcmp.gt.f32.partialorder %v5504_v52, 0.0  ;;  %v5639_v53 = vmul.f32 %v16372_v6, %v5504_v52  ;;  %8494 = vperm.xlu1 %12549, %v12015_v2   ;;  %8489 = vperm.xlu0 %12548, %v12014_v12   ;;  %v12751_v12 = vld [vmem:[%s17583_s2 + $0x1d0] ss:$36 sps:$4 sm:$0xff]  }
 0x2cf   : > { %v4993_v31 = vmul.f32 %v4960_v55, %v17924_v28  ;;  %v4992_v46 = vmul.f32 %v4955_v32, %v17925_v24  ;;  %v12752_v32 = vld [vmem:[%s17583_s2 + $0x188] ss:$36 sps:$4 sm:$0xff]  }
 0x2d0   : > { %v5672_v63 = vsel %vm5601_vm2, %v5505_v1, %v5640_v45  ;;  %v5671_v10 = vsel %vm5600_vm3, %v5504_v52, %v5639_v53  ;;  %v12066_v1 = vld [vmem:[%s17584_s3 + $0x540] sm:$0xff]  ;;  %v12043_v52 = vld [vmem:[%s17584_s3 + $0x488] sm:$0xff] }
 0x2d1   : > { %v16439_v22 = vpack.c.bf16 %v5672_v63, %v5671_v10  ;;  %v5057_v40 = vadd.f32 %v4993_v31, %v15846_v18  ;;  %v5410_v19 = vpop.permute.xlu1 %5409  ;;  %v5405_v39 = vpop.permute.xlu0 %5404  ;;  %v5056_v4 = vadd.f32 %v4992_v46, %v15849_v15  ;;  %v12035_v18 = vld [vmem:[%s17584_s3 + $0x448] sm:$0xff]  ;;  %v12122_v45 = vld [vmem:[%s17584_s3 + $0x700] sm:$0xff] }
 0x2d2   : > { %v5443_v59 = vmul.f32 %v5410_v19, %v5214_v23  ;;  %v5442_v30 = vmul.f32 %v5405_v39, %v5213_v33  ;;  %8709 = vperm.xlu1 %12549, %v12026_v27   ;;  %8714 = vperm.xlu0 %12548, %v12027_v8   ;;  %v12099_v53 = vld [vmem:[%s17584_s3 + $0x648] sm:$0xff]  ;;  %v12753_v46 = vld [vmem:[%s17583_s2 + $0x140] ss:$36 sps:$4 sm:$0xff]   ;;  %v12754_v23 = vld [vmem:[%s17583_s2 + $0xf8] ss:$36 sps:$4 sm:$0xff]  }
 0x2d3   : > { %6312 = vmatmul.mubr.bf16.gmra.mxu1 %v16439_v22  ;;  %6505 = vmatmul.mubr.bf16.gmra.mxu0 %v16439_v22  ;;  %v12019_v24 = vld [vmem:[%s17584_s3 + $0x3c8] sm:$0xff]  ;;  %v12042_v10 = vld [vmem:[%s17584_s3 + $0x480] sm:$0xff] }
 0x2d4   : > { %v5507_v14 = vadd.f32 %v5443_v59, %v5057_v40  ;;  %v5506_v0 = vadd.f32 %v5442_v30, %v5056_v4  ;;  %6321 = vmatprep.mubr.bf16.mxu1 %v17897_v61  ;;  %6514 = vmatprep.mubr.bf16.mxu0 %v17897_v61  ;;  %v12075_v63 = vld [vmem:[%s17584_s3 + $0x588] sm:$0xff]  ;;  %v12098_v33 = vld [vmem:[%s17584_s3 + $0x640] sm:$0xff]  ;;  %v12755_v4 = vld [vmem:[%s17583_s2 + $0xb0] ss:$36 sps:$4 sm:$0xff]  }
 0x2d5   : > { %v16457_v15 = vpop.permute.xlu1 %7240  ;;  %v16459_v25 = vpop.permute.xlu0 %7235  ;;  %v12131_v39 = vld [vmem:[%s17584_s3 + $0x748] sm:$0xff] }
 0x2d6   : > { %17926 = vst [vmem:[#allocation59_spill] sm:$0xff] %v16457_v15  ;;  %17927 = vst [vmem:[#allocation16_spill] sm:$0xff] %v16459_v25  ;;  %vm5603_vm4 = vcmp.gt.f32.partialorder %v5507_v14, 0.0  ;;  %v5642_v48 = vmul.f32 %v16372_v6, %v5507_v14  ;;  %vm5602_vm5 = vcmp.gt.f32.partialorder %v5506_v0, 0.0  ;;  %v5641_v49 = vmul.f32 %v16372_v6, %v5506_v0  ;;  %8754 = vperm.xlu1 %12549, %v12035_v18   ;;  %v12067_v6 = vld [vmem:[%s17584_s3 + $0x548] sm:$0xff]  ;;  %v12018_v18 = vld [vmem:[%s17584_s3 + $0x3c0] sm:$0xff] }
 0x2d7   : > { %9163 = vperm.xlu0 %12548, %v12059_v7   ;;  %v12154_v7 = vld [vmem:[%s17584_s3 + $0x800] sm:$0xff]  ;;  %v12063_v15 = vld [vmem:[%s17584_s3 + $0x528] sm:$0xff] }
 0x2d8   : > { %v5674_v34 = vsel %vm5603_vm4, %v5507_v14, %v5642_v48  ;;  %v5673_v13 = vsel %vm5602_vm5, %v5506_v0, %v5641_v49  ;;  %v12074_v48 = vld [vmem:[%s17584_s3 + $0x580] sm:$0xff]  ;;  %v12051_v49 = vld [vmem:[%s17584_s3 + $0x4c8] sm:$0xff] }
 0x2d9   : > { %v16469_v58 = vpack.c.bf16 %v5674_v34, %v5673_v13  ;;  %v16471_v35 = vpop.permute.xlu1 %7260  ;;  %v16473_v17 = vpop.permute.xlu0 %7255  ;;  %v12130_v13 = vld [vmem:[%s17584_s3 + $0x740] sm:$0xff] }
 0x2da   : > { %9612 = vperm.xlu1 %12549, %v12091_v36   ;;  %v12756_v36 = vld [vmem:[%s17583_s2 + $0x68] ss:$36 sps:$4 sm:$0xff]  }
 0x2db   : > { %9158 = vperm.xlu0 %12548, %v12058_v3   ;;  %6322 = vmatmul.mubr.bf16.gmra.mxu1 %v16469_v58 }
 0x2dc   : > { %6515 = vmatmul.mubr.bf16.gmra.mxu0 %v16469_v58  ;;  %6557 = vmatprep.mubr.bf16.mxu1 %v17897_v61 }
 0x2dd   : > { %6750 = vmatprep.mubr.bf16.mxu0 %v17897_v61  ;;  %v16485_v62 = vpop.permute.xlu1 %7280  ;;  %v16487_v43 = vpop.permute.xlu0 %7275 }
 0x2de   : > { %9203 = vperm.xlu1 %12549, %v12067_v6   ;;  %v12107_v6 = vld [vmem:[%s17584_s3 + $0x688] sm:$0xff] }
 0x2df   : > { %8749 = vperm.xlu0 %12548, %v12034_v54  }
 0x2e1   : > { %v16495_v37 = vpop.permute.xlu1 %7300  ;;  %v16497_v2 = vpop.permute.xlu0 %7295 }
 0x2e2   : > { %9932 = vperm.xlu1 %12549, %v12123_v5  }
 0x2e3   : > { %9607 = vperm.xlu0 %12548, %v12090_v56   ;;  %6558 = vmatmul.mubr.bf16.vlgmr.msra.gmra.mxu1 %v15895_v38  ;;  %v12757_v56 = vld [vmem:[%s17583_s2 + $0x20] ss:$36 sps:$4 sm:$0xff]  }
 0x2e4   : > { %6751 = vmatmul.mubr.bf16.vlgmr.msra.gmra.mxu0 %v15895_v38  ;;  %12496 = vmatpush3.bf16.msra.mxu1 %v16142_v26 }
 0x2e5   : > { %6567 = vmatprep.mubr.bf16.mxu1 %v17897_v61  ;;  %v16512_v21 = vpop.permute.xlu1 %7320  ;;  %v16514_v55 = vpop.permute.xlu0 %7315  ;;  %6760 = vmatprep.mubr.bf16.mxu0 %v17897_v61 }
 0x2e6   : > { %12489 = vmatprep.subr.bf16.mxu1 %v12751_v12  ;;  %9198 = vperm.xlu1 %12549, %v12066_v1   ;;  %v12163_v1 = vld [vmem:[%s17584_s3 + $0x848] sm:$0xff] }
 0x2e7   : > { %8794 = vperm.xlu0 %12548, %v12043_v52   ;;  %12345 = vmatpush3.bf16.msra.mxu0 %v16142_v26  ;;  %v12155_v26 = vld [vmem:[%s17584_s3 + $0x808] sm:$0xff] }
 0x2e8   : > { %12497 = vmatpush3.bf16.msra.mxu1 %v12751_v12  ;;  %12346 = vmatprep.subr.bf16.mxu0 %v12751_v12 }
 0x2e9   : > { %v16527_v28 = vpop.permute.xlu1 %7340  ;;  %v16529_v31 = vpop.permute.xlu0 %7335  ;;  %12490 = vmatprep.subr.bf16.mxu1 %v12752_v32 }
 0x2ea   : > { %9927 = vperm.xlu1 %12549, %v12122_v45   ;;  %v12106_v45 = vld [vmem:[%s17584_s3 + $0x680] sm:$0xff] }
 0x2eb   : > { %9652 = vperm.xlu0 %12548, %v12099_v53   ;;  %6568 = vmatmul.mubr.bf16.gmra.mxu1 %v15944_v60  ;;  %v12083_v53 = vld [vmem:[%s17584_s3 + $0x5c8] sm:$0xff] }
 0x2ec   : > { %6761 = vmatmul.mubr.bf16.gmra.mxu0 %v15944_v60  ;;  %6577 = vmatprep.mubr.bf16.mxu1 %v17897_v61 }
 0x2ed   : > { %6770 = vmatprep.mubr.bf16.mxu0 %v17897_v61  ;;  %v16544_v27 = vpop.permute.xlu1 %7360  ;;  %v16546_v8 = vpop.permute.xlu0 %7355  ;;  %12498 = vmatpush3.bf16.msra.mxu1 %v12752_v32 }
 0x2ee   : > { %17928 = vst [vmem:[#allocation23_spill] sm:$0xff] %v16544_v27  ;;  %17929 = vst [vmem:[#allocation49_spill] sm:$0xff] %v16546_v8  ;;  %12347 = vmatpush3.bf16.msra.mxu0 %v12751_v12  ;;  %8514 = vperm.xlu1 %12549, %v12019_v24   ;;  %v12050_v12 = vld [vmem:[%s17584_s3 + $0x4c0] sm:$0xff] }
 0x2ef   : > { %10381 = vperm.xlu0 %12548, %v12155_v26   ;;  %12491 = vmatprep.subr.bf16.mxu1 %v12753_v46 }
 0x2f0   : > { %12348 = vmatprep.subr.bf16.mxu0 %v12752_v32 }
 0x2f1   : > { %v16554_v40 = vpop.permute.xlu1 %7380  ;;  %v16556_v19 = vpop.permute.xlu0 %7375  ;;  %12499 = vmatpush3.bf16.msra.mxu1 %v12753_v46 }
 0x2f2   : > { %17930 = vst [vmem:[#allocation20_spill] sm:$0xff] %v16554_v40  ;;  %17931 = vst [vmem:[#allocation19_spill] sm:$0xff] %v16556_v19  ;;  %12349 = vmatpush3.bf16.msra.mxu0 %v12752_v32  ;;  %9243 = vperm.xlu1 %12549, %v12075_v63   ;;  %v12139_v63 = vld [vmem:[%s17584_s3 + $0x788] sm:$0xff] }
 0x2f3   : > { %8789 = vperm.xlu0 %12548, %v12042_v10   ;;  %6578 = vmatmul.mubr.bf16.gmra.mxu1 %v15998_v41  ;;  %v12095_v40 = vld [vmem:[%s17584_s3 + $0x628] sm:$0xff] }
 0x2f4   : > { %6771 = vmatmul.mubr.bf16.gmra.mxu0 %v15998_v41  ;;  %6587 = vmatprep.mubr.bf16.mxu1 %v17897_v61 }
 0x2f5   : > { %6780 = vmatprep.mubr.bf16.mxu0 %v17897_v61  ;;  %v16574_v59 = vpop.permute.xlu1 %7496  ;;  %v16576_v30 = vpop.permute.xlu0 %7491  ;;  %12492 = vmatprep.subr.bf16.mxu1 %v12754_v23 }
 0x2f6   : > { %17932 = vst [vmem:[#allocation68_spill] sm:$0xff] %v16574_v59  ;;  %17933 = vst [vmem:[#allocation24_spill] sm:$0xff] %v16576_v30  ;;  %12350 = vmatprep.subr.bf16.mxu0 %v12753_v46  ;;  %9972 = vperm.xlu1 %12549, %v12131_v39   ;;  %v12115_v39 = vld [vmem:[%s17584_s3 + $0x6c8] sm:$0xff] }
 0x2f7   : > { %9647 = vperm.xlu0 %12548, %v12098_v33   ;;  %12500 = vmatpush3.bf16.msra.mxu1 %v12754_v23  ;;  %v12082_v33 = vld [vmem:[%s17584_s3 + $0x5c0] sm:$0xff] }
 0x2f8   : > { %12351 = vmatpush3.bf16.msra.mxu0 %v12753_v46  ;;  %12493 = vmatprep.subr.bf16.mxu1 %v12755_v4  ;;  %v12162_v46 = vld [vmem:[%s17584_s3 + $0x840] sm:$0xff] }
 0x2f9   : > { %12352 = vmatprep.subr.bf16.mxu0 %v12754_v23  ;;  %v16584_v14 = vpop.permute.xlu1 %7516  ;;  %v16586_v0 = vpop.permute.xlu0 %7511 }
 0x2fa   : > { %8509 = vperm.xlu1 %12549, %v12018_v18  }
 0x2fb   : > { %10376 = vperm.xlu0 %12548, %v12154_v7   ;;  %6588 = vmatmul.mubr.bf16.gmra.mxu1 %v16049_v47  ;;  %v12171_v7 = vld [vmem:[%s17584_s3 + $0x888] sm:$0xff] }
 0x2fc   : > { %6781 = vmatmul.mubr.bf16.gmra.mxu0 %v16049_v47  ;;  %6597 = vmatprep.mubr.bf16.mxu1 %v17897_v61 }
 0x2fd   : > { %6790 = vmatprep.mubr.bf16.mxu0 %v17897_v61  ;;  %v16601_v3 = vpop.permute.xlu1 %7536  ;;  %v16603_v34 = vpop.permute.xlu0 %7531  ;;  %12501 = vmatpush3.bf16.msra.mxu1 %v12755_v4 }
 0x2fe   : > { %12353 = vmatpush3.bf16.msra.mxu0 %v12754_v23  ;;  %9238 = vperm.xlu1 %12549, %v12074_v48   ;;  %v12138_v48 = vld [vmem:[%s17584_s3 + $0x780] sm:$0xff] }
 0x2ff   : > { %8834 = vperm.xlu0 %12548, %v12051_v49   ;;  %12494 = vmatprep.subr.bf16.mxu1 %v12756_v36 }
 0x300   : > { %12354 = vmatprep.subr.bf16.mxu0 %v12755_v4 }
 0x301   : > { %v16611_v54 = vpop.permute.xlu1 %7556  ;;  %v16613_v5 = vpop.permute.xlu0 %7551  ;;  %12502 = vmatpush3.bf16.msra.mxu1 %v12756_v36 }
 0x302   : > { %12355 = vmatpush3.bf16.msra.mxu0 %v12755_v4  ;;  %9967 = vperm.xlu1 %12549, %v12130_v13   ;;  %v12147_v13 = vld [vmem:[%s17584_s3 + $0x7c8] sm:$0xff] }
 0x303   : > { %9692 = vperm.xlu0 %12548, %v12107_v6   ;;  %6598 = vmatmul.mubr.bf16.gmra.mxu1 %v16105_v9  ;;  %v12114_v6 = vld [vmem:[%s17584_s3 + $0x6c0] sm:$0xff] }
 0x304   : > { %6791 = vmatmul.mubr.bf16.gmra.mxu0 %v16105_v9  ;;  %6607 = vmatprep.mubr.bf16.mxu1 %v17897_v61 }
 0x305   : > { %6800 = vmatprep.mubr.bf16.mxu0 %v17897_v61  ;;  %v16628_v52 = vpop.permute.xlu1 %7576  ;;  %v16630_v32 = vpop.permute.xlu0 %7571  ;;  %12495 = vmatprep.subr.bf16.mxu1 %v12757_v56 }
 0x306   : > { %12356 = vmatprep.subr.bf16.mxu0 %v12756_v36  ;;  %8829 = vperm.xlu1 %12549, %v12050_v12  }
 0x307   : > { %10421 = vperm.xlu0 %12548, %v12163_v1   ;;  %12503 = vmatpush3.bf16.msra.mxu1 %v12757_v56  ;;  %v12146_v1 = vld [vmem:[%s17584_s3 + $0x7c0] sm:$0xff] }
 0x308   : > { %12357 = vmatpush3.bf16.msra.mxu0 %v12756_v36 }
 0x309   : > { %12358 = vmatprep.subr.bf16.mxu0 %v12757_v56  ;;  %v16638_v24 = vpop.permute.xlu1 %7596  ;;  %v16640_v26 = vpop.permute.xlu0 %7591 }
 0x30a   : > { %9687 = vperm.xlu1 %12549, %v12106_v45   ;;  %v12170_v45 = vld [vmem:[%s17584_s3 + $0x880] sm:$0xff] }
 0x30b   : > { %9283 = vperm.xlu0 %12548, %v12083_v53   ;;  %6608 = vmatmul.mubr.bf16.gmra.mxu1 %v16159_v11 }
 0x30c   : > { %6801 = vmatmul.mubr.bf16.gmra.mxu0 %v16159_v11  ;;  %6617 = vmatprep.mubr.bf16.mxu1 %v17897_v61 }
 0x30d   : > { %6810 = vmatprep.mubr.bf16.mxu0 %v17897_v61  ;;  %v16652_v10 = vpop.permute.xlu1 %7616  ;;  %v16654_v23 = vpop.permute.xlu0 %7611  ;;  %12359 = vmatpush3.bf16.msra.mxu0 %v12757_v56 }
 0x30e   : > { %17934 = vst [vmem:[#allocation22_spill] sm:$0xff] %v16652_v10  ;;  %17935 = vst [vmem:[#allocation43_spill] sm:$0xff] %v16654_v23  ;;  %10416 = vperm.xlu1 %12549, %v12162_v46  }
 0x30f   : > { %10012 = vperm.xlu0 %12548, %v12139_v63   ;;  %v12178_v63 = vld [vmem:[%s17584_s3 + $0x8c0] sm:$0xff] }
 0x311   : > { %v16662_v4 = vpop.permute.xlu1 %7636  ;;  %v16664_v18 = vpop.permute.xlu0 %7631 }
 0x312   : > { %17936 = vst [vmem:[#allocation21_spill] sm:$0xff] %v16662_v4  ;;  %17937 = vst [vmem:[#allocation70_spill] sm:$0xff] %v16664_v18  ;;  %9732 = vperm.xlu1 %12549, %v12115_v39   ;;  %v12179_v39 = vld [vmem:[%s17584_s3 + $0x8c8] sm:$0xff] }
 0x313   : > { %9278 = vperm.xlu0 %12548, %v12082_v33   ;;  %6618 = vmatmul.mubr.bf16.gmra.mxu1 %v16196_v50 }
 0x314   : > { %6811 = vmatmul.mubr.bf16.gmra.mxu0 %v16196_v50  ;;  %6627 = vmatprep.mubr.bf16.mxu1 %v17897_v61 }
 0x315   : > { %6820 = vmatprep.mubr.bf16.mxu0 %v17897_v61  ;;  %v16676_v49 = vpop.permute.xlu1 %7945  ;;  %v16678_v36 = vpop.permute.xlu0 %7940 }
 0x316   : > { %17938 = vst [vmem:[#allocation66_spill] sm:$0xff] %v16676_v49  ;;  %17939 = vst [vmem:[#allocation42_spill] sm:$0xff] %v16678_v36  ;;  %10461 = vperm.xlu1 %12549, %v12171_v7   ;;  %v12039_v49 = vld [vmem:[%s17584_s3 + $0x468] sm:$0xff] }
 0x317   : > { %10007 = vperm.xlu0 %12548, %v12138_v48  }
 0x319   : > { %v16686_v56 = vpop.permute.xlu1 %7965  ;;  %v16688_v12 = vpop.permute.xlu0 %7960 }
 0x31a   : > { %10052 = vperm.xlu1 %12549, %v12147_v13  }
 0x31b   : > { %9727 = vperm.xlu0 %12548, %v12114_v6   ;;  %6628 = vmatmul.mubr.bf16.gmra.mxu1 %v16230_v16  ;;  %v12030_v6 = vld [vmem:[%s17584_s3 + $0x420] sm:$0xff] }
 0x31c   : > { %6821 = vmatmul.mubr.bf16.gmra.mxu0 %v16230_v16  ;;  %6637 = vmatprep.mubr.bf16.mxu1 %v17897_v61 }
 0x31d   : > { %6830 = vmatprep.mubr.bf16.mxu0 %v17897_v61  ;;  %v16700_v53 = vpop.permute.xlu1 %7985  ;;  %v16702_v46 = vpop.permute.xlu0 %7980 }
 0x31e   : > { %10047 = vperm.xlu1 %12549, %v12146_v1   ;;  %v12031_v1 = vld [vmem:[%s17584_s3 + $0x428] sm:$0xff] }
 0x31f   : > { %10456 = vperm.xlu0 %12548, %v12170_v45  }
 0x321   : > { %v16710_v33 = vpop.permute.xlu1 %8005  ;;  %v16712_v7 = vpop.permute.xlu0 %8000 }
 0x322   : > { %10496 = vperm.xlu1 %12549, %v12178_v63  }
 0x323   : > { %10501 = vperm.xlu0 %12548, %v12179_v39   ;;  %v6173_v48 = vpop.f32.mrf.mxu1  ;;  %v16714_v13 = vpop.f32.mrf.mxu0  ;;  %6638 = vmatmul.mubr.bf16.gmra.mxu1 %v16259_v20 }
 0x324   : > { %17940 = vst [vmem:[#allocation72_spill] sm:$0xff] %v16714_v13  ;;  %6831 = vmatmul.mubr.bf16.gmra.mxu0 %v16259_v20  ;;  %6647 = vmatprep.mubr.bf16.mxu1 %v17897_v61 }
 0x325   : > { %6840 = vmatprep.mubr.bf16.mxu0 %v17897_v61  ;;  %v16726_v45 = vpop.permute.xlu1 %8025  ;;  %v16728_v63 = vpop.permute.xlu0 %8020 }
 0x326   : > { %v6175_v39 = vpop.f32.mrf.mxu1  ;;  %v16730_v48 = vpop.f32.mrf.mxu0  ;;  %8729 = vperm.xlu1 %12549, %v12030_v6  }
 0x327   : > { %17941 = vst [vmem:[#allocation48_spill] sm:$0xff] %v16730_v48  ;;  %8734 = vperm.xlu0 %12548, %v12031_v1   ;;  %v17945_v19 = vrot.slane %v16730_v48, 7 }
 0x328   : > { %v6177_v36 = vpop.f32.mrf.mxu1  ;;  %v6370_v59 = vpop.f32.mrf.mxu0 }
 0x329   : > { %v16738_v13 = vpop.permute.xlu1 %8045  ;;  %v16740_v25 = vpop.permute.xlu0 %8040  ;;  %v12062_v59 = vld [vmem:[%s17584_s3 + $0x520] sm:$0xff] }
 0x32a   : > { %17942 = vst [vmem:[#allocation27_spill] sm:$0xff] %v16738_v13  ;;  %v6179_v30 = vpop.f32.mrf.mxu1  ;;  %v6372_v39 = vpop.f32.mrf.mxu0  ;;  %8774 = vperm.xlu1 %12549, %v12039_v49  }
 0x32b   : > { %9183 = vperm.xlu0 %12548, %v12063_v15   ;;  %v8261_v1 = vrot.slane %v6372_v39, 7  ;;  %6648 = vmatmul.mubr.bf16.gmra.mxu1 %v16291_v44  ;;  %v7113_v15 = vrot.slane %v6177_v36, 7  ;;  %v12038_v36 = vld [vmem:[%s17584_s3 + $0x460] sm:$0xff] }
 0x32c   : > { %6841 = vmatmul.mubr.bf16.gmra.mxu0 %v16291_v44  ;;  %v6183_v4 = vpop.f32.mrf.mxu1  ;;  %v6376_v30 = vpop.f32.mrf.mxu0  ;;  %6657 = vmatprep.mubr.bf16.mxu1 %v17897_v61 }
 0x32d   : > { %6850 = vmatprep.mubr.bf16.mxu0 %v17897_v61  ;;  %v7115_v49 = vrot.slane %v6183_v4, 7  ;;  %v16753_v39 = vpop.permute.xlu1 %8065  ;;  %v16755_v6 = vpop.permute.xlu0 %8060  ;;  %v8262_v18 = vsel %vm1943_vm0, %v17945_v19, %v8261_v1  ;;  %v12071_v4 = vld [vmem:[%s17584_s3 + $0x568] sm:$0xff]  ;;  %v7817_v1 = vrot.slane %v6376_v30, 1 }
 0x32e   : > { %17943 = vst [vmem:[#allocation44_spill] sm:$0xff] %v16753_v39  ;;  %17944 = vst [vmem:[#allocation75_spill] sm:$0xff] %v16755_v6  ;;  %v6185_v10 = vpop.f32.mrf.mxu1  ;;  %v6378_v27 = vpop.f32.mrf.mxu0  ;;  %9632 = vperm.xlu1 %12549, %v12095_v40  }
 0x32f   : > { %9178 = vperm.xlu0 %12548, %v12062_v59   ;;  %v7116_v23 = vsel %vm1943_vm0, %v7113_v15, %v7115_v49  ;;  %v7653_v8 = vmul.f32 %v16586_v0, %v6185_v10 }
 0x330   : > { %v7397_v48 = vmul.f32 %v16473_v17, %v7116_v23  ;;  %v6187_v39 = vpop.f32.mrf.mxu1  ;;  %v6380_v19 = vpop.f32.mrf.mxu0  ;;  %v12127_v23 = vld [vmem:[%s17584_s3 + $0x728] sm:$0xff] }
 0x331   : > { %v7117_v27 = vrot.slane %v6187_v39, 7  ;;  %v7819_v40 = vrot.slane %v6380_v19, 1  ;;  %v16769_v59 = vpop.permute.xlu1 %8085  ;;  %v16771_v15 = vpop.permute.xlu0 %8080 }
 0x332   : > { %v7717_v0 = vadd.f32 %v7653_v8, %v7397_v48  ;;  %v6189_v10 = vpop.f32.mrf.mxu1  ;;  %v6382_v6 = vpop.f32.mrf.mxu0  ;;  %9223 = vperm.xlu1 %12549, %v12071_v4   ;;  %v12094_v8 = vld [vmem:[%s17584_s3 + $0x620] sm:$0xff] }
 0x333   : > { %8769 = vperm.xlu0 %12548, %v12038_v36   ;;  %v7118_v44 = vsel %vm1943_vm0, %v7115_v49, %v7117_v27  ;;  %v7820_v13 = vsel %vm2649_vm1, %v7817_v1, %v7819_v40  ;;  %v7654_v17 = vmul.f32 %v16584_v14, %v6189_v10  ;;  %6658 = vmatmul.mubr.bf16.gmra.mxu1 %v16320_v51 }
 0x334   : > { %6851 = vmatmul.mubr.bf16.gmra.mxu0 %v16320_v51  ;;  %v8102_v48 = vmul.f32 %v16688_v12, %v7820_v13  ;;  %v7398_v30 = vmul.f32 %v16471_v35, %v7118_v44  ;;  %v6193_v49 = vpop.f32.mrf.mxu1  ;;  %v6386_v39 = vpop.f32.mrf.mxu0  ;;  %6667 = vmatprep.mubr.bf16.mxu1 %v17897_v61  ;;  %v8265_v13 = vrot.slane %v6382_v6, 7 }
 0x335   : > { %6860 = vmatprep.mubr.bf16.mxu0 %v17897_v61  ;;  %v7821_v14 = vrot.slane %v6386_v39, 1  ;;  %v8395_v4 = vpop.permute.xlu1 %8394  ;;  %v16788_v36 = vpop.permute.xlu0 %8389  ;;  %v12070_v49 = vld [vmem:[%s17584_s3 + $0x560] sm:$0xff]  ;;  %v12047_v39 = vld [vmem:[%s17584_s3 + $0x4a8] sm:$0xff] }
 0x336   : > { %v7718_v19 = vadd.f32 %v7654_v17, %v7398_v30  ;;  %v16790_v1 = vmul.f32 %v8395_v4, %v8262_v18  ;;  %v6195_v27 = vpop.f32.mrf.mxu1  ;;  %v6388_v10 = vpop.f32.mrf.mxu0  ;;  %9952 = vperm.xlu1 %12549, %v12127_v23   ;;  %v8166_v12 = vadd.f32 %v8102_v48, %v7717_v0 }
 0x337   : > { %9627 = vperm.xlu0 %12548, %v12094_v8   ;;  %v7822_v44 = vsel %vm2649_vm1, %v7819_v40, %v7821_v14  ;;  %v8267_v35 = vrot.slane %v6388_v10, 7  ;;  %v12103_v27 = vld [vmem:[%s17584_s3 + $0x668] sm:$0xff] }
 0x338   : > { %17946 = vst [vmem:[#allocation26_spill] sm:$0xff] %v16790_v1  ;;  %v8103_v18 = vmul.f32 %v16686_v56, %v7822_v44  ;;  %v6197_v17 = vpop.f32.mrf.mxu1  ;;  %v6390_v30 = vpop.f32.mrf.mxu0  ;;  %v12126_v56 = vld [vmem:[%s17584_s3 + $0x720] sm:$0xff] }
 0x339   : > { %v8415_v4 = vpop.permute.xlu1 %8414  ;;  %v8410_v23 = vpop.permute.xlu0 %8409  ;;  %v8268_v0 = vsel %vm1943_vm0, %v8265_v13, %v8267_v35 }
 0x33a   : > { %v8551_v6 = vmul.f32 %v8410_v23, %v8268_v0  ;;  %v6199_v8 = vpop.f32.mrf.mxu1  ;;  %v6392_v40 = vpop.f32.mrf.mxu0  ;;  %9218 = vperm.xlu1 %12549, %v12070_v49   ;;  %v8167_v48 = vadd.f32 %v8103_v18, %v7718_v19  ;;  %v7121_v19 = vrot.slane %v6197_v17, 7 }
 0x33b   : > { %8814 = vperm.xlu0 %12548, %v12047_v39   ;;  %v8269_v14 = vrot.slane %v6392_v40, 7  ;;  %6668 = vmatmul.mubr.bf16.gmra.mxu1 %v16352_v29  ;;  %v12023_v40 = vld [vmem:[%s17584_s3 + $0x3e8] sm:$0xff] }
 0x33c   : > { %6861 = vmatmul.mubr.bf16.gmra.mxu0 %v16352_v29  ;;  %v16809_v10 = vadd.f32 %v8551_v6, %v8166_v12  ;;  %v6203_v13 = vpop.f32.mrf.mxu1  ;;  %v6396_v44 = vpop.f32.mrf.mxu0  ;;  %6677 = vmatprep.mubr.bf16.mxu1 %v17897_v61 }
 0x33d   : > { %6870 = vmatprep.mubr.bf16.mxu0 %v17897_v61  ;;  %v8270_v49 = vsel %vm1943_vm0, %v8267_v35, %v8269_v14  ;;  %v7123_v39 = vrot.slane %v6203_v13, 7  ;;  %v16814_v18 = vpop.permute.xlu1 %8434  ;;  %v8430_v30 = vpop.permute.xlu0 %8429  ;;  %v12159_v35 = vld [vmem:[%s17584_s3 + $0x828] sm:$0xff] }
 0x33e   : > { %17947 = vst [vmem:[#allocation60_spill] sm:$0xff] %v16809_v10  ;;  %v6205_v23 = vpop.f32.mrf.mxu1  ;;  %v6398_v0 = vpop.f32.mrf.mxu0  ;;  %9947 = vperm.xlu1 %12549, %v12126_v56   ;;  %v8552_v8 = vmul.f32 %v8415_v4, %v8270_v49  ;;  %v7825_v56 = vrot.slane %v6396_v44, 1  ;;  %v12046_v44 = vld [vmem:[%s17584_s3 + $0x4a0] sm:$0xff] }
 0x33f   : > { %9672 = vperm.xlu0 %12548, %v12103_v27   ;;  %v7124_v12 = vsel %vm1943_vm0, %v7121_v19, %v7123_v39  ;;  %v7657_v6 = vmul.f32 %v16603_v34, %v6205_v23 }
 0x340   : > { %v7401_v17 = vmul.f32 %v16487_v43, %v7124_v12  ;;  %v6207_v14 = vpop.f32.mrf.mxu1  ;;  %v6400_v13 = vpop.f32.mrf.mxu0  ;;  %v16825_v0 = vadd.f32 %v8552_v8, %v8167_v48  ;;  %v12079_v48 = vld [vmem:[%s17584_s3 + $0x5a8] sm:$0xff] }
 0x341   : > { %v7125_v4 = vrot.slane %v6207_v14, 7  ;;  %v7827_v27 = vrot.slane %v6400_v13, 1  ;;  %v16827_v19 = vpop.permute.xlu1 %8454  ;;  %v16829_v34 = vpop.permute.xlu0 %8449 }
 0x342   : > { %17948 = vst [vmem:[#allocation29_spill] sm:$0xff] %v16825_v0  ;;  %v7721_v49 = vadd.f32 %v7657_v6, %v7401_v17  ;;  %v6209_v23 = vpop.f32.mrf.mxu1  ;;  %v6402_v10 = vpop.f32.mrf.mxu0  ;;  %8534 = vperm.xlu1 %12549, %v12023_v40  }
 0x343   : > { %10401 = vperm.xlu0 %12548, %v12159_v35   ;;  %v7126_v1 = vsel %vm1943_vm0, %v7123_v39, %v7125_v4  ;;  %v7828_v43 = vsel %vm2649_vm1, %v7825_v56, %v7827_v27  ;;  %v7658_v12 = vmul.f32 %v16601_v3, %v6209_v23  ;;  %6678 = vmatmul.mubr.bf16.gmra.mxu1 %v16384_v57  ;;  %v12135_v23 = vld [vmem:[%s17584_s3 + $0x768] sm:$0xff] }
 0x344   : > { %6871 = vmatmul.mubr.bf16.gmra.mxu0 %v16384_v57  ;;  %v8106_v8 = vmul.f32 %v16702_v46, %v7828_v43  ;;  %v7402_v39 = vmul.f32 %v16485_v62, %v7126_v1  ;;  %v6213_v6 = vpop.f32.mrf.mxu1  ;;  %v6406_v40 = vpop.f32.mrf.mxu0  ;;  %6687 = vmatprep.mubr.bf16.mxu1 %v17897_v61  ;;  %v8273_v46 = vrot.slane %v6402_v10, 7  ;;  %v12102_v43 = vld [vmem:[%s17584_s3 + $0x660] sm:$0xff] }
 0x345   : > { %6880 = vmatprep.mubr.bf16.mxu0 %v17897_v61  ;;  %v7829_v3 = vrot.slane %v6406_v40, 1  ;;  %v16846_v35 = vpop.permute.xlu1 %8474  ;;  %v16848_v17 = vpop.permute.xlu0 %8469 }
 0x346   : > { %v7722_v14 = vadd.f32 %v7658_v12, %v7402_v39  ;;  %v6215_v13 = vpop.f32.mrf.mxu1  ;;  %v6408_v56 = vpop.f32.mrf.mxu0  ;;  %9263 = vperm.xlu1 %12549, %v12079_v48   ;;  %v8170_v4 = vadd.f32 %v8106_v8, %v7721_v49 }
 0x347   : > { %8809 = vperm.xlu0 %12548, %v12046_v44   ;;  %v7830_v62 = vsel %vm2649_vm1, %v7827_v27, %v7829_v3  ;;  %v8275_v1 = vrot.slane %v6408_v56, 7  ;;  %v12158_v13 = vld [vmem:[%s17584_s3 + $0x820] sm:$0xff] }
 0x348   : > { %v8107_v6 = vmul.f32 %v16700_v53, %v7830_v62  ;;  %v6217_v12 = vpop.f32.mrf.mxu1  ;;  %v6410_v39 = vpop.f32.mrf.mxu0  ;;  %v12022_v53 = vld [vmem:[%s17584_s3 + $0x3e0] sm:$0xff] }
 0x349   : > { %v8276_v48 = vsel %vm1943_vm0, %v8273_v46, %v8275_v1  ;;  %v16859_v44 = vpop.permute.xlu1 %8494  ;;  %v16861_v10 = vpop.permute.xlu0 %8489  ;;  %v7129_v46 = vrot.slane %v6217_v12, 7 }
 0x34a   : > { %v8555_v27 = vmul.f32 %v8430_v30, %v8276_v48  ;;  %v6219_v49 = vpop.f32.mrf.mxu1  ;;  %v6412_v8 = vpop.f32.mrf.mxu0  ;;  %9992 = vperm.xlu1 %12549, %v12135_v23   ;;  %v8171_v40 = vadd.f32 %v8107_v6, %v7722_v14 }
 0x34b   : > { %9667 = vperm.xlu0 %12548, %v12102_v43   ;;  %v8277_v3 = vrot.slane %v6412_v8, 7  ;;  %6688 = vmatmul.mubr.bf16.gmra.mxu1 %v16412_v42 }
 0x34c   : > { %6881 = vmatmul.mubr.bf16.gmra.mxu0 %v16412_v42  ;;  %v6223_v56 = vpop.f32.mrf.mxu1  ;;  %v6416_v30 = vpop.f32.mrf.mxu0  ;;  %6697 = vmatprep.mubr.bf16.mxu1 %v17897_v61  ;;  %v16873_v14 = vadd.f32 %v8555_v27, %v8170_v4  ;;  %v12078_v4 = vld [vmem:[%s17584_s3 + $0x5a0] sm:$0xff] }
 0x34d   : > { %6890 = vmatprep.mubr.bf16.mxu0 %v17897_v61  ;;  %v8278_v62 = vsel %vm1943_vm0, %v8275_v1, %v8277_v3  ;;  %v7131_v23 = vrot.slane %v6223_v56, 7  ;;  %v16876_v43 = vpop.permute.xlu1 %8709  ;;  %v16878_v6 = vpop.permute.xlu0 %8714  ;;  %v12055_v1 = vld [vmem:[%s17584_s3 + $0x4e8] sm:$0xff] }
 0x34e   : > { %17949 = vst [vmem:[#allocation51_spill] sm:$0xff] %v16873_v14  ;;  %v6225_v39 = vpop.f32.mrf.mxu1  ;;  %v6418_v48 = vpop.f32.mrf.mxu0  ;;  %8529 = vperm.xlu1 %12549, %v12022_v53   ;;  %v8556_v49 = vmul.f32 %v16814_v18, %v8278_v62 }
 0x34f   : > { %10396 = vperm.xlu0 %12548, %v12158_v13   ;;  %v7132_v8 = vsel %vm1943_vm0, %v7129_v46, %v7131_v23  ;;  %v7661_v0 = vmul.f32 %v16613_v5, %v6225_v39  ;;  %v7833_v13 = vrot.slane %v6416_v30, 1 }
 0x350   : > { %v7405_v12 = vmul.f32 %v16497_v2, %v7132_v8  ;;  %v6227_v27 = vpop.f32.mrf.mxu1  ;;  %v6420_v3 = vpop.f32.mrf.mxu0  ;;  %v16890_v53 = vadd.f32 %v8556_v49, %v8171_v40  ;;  %v12134_v40 = vld [vmem:[%s17584_s3 + $0x760] sm:$0xff] }
 0x351   : > { %v7133_v18 = vrot.slane %v6227_v27, 7  ;;  %v7835_v56 = vrot.slane %v6420_v3, 1  ;;  %v16892_v46 = vpop.permute.xlu1 %8754 }
 0x352   : > { %v16894_v5 = vpop.permute.xlu0 %9163  ;;  %v7725_v62 = vadd.f32 %v7661_v0, %v7405_v12  ;;  %v6229_v39 = vpop.f32.mrf.mxu1  ;;  %9258 = vperm.xlu1 %12549, %v12078_v4   ;;  %v12111_v0 = vld [vmem:[%s17584_s3 + $0x6a8] sm:$0xff] }
 0x353   : > { %v6422_v48 = vpop.f32.mrf.mxu0  ;;  %8854 = vperm.xlu0 %12548, %v12055_v1   ;;  %v7134_v14 = vsel %vm1943_vm0, %v7131_v23, %v7133_v18  ;;  %v7836_v2 = vsel %vm2649_vm1, %v7833_v13, %v7835_v56  ;;  %v7662_v8 = vmul.f32 %v16611_v54, %v6229_v39  ;;  %6698 = vmatmul.mubr.bf16.gmra.mxu1 %v16439_v22  ;;  %v12054_v39 = vld [vmem:[%s17584_s3 + $0x4e0] sm:$0xff] }
 0x354   : > { %6891 = vmatmul.mubr.bf16.gmra.mxu0 %v16439_v22  ;;  %v8110_v30 = vmul.f32 %v16712_v7, %v7836_v2  ;;  %v7406_v23 = vmul.f32 %v16495_v37, %v7134_v14  ;;  %v6233_v49 = vpop.f32.mrf.mxu1  ;;  %6707 = vmatprep.mubr.bf16.mxu1 %v17897_v61  ;;  %v8281_v7 = vrot.slane %v6422_v48, 7 }
 0x355   : > { %v6426_v4 = vpop.f32.mrf.mxu0  ;;  %6900 = vmatprep.mubr.bf16.mxu0 %v17897_v61  ;;  %v16911_v1 = vpop.permute.xlu1 %9612  ;;  %v12167_v61 = vld [vmem:[%s17584_s3 + $0x868] sm:$0xff] }
 0x356   : > { %v7837_v54 = vrot.slane %v6426_v4, 1  ;;  %v16913_v12 = vpop.permute.xlu0 %9158  ;;  %v7726_v27 = vadd.f32 %v7662_v8, %v7406_v23  ;;  %v6235_v3 = vpop.f32.mrf.mxu1  ;;  %9987 = vperm.xlu1 %12549, %v12134_v40   ;;  %v8174_v18 = vadd.f32 %v8110_v30, %v7725_v62 }
 0x357   : > { %v6428_v13 = vpop.f32.mrf.mxu0  ;;  %9712 = vperm.xlu0 %12548, %v12111_v0  }
 0x358   : > { %v7838_v37 = vsel %vm2649_vm1, %v7835_v56, %v7837_v54  ;;  %v8283_v14 = vrot.slane %v6428_v13, 7  ;;  %v6237_v8 = vpop.f32.mrf.mxu1  ;;  %v12087_v54 = vld [vmem:[%s17584_s3 + $0x5e8] sm:$0xff] }
 0x359   : > { %v8111_v2 = vmul.f32 %v16710_v33, %v7838_v37  ;;  %v6430_v23 = vpop.f32.mrf.mxu0  ;;  %v16924_v0 = vpop.permute.xlu1 %9203  ;;  %v12110_v33 = vld [vmem:[%s17584_s3 + $0x6a0] sm:$0xff] }
 0x35a   : > { %v8284_v40 = vsel %vm1943_vm0, %v8281_v7, %v8283_v14  ;;  %v16926_v62 = vpop.permute.xlu0 %8749  ;;  %v6239_v56 = vpop.f32.mrf.mxu1  ;;  %8849 = vperm.xlu1 %12549, %v12054_v39  }
 0x35b   : > { %v6432_v48 = vpop.f32.mrf.mxu0  ;;  %10441 = vperm.xlu0 %12548, %v12167_v61   ;;  %v8559_v30 = vmul.f32 %v16829_v34, %v8284_v40  ;;  %v8175_v49 = vadd.f32 %v8111_v2, %v7726_v27  ;;  %6708 = vmatmul.mubr.bf16.gmra.mxu1 %v16469_v58  ;;  %v7137_v27 = vrot.slane %v6237_v8, 7 }
 0x35c   : > { %v8285_v4 = vrot.slane %v6432_v48, 7  ;;  %6901 = vmatmul.mubr.bf16.gmra.mxu0 %v16469_v58  ;;  %v6243_v3 = vpop.f32.mrf.mxu1  ;;  %12364 = vmatprep.mubr.bf16.mxu1 %v15998_v41 }
 0x35d   : > { %v6436_v13 = vpop.f32.mrf.mxu0  ;;  %12360 = vmatprep.mubr.bf16.mxu0 %v15895_v38  ;;  %v16939_v34 = vadd.f32 %v8559_v30, %v8174_v18  ;;  %v7139_v37 = vrot.slane %v6243_v3, 7  ;;  %v16942_v39 = vpop.permute.xlu1 %9932  ;;  %v12166_v18 = vld [vmem:[%s17584_s3 + $0x860] sm:$0xff] }
 0x35e   : > { %v8286_v7 = vsel %vm1943_vm0, %v8283_v14, %v8285_v4  ;;  %v16944_v61 = vpop.permute.xlu0 %9607  ;;  %v6245_v2 = vpop.f32.mrf.mxu1  ;;  %9707 = vperm.xlu1 %12549, %v12110_v33   ;;  %v12143_v14 = vld [vmem:[%s17584_s3 + $0x7a8] sm:$0xff]  ;;  %v7841_v4 = vrot.slane %v6436_v13, 1  ;;  %v12086_v13 = vld [vmem:[%s17584_s3 + $0x5e0] sm:$0xff] }
 0x35f   : > { %v6438_v23 = vpop.f32.mrf.mxu0  ;;  %9303 = vperm.xlu0 %12548, %v12087_v54   ;;  %v8560_v40 = vmul.f32 %v16827_v19, %v8286_v7  ;;  %v7140_v38 = vsel %vm1943_vm0, %v7137_v27, %v7139_v37  ;;  %v7665_v41 = vmul.f32 %v16630_v32, %v6245_v2 }
 0x360   : > { %v7409_v8 = vmul.f32 %v16514_v55, %v7140_v38  ;;  %v6247_v56 = vpop.f32.mrf.mxu1 }
 0x361   : > { %v6440_v48 = vpop.f32.mrf.mxu0  ;;  %v16956_v30 = vadd.f32 %v8560_v40, %v8175_v49  ;;  %v7141_v19 = vrot.slane %v6247_v56, 7  ;;  %v16958_v54 = vpop.permute.xlu1 %9198  ;;  %v12119_v49 = vld [vmem:[%s17584_s3 + $0x6e8] sm:$0xff] }
 0x362   : > { %v7843_v33 = vrot.slane %v6440_v48, 1  ;;  %v16960_v32 = vpop.permute.xlu0 %8794  ;;  %v7729_v3 = vadd.f32 %v7665_v41, %v7409_v8  ;;  %v6249_v27 = vpop.f32.mrf.mxu1  ;;  %10436 = vperm.xlu1 %12549, %v12166_v18  }
 0x363   : > { %v6442_v7 = vpop.f32.mrf.mxu0  ;;  %10032 = vperm.xlu0 %12548, %v12143_v14   ;;  %v7142_v2 = vsel %vm1943_vm0, %v7139_v37, %v7141_v19  ;;  %v7666_v23 = vmul.f32 %v16628_v52, %v6249_v27  ;;  %12365 = vmatmul.mubr.bf16.vlgmr.msra.gmra.mxu1 %v16049_v47 }
 0x364   : > { %v7844_v55 = vsel %vm2649_vm1, %v7841_v4, %v7843_v33  ;;  %12361 = vmatmul.mubr.bf16.vlgmr.msra.gmra.mxu0 %v15944_v60  ;;  %v7410_v37 = vmul.f32 %v16512_v21, %v7142_v2  ;;  %v6253_v38 = vpop.f32.mrf.mxu1  ;;  %12368 = vmatprep.mubr.bf16.mxu1 %v16105_v9  ;;  %v8289_v48 = vrot.slane %v6442_v7, 7  ;;  %v12175_v21 = vld [vmem:[%s17584_s3 + $0x8a8] sm:$0xff]  ;;  %v12142_v9 = vld [vmem:[%s17584_s3 + $0x7a0] sm:$0xff] }
 0x365   : > { %v8114_v40 = vmul.f32 %v16728_v63, %v7844_v55  ;;  %v6446_v41 = vpop.f32.mrf.mxu0  ;;  %v16976_v60 = vpop.permute.xlu1 %9927 }
 0x366   : > { %v7845_v52 = vrot.slane %v6446_v41, 1  ;;  %v16978_v47 = vpop.permute.xlu0 %9652  ;;  %v7730_v18 = vadd.f32 %v7666_v23, %v7410_v37  ;;  %v6255_v14 = vpop.f32.mrf.mxu1  ;;  %9752 = vperm.xlu1 %12549, %v12119_v49   ;;  %v12118_v37 = vld [vmem:[%s17584_s3 + $0x6e0] sm:$0xff] }
 0x367   : > { %v6448_v8 = vpop.f32.mrf.mxu0  ;;  %9298 = vperm.xlu0 %12548, %v12086_v13   ;;  %v8178_v56 = vadd.f32 %v8114_v40, %v7729_v3 }
 0x368   : > { %v7846_v63 = vsel %vm2649_vm1, %v7843_v33, %v7845_v52  ;;  %v8291_v4 = vrot.slane %v6448_v8, 7  ;;  %v6257_v27 = vpop.f32.mrf.mxu1 }
 0x369   : > { %v8115_v19 = vmul.f32 %v16726_v45, %v7846_v63  ;;  %v6450_v2 = vpop.f32.mrf.mxu0  ;;  %v16989_v23 = vpop.permute.xlu1 %8514  ;;  %v12151_v45 = vld [vmem:[%s17584_s3 + $0x7e8] sm:$0xff]  ;;  %v7145_v52 = vrot.slane %v6257_v27, 7 }
 0x36a   : > { %v8292_v55 = vsel %vm1943_vm0, %v8289_v48, %v8291_v4  ;;  %v16991_v3 = vpop.permute.xlu0 %10381  ;;  %v6259_v7 = vpop.f32.mrf.mxu1  ;;  %10481 = vperm.xlu1 %12549, %v12175_v21  }
 0x36b   : > { %17950 = vst [vmem:[#allocation55_spill] sm:$0xff] %v16991_v3  ;;  %v8563_v33 = vmul.f32 %v16848_v17, %v8292_v55  ;;  %v6452_v49 = vpop.f32.mrf.mxu0  ;;  %10027 = vperm.xlu0 %12548, %v12142_v9   ;;  %v8179_v13 = vadd.f32 %v8115_v19, %v7730_v18  ;;  %12369 = vmatmul.mubr.bf16.gmra.mxu1 %v16159_v11 }
 0x36c   : > { %v8293_v40 = vrot.slane %v6452_v49, 7  ;;  %v6263_v38 = vpop.f32.mrf.mxu1  ;;  %12372 = vmatprep.mubr.bf16.mxu1 %v16196_v50 }
 0x36d   : > { %v6456_v41 = vpop.f32.mrf.mxu0  ;;  %v17002_v17 = vadd.f32 %v8563_v33, %v8178_v56  ;;  %v7147_v14 = vrot.slane %v6263_v38, 7  ;;  %v17005_v8 = vpop.permute.xlu1 %9243  ;;  %v12150_v56 = vld [vmem:[%s17584_s3 + $0x7e0] sm:$0xff] }
 0x36e   : > { %v8294_v18 = vsel %vm1943_vm0, %v8291_v4, %v8293_v40  ;;  %v17007_v11 = vpop.permute.xlu0 %8789  ;;  %v6265_v48 = vpop.f32.mrf.mxu1  ;;  %10072 = vperm.xlu1 %12549, %v12151_v45   ;;  %v12174_v4 = vld [vmem:[%s17584_s3 + $0x8a0] sm:$0xff]  ;;  %v7849_v33 = vrot.slane %v6456_v41, 1  ;;  %v12183_v41 = vld [vmem:[%s17584_s3 + $0x8e8] sm:$0xff] }
 0x36f   : > { %v6458_v63 = vpop.f32.mrf.mxu0  ;;  %9747 = vperm.xlu0 %12548, %v12118_v37   ;;  %v8564_v21 = vmul.f32 %v16846_v35, %v8294_v18  ;;  %v7148_v9 = vsel %vm1943_vm0, %v7145_v52, %v7147_v14  ;;  %v7669_v50 = vmul.f32 %v16640_v26, %v6265_v48 }
 0x370   : > { %v7413_v19 = vmul.f32 %v16529_v31, %v7148_v9  ;;  %v6267_v27 = vpop.f32.mrf.mxu1 }
 0x371   : > { %v6460_v2 = vpop.f32.mrf.mxu0  ;;  %v17019_v55 = vadd.f32 %v8564_v21, %v8179_v13  ;;  %v7149_v35 = vrot.slane %v6267_v27, 7  ;;  %v17021_v49 = vpop.permute.xlu1 %9972  ;;  %v12182_v13 = vld [vmem:[%s17584_s3 + $0x8e0] sm:$0xff] }
 0x372   : > { %v7851_v7 = vrot.slane %v6460_v2, 1  ;;  %v17023_v26 = vpop.permute.xlu0 %9647  ;;  %v7733_v40 = vadd.f32 %v7669_v50, %v7413_v19  ;;  %v6269_v45 = vpop.f32.mrf.mxu1  ;;  %10067 = vperm.xlu1 %12549, %v12150_v56  }
 0x373   : > { %v6462_v37 = vpop.f32.mrf.mxu0  ;;  %10476 = vperm.xlu0 %12548, %v12174_v4   ;;  %v7150_v38 = vsel %vm1943_vm0, %v7147_v14, %v7149_v35  ;;  %v7670_v52 = vmul.f32 %v16638_v24, %v6269_v45  ;;  %12373 = vmatmul.mubr.bf16.gmra.mxu1 %v16230_v16 }
 0x374   : > { %v7852_v31 = vsel %vm2649_vm1, %v7849_v33, %v7851_v7  ;;  %v7414_v48 = vmul.f32 %v16527_v28, %v7150_v38  ;;  %v6273_v63 = vpop.f32.mrf.mxu1  ;;  %12376 = vmatprep.mubr.bf16.mxu1 %v16259_v20  ;;  %v8297_v19 = vrot.slane %v6462_v37, 7  ;;  %v17952_v28 = vld [vmem:[#allocation27_spill] sm:$0xff] }
 0x375   : > { %v8118_v18 = vmul.f32 %v16740_v25, %v7852_v31  ;;  %v6466_v14 = vpop.f32.mrf.mxu0  ;;  %v17038_v24 = vpop.permute.xlu1 %8509  ;;  %v17954_v37 = vld [vmem:[#allocation15_spill] sm:$0xff] }
 0x376   : > { %v7853_v21 = vrot.slane %v6466_v14, 1  ;;  %v17040_v16 = vpop.permute.xlu0 %10376  ;;  %v7734_v9 = vadd.f32 %v7670_v52, %v7414_v48  ;;  %v6275_v50 = vpop.f32.mrf.mxu1  ;;  %10516 = vperm.xlu1 %12549, %v12182_v13  }
 0x377   : > { %17951 = vst [vmem:[#allocation31_spill] sm:$0xff] %v17040_v16  ;;  %v6468_v56 = vpop.f32.mrf.mxu0  ;;  %10521 = vperm.xlu0 %12548, %v12183_v41   ;;  %v8182_v4 = vadd.f32 %v8118_v18, %v7733_v40 }
 0x378   : > { %v7854_v25 = vsel %vm2649_vm1, %v7851_v7, %v7853_v21  ;;  %v8299_v27 = vrot.slane %v6468_v56, 7  ;;  %v6277_v33 = vpop.f32.mrf.mxu1 }
 0x379   : > { %v8119_v2 = vmul.f32 %v17952_v28, %v7854_v25  ;;  %v6470_v35 = vpop.f32.mrf.mxu0  ;;  %v17045_v45 = vpop.permute.xlu1 %9238  ;;  %v7153_v63 = vrot.slane %v6277_v33, 7  ;;  %v17955_v28 = vld [vmem:[#allocation49_spill] sm:$0xff] }
 0x37a   : > { %v8300_v20 = vsel %vm1943_vm0, %v8297_v19, %v8299_v27  ;;  %v17047_v38 = vpop.permute.xlu0 %8834  ;;  %v6279_v52 = vpop.f32.mrf.mxu1  ;;  %v17956_v35 = vld [vmem:[#allocation43_spill] sm:$0xff] }
 0x37b   : > { %17953 = vst [vmem:[#allocation63_spill] sm:$0xff] %v17047_v38  ;;  %v8567_v31 = vmul.f32 %v16861_v10, %v8300_v20  ;;  %v6472_v13 = vpop.f32.mrf.mxu0  ;;  %v8183_v41 = vadd.f32 %v8119_v2, %v7734_v9  ;;  %12377 = vmatmul.mubr.bf16.gmra.mxu1 %v17954_v37 }
 0x37c   : > { %v8301_v40 = vrot.slane %v6472_v13, 7  ;;  %v6283_v7 = vpop.f32.mrf.mxu1  ;;  %12380 = vmatprep.mubr.bf16.mxu1 %v16320_v51 }
 0x37d   : > { %v6476_v18 = vpop.f32.mrf.mxu0  ;;  %v17052_v48 = vadd.f32 %v8567_v31, %v8182_v4  ;;  %v7155_v21 = vrot.slane %v6283_v7, 7  ;;  %v17055_v50 = vpop.permute.xlu1 %9967 }
 0x37e   : > { %v8302_v14 = vsel %vm1943_vm0, %v8299_v27, %v8301_v40  ;;  %v17057_v56 = vpop.permute.xlu0 %9692  ;;  %v6285_v9 = vpop.f32.mrf.mxu1  ;;  %v7857_v27 = vrot.slane %v6476_v18, 1  ;;  %v17961_v18 = vld [vmem:[#allocation22_spill] sm:$0xff] }
 0x37f   : > { %v8568_v10 = vmul.f32 %v16859_v44, %v8302_v14  ;;  %v6478_v19 = vpop.f32.mrf.mxu0  ;;  %v7156_v25 = vsel %vm1943_vm0, %v7153_v63, %v7155_v21  ;;  %v7673_v51 = vmul.f32 %v17956_v35, %v6285_v9  ;;  %v17959_v9 = vld [vmem:[#allocation75_spill] sm:$0xff] }
 0x380   : > { %v7417_v2 = vmul.f32 %v17955_v28, %v7156_v25  ;;  %v6287_v4 = vpop.f32.mrf.mxu1 }
 0x381   : > { %v6480_v20 = vpop.f32.mrf.mxu0  ;;  %v17063_v33 = vadd.f32 %v8568_v10, %v8183_v41  ;;  %v7157_v31 = vrot.slane %v6287_v4, 7  ;;  %v17065_v13 = vpop.permute.xlu1 %8829  ;;  %v17960_v41 = vld [vmem:[#allocation23_spill] sm:$0xff] }
 0x382   : > { %v7859_v52 = vrot.slane %v6480_v20, 1  ;;  %17957 = vst [vmem:[#allocation54_spill] sm:$0xff] %v17065_v13  ;;  %v17067_v40 = vpop.permute.xlu0 %10421  ;;  %v6289_v44 = vpop.f32.mrf.mxu1  ;;  %v7737_v14 = vadd.f32 %v7673_v51, %v7417_v2 }
 0x383   : > { %17958 = vst [vmem:[#allocation17_spill] sm:$0xff] %v17067_v40  ;;  %v6482_v37 = vpop.f32.mrf.mxu0  ;;  %v7158_v7 = vsel %vm1943_vm0, %v7155_v21, %v7157_v31  ;;  %12381 = vmatmul.mubr.bf16.gmra.mxu1 %v16352_v29  ;;  %v7674_v25 = vmul.f32 %v17961_v18, %v6289_v44 }
 0x384   : > { %v7860_v63 = vsel %vm2649_vm1, %v7857_v27, %v7859_v52  ;;  %v7418_v10 = vmul.f32 %v17960_v41, %v7158_v7  ;;  %v6293_v28 = vpop.f32.mrf.mxu1  ;;  %12384 = vmatprep.mubr.bf16.mxu1 %v16384_v57  ;;  %v8305_v29 = vrot.slane %v6482_v37, 7  ;;  %v17963_v7 = vld [vmem:[#allocation44_spill] sm:$0xff] }
 0x385   : > { %v8122_v19 = vmul.f32 %v17959_v9, %v7860_v63  ;;  %v6486_v35 = vpop.f32.mrf.mxu0  ;;  %v17076_v20 = vpop.permute.xlu1 %9687 }
 0x386   : > { %v7861_v4 = vrot.slane %v6486_v35, 1  ;;  %v17078_v40 = vpop.permute.xlu0 %9283  ;;  %v6295_v21 = vpop.f32.mrf.mxu1  ;;  %v7738_v63 = vadd.f32 %v7674_v25, %v7418_v10 }
 0x387   : > { %17962 = vst [vmem:[#allocation64_spill] sm:$0xff] %v17078_v40  ;;  %v6488_v27 = vpop.f32.mrf.mxu0  ;;  %v8186_v31 = vadd.f32 %v8122_v19, %v7737_v14  ;;  %v17984_v40 = vld [vmem:[#allocation42_spill] sm:$0xff] }
 0x388   : > { %v7862_v2 = vsel %vm2649_vm1, %v7859_v52, %v7861_v4  ;;  %v8307_v51 = vrot.slane %v6488_v27, 7  ;;  %v6297_v44 = vpop.f32.mrf.mxu1 }
 0x389   : > { %v8123_v9 = vmul.f32 %v17963_v7, %v7862_v2  ;;  %v6490_v41 = vpop.f32.mrf.mxu0  ;;  %v17083_v57 = vpop.permute.xlu1 %10416  ;;  %v7161_v25 = vrot.slane %v6297_v44, 7  ;;  %v17968_v7 = vld [vmem:[#allocation70_spill] sm:$0xff] }
 0x38a   : > { %v8308_v18 = vsel %vm1943_vm0, %v8305_v29, %v8307_v51  ;;  %17964 = vst [vmem:[#allocation58_spill] sm:$0xff] %v17083_v57  ;;  %v17085_v28 = vpop.permute.xlu0 %10012  ;;  %v6299_v21 = vpop.f32.mrf.mxu1  ;;  %v17969_v41 = vld [vmem:[#allocation19_spill] sm:$0xff] }
 0x38b   : > { %v8571_v35 = vmul.f32 %v17038_v24, %v8308_v18  ;;  %v6492_v3 = vpop.f32.mrf.mxu0  ;;  %v8187_v14 = vadd.f32 %v8123_v9, %v7738_v63  ;;  %12385 = vmatmul.mubr.bf16.gmra.mxu1 %v16412_v42 }
 0x38c   : > { %v8309_v37 = vrot.slane %v6492_v3, 7  ;;  %v6303_v52 = vpop.f32.mrf.mxu1  ;;  %12388 = vmatprep.mubr.bf16.mxu1 %v16439_v22 }
 0x38d   : > { %v6496_v19 = vpop.f32.mrf.mxu0  ;;  %v17090_v10 = vadd.f32 %v8571_v35, %v8186_v31  ;;  %v7163_v27 = vrot.slane %v6303_v52, 7  ;;  %v17093_v29 = vpop.permute.xlu1 %9732 }
 0x38e   : > { %v8310_v4 = vsel %vm1943_vm0, %v8307_v51, %v8309_v37  ;;  %17966 = vst [vmem:[#allocation57_spill] sm:$0xff] %v17093_v29  ;;  %v17095_v2 = vpop.permute.xlu0 %9278  ;;  %v6305_v63 = vpop.f32.mrf.mxu1  ;;  %v7865_v51 = vrot.slane %v6496_v19, 1  ;;  %v17973_v19 = vld [vmem:[#allocation20_spill] sm:$0xff] }
 0x38f   : > { %17965 = vst [vmem:[#allocation36_spill] sm:$0xff] %v17090_v10  ;;  %17967 = vst [vmem:[#allocation18_spill] sm:$0xff] %v17095_v2  ;;  %v8572_v24 = vmul.f32 %v16989_v23, %v8310_v4  ;;  %v6498_v3 = vpop.f32.mrf.mxu0  ;;  %v7164_v42 = vsel %vm1943_vm0, %v7161_v25, %v7163_v27  ;;  %v7677_v9 = vmul.f32 %v17968_v7, %v6305_v63  ;;  %v17972_v7 = vld [vmem:[#allocation21_spill] sm:$0xff] }
 0x390   : > { %v7421_v22 = vmul.f32 %v17969_v41, %v7164_v42  ;;  %v6307_v31 = vpop.f32.mrf.mxu1 }
 0x391   : > { %v6500_v18 = vpop.f32.mrf.mxu0  ;;  %v17101_v44 = vadd.f32 %v8572_v24, %v8187_v14  ;;  %v7165_v35 = vrot.slane %v6307_v31, 7  ;;  %v17103_v37 = vpop.permute.xlu1 %10461 }
 0x392   : > { %v7867_v21 = vrot.slane %v6500_v18, 1  ;;  %17971 = vst [vmem:[#allocation39_spill] sm:$0xff] %v17103_v37  ;;  %v17105_v52 = vpop.permute.xlu0 %10007  ;;  %v7741_v23 = vadd.f32 %v7677_v9, %v7421_v22  ;;  %v6309_v4 = vpop.f32.mrf.mxu1 }
 0x393   : > { %17970 = vst [vmem:[#allocation13_spill] sm:$0xff] %v17101_v44  ;;  %v6502_v3 = vpop.f32.mrf.mxu0  ;;  %v7166_v25 = vsel %vm1943_vm0, %v7163_v27, %v7165_v35  ;;  %v7678_v42 = vmul.f32 %v17972_v7, %v6309_v4  ;;  %12389 = vmatmul.mubr.bf16.gmra.mxu1 %v16469_v58 }
 0x394   : > { %v7868_v63 = vsel %vm2649_vm1, %v7865_v51, %v7867_v21  ;;  %v7422_v24 = vmul.f32 %v17973_v19, %v7166_v25  ;;  %v6313_v41 = vpop.f32.mrf.mxu1  ;;  %v8313_v51 = vrot.slane %v6502_v3, 7 }
 0x395   : > { %v8126_v14 = vmul.f32 %v16771_v15, %v7868_v63  ;;  %v6506_v31 = vpop.f32.mrf.mxu0  ;;  %v17113_v37 = vpop.permute.xlu1 %10052 }
 0x396   : > { %v7869_v18 = vrot.slane %v6506_v31, 1  ;;  %17974 = vst [vmem:[#allocation71_spill] sm:$0xff] %v17113_v37  ;;  %v17115_v9 = vpop.permute.xlu0 %9727  ;;  %v7742_v22 = vadd.f32 %v7678_v42, %v7422_v24  ;;  %v6315_v57 = vpop.f32.mrf.mxu1  ;;  %v17982_v37 = vld [vmem:[#allocation72_spill] sm:$0xff] }
 0x397   : > { %17975 = vst [vmem:[#allocation67_spill] sm:$0xff] %v17115_v9  ;;  %v6508_v27 = vpop.f32.mrf.mxu0  ;;  %v17117_v35 = vadd.f32 %v8126_v14, %v7741_v23 }
 0x398   : > { %v7870_v4 = vsel %vm2649_vm1, %v7867_v21, %v7869_v18  ;;  %v8315_v58 = vrot.slane %v6508_v27, 7  ;;  %v6317_v63 = vpop.f32.mrf.mxu1 }
 0x399   : > { %v8127_v15 = vmul.f32 %v16769_v59, %v7870_v4  ;;  %v6510_v25 = vpop.f32.mrf.mxu0  ;;  %v17121_v7 = vpop.permute.xlu1 %10047  ;;  %v7075_v21 = vrot.slane %v6317_v63, 7  ;;  %v7814_v63 = vrot.slane %v17982_v37, 1 }
 0x39a   : > { %17976 = vst [vmem:[#allocation74_spill] sm:$0xff] %v17121_v7  ;;  %v17123_v19 = vpop.permute.xlu0 %10456  ;;  %v17126_v41 = vsel %vm1943_vm0, %v8313_v51, %v8315_v58  ;;  %v6319_v42 = vpop.f32.mrf.mxu1 }
 0x39b   : > { %17977 = vst [vmem:[#allocation82_spill] sm:$0xff] %v17123_v19  ;;  %v6512_v57 = vpop.f32.mrf.mxu0  ;;  %v17128_v24 = vadd.f32 %v8127_v15, %v7742_v22  ;;  %v17980_v42 = vld [vmem:[#allocation24_spill] sm:$0xff] }
 0x39c   : > { %v8317_v23 = vrot.slane %v6512_v57, 7  ;;  %v6323_v3 = vpop.f32.mrf.mxu1  ;;  %v17981_v22 = vld [vmem:[#allocation16_spill] sm:$0xff] }
 0x39d   : > { %v6516_v14 = vpop.f32.mrf.mxu0  ;;  %v7076_v31 = vrot.slane %v6323_v3, 7  ;;  %v17130_v18 = vpop.permute.xlu1 %10496 }
 0x39e   : > { %17978 = vst [vmem:[#allocation45_spill] sm:$0xff] %v17130_v18  ;;  %v17132_v59 = vpop.permute.xlu0 %10501  ;;  %v17135_v27 = vsel %vm1943_vm0, %v8315_v58, %v8317_v23  ;;  %v6325_v4 = vpop.f32.mrf.mxu1  ;;  %v7779_v3 = vrot.slane %v6516_v14, 1  ;;  %v17985_v14 = vld [vmem:[#allocation59_spill] sm:$0xff] }
 0x39f   : > { %17979 = vst [vmem:[#allocation40_spill] sm:$0xff] %v17132_v59  ;;  %v6518_v25 = vpop.f32.mrf.mxu0  ;;  %v7077_v51 = vsel %vm1943_vm0, %v7075_v21, %v7076_v31  ;;  %v7649_v19 = vmul.f32 %v17980_v42, %v6325_v4  ;;  %v17983_v42 = vld [vmem:[#allocation68_spill] sm:$0xff] }
 0x3a0   : > { %v7393_v15 = vmul.f32 %v17981_v22, %v7077_v51  ;;  %v6327_v57 = vpop.f32.mrf.mxu1 }
 0x3a1   : > { %v6520_v16 = vpop.f32.mrf.mxu0  ;;  %v7078_v29 = vrot.slane %v6327_v57, 7  ;;  %v17141_v7 = vpop.permute.xlu1 %8729 }
 0x3a2   : > { %v7780_v18 = vrot.slane %v6520_v16, 1  ;;  %v17143_v59 = vpop.permute.xlu0 %8734  ;;  %v7713_v58 = vadd.f32 %v7649_v19, %v7393_v15  ;;  %v6329_v23 = vpop.f32.mrf.mxu1  ;;  %v17986_v15 = vld [vmem:[#allocation66_spill] sm:$0xff] }
 0x3a3   : > { %v6522_v25 = vpop.f32.mrf.mxu0  ;;  %v7079_v21 = vsel %vm1943_vm0, %v7076_v31, %v7078_v29  ;;  %v7650_v22 = vmul.f32 %v17983_v42, %v6329_v23  ;;  %v17987_v31 = vld [vmem:[#allocation48_spill] sm:$0xff] }
 0x3a4   : > { %v7781_v4 = vsel %vm2649_vm1, %v7779_v3, %v7780_v18  ;;  %v7905_v51 = vsel %vm2649_vm1, %v7780_v18, %v7814_v63  ;;  %v7394_v57 = vmul.f32 %v17985_v14, %v7079_v21  ;;  %v8227_v16 = vrot.slane %v6522_v25, 7  ;;  %v6559_v9 = vpop.f32.mrf.mxu1 }
 0x3a5   : > { %v8098_v37 = vmul.f32 %v17984_v40, %v7781_v4  ;;  %v6752_v2 = vpop.f32.mrf.mxu0  ;;  %v17151_v44 = vpop.permute.xlu1 %8774  ;;  %v8099_v38 = vmul.f32 %v17986_v15, %v7905_v51  ;;  %v17988_v3 = vrot.slane %v17987_v31, 7  ;;  %v8867_v14 = vmul.f32 %v16876_v43, %v6559_v9 }
 0x3a6   : > { %v17153_v19 = vpop.permute.xlu0 %9183  ;;  %v7714_v29 = vadd.f32 %v7650_v22, %v7394_v57  ;;  %v6561_v23 = vpop.f32.mrf.mxu1  ;;  %v17989_v22 = vld [vmem:[#allocation26_spill] sm:$0xff] }
 0x3a7   : > { %v8354_v18 = vsel %vm1943_vm0, %v8227_v16, %v17988_v3  ;;  %v8162_v63 = vadd.f32 %v8098_v37, %v7713_v58  ;;  %v6754_v42 = vpop.f32.mrf.mxu0  ;;  %v9027_v15 = vrot.slane %v6561_v23, 1 }
 0x3a8   : > { %v8547_v40 = vmul.f32 %v16788_v36, %v8354_v18  ;;  %v8163_v21 = vadd.f32 %v8099_v38, %v7714_v29  ;;  %v6563_v25 = vpop.f32.mrf.mxu1 }
 0x3a9   : > { %v6756_v4 = vpop.f32.mrf.mxu0  ;;  %v8868_v10 = vmul.f32 %v16878_v6, %v6563_v25  ;;  %v17162_v13 = vpop.permute.xlu1 %9632 }
 0x3aa   : > { %v8611_v2 = vadd.f32 %v8547_v40, %v8162_v63  ;;  %v17164_v51 = vpop.permute.xlu0 %9178  ;;  %v8612_v57 = vadd.f32 %v17989_v22, %v8163_v21  ;;  %v6565_v16 = vpop.f32.mrf.mxu1  ;;  %v9475_v3 = vrot.slane %v6756_v4, 7 }
 0x3ab   : > { %v6758_v58 = vpop.f32.mrf.mxu0  ;;  %v9028_v31 = vrot.slane %v6565_v16, 1 }
 0x3ac   : > { %v8931_v37 = vadd.f32 %v8867_v14, %v8611_v2  ;;  %v8932_v36 = vadd.f32 %v8868_v10, %v8612_v57  ;;  %v6569_v38 = vpop.f32.mrf.mxu1 }
 0x3ad   : > { %v6762_v29 = vpop.f32.mrf.mxu0  ;;  %v9029_v18 = vsel %vm2649_vm1, %v9027_v15, %v9028_v31  ;;  %v17168_v9 = vpop.permute.xlu1 %9223 }
 0x3ae   : > { %v9476_v43 = vrot.slane %v6762_v29, 7  ;;  %v17170_v6 = vpop.permute.xlu0 %8769  ;;  %v9316_v63 = vmul.f32 %v16913_v12, %v9029_v18  ;;  %v6571_v42 = vpop.f32.mrf.mxu1 }
 0x3af   : > { %v6764_v40 = vpop.f32.mrf.mxu0  ;;  %v9030_v25 = vrot.slane %v6571_v42, 1 }
 0x3b0   : > { %v9477_v21 = vsel %vm1943_vm0, %v9475_v3, %v9476_v43  ;;  %v9380_v10 = vadd.f32 %v9316_v63, %v8931_v37  ;;  %v6573_v2 = vpop.f32.mrf.mxu1  ;;  %v10085_v12 = vmul.f32 %v16976_v60, %v6764_v40 }
 0x3b1   : > { %v9765_v23 = vmul.f32 %v16944_v61, %v9477_v21  ;;  %v6766_v14 = vpop.f32.mrf.mxu0  ;;  %v9031_v4 = vsel %vm2649_vm1, %v9028_v31, %v9030_v25  ;;  %v17176_v57 = vpop.permute.xlu1 %9952 }
 0x3b2   : > { %v9478_v22 = vrot.slane %v6766_v14, 7  ;;  %v9317_v16 = vmul.f32 %v16894_v5, %v9031_v4  ;;  %v6575_v15 = vpop.f32.mrf.mxu1  ;;  %v9628_v3 = vpop.permute.xlu0 %9627 }
 0x3b3   : > { %v9829_v58 = vadd.f32 %v9765_v23, %v9380_v10  ;;  %v6768_v38 = vpop.f32.mrf.mxu0  ;;  %v17990_v23 = vld [vmem:[#allocation60_spill] sm:$0xff] }
 0x3b4   : > { %v9479_v29 = vsel %vm1943_vm0, %v9476_v43, %v9478_v22  ;;  %v9381_v37 = vadd.f32 %v9317_v16, %v8932_v36  ;;  %v6579_v63 = vpop.f32.mrf.mxu1  ;;  %v10086_v25 = vmul.f32 %v16942_v39, %v6768_v38  ;;  %v12830_v43 = vmov 0.0  }
 0x3b5   : > { %v17181_v18 = vadd.f32 %v10085_v12, %v9829_v58  ;;  %v9766_v61 = vmul.f32 %v16911_v1, %v9479_v29  ;;  %v6772_v31 = vpop.f32.mrf.mxu0  ;;  %v8871_v42 = vmul.f32 %v17141_v7, %v6579_v63  ;;  %v17185_v21 = vpop.permute.xlu1 %9218  ;;  %12392 = vmatprep.subr.mxu0 %v12830_v43  ;;  %12399 = vmatprep.subr.mxu1 %v12830_v43  ;;  %v17991_v58 = vld [vmem:[#allocation29_spill] sm:$0xff] }
 0x3b6   : > { %v6581_v60 = vpop.f32.mrf.mxu1  ;;  %v17193_v14 = vpop.permute.xlu0 %8814  ;;  %12396 = vmatprep.mubr.msk.f32.mxu0 %vm12831_vm6, %v12830_v43  ;;  %12403 = vmatprep.mubr.msk.f32.mxu1 %vm12831_vm6, %v12830_v43 }
 0x3b7   : > { %v9830_v5 = vadd.f32 %v9766_v61, %v9381_v37  ;;  %v6774_v40 = vpop.f32.mrf.mxu0  ;;  %v8935_v10 = vadd.f32 %v8871_v42, %v17990_v23  ;;  %v9034_v16 = vrot.slane %v6581_v60, 1 }
 0x3b8   : > { %v6583_v36 = vpop.f32.mrf.mxu1 }
 0x3b9   : > { %v17191_v1 = vadd.f32 %v10086_v25, %v9830_v5  ;;  %v6776_v2 = vpop.f32.mrf.mxu0  ;;  %v8872_v7 = vmul.f32 %v17143_v59, %v6583_v36  ;;  %v9948_v4 = vpop.permute.xlu1 %9947 }
 0x3ba   : > { %v6585_v22 = vpop.f32.mrf.mxu1  ;;  %v9482_v61 = vrot.slane %v6776_v2, 7  ;;  %v17200_v40 = vpop.permute.xlu0 %9672 }
 0x3bb   : > { %v6778_v39 = vpop.f32.mrf.mxu0  ;;  %v8936_v12 = vadd.f32 %v8872_v7, %v17991_v58  ;;  %v9036_v15 = vrot.slane %v6585_v22, 1 }
 0x3bc   : > { %v6589_v38 = vpop.f32.mrf.mxu1 }
 0x3bd   : > { %v6782_v29 = vpop.f32.mrf.mxu0  ;;  %v9037_v37 = vsel %vm2649_vm1, %v9034_v16, %v9036_v15  ;;  %v8535_v31 = vpop.permute.xlu1 %8534 }
 0x3be   : > { %v9484_v63 = vrot.slane %v6782_v29, 7  ;;  %v9320_v42 = vmul.f32 %v17164_v51, %v9037_v37  ;;  %v8576_v5 = vmul.f32 %v8535_v31, %v17135_v27  ;;  %v6591_v25 = vpop.f32.mrf.mxu1 }
 0x3bf   : > { %v6784_v59 = vpop.f32.mrf.mxu0  ;;  %v9038_v23 = vrot.slane %v6591_v25, 1  ;;  %v17214_v25 = vpop.permute.xlu0 %10401 }
 0x3c0   : > { %v9485_v60 = vsel %vm1943_vm0, %v9482_v61, %v9484_v63  ;;  %v17204_v7 = vadd.f32 %v8576_v5, %v17128_v24  ;;  %v9384_v2 = vadd.f32 %v9320_v42, %v8935_v10  ;;  %v6593_v22 = vpop.f32.mrf.mxu1  ;;  %v10089_v29 = vmul.f32 %v9948_v4, %v6784_v59 }
 0x3c1   : > { %v9769_v36 = vmul.f32 %v9628_v3, %v9485_v60  ;;  %v6786_v39 = vpop.f32.mrf.mxu0  ;;  %v9039_v16 = vsel %vm2649_vm1, %v9036_v15, %v9038_v23  ;;  %v17207_v51 = vpop.permute.xlu1 %9263 }
 0x3c2   : > { %v9486_v58 = vrot.slane %v6786_v39, 7  ;;  %v9321_v27 = vmul.f32 %v17153_v19, %v9039_v16  ;;  %v6595_v37 = vpop.f32.mrf.mxu1 }
 0x3c3   : > { %v9833_v38 = vadd.f32 %v9769_v36, %v9384_v2  ;;  %v6788_v31 = vpop.f32.mrf.mxu0 }
 0x3c4   : > { %v9487_v61 = vsel %vm1943_vm0, %v9484_v63, %v9486_v58  ;;  %v9385_v10 = vadd.f32 %v9321_v27, %v8936_v12  ;;  %v6599_v42 = vpop.f32.mrf.mxu1  ;;  %v10090_v4 = vmul.f32 %v17176_v57, %v6788_v31  ;;  %v17992_v63 = vld [vmem:[#allocation51_spill] sm:$0xff]  ;;  %v17229_v27 = vpop.permute.xlu0 %8809 }
 0x3c5   : > { %v17211_v3 = vadd.f32 %v10089_v29, %v9833_v38  ;;  %v9770_v24 = vmul.f32 %v17162_v13, %v9487_v61  ;;  %v6792_v5 = vpop.f32.mrf.mxu0  ;;  %v8875_v15 = vmul.f32 %v16926_v62, %v6599_v42  ;;  %v17217_v60 = vpop.permute.xlu1 %9992 }
 0x3c6   : > { %v6601_v13 = vpop.f32.mrf.mxu1 }
 0x3c7   : > { %v9834_v19 = vadd.f32 %v9770_v24, %v9385_v10  ;;  %v6794_v12 = vpop.f32.mrf.mxu0  ;;  %v8939_v59 = vadd.f32 %v8875_v15, %v17992_v63  ;;  %v9042_v38 = vrot.slane %v6601_v13, 1 }
 0x3c8   : > { %v6603_v36 = vpop.f32.mrf.mxu1 }
 0x3c9   : > { %v17225_v23 = vadd.f32 %v10090_v4, %v9834_v19  ;;  %v6796_v62 = vpop.f32.mrf.mxu0  ;;  %v8876_v2 = vmul.f32 %v16892_v46, %v6603_v36  ;;  %v8530_v22 = vpop.permute.xlu1 %8529 }
 0x3ca   : > { %v8575_v39 = vmul.f32 %v8530_v22, %v17126_v41  ;;  %v6605_v16 = vpop.f32.mrf.mxu1  ;;  %v9490_v24 = vrot.slane %v6796_v62, 7 }
 0x3cb   : > { %v6798_v58 = vpop.f32.mrf.mxu0  ;;  %v8940_v57 = vadd.f32 %v8876_v2, %v16890_v53  ;;  %v9044_v29 = vrot.slane %v6605_v16, 1 }
 0x3cc   : > { %v17233_v37 = vadd.f32 %v8575_v39, %v17117_v35  ;;  %v6609_v31 = vpop.f32.mrf.mxu1  ;;  %v9668_v35 = vpop.permute.xlu0 %9667 }
 0x3cd   : > { %v6802_v61 = vpop.f32.mrf.mxu0  ;;  %v9045_v10 = vsel %vm2649_vm1, %v9042_v38, %v9044_v29 }
 0x3ce   : > { %v9492_v46 = vrot.slane %v6802_v61, 7  ;;  %v9324_v42 = vmul.f32 %v16958_v54, %v9045_v10  ;;  %v6611_v41 = vpop.f32.mrf.mxu1 }
 0x3cf   : > { %v6804_v5 = vpop.f32.mrf.mxu0  ;;  %v9046_v19 = vrot.slane %v6611_v41, 1 }
 0x3d0   : > { %v9493_v15 = vsel %vm1943_vm0, %v9490_v24, %v9492_v46  ;;  %v9388_v53 = vadd.f32 %v9324_v42, %v8939_v59  ;;  %v6613_v13 = vpop.f32.mrf.mxu1  ;;  %v10093_v22 = vmul.f32 %v17055_v50, %v6804_v5  ;;  %v17248_v42 = vpop.permute.xlu0 %10396 }
 0x3d1   : > { %v9773_v4 = vmul.f32 %v17023_v26, %v9493_v15  ;;  %v6806_v12 = vpop.f32.mrf.mxu0  ;;  %v9047_v63 = vsel %vm2649_vm1, %v9044_v29, %v9046_v19  ;;  %v17254_v19 = vpop.permute.xlu1 %9258 }
 0x3d2   : > { %v9494_v36 = vrot.slane %v6806_v12, 7  ;;  %v9325_v62 = vmul.f32 %v16924_v0, %v9047_v63  ;;  %v6615_v54 = vpop.f32.mrf.mxu1 }
 0x3d3   : > { %v9837_v2 = vadd.f32 %v9773_v4, %v9388_v53  ;;  %v6808_v39 = vpop.f32.mrf.mxu0 }
 0x3d4   : > { %v9495_v16 = vsel %vm1943_vm0, %v9492_v46, %v9494_v36  ;;  %v9389_v59 = vadd.f32 %v9325_v62, %v8940_v57  ;;  %v6619_v38 = vpop.f32.mrf.mxu1  ;;  %v10094_v24 = vmul.f32 %v17021_v49, %v6808_v39  ;;  %v17257_v12 = vpop.permute.xlu0 %8854 }
 0x3d5   : > { %v17243_v58 = vadd.f32 %v10093_v22, %v9837_v2  ;;  %v9774_v26 = vmul.f32 %v16978_v47, %v9495_v16  ;;  %v6812_v31 = vpop.f32.mrf.mxu0  ;;  %v8879_v61 = vmul.f32 %v17170_v6, %v6619_v38 }
 0x3d6   : > { %v6621_v0 = vpop.f32.mrf.mxu1 }
 0x3d7   : > { %v9838_v29 = vadd.f32 %v9774_v26, %v9389_v59  ;;  %v6814_v10 = vpop.f32.mrf.mxu0  ;;  %v8943_v50 = vadd.f32 %v8879_v61, %v16939_v34  ;;  %v9050_v6 = vrot.slane %v6621_v0, 1  ;;  %v9988_v59 = vpop.permute.xlu1 %9987 }
 0x3d8   : > { %v6623_v46 = vpop.f32.mrf.mxu1 }
 0x3d9   : > { %v17251_v41 = vadd.f32 %v10094_v24, %v9838_v29  ;;  %v6816_v5 = vpop.f32.mrf.mxu0  ;;  %v8880_v47 = vmul.f32 %v17151_v44, %v6623_v46 }
 0x3da   : > { %v6625_v57 = vpop.f32.mrf.mxu1  ;;  %v9498_v63 = vrot.slane %v6816_v5, 7 }
 0x3db   : > { %v6818_v15 = vpop.f32.mrf.mxu0  ;;  %v8944_v4 = vadd.f32 %v8880_v47, %v16956_v30  ;;  %v9052_v49 = vrot.slane %v6625_v57, 1 }
 0x3dc   : > { %v6629_v53 = vpop.f32.mrf.mxu1 }
 0x3dd   : > { %v6822_v13 = vpop.f32.mrf.mxu0  ;;  %v9053_v34 = vsel %vm2649_vm1, %v9050_v6, %v9052_v49 }
 0x3de   : > { %v9500_v36 = vrot.slane %v6822_v13, 7  ;;  %v9328_v62 = vmul.f32 %v17185_v21, %v9053_v34  ;;  %v6631_v2 = vpop.f32.mrf.mxu1  ;;  %v17264_v21 = vpop.permute.xlu0 %9712 }
 0x3df   : > { %v6824_v44 = vpop.f32.mrf.mxu0  ;;  %v9054_v54 = vrot.slane %v6631_v2, 1 }
 0x3e0   : > { %v9501_v22 = vsel %vm1943_vm0, %v9498_v63, %v9500_v36  ;;  %v9392_v16 = vadd.f32 %v9328_v62, %v8943_v50  ;;  %v6633_v26 = vpop.f32.mrf.mxu1  ;;  %v10097_v24 = vmul.f32 %v9988_v59, %v6824_v44 }
 0x3e1   : > { %v9777_v39 = vmul.f32 %v9668_v35, %v9501_v22  ;;  %v6826_v30 = vpop.f32.mrf.mxu0  ;;  %v9055_v38 = vsel %vm2649_vm1, %v9052_v49, %v9054_v54 }
 0x3e2   : > { %v9502_v31 = vrot.slane %v6826_v30, 7  ;;  %v9329_v61 = vmul.f32 %v17168_v9, %v9055_v38  ;;  %v6635_v0 = vpop.f32.mrf.mxu1  ;;  %v17275_v62 = vpop.permute.xlu0 %10441 }
 0x3e3   : > { %v9841_v29 = vadd.f32 %v9777_v39, %v9392_v16  ;;  %v6828_v10 = vpop.f32.mrf.mxu0 }
 0x3e4   : > { %v9503_v46 = vsel %vm1943_vm0, %v9500_v36, %v9502_v31  ;;  %v9393_v50 = vadd.f32 %v9329_v61, %v8944_v4  ;;  %v6639_v47 = vpop.f32.mrf.mxu1  ;;  %v10098_v9 = vmul.f32 %v17217_v60, %v6828_v10 }
 0x3e5   : > { %v17267_v5 = vadd.f32 %v10097_v24, %v9841_v29  ;;  %v9778_v35 = vmul.f32 %v17200_v40, %v9503_v46  ;;  %v6832_v57 = vpop.f32.mrf.mxu0  ;;  %v8883_v15 = vmul.f32 %v17007_v11, %v6639_v47 }
 0x3e6   : > { %v6641_v49 = vpop.f32.mrf.mxu1  ;;  %v17281_v38 = vpop.permute.xlu0 %9303 }
 0x3e7   : > { %v9842_v6 = vadd.f32 %v9778_v35, %v9393_v50  ;;  %v6834_v53 = vpop.f32.mrf.mxu0  ;;  %v8947_v13 = vadd.f32 %v8883_v15, %v17002_v17  ;;  %v9058_v44 = vrot.slane %v6641_v49, 1 }
 0x3e8   : > { %v6643_v34 = vpop.f32.mrf.mxu1 }
 0x3e9   : > { %v17273_v63 = vadd.f32 %v10098_v9, %v9842_v6  ;;  %v6836_v36 = vpop.f32.mrf.mxu0  ;;  %v8884_v40 = vmul.f32 %v16960_v32, %v6643_v34 }
 0x3ea   : > { %v6645_v4 = vpop.f32.mrf.mxu1  ;;  %v9506_v39 = vrot.slane %v6836_v36, 7  ;;  %v10033_v53 = vpop.permute.xlu0 %10032 }
 0x3eb   : > { %v6838_v2 = vpop.f32.mrf.mxu0  ;;  %v8948_v11 = vadd.f32 %v8884_v40, %v17019_v55  ;;  %v9060_v22 = vrot.slane %v6645_v4, 1 }
 0x3ec   : > { %v6649_v54 = vpop.f32.mrf.mxu1 }
 0x3ed   : > { %v6842_v60 = vpop.f32.mrf.mxu0  ;;  %v9061_v16 = vsel %vm2649_vm1, %v9058_v44, %v9060_v22 }
 0x3ee   : > { %v9508_v17 = vrot.slane %v6842_v60, 7  ;;  %v9332_v26 = vmul.f32 %v17045_v45, %v9061_v16  ;;  %v6651_v30 = vpop.f32.mrf.mxu1  ;;  %v17300_v60 = vpop.permute.xlu0 %9298 }
 0x3ef   : > { %v6844_v59 = vpop.f32.mrf.mxu0  ;;  %v9062_v31 = vrot.slane %v6651_v30, 1 }
 0x3f0   : > { %v9509_v32 = vsel %vm1943_vm0, %v9506_v39, %v9508_v17  ;;  %v9396_v29 = vadd.f32 %v9332_v26, %v8947_v13  ;;  %v6653_v55 = vpop.f32.mrf.mxu1  ;;  %v10101_v45 = vmul.f32 %v17105_v52, %v6844_v59 }
 0x3f1   : > { %v9781_v61 = vmul.f32 %v17076_v20, %v9509_v32  ;;  %v6846_v24 = vpop.f32.mrf.mxu0  ;;  %v9063_v0 = vsel %vm2649_vm1, %v9060_v22, %v9062_v31  ;;  %v17297_v22 = vpop.permute.xlu1 %8849 }
 0x3f2   : > { %v9510_v10 = vrot.slane %v6846_v24, 7  ;;  %v9333_v46 = vmul.f32 %v17005_v8, %v9063_v0  ;;  %v6655_v50 = vpop.f32.mrf.mxu1 }
 0x3f3   : > { %v9845_v35 = vadd.f32 %v9781_v61, %v9396_v29  ;;  %v6848_v47 = vpop.f32.mrf.mxu0 }
 0x3f4   : > { %v9511_v57 = vsel %vm1943_vm0, %v9508_v17, %v9510_v10  ;;  %v9397_v20 = vadd.f32 %v9333_v46, %v8948_v11  ;;  %v6659_v9 = vpop.f32.mrf.mxu1  ;;  %v10102_v8 = vmul.f32 %v17085_v28, %v6848_v47 }
 0x3f5   : > { %v17289_v15 = vadd.f32 %v10101_v45, %v9845_v35  ;;  %v9782_v6 = vmul.f32 %v17057_v56, %v9511_v57  ;;  %v6852_v49 = vpop.f32.mrf.mxu0  ;;  %v8887_v13 = vmul.f32 %v17229_v27, %v6659_v9  ;;  %v9708_v61 = vpop.permute.xlu1 %9707 }
 0x3f6   : > { %v6661_v36 = vpop.f32.mrf.mxu1 }
 0x3f7   : > { %v9846_v34 = vadd.f32 %v9782_v6, %v9397_v20  ;;  %v6854_v40 = vpop.f32.mrf.mxu0  ;;  %v8951_v52 = vadd.f32 %v8887_v13, %v17052_v48  ;;  %v9066_v27 = vrot.slane %v6661_v36, 1 }
 0x3f8   : > { %v6663_v2 = vpop.f32.mrf.mxu1 }
 0x3f9   : > { %v17295_v4 = vadd.f32 %v10102_v8, %v9846_v34  ;;  %v6856_v44 = vpop.f32.mrf.mxu0  ;;  %v8888_v56 = vmul.f32 %v17193_v14, %v6663_v2  ;;  %v17993_v8 = vld [vmem:[#allocation54_spill] sm:$0xff] }
 0x3fa   : > { %v6665_v11 = vpop.f32.mrf.mxu1  ;;  %v9514_v26 = vrot.slane %v6856_v44, 7 }
 0x3fb   : > { %v6858_v54 = vpop.f32.mrf.mxu0  ;;  %v8952_v39 = vadd.f32 %v8888_v56, %v17063_v33  ;;  %v9068_v28 = vrot.slane %v6665_v11, 1  ;;  %v10028_v33 = vpop.permute.xlu0 %10027 }
 0x3fc   : > { %v6669_v16 = vpop.f32.mrf.mxu1 }
 0x3fd   : > { %v6862_v17 = vpop.f32.mrf.mxu0  ;;  %v9069_v48 = vsel %vm2649_vm1, %v9066_v27, %v9068_v28 }
 0x3fe   : > { %v9516_v30 = vrot.slane %v6862_v17, 7  ;;  %v9336_v59 = vmul.f32 %v17254_v19, %v9069_v48  ;;  %v6671_v32 = vpop.f32.mrf.mxu1 }
 0x3ff   : > { %v6864_v31 = vpop.f32.mrf.mxu0  ;;  %v9070_v29 = vrot.slane %v6671_v32, 1 }
 0x400   : > { %v9517_v14 = vsel %vm1943_vm0, %v9514_v26, %v9516_v30  ;;  %v9400_v24 = vadd.f32 %v9336_v59, %v8951_v52  ;;  %v6673_v0 = vpop.f32.mrf.mxu1  ;;  %v10105_v47 = vmul.f32 %v10028_v33, %v6864_v31  ;;  %v17998_v33 = vld [vmem:[#allocation67_spill] sm:$0xff] }
 0x401   : > { %v9785_v55 = vmul.f32 %v9708_v61, %v9517_v14  ;;  %v6866_v10 = vpop.f32.mrf.mxu0  ;;  %v9071_v46 = vsel %vm2649_vm1, %v9068_v28, %v9070_v29  ;;  %v17995_v28 = vld [vmem:[#allocation63_spill] sm:$0xff]  ;;  %v17997_v14 = vld [vmem:[#allocation18_spill] sm:$0xff] }
 0x402   : > { %v9518_v35 = vrot.slane %v6866_v10, 7  ;;  %v9337_v45 = vmul.f32 %v17207_v51, %v9071_v46  ;;  %v6675_v57 = vpop.f32.mrf.mxu1  ;;  %v17994_v51 = vld [vmem:[#allocation36_spill] sm:$0xff] }
 0x403   : > { %v9849_v50 = vadd.f32 %v9785_v55, %v9400_v24  ;;  %v6868_v19 = vpop.f32.mrf.mxu0 }
 0x404   : > { %v9519_v6 = vsel %vm1943_vm0, %v9516_v30, %v9518_v35  ;;  %v9401_v49 = vadd.f32 %v9337_v45, %v8952_v39  ;;  %v6679_v13 = vpop.f32.mrf.mxu1  ;;  %v10106_v52 = vmul.f32 %v10033_v53, %v6868_v19  ;;  %v17996_v39 = vld [vmem:[#allocation13_spill] sm:$0xff]  ;;  %v17999_v19 = vld [vmem:[#allocation64_spill] sm:$0xff] }
 0x405   : > { %v17309_v20 = vadd.f32 %v10105_v47, %v9849_v50  ;;  %v9786_v9 = vmul.f32 %v17264_v21, %v9519_v6  ;;  %v6872_v34 = vpop.f32.mrf.mxu0  ;;  %v8891_v36 = vmul.f32 %v17993_v8, %v6679_v13 }
 0x406   : > { %v6681_v2 = vpop.f32.mrf.mxu1 }
 0x407   : > { %v9850_v40 = vadd.f32 %v9786_v9, %v9401_v49  ;;  %v6874_v44 = vpop.f32.mrf.mxu0  ;;  %v8955_v56 = vadd.f32 %v8891_v36, %v17994_v51  ;;  %v9074_v21 = vrot.slane %v6681_v2, 1  ;;  %v18000_v49 = vld [vmem:[#allocation74_spill] sm:$0xff] }
 0x408   : > { %v6683_v54 = vpop.f32.mrf.mxu1 }
 0x409   : > { %v17314_v11 = vadd.f32 %v10106_v52, %v9850_v40  ;;  %v6876_v27 = vpop.f32.mrf.mxu0  ;;  %v8892_v16 = vmul.f32 %v17995_v28, %v6683_v54  ;;  %v18001_v52 = vld [vmem:[#allocation57_spill] sm:$0xff]  ;;  %v18002_v28 = vld [vmem:[#allocation71_spill] sm:$0xff] }
 0x40a   : > { %v6685_v17 = vpop.f32.mrf.mxu1  ;;  %v9522_v31 = vrot.slane %v6876_v27, 7 }
 0x40b   : > { %v6878_v26 = vpop.f32.mrf.mxu0  ;;  %v8956_v48 = vadd.f32 %v8892_v16, %v17996_v39  ;;  %v9076_v30 = vrot.slane %v6685_v17, 1 }
 0x40c   : > { %v6689_v59 = vpop.f32.mrf.mxu1 }
 0x40d   : > { %v6882_v32 = vpop.f32.mrf.mxu0  ;;  %v9077_v53 = vsel %vm2649_vm1, %v9074_v21, %v9076_v30 }
 0x40e   : > { %v9524_v61 = vrot.slane %v6882_v32, 7  ;;  %v9340_v29 = vmul.f32 %v17997_v14, %v9077_v53  ;;  %v6691_v55 = vpop.f32.mrf.mxu1 }
 0x40f   : > { %v6884_v24 = vpop.f32.mrf.mxu0  ;;  %v9078_v10 = vrot.slane %v6691_v55, 1 }
 0x410   : > { %v9525_v0 = vsel %vm1943_vm0, %v9522_v31, %v9524_v61  ;;  %v9404_v35 = vadd.f32 %v9340_v29, %v8955_v56  ;;  %v6693_v45 = vpop.f32.mrf.mxu1  ;;  %v10109_v13 = vmul.f32 %v18000_v49, %v6884_v24 }
 0x411   : > { %v9789_v46 = vmul.f32 %v17998_v33, %v9525_v0  ;;  %v6886_v50 = vpop.f32.mrf.mxu0  ;;  %v9079_v47 = vsel %vm2649_vm1, %v9076_v30, %v9078_v10 }
 0x412   : > { %v9526_v57 = vrot.slane %v6886_v50, 7  ;;  %v9341_v6 = vmul.f32 %v17999_v19, %v9079_v47  ;;  %v6695_v34 = vpop.f32.mrf.mxu1 }
 0x413   : > { %v9853_v9 = vadd.f32 %v9789_v46, %v9404_v35  ;;  %v6888_v8 = vpop.f32.mrf.mxu0  ;;  %v18003_v34 = vld [vmem:[#allocation31_spill] sm:$0xff] }
 0x414   : > { %v9527_v36 = vsel %vm1943_vm0, %v9524_v61, %v9526_v57  ;;  %v9405_v44 = vadd.f32 %v9341_v6, %v8956_v48  ;;  %v6699_v51 = vpop.f32.mrf.mxu1  ;;  %v10110_v16 = vmul.f32 %v18002_v28, %v6888_v8 }
 0x415   : > { %v17326_v40 = vadd.f32 %v10109_v13, %v9853_v9  ;;  %v9790_v2 = vmul.f32 %v18001_v52, %v9527_v36  ;;  %v6892_v56 = vpop.f32.mrf.mxu0  ;;  %v8895_v54 = vmul.f32 %v17297_v22, %v6699_v51  ;;  %v18004_v36 = vld [vmem:[#allocation55_spill] sm:$0xff] }
 0x416   : > { %v17331_v17 = vpop.f32.mrf.mxu1  ;;  %v17364_v51 = vld [vmem:[%s17588_s7] ss:$0 sm:$0xff] }
 0x417   : > { %v9854_v27 = vadd.f32 %v9790_v2, %v9405_v44  ;;  %v6894_v26 = vpop.f32.mrf.mxu0  ;;  %v17334_v21 = vadd.f32 %v8895_v54, %v17233_v37 }
 0x418   : > { %v17338_v30 = vpop.f32.mrf.mxu1 }
 0x419   : > { %v17336_v39 = vadd.f32 %v10110_v16, %v9854_v27  ;;  %v17340_v59 = vpop.f32.mrf.mxu0 }
 0x41a   : > { %v17342_v48 = vpop.f32.mrf.mxu1 }
 0x41b   : > { %v6898_v32 = vpop.f32.mrf.mxu0 }
 0x41c   : > { %v6709_v31 = vpop.f32.mrf.mxu1 }
 0x41d   : > { %v17344_v22 = vpop.f32.mrf.mxu0 }
 0x41e   : > { %v17346_v53 = vpop.f32.mrf.mxu1 }
 0x41f   : > { %v17348_v61 = vpop.f32.mrf.mxu0 }
 0x420   : > { %v6713_v14 = vpop.f32.mrf.mxu1 }
 0x421   : > { %v17350_v29 = vpop.f32.mrf.mxu0 }
 0x422   : > { %v6715_v37 = vpop.f32.mrf.mxu1 }
 0x423   : > { %v17352_v55 = vpop.f32.mrf.mxu0 }
 0x424   : > { %v12366_v0 = vpop.f32.mrf.mxu1 }
 0x425   : > { %v12362_v24 = vpop.f32.mrf.mxu0  ;;  %v10250_v9 = vrot.slane %v12366_v0, 1 }
 0x426   : > { %v6961_v33 = vpop.f32.mrf.mxu1  ;;  %v10243_v45 = vrot.slane %v12362_v24, 1 }
 0x427   : > { %v17354_v10 = vpop.f32.mrf.mxu0  ;;  %v10246_v50 = vrot.slane %v6961_v33, 1 }
 0x428   : > { %v12367_v35 = vpop.f32.mrf.mxu1 }
 0x429   : > { %v12363_v46 = vpop.f32.mrf.mxu0  ;;  %v10252_v57 = vrot.slane %v12367_v35, 1 }
 0x42a   : > { %v10244_v47 = vrot.slane %v12363_v46, 1  ;;  %v6964_v6 = vpop.f32.mrf.mxu1 }
 0x42b   : > { %v6948_v19 = vpop.f32.mrf.mxu0  ;;  %v10253_v44 = vsel %vm2649_vm1, %v10250_v9, %v10252_v57  ;;  %v18006_v9 = vld [vmem:[#allocation17_spill] sm:$0xff] }
 0x42c   : > { %v10245_v49 = vsel %vm2649_vm1, %v10243_v45, %v10244_v47  ;;  %v10247_v13 = vsel %vm2649_vm1, %v10244_v47, %v10246_v50  ;;  %v12370_v2 = vpop.f32.mrf.mxu1  ;;  %v10538_v16 = vmul.f32 %v17248_v42, %v10253_v44  ;;  %v18005_v47 = vld [vmem:[#allocation58_spill] sm:$0xff] }
 0x42d   : > { %v10534_v8 = vmul.f32 %v18003_v34, %v10245_v49  ;;  %v10535_v52 = vmul.f32 %v18004_v36, %v10247_v13 }
 0x42e   : > { %v6977_v27 = vpop.f32.mrf.mxu1  ;;  %v10602_v42 = vadd.f32 %v10538_v16, %v17211_v3 }
 0x42f   : > { %v10598_v56 = vadd.f32 %v10534_v8, %v17181_v18  ;;  %v10599_v54 = vadd.f32 %v10535_v52, %v17191_v1  ;;  %v10254_v28 = vrot.slane %v6977_v27, 1  ;;  %v17376_v18 = vld [vmem:[%s17590_s9] sm:$0xff]  ;;  %v10258_v1 = vrot.slane %v12370_v2, 1  ;;  %v10437_v2 = vpop.permute.xlu1 %10436 }
 0x430   : > { %v12371_v26 = vpop.f32.mrf.mxu1 }
 0x431   : > { %v10686_v32 = vadd.f32 %v17364_v51, %v10599_v54  ;;  %v10255_v31 = vsel %vm2649_vm1, %v10252_v57, %v10254_v28  ;;  %v10260_v14 = vrot.slane %v12371_v26, 1  ;;  %v10685_v0 = vadd.f32 %v17364_v51, %v10598_v56 }
 0x432   : > { %v10539_v37 = vmul.f32 %v17214_v25, %v10255_v31  ;;  %v6980_v24 = vpop.f32.mrf.mxu1 }
 0x433   : > { %12393 = vmatpush3.msra.mxu0 %v10686_v32  ;;  %v10261_v25 = vsel %vm2649_vm1, %v10258_v1, %v10260_v14 }
 0x434   : > { %12394 = vmatprep.subr.mxu0 %v12830_v43  ;;  %v10603_v33 = vadd.f32 %v10539_v37, %v17225_v23  ;;  %v12374_v46 = vpop.f32.mrf.mxu1  ;;  %v10542_v3 = vmul.f32 %v18005_v47, %v10261_v25  ;;  %v10687_v23 = vadd.f32 %v17364_v51, %v10602_v42 }
 0x435   : > { %12395 = vmatpush3.msra.mxu0 %v10685_v0  ;;  %v10266_v34 = vrot.slane %v12374_v46, 1  ;;  %v9084_v46 = vrot.slane %v17342_v48, 1 }
 0x436   : > { %12406 = vmatprep.subr.mxu0 %v12830_v43  ;;  %12397 = vmatmul.mubr.msk.f32.vlgmr.msra.gmra.mxu0 %vm10702_vm7, %v17376_v18  ;;  %v6993_v35 = vpop.f32.mrf.mxu1  ;;  %v10688_v45 = vadd.f32 %v17364_v51, %v10603_v33  ;;  %v10606_v8 = vadd.f32 %v10542_v3, %v17243_v58  ;;  %v9748_v3 = vpop.permute.xlu0 %9747 }
 0x437   : > { %12410 = vmatprep.mubr.msk.f32.mxu0 %vm12831_vm6, %v12830_v43  ;;  %v10262_v50 = vrot.slane %v6993_v35, 1  ;;  %v9086_v35 = vrot.slane %v17346_v53, 1 }
 0x438   : > { %v12375_v57 = vpop.f32.mrf.mxu1  ;;  %12400 = vmatpush3.msra.mxu1 %v10688_v45  ;;  %v10689_v26 = vadd.f32 %v17364_v51, %v10606_v8  ;;  %v18007_v45 = vld [vmem:[#allocation82_spill] sm:$0xff] }
 0x439   : > { %v10263_v19 = vsel %vm2649_vm1, %v10260_v14, %v10262_v50  ;;  %v10268_v6 = vrot.slane %v12375_v57, 1  ;;  %12401 = vmatprep.subr.mxu1 %v12830_v43  ;;  %v17406_v14 = vpop.permute.xlu1 %9752  ;;  %v9082_v57 = vrot.slane %v17331_v17, 1  ;;  %v9087_v17 = vsel %vm2649_vm1, %v9084_v46, %v9086_v35 }
 0x43a   : > { %v10543_v49 = vmul.f32 %v18006_v9, %v10263_v19  ;;  %v6996_v13 = vpop.f32.mrf.mxu1  ;;  %12402 = vmatpush3.msra.mxu1 %v10687_v23 }
 0x43b   : > { %12413 = vmatprep.subr.mxu1 %v12830_v43  ;;  %12404 = vmatmul.mubr.msk.f32.vlgmr.msra.gmra.mxu1 %vm10702_vm7, %v17376_v18  ;;  %v10269_v44 = vsel %vm2649_vm1, %v10266_v34, %v10268_v6  ;;  %v9085_v53 = vsel %vm2649_vm1, %v9082_v57, %v9084_v46  ;;  %v9534_v34 = vrot.slane %v17350_v29, 7 }
 0x43c   : > { %v10607_v36 = vadd.f32 %v10543_v49, %v17251_v41  ;;  %v12378_v52 = vpop.f32.mrf.mxu1  ;;  %12417 = vmatprep.mubr.msk.f32.mxu1 %vm12831_vm6, %v12830_v43  ;;  %v10546_v28 = vmul.f32 %v10437_v2, %v10269_v44  ;;  %v9532_v49 = vrot.slane %v17344_v22, 7  ;;  %v8896_v22 = vmul.f32 %v17257_v12, %v17338_v30 }
 0x43d   : > { %v10274_v37 = vrot.slane %v12378_v52, 1  ;;  %v9530_v2 = vrot.slane %v17340_v59, 7 }
 0x43e   : > { %v7009_v56 = vpop.f32.mrf.mxu1  ;;  %v10690_v54 = vadd.f32 %v17364_v51, %v10607_v36  ;;  %v10610_v24 = vadd.f32 %v10546_v28, %v17267_v5  ;;  %v9345_v28 = vmul.f32 %v17281_v38, %v9087_v17  ;;  %v8960_v59 = vadd.f32 %v8896_v22, %v17204_v7 }
 0x43f   : > { %v10270_v27 = vrot.slane %v7009_v56, 1  ;;  %v9344_v56 = vmul.f32 %v17300_v60, %v9085_v53 }
 0x440   : > { %v12379_v16 = vpop.f32.mrf.mxu1  ;;  %12407 = vmatpush3.msra.mxu0 %v10690_v54  ;;  %v10691_v5 = vadd.f32 %v17364_v51, %v10610_v24 }
 0x441   : > { %v10271_v58 = vsel %vm2649_vm1, %v10268_v6, %v10270_v27  ;;  %v10276_v32 = vrot.slane %v12379_v16, 1  ;;  %12408 = vmatprep.subr.mxu0 %v12830_v43  ;;  %v18008_v6 = vld [vmem:[#allocation39_spill] sm:$0xff] }
 0x442   : > { %v10547_v41 = vmul.f32 %v17275_v62, %v10271_v58  ;;  %v7012_v31 = vpop.f32.mrf.mxu1  ;;  %12409 = vmatpush3.msra.mxu0 %v10689_v26  ;;  %v9535_v26 = vsel %vm1943_vm0, %v9532_v49, %v9534_v34 }
 0x443   : > { %12420 = vmatprep.subr.mxu0 %v12830_v43  ;;  %12411 = vmatmul.mubr.msk.f32.vlgmr.msra.gmra.mxu0 %vm10702_vm7, %v17376_v18  ;;  %v10277_v62 = vsel %vm2649_vm1, %v10274_v37, %v10276_v32  ;;  %v9408_v31 = vadd.f32 %v9344_v56, %v17334_v21  ;;  %v9794_v24 = vmul.f32 %v17406_v14, %v9535_v26  ;;  %v11267_v56 = vld [vmem:[%s17477_s14 + $0x8] sm:$0xff]  ;;  %v11268_v26 = vld [vmem:[%s17477_s14 + $0x10] sm:$0xff] }
 0x444   : > { %v10611_v0 = vadd.f32 %v10547_v41, %v17273_v63  ;;  %v12382_v1 = vpop.f32.mrf.mxu1  ;;  %12424 = vmatprep.mubr.msk.f32.mxu0 %vm12831_vm6, %v12830_v43  ;;  %v10550_v50 = vmul.f32 %v18007_v45, %v10277_v62  ;;  %v10482_v63 = vpop.permute.xlu1 %10481 }
 0x445   : > { %v10282_v13 = vrot.slane %v12382_v1, 1 }
 0x446   : > { %v7025_v42 = vpop.f32.mrf.mxu1  ;;  %v10692_v33 = vadd.f32 %v17364_v51, %v10611_v0  ;;  %v10614_v8 = vadd.f32 %v10550_v50, %v17289_v15  ;;  %v10477_v15 = vpop.permute.xlu0 %10476  ;;  %v9409_v0 = vadd.f32 %v9345_v28, %v8960_v59  ;;  %v12764_v28 = vld [vmem:[%s17591_s10 + $0x8] sm:$0xff]  }
 0x447   : > { %v10278_v25 = vrot.slane %v7025_v42, 1 }
 0x448   : > { %v12383_v47 = vpop.f32.mrf.mxu1  ;;  %12414 = vmatpush3.msra.mxu1 %v10692_v33  ;;  %v10073_v27 = vpop.permute.xlu1 %10072  ;;  %v10693_v30 = vadd.f32 %v17364_v51, %v10614_v8  ;;  %v9858_v35 = vadd.f32 %v9794_v24, %v9409_v0 }
 0x449   : > { %v10279_v23 = vsel %vm2649_vm1, %v10276_v32, %v10278_v25  ;;  %v10284_v19 = vrot.slane %v12383_v47, 1  ;;  %12415 = vmatprep.subr.mxu1 %v12830_v43  ;;  %v18009_v47 = vld [vmem:[#allocation45_spill] sm:$0xff] }
 0x44a   : > { %v10551_v48 = vmul.f32 %v18008_v6, %v10279_v23  ;;  %v7028_v9 = vpop.f32.mrf.mxu1  ;;  %12416 = vmatpush3.msra.mxu1 %v10691_v5  ;;  %v10522_v53 = vpop.permute.xlu0 %10521 }
 0x44b   : > { %12427 = vmatprep.subr.mxu1 %v12830_v43  ;;  %12418 = vmatmul.mubr.msk.f32.vlgmr.msra.gmra.mxu1 %vm10702_vm7, %v17376_v18  ;;  %v10285_v44 = vsel %vm2649_vm1, %v10282_v13, %v10284_v19 }
 0x44c   : > { %v10615_v36 = vadd.f32 %v10551_v48, %v17295_v4  ;;  %v12386_v52 = vpop.f32.mrf.mxu1  ;;  %12431 = vmatprep.mubr.msk.f32.mxu1 %vm12831_vm6, %v12830_v43  ;;  %v9533_v4 = vsel %vm1943_vm0, %v9530_v2, %v9532_v49  ;;  %v10554_v58 = vmul.f32 %v10477_v15, %v10285_v44  ;;  %v10068_v21 = vpop.permute.xlu1 %10067  ;;  %v18010_v48 = vld [vmem:[#allocation40_spill] sm:$0xff]  ;;  %v11266_v44 = vld [vmem:[%s17477_s14] sm:$0xff]  ;;  %v12759_v15 = vld [vmem:[%s17591_s10 + $0x30] sm:$0xff]  }
 0x44d   : > { %v9793_v41 = vmul.f32 %v9748_v3, %v9533_v4  ;;  %v10290_v1 = vrot.slane %v12386_v52, 1  ;;  %v10113_v50 = vmul.f32 %v10068_v21, %v17348_v61  ;;  %v10334_v3 = vrot.slane %v17354_v10, 1  ;;  %v12760_v4 = vld [vmem:[%s17591_s10 + $0x28] sm:$0xff]  }
 0x44e   : > { %v7041_v54 = vpop.f32.mrf.mxu1  ;;  %v10694_v29 = vadd.f32 %v17364_v51, %v10615_v36  ;;  %v10618_v7 = vadd.f32 %v10554_v58, %v17309_v20  ;;  %v10114_v20 = vmul.f32 %v10073_v27, %v17352_v55  ;;  %v11269_v58 = vld [vmem:[%s17477_s14 + $0x18] sm:$0xff] }
 0x44f   : > { %v10286_v16 = vrot.slane %v7041_v54, 1  ;;  %v9857_v14 = vadd.f32 %v9793_v41, %v9408_v31  ;;  %v11275_v59 = vpack.c.bf16 %v11269_v58, %v11268_v26  ;;  %v11273_v41 = vld [vmem:[%s17477_s14 + $0x38] sm:$0xff] }
 0x450   : > { %v12387_v12 = vpop.f32.mrf.mxu1  ;;  %12421 = vmatpush3.msra.mxu0 %v10694_v29  ;;  %v10517_v55 = vpop.permute.xlu1 %10516  ;;  %v10178_v49 = vadd.f32 %v10114_v20, %v9858_v35  ;;  %v12195_v20 = vld [vmem:[%s17592_s11] ss:$0 sm:$0xff] }
 0x451   : > { %v10287_v60 = vsel %vm2649_vm1, %v10284_v19, %v10286_v16  ;;  %v10292_v32 = vrot.slane %v12387_v12, 1  ;;  %12422 = vmatprep.subr.mxu0 %v12830_v43  ;;  %v10177_v6 = vadd.f32 %v10113_v50, %v9857_v14  ;;  %v12765_v16 = vld [vmem:[%s17591_s10] sm:$0xff]  }
 0x452   : > { %v10555_v37 = vmul.f32 %v10482_v63, %v10287_v60  ;;  %v7044_v38 = vpop.f32.mrf.mxu1  ;;  %12423 = vmatpush3.msra.mxu0 %v10693_v30  ;;  %v10695_v63 = vadd.f32 %v17364_v51, %v10618_v7  ;;  %v11270_v12 = vld [vmem:[%s17477_s14 + $0x20] sm:$0xff]  ;;  %v11271_v30 = vld [vmem:[%s17477_s14 + $0x28] sm:$0xff] }
 0x453   : > { %12425 = vmatmul.mubr.msk.f32.vlgmr.msra.gmra.mxu0 %vm10702_vm7, %v17376_v18  ;;  %12434 = vmatprep.subr.mxu0 %v12830_v43  ;;  %v10293_v33 = vsel %vm2649_vm1, %v10290_v1, %v10292_v32  ;;  %v11276_v60 = vpack.c.bf16 %v11271_v30, %v11270_v12 }
 0x454   : > { %v10619_v62 = vadd.f32 %v10555_v37, %v17314_v11  ;;  %v12390_v42 = vpop.f32.mrf.mxu1  ;;  %12438 = vmatprep.mubr.msk.f32.mxu0 %vm12831_vm6, %v12830_v43  ;;  %v10558_v11 = vmul.f32 %v18009_v47, %v10293_v33 }
 0x455   : > { %v10298_v57 = vrot.slane %v12390_v42, 1 }
 0x456   : > { %v7057_v46 = vpop.f32.mrf.mxu1  ;;  %v10696_v25 = vadd.f32 %v17364_v51, %v10619_v62  ;;  %v10622_v10 = vadd.f32 %v10558_v11, %v17326_v40  ;;  %v12758_v40 = vld [vmem:[%s17591_s10 + $0x38] sm:$0xff]  }
 0x457   : > { %v10294_v45 = vrot.slane %v7057_v46, 1 }
 0x458   : > { %v12391_v5 = vpop.f32.mrf.mxu1  ;;  %12428 = vmatpush3.msra.mxu1 %v10696_v25  ;;  %v10697_v54 = vadd.f32 %v17364_v51, %v10622_v10 }
 0x459   : > { %v10295_v23 = vsel %vm2649_vm1, %v10292_v32, %v10294_v45  ;;  %v10300_v19 = vrot.slane %v12391_v5, 1  ;;  %12429 = vmatprep.subr.mxu1 %v12830_v43  ;;  %v11272_v32 = vld [vmem:[%s17477_s14 + $0x30] sm:$0xff]  ;;  %s419_s14 = sand.u32 1, %s12819_s22  }
 0x45a   : > { %v10559_v61 = vmul.f32 %v18010_v48, %v10295_v23  ;;  %v7060_v9 = vpop.f32.mrf.mxu1  ;;  %12430 = vmatpush3.msra.mxu1 %v10695_v63  ;;  %v11277_v31 = vpack.c.bf16 %v11273_v41, %v11272_v32  ;;  %s11522_s20 = sshll.u32 %s419_s14, 6  ;;  %s17541_s25 = scalar_lea.sflag [#allocation5], %s419_s14 }
 0x45b   : > { %v10301_v13 = vsel %vm2649_vm1, %v10298_v57, %v10300_v19  ;;  %v10341_v17 = vsel %vm2649_vm1, %v10300_v19, %v10334_v3  ;;  %12441 = vmatprep.subr.mxu1 %v12830_v43  ;;  %12432 = vmatmul.mubr.msk.f32.vlgmr.msra.gmra.mxu1 %vm10702_vm7, %v17376_v18  ;;  %s421_s18 = scalar_lea.vmem [#allocation4], %s11522_s20 }
 0x45c   : > { %v10623_v34 = vadd.f32 %v10559_v61, %v17336_v39  ;;  %v10562_v8 = vmul.f32 %v10517_v55, %v10301_v13  ;;  %v10563_v36 = vmul.f32 %v10522_v53, %v10341_v17  ;;  %12445 = vmatprep.mubr.msk.f32.mxu1 %vm12831_vm6, %v12830_v43  ;;  %v11274_v39 = vpack.c.bf16 %v11267_v56, %v11266_v44  ;;  %s11444_s26 = sshll.u32 %s421_s18, 4  ;;  %s17537_s26 = int_to_ptr.vmem [resolvable:$true] %s11444_s26 }
 0x45d   : > { %s12767_s29 = scalar_lea.vmem %s17537_s26, 1024  ;;  %p12774_p0 = scmp.lt.s32.totalorder %s17537_s26, %s12772_s15 }
 0x45e   : > { %v10626_v52 = vadd.f32 %v10562_v8, %v10177_v6  ;;  %v10627_v22 = vadd.f32 %v10563_v36, %v10178_v49  ;;  %v10698_v2 = vadd.f32 %v17364_v51, %v10623_v34  ;;  %p12768_p11 = scmp.ne.s32.totalorder %s17537_s26, %s12767_s29  ;;  %p12775_p1 = scmp.lt.s32.totalorder %s12773_s16, %s12767_s29 }
 0x460   : > { %12435 = vmatpush3.msra.mxu0 %v10698_v2  ;;  %v10700_v29 = vadd.f32 %v17364_v51, %v10627_v22  ;;  %v10699_v27 = vadd.f32 %v17364_v51, %v10626_v52  ;;  %v12762_v51 = vld [vmem:[%s17591_s10 + $0x18] sm:$0xff]   ;;  %p12769_p12 = pnand %p12768_p11, %p12938_p5  ;;  %p12776_p2 = por %p12775_p1, %p12774_p0 }
 0x461   : > { %12436 = vmatprep.subr.mxu0 %v12830_v43 }
 0x462   : > { %12437 = vmatpush3.msra.mxu0 %v10697_v54  ;;  %12442 = vmatpush3.msra.mxu1 %v10700_v29  ;;  %p12770_p13 = pneg %p12769_p12 }
 0x463   : > { %12439 = vmatmul.mubr.msk.f32.vlgmr.msra.gmra.mxu0 %vm10702_vm7, %v17376_v18  ;;  %12443 = vmatprep.subr.mxu1 %v12830_v43  ;;  %v12761_v43 = vld [vmem:[%s17591_s10 + $0x20] sm:$0xff]  }
 0x464   : > { %12448 = vmatprep.subr.bf16.mxu0 %v12758_v40  ;;  %12444 = vmatpush3.msra.mxu1 %v10699_v27  ;;  %p12777_p3 = pnand %p12776_p2, %p12770_p13 }
 0x465   : > { %12449 = vmatpush3.bf16.msra.mxu0 %v12758_v40  ;;  %12464 = vmatprep.mubr.bf16.mxu0 %v11274_v39 }
 0x466   : > { %12450 = vmatprep.subr.bf16.mxu0 %v12759_v15  ;;  %12446 = vmatmul.mubr.msk.f32.vlgmr.msra.gmra.mxu1 %vm10702_vm7, %v17376_v18  ;;  %v12763_v18 = vld [vmem:[%s17591_s10 + $0x10] sm:$0xff]  }
 0x469   : > { %12451 = vmatpush3.bf16.msra.mxu0 %v12759_v15 }
 0x46a   : > { %12452 = vmatprep.subr.bf16.mxu0 %v12760_v4 }
 0x46d   : > { %12453 = vmatpush3.bf16.msra.mxu0 %v12760_v4 }
 0x46e   : > { %12454 = vmatprep.subr.bf16.mxu0 %v12761_v43 }
 0x471   : > { %12455 = vmatpush3.bf16.msra.mxu0 %v12761_v43 }
 0x472   : > { %12456 = vmatprep.subr.bf16.mxu0 %v12762_v51 }
 0x475   : > { %12457 = vmatpush3.bf16.msra.mxu0 %v12762_v51 }
 0x476   : > { %12458 = vmatprep.subr.bf16.mxu0 %v12763_v18 }
 0x479   : > { %12459 = vmatpush3.bf16.msra.mxu0 %v12763_v18 }
 0x47a   : > { %12460 = vmatprep.subr.bf16.mxu0 %v12764_v28 }
 0x47d   : > { %12461 = vmatpush3.bf16.msra.mxu0 %v12764_v28 }
 0x47e   : > { %12462 = vmatprep.subr.bf16.mxu0 %v12765_v16 }
 0x481   : > { %12463 = vmatpush3.bf16.msra.mxu0 %v12765_v16 }
 0x484   : > { %12465 = vmatmul.mubr.bf16.vlgmr.msra.gmra.mxu0 %v11275_v59 }
 0x485   : > { %12468 = vmatprep.mubr.bf16.mxu0 %v11276_v60 }
 0x48c   : > { %12469 = vmatmul.mubr.bf16.gmra.mxu0 %v11277_v31 }
 0x4f6   : > { %v10772_v37 = vpop.f32.mrf.mxu0 }
 0x4f8   : > { %v12398_v38 = vpop.f32.mrf.mxu0 }
 0x4fb   : > { %v10842_v24 = vpop.f32.mrf.mxu1 }
 0x4fd   : > { %v12405_v0 = vpop.f32.mrf.mxu1 }
 0x503   : > { %v10912_v1 = vpop.f32.mrf.mxu0 }
 0x505   : > { %v12412_v7 = vpop.f32.mrf.mxu0 }
 0x50b   : > { %v10982_v62 = vpop.f32.mrf.mxu1 }
 0x50d   : > { %v12419_v42 = vpop.f32.mrf.mxu1 }
 0x513   : > { %v11052_v21 = vpop.f32.mrf.mxu0 }
 0x515   : > { %v12426_v33 = vpop.f32.mrf.mxu0 }
 0x51b   : > { %v11122_v14 = vpop.f32.mrf.mxu1 }
 0x51d   : > { %v12433_v46 = vpop.f32.mrf.mxu1 }
 0x523   : > { %v11192_v25 = vpop.f32.mrf.mxu0 }
 0x525   : > { %v12440_v35 = vpop.f32.mrf.mxu0 }
 0x526   : > { %v11262_v45 = vpop.f32.mrf.mxu1 }
 0x528   : > { %v12447_v50 = vpop.f32.mrf.mxu1 }
 0x544   : > { %v12466_v47 = vpop.f32.mrf.mxu0 }
 0x545   : > { %v11392_v11 = vadd.f32 %v12466_v47, %v12195_v20 }
 0x546   : > { %v11383_v5 = vpop.f32.mrf.mxu0 }
 0x547   : > { %v11416_v63 = vadd.f32 %v11392_v11, %v10912_v1  ;;  %v11384_v3 = vadd.f32 %v12195_v20, %v11383_v5 }
 0x548   : > { %v12467_v57 = vpop.f32.mrf.mxu0 }
 0x549   : > { %11424 = vst [vmem:[%s421_s18 + $0x10] sm:$0xff] %v11416_v63  ;;  %v11414_v23 = vadd.f32 %v11384_v3, %v10772_v37  ;;  %v11395_v19 = vadd.f32 %v12467_v57, %v12195_v20 }
 0x54a   : > { %v11386_v6 = vpop.f32.mrf.mxu0 }
 0x54b   : > { %11422 = vst [vmem:[%s421_s18] sm:$0xff] %v11414_v23  ;;  %v11417_v48 = vadd.f32 %v11395_v19, %v10982_v62  ;;  %v11387_v61 = vadd.f32 %v12195_v20, %v11386_v6 }
 0x54c   : > { %v12470_v9 = vpop.f32.mrf.mxu0 }
 0x54d   : > { %11425 = vst [vmem:[%s421_s18 + $0x18] sm:$0xff] %v11417_v48  ;;  %v11415_v55 = vadd.f32 %v11387_v61, %v10842_v24  ;;  %v11408_v53 = vadd.f32 %v12470_v9, %v12195_v20 }
 0x54e   : > { %v11399_v49 = vpop.f32.mrf.mxu0 }
 0x54f   : > { %11423 = vst [vmem:[%s421_s18 + $0x8] sm:$0xff] %v11415_v55  ;;  %v11420_v13 = vadd.f32 %v11408_v53, %v11192_v25  ;;  %v11400_v17 = vadd.f32 %v12195_v20, %v11399_v49 }
 0x550   : > { %v12471_v10 = vpop.f32.mrf.mxu0 }
 0x551   : > { %11428 = vst [vmem:[%s421_s18 + $0x30] sm:$0xff] %v11420_v13  ;;  %v11418_v34 = vadd.f32 %v11400_v17, %v11052_v21  ;;  %v11411_v8 = vadd.f32 %v12471_v10, %v12195_v20 }
 0x552   : > { %v11402_v36 = vpop.f32.mrf.mxu0 }
 0x553   : > { %11426 = vst [vmem:[%s421_s18 + $0x20] sm:$0xff] %v11418_v34  ;;  %v11421_v52 = vadd.f32 %v11411_v8, %v11262_v45  ;;  %v11403_v22 = vadd.f32 %v12195_v20, %v11402_v36 }
 0x555   : > { %11429 = vst [vmem:[%s421_s18 + $0x38] sm:$0xff] %v11421_v52  ;;  %v11419_v2 = vadd.f32 %v11403_v22, %v11122_v14 }
 0x557   : > { %11427 = vst [vmem:[%s421_s18 + $0x28] sm:$0xff] %v11419_v2 }
 0x558   : > { %12780 = shalt.err (!%p12777_p3)
}
 0x559   : > { %s12781_s14 = scalar_lea.hbm %s17535_s23, 1024  ;;  %s12785_s18 = scalar_lea.hbm %s17593_s12, 2048 }
 0x55a   : > { %p12782_p4 = scmp.ne.s32.totalorder %s17535_s23, %s12781_s14  ;;  %p12786_p9 = scmp.lt.s32.totalorder %s17535_s23, %s17593_s12 }
 0x55b   : > { %p12787_p10 = scmp.lt.s32.totalorder %s12785_s18, %s12781_s14 }
 0x55c   : > { %p12783_p7 = pnand %p12782_p4, %p12938_p5 }
 0x55d   : > { %p12788_p11 = por %p12787_p10, %p12786_p9 }
 0x55e   : > { %p12784_p8 = pneg %p12783_p7 }
 0x560   : > { %p12789_p12 = pnand %p12788_p11, %p12784_p8 }
 0x562   : > { %12792 = shalt.err (!%p12789_p12)
}
 0x563   : > { %s12833_s28 = smov 128   ;;  %s12834_s29 = smov 8  }
 0x564   : > { %12504 = dma.vmem_to_hbm [thread:$0]  (%p12938_p5), %s17537_s26, 1024, %s17535_s23, %s17541_s25, %s12833_s28, %s12833_s28, %s12834_s29  }
 0x565 PF: > { %p12510_p13 = scmp.ge.s32.totalorder %s12827_s24, 2  ;;  %s11459_s15 = sand.u32 1, %s12815_s21  }
 0x566   : > { %s11460_s16 = scalar_lea.sflag [#allocation5], %s11459_s15 }
 0x567   : > { %p12507_p0 = pnand %p12510_p13, %p12942_p6 }
 0x569   : > { %p12508_p1 = pneg %p12507_p0 }
 0x56b   : > { %12810 = dma.done.wait (%p12508_p1), %s11460_s16, 1024  }
 0x56c   : > { %12812 = vsyncadd (%p12508_p1), %s11460_s16, 4294966272  ;;  %s18012_s24 = sld [smem:[#allocation8_spill]]  ;;  %s18015_s21 = smov %s12819_s22 }
 0x56d   : > { %s18013_s14 = sld [smem:[#allocation7_spill]] }
 0x56e   : > { %s18014_s23 = sld [smem:[#allocation9_spill]] }
 0x572   : > { %p22_p2 = scmp.ge.s32.totalorder %s18012_s24, 4  }
 0x573   : > { %s18016_s22 = smov %s18013_s14 }
 0x574   :  { %24 = sbr.rel (!%p22_p2) target bundleno = 3 (0x3), region = 114 }
 0x579   :  { %11465 = vsyncpa [#allocation5], 1 }
 0x57a   :  { %11467 = vsyncpa [#allocation5 + $0x1], 1 }

</bundles_post_ra>
